<compile_context>
chip_gen: v5e
topology: v5e:2x2
jax: 0.10.0
libtpu: 0.0.40
codegen_flags: <defaults>
</compile_context>

<pallas_src>
import functools
import jax
import jax.numpy as jnp
from jax.experimental import pallas as pl
from jax.experimental.pallas import tpu as pltpu


def _round_up(x, m):
    return (x + m - 1) // m * m


# ---------------------------------------------------------------------------
# Pallas matmul: act((M,K)@(K,N) + bias), bf16 operands, f32 accumulation
# ---------------------------------------------------------------------------
def _matmul_kernel(a_ref, b_ref, bias_ref, o_ref, *, act):
    @pl.when(pl.program_id(2) == 0)
    def _():
        o_ref[...] = jnp.broadcast_to(bias_ref[...], o_ref.shape)

    o_ref[...] += jnp.dot(a_ref[...], b_ref[...],
                          preferred_element_type=jnp.float32)

    if act is not None:
        @pl.when(pl.program_id(2) == pl.num_programs(2) - 1)
        def _():
            if act == "tanh":
                o_ref[...] = jnp.tanh(o_ref[...])
            elif act == "relu":
                o_ref[...] = jnp.maximum(o_ref[...], 0.0)


def _pick_tiles(M, K, N):
    tn = min(_round_up(N, 128), 512)
    tk = min(_round_up(K, 128), 2048)          # one K grid step for all layers here
    Mp = _round_up(M, 128)
    if Mp >= 1024:
        tm = 512                               # >=2 parallel M blocks on big layers
    elif Mp >= 256:
        tm = Mp // 2                           # 2 blocks (multiple of 64/128)
    else:
        tm = Mp
    return tm, tk, tn


def matmul_bias(a, b, bias, act=None):
    """act((M,K) @ (K,N) + bias[N]) -> (M,N) float32."""
    M, K = a.shape
    K2, N = b.shape
    assert K == K2
    tm, tk, tn = _pick_tiles(M, K, N)
    Mp, Kp, Np = _round_up(M, tm), _round_up(K, tk), _round_up(N, tn)
    a_p = jnp.pad(a.astype(jnp.bfloat16), ((0, Mp - M), (0, Kp - K)))
    b_p = jnp.pad(b.astype(jnp.bfloat16), ((0, Kp - K), (0, Np - N)))
    bias_p = jnp.pad(bias.astype(jnp.float32), (0, Np - N)).reshape(1, Np)

    out = pl.pallas_call(
        functools.partial(_matmul_kernel, act=act),
        out_shape=jax.ShapeDtypeStruct((Mp, Np), jnp.float32),
        grid_spec=pltpu.PrefetchScalarGridSpec(
            num_scalar_prefetch=0,
            grid=(Mp // tm, Np // tn, Kp // tk),
            in_specs=[
                pl.BlockSpec((tm, tk), lambda i, j, k: (i, k)),
                pl.BlockSpec((tk, tn), lambda i, j, k: (k, j)),
                pl.BlockSpec((1, tn), lambda i, j, k: (0, j)),
            ],
            out_specs=pl.BlockSpec((tm, tn), lambda i, j, k: (i, j)),
        ),
        compiler_params=pltpu.CompilerParams(
            dimension_semantics=("parallel", "parallel", "arbitrary"),
            vmem_limit_bytes=32 * 1024 * 1024),
    )(a_p, b_p, bias_p)
    return out[:M, :N]


# ---------------------------------------------------------------------------
# Pallas elementwise: act(x * scale + shift), scale/shift broadcast over rows
# ---------------------------------------------------------------------------
def _affine_act_kernel(x_ref, scale_ref, shift_ref, o_ref, *, act):
    y = x_ref[...] * scale_ref[...] + shift_ref[...]
    if act == "relu":
        y = jnp.maximum(y, 0.0)
    elif act == "tanh":
        y = jnp.tanh(y)
    o_ref[...] = y


def affine_act(x, scale, shift, act):
    M, C = x.shape
    Cp = _round_up(C, 128)
    tm = min(1024, _round_up(M, 128))
    Mp = _round_up(M, tm)
    x_p = jnp.pad(x.astype(jnp.float32), ((0, Mp - M), (0, Cp - C)))
    scale_p = jnp.pad(scale.astype(jnp.float32), (0, Cp - C)).reshape(1, Cp)
    shift_p = jnp.pad(shift.astype(jnp.float32), (0, Cp - C)).reshape(1, Cp)

    out = pl.pallas_call(
        functools.partial(_affine_act_kernel, act=act),
        out_shape=jax.ShapeDtypeStruct((Mp, Cp), jnp.float32),
        grid_spec=pltpu.PrefetchScalarGridSpec(
            num_scalar_prefetch=0,
            grid=(Mp // tm,),
            in_specs=[
                pl.BlockSpec((tm, Cp), lambda i: (i, 0)),
                pl.BlockSpec((1, Cp), lambda i: (0, 0)),
                pl.BlockSpec((1, Cp), lambda i: (0, 0)),
            ],
            out_specs=pl.BlockSpec((tm, Cp), lambda i: (i, 0)),
        ),
        compiler_params=pltpu.CompilerParams(
            dimension_semantics=("parallel",),
            vmem_limit_bytes=32 * 1024 * 1024),
    )(x_p, scale_p, shift_p)
    return out[:M, :C]


# ---------------------------------------------------------------------------
# ConvTranspose2d(k=4, s=2, p=1) as a sub-pixel 3x3 conv + pixel shuffle
# ---------------------------------------------------------------------------
# For out row oy = 2*i + py, contributions come only from input rows h and
# kernel rows kr with oy = 2*h - 1 + kr:
#   py=0: (h=i-1, kr=3), (h=i,   kr=1)
#   py=1: (h=i,   kr=2), (h=i+1, kr=0)
# i.e. a 3x3 input window around (i, j) per 2x2 output phase.
_PHASE_MAP = [(0, 0, 3), (0, 1, 1), (1, 1, 2), (1, 2, 0)]  # (phase, win_off, k_idx)


def _subpixel_weight(weight):
    """(Cin, Cout, 4, 4) -> (9*Cin, 4*Cout) matrix for the equivalent 3x3 conv
    whose output columns are ordered (phase_y, phase_x, Cout)."""
    Cin, Cout = weight.shape[0], weight.shape[1]
    B = jnp.zeros((3, 3, Cin, 2, 2, Cout), weight.dtype)
    for (py, dy, kr) in _PHASE_MAP:
        for (px, dx, kc) in _PHASE_MAP:
            B = B.at[dy, dx, :, py, px, :].set(weight[:, :, kr, kc])
    return B.reshape(9 * Cin, 4 * Cout)


def _im2col_3x3(x):
    """x: (N,H,W,C) -> (N*H*W, 9*C) patches of the 1-padded input, (dy,dx,c)."""
    N, H, W, C = x.shape
    xp = jnp.pad(x, ((0, 0), (1, 1), (1, 1), (0, 0)))
    cols = [xp[:, dy:dy + H, dx:dx + W, :] for dy in range(3) for dx in range(3)]
    patches = jnp.stack(cols, axis=3)                  # (N,H,W,9,C)
    return patches.reshape(N * H * W, 9 * C)


def _pixel_shuffle(y2d, N, H, W, Cout):
    """(N*H*W, 4*Cout) with (py,px,co) columns -> (N, 2H, 2W, Cout)."""
    y = y2d.reshape(N, H, W, 2, 2, Cout)
    y = jnp.transpose(y, (0, 1, 3, 2, 4, 5))
    return y.reshape(N, 2 * H, 2 * W, Cout)


# ---------------------------------------------------------------------------
# Generator forward
# ---------------------------------------------------------------------------
def generator_forward(x_nchw, params):
    x = jnp.transpose(x_nchw, (0, 2, 3, 1)).astype(jnp.float32)   # -> NHWC
    N = x.shape[0]

    # ---- layer 0: ConvTranspose2d(k=4, s=1, p=0) on a 1x1 input -> 4x4 ------
    w0 = params["w0"]                                   # (Cin, C0, 4, 4)
    Cin0, C0 = w0.shape[0], w0.shape[1]
    a0 = x.reshape(N, Cin0)
    b0 = jnp.transpose(w0, (0, 2, 3, 1)).reshape(Cin0, 16 * C0)   # (ci)->(oy,ox,co)
    # conv bias omitted: BatchNorm's mean subtraction cancels it exactly.
    y0 = matmul_bias(a0, b0, jnp.zeros((16 * C0,), jnp.float32))
    y0 = y0.reshape(N * 16, C0)                         # rows = (n, oy, ox)
    mean = jnp.mean(y0, axis=0)
    var = jnp.var(y0, axis=0)                           # biased, as PyTorch BN
    scale = params["gamma0"] * jax.lax.rsqrt(var + 1e-5)
    shift = params["beta0"] - mean * scale
    y0 = affine_act(y0, scale, shift, "relu")
    x = y0.reshape(N, 4, 4, C0)

    # ---- layers 1..4: ConvTranspose2d(k=4, s=2, p=1) via sub-pixel 3x3 conv --
    for li in range(1, 5):
        _, H, W, _ = x.shape
        w = params[f"w{li}"]
        Cout = w.shape[1]
        patches = _im2col_3x3(x.astype(jnp.bfloat16))   # (N*H*W, 9*Cin)
        wmat = _subpixel_weight(w)                      # (9*Cin, 4*Cout)
        M = N * H * W
        if li < 4:
            y = matmul_bias(patches, wmat, jnp.zeros((4 * Cout,), jnp.float32))
            # training-mode BatchNorm2d: stats over batch + all output positions
            y3 = y.reshape(M, 4, Cout)
            mean = jnp.mean(y3, axis=(0, 1))
            var = jnp.var(y3, axis=(0, 1))
            scale = params[f"gamma{li}"] * jax.lax.rsqrt(var + 1e-5)
            shift = params[f"beta{li}"] - mean * scale
            y = affine_act(y, jnp.tile(scale, 4), jnp.tile(shift, 4), "relu")
        else:
            # last layer: bias + tanh fused into the matmul epilogue
            y = matmul_bias(patches, wmat, jnp.tile(params[f"b{li}"], 4),
                            act="tanh")
        x = _pixel_shuffle(y, N, H, W, Cout)

    return jnp.transpose(x, (0, 3, 1, 2))               # back to NCHW


def init_params(key, z_dim=8, noise_dim=16, channels_img=3):
    dims = [noise_dim, z_dim * 16, z_dim * 8, z_dim * 4, z_dim * 2, channels_img]
    params = {}
    for li in range(5):
        cin, cout = dims[li], dims[li + 1]
        key, k1, k2, k3, k4 = jax.random.split(key, 5)
        fan = cin * 4 * 4
        params[f"w{li}"] = jax.random.normal(
            k1, (cin, cout, 4, 4), jnp.float32) / jnp.sqrt(jnp.float32(fan))
        params[f"b{li}"] = 0.01 * jax.random.normal(k2, (cout,), jnp.float32)
        if li < 4:
            params[f"gamma{li}"] = 1.0 + 0.1 * jax.random.normal(k3, (cout,), jnp.float32)
            params[f"beta{li}"] = 0.1 * jax.random.normal(k4, (cout,), jnp.float32)
    return params


if __name__ == "__main__":
    # Small shapes consistent with the module: z_dim=8, noise_dim=16, batch=2.
    key = jax.random.PRNGKey(0)
    kp, kx = jax.random.split(key)
    params = init_params(kp, z_dim=8, noise_dim=16, channels_img=3)
    x = jax.random.normal(kx, (2, 16, 1, 1), jnp.float32)  # (N, noise_dim, 1, 1)

    out = jax.jit(generator_forward)(x, params)
    jax.block_until_ready(out)

    assert out.shape == (2, 3, 64, 64), out.shape
    assert bool(jnp.all(jnp.isfinite(out)))
    assert bool(jnp.all(jnp.abs(out) <= 1.0 + 1e-6))  # tanh range
    print("KERNEL_OK")
</pallas_src>

<mosaic_0001>
module attributes {stable_mosaic.version = 11 : i64} {
  func.func @_matmul_kernel(%arg0: i32, %arg1: i32, %arg2: i32, %arg3: memref<128x128xbf16, #tpu.memory_space<vmem>>, %arg4: memref<128x512xbf16, #tpu.memory_space<vmem>>, %arg5: memref<1x512xf32, #tpu.memory_space<vmem>>, %arg6: memref<128x512xf32, #tpu.memory_space<vmem>>) attributes {dimension_semantics = [#tpu.dimension_semantics<parallel>, #tpu.dimension_semantics<parallel>, #tpu.dimension_semantics<arbitrary>], iteration_bounds = array<i64: 1, 4, 1>, scalar_prefetch = 0 : i64, scratch_operands = 0 : i64, tpu.core_type = #tpu.core_type<tc>, window_params = [{transform_indices = @transform_0, window_bounds = array<i64: 128, 128>}, {transform_indices = @transform_1, window_bounds = array<i64: 128, 512>}, {transform_indices = @transform_2, window_bounds = array<i64: 1, 512>}, {transform_indices = @transform_3, window_bounds = array<i64: 128, 512>}]} {
    %c0_i32 = arith.constant 0 : i32
    %0 = arith.cmpi eq, %arg2, %c0_i32 : i32
    %1 = arith.extui %0 : i1 to i32
    %c0_i32_0 = arith.constant 0 : i32
    %2 = arith.cmpi ne, %1, %c0_i32_0 : i32
    scf.if %2 {
      %c0_8 = arith.constant 0 : index
      %c0_9 = arith.constant 0 : index
      %9 = vector.load %arg5[%c0_8, %c0_9] : memref<1x512xf32, #tpu.memory_space<vmem>>, vector<1x512xf32>
      %10 = vector.shape_cast %9 : vector<1x512xf32> to vector<1x512xf32>
      %11 = vector.broadcast %10 : vector<1x512xf32> to vector<128x512xf32>
      %c0_10 = arith.constant 0 : index
      %c0_11 = arith.constant 0 : index
      %12 = vector.load %arg6[%c0_10, %c0_11] : memref<128x512xf32, #tpu.memory_space<vmem>>, vector<128x512xf32>
      tpu.vector_store %arg6[%c0_10, %c0_11], %11 {strides = array<i32>} : memref<128x512xf32, #tpu.memory_space<vmem>>, vector<128x512xf32>,
    } else {
    }
    %c0 = arith.constant 0 : index
    %c0_1 = arith.constant 0 : index
    %3 = vector.load %arg6[%c0, %c0_1] : memref<128x512xf32, #tpu.memory_space<vmem>>, vector<128x512xf32>
    %c0_2 = arith.constant 0 : index
    %c0_3 = arith.constant 0 : index
    %4 = vector.load %arg3[%c0_2, %c0_3] : memref<128x128xbf16, #tpu.memory_space<vmem>>, vector<128x128xbf16>
    %c0_4 = arith.constant 0 : index
    %c0_5 = arith.constant 0 : index
    %5 = vector.load %arg4[%c0_4, %c0_5] : memref<128x512xbf16, #tpu.memory_space<vmem>>, vector<128x512xbf16>
    %cst = arith.constant dense<0.000000e+00> : vector<128x512xf32>
    %6 = tpu.matmul %4, %5, %cst {dimension_numbers = #tpu.dot_dimension_numbers<[1], [0], [0], [1], [0, 0, 1, 1], [], []>} : vector<128x128xbf16>, vector<128x512xbf16>, vector<128x512xf32> -> vector<128x512xf32>
    %7 = arith.addf %3, %6 : vector<128x512xf32>
    %c0_6 = arith.constant 0 : index
    %c0_7 = arith.constant 0 : index
    %8 = vector.load %arg6[%c0_6, %c0_7] : memref<128x512xf32, #tpu.memory_space<vmem>>, vector<128x512xf32>
    tpu.vector_store %arg6[%c0_6, %c0_7], %7 {strides = array<i32>} : memref<128x512xf32, #tpu.memory_space<vmem>>, vector<128x512xf32>,
    return
  }
  func.func @transform_0(%arg0: i32, %arg1: i32, %arg2: i32) -> (i32, i32) {
    %c0_i32 = arith.constant 0 : i32
    return %arg0, %arg2 : i32, i32
  }
  func.func @transform_1(%arg0: i32, %arg1: i32, %arg2: i32) -> (i32, i32) {
    %c0_i32 = arith.constant 0 : i32
    return %arg2, %arg1 : i32, i32
  }
  func.func @transform_2(%arg0: i32, %arg1: i32, %arg2: i32) -> (i32, i32) {
    %c0_i32 = arith.constant 0 : i32
    %c0_i32_0 = arith.constant 0 : i32
    return %c0_i32, %arg1 : i32, i32
  }
  func.func @transform_3(%arg0: i32, %arg1: i32, %arg2: i32) -> (i32, i32) {
    %c0_i32 = arith.constant 0 : i32
    return %arg0, %arg1 : i32, i32
  }
}

module attributes {stable_mosaic.version = 11 : i64} {
  func.func @_affine_act_kernel(%arg0: i32, %arg1: memref<128x128xf32, #tpu.memory_space<vmem>>, %arg2: memref<1x128xf32, #tpu.memory_space<vmem>>, %arg3: memref<1x128xf32, #tpu.memory_space<vmem>>, %arg4: memref<128x128xf32, #tpu.memory_space<vmem>>) attributes {dimension_semantics = [#tpu.dimension_semantics<parallel>], iteration_bounds = array<i64: 1>, scalar_prefetch = 0 : i64, scratch_operands = 0 : i64, tpu.core_type = #tpu.core_type<tc>, window_params = [{transform_indices = @transform_0, window_bounds = array<i64: 128, 128>}, {pipeline_mode = #tpu.pipeline_mode<synchronous>, transform_indices = @transform_1, window_bounds = array<i64: 1, 128>}, {pipeline_mode = #tpu.pipeline_mode<synchronous>, transform_indices = @transform_2, window_bounds = array<i64: 1, 128>}, {transform_indices = @transform_3, window_bounds = array<i64: 128, 128>}]} {
    %c0 = arith.constant 0 : index
    %c0_0 = arith.constant 0 : index
    %0 = vector.load %arg1[%c0, %c0_0] : memref<128x128xf32, #tpu.memory_space<vmem>>, vector<128x128xf32>
    %c0_1 = arith.constant 0 : index
    %c0_2 = arith.constant 0 : index
    %1 = vector.load %arg2[%c0_1, %c0_2] : memref<1x128xf32, #tpu.memory_space<vmem>>, vector<1x128xf32>
    %2 = vector.broadcast %1 : vector<1x128xf32> to vector<128x128xf32>
    %3 = arith.mulf %0, %2 : vector<128x128xf32>
    %c0_3 = arith.constant 0 : index
    %c0_4 = arith.constant 0 : index
    %4 = vector.load %arg3[%c0_3, %c0_4] : memref<1x128xf32, #tpu.memory_space<vmem>>, vector<1x128xf32>
    %5 = vector.broadcast %4 : vector<1x128xf32> to vector<128x128xf32>
    %6 = arith.addf %3, %5 : vector<128x128xf32>
    %cst = arith.constant 0.000000e+00 : f32
    %7 = vector.broadcast %cst : f32 to vector<128x128xf32>
    %8 = arith.maximumf %6, %7 : vector<128x128xf32>
    %c0_5 = arith.constant 0 : index
    %c0_6 = arith.constant 0 : index
    %9 = vector.load %arg4[%c0_5, %c0_6] : memref<128x128xf32, #tpu.memory_space<vmem>>, vector<128x128xf32>
    tpu.vector_store %arg4[%c0_5, %c0_6], %8 {strides = array<i32>} : memref<128x128xf32, #tpu.memory_space<vmem>>, vector<128x128xf32>,
    return
  }
  func.func @transform_0(%arg0: i32) -> (i32, i32) {
    %c0_i32 = arith.constant 0 : i32
    %c0_i32_0 = arith.constant 0 : i32
    return %arg0, %c0_i32 : i32, i32
  }
  func.func @transform_1(%arg0: i32) -> (i32, i32) {
    %c0_i32 = arith.constant 0 : i32
    %c0_i32_0 = arith.constant 0 : i32
    %c0_i32_1 = arith.constant 0 : i32
    return %c0_i32, %c0_i32_0 : i32, i32
  }
  func.func @transform_2(%arg0: i32) -> (i32, i32) {
    %c0_i32 = arith.constant 0 : i32
    %c0_i32_0 = arith.constant 0 : i32
    %c0_i32_1 = arith.constant 0 : i32
    return %c0_i32, %c0_i32_0 : i32, i32
  }
  func.func @transform_3(%arg0: i32) -> (i32, i32) {
    %c0_i32 = arith.constant 0 : i32
    %c0_i32_0 = arith.constant 0 : i32
    return %arg0, %c0_i32 : i32, i32
  }
}

module attributes {stable_mosaic.version = 11 : i64} {
  func.func @_matmul_kernel(%arg0: i32, %arg1: i32, %arg2: i32, %arg3: memref<128x1152xbf16, #tpu.memory_space<vmem>>, %arg4: memref<1152x256xbf16, #tpu.memory_space<vmem>>, %arg5: memref<1x256xf32, #tpu.memory_space<vmem>>, %arg6: memref<128x256xf32, #tpu.memory_space<vmem>>) attributes {dimension_semantics = [#tpu.dimension_semantics<parallel>, #tpu.dimension_semantics<parallel>, #tpu.dimension_semantics<arbitrary>], iteration_bounds = array<i64: 1, 1, 1>, scalar_prefetch = 0 : i64, scratch_operands = 0 : i64, tpu.core_type = #tpu.core_type<tc>, window_params = [{transform_indices = @transform_0, window_bounds = array<i64: 128, 1152>}, {transform_indices = @transform_1, window_bounds = array<i64: 1152, 256>}, {transform_indices = @transform_2, window_bounds = array<i64: 1, 256>}, {transform_indices = @transform_3, window_bounds = array<i64: 128, 256>}]} {
    %c0_i32 = arith.constant 0 : i32
    %0 = arith.cmpi eq, %arg2, %c0_i32 : i32
    %1 = arith.extui %0 : i1 to i32
    %c0_i32_0 = arith.constant 0 : i32
    %2 = arith.cmpi ne, %1, %c0_i32_0 : i32
    scf.if %2 {
      %c0_8 = arith.constant 0 : index
      %c0_9 = arith.constant 0 : index
      %9 = vector.load %arg5[%c0_8, %c0_9] : memref<1x256xf32, #tpu.memory_space<vmem>>, vector<1x256xf32>
      %10 = vector.shape_cast %9 : vector<1x256xf32> to vector<1x256xf32>
      %11 = vector.broadcast %10 : vector<1x256xf32> to vector<128x256xf32>
      %c0_10 = arith.constant 0 : index
      %c0_11 = arith.constant 0 : index
      %12 = vector.load %arg6[%c0_10, %c0_11] : memref<128x256xf32, #tpu.memory_space<vmem>>, vector<128x256xf32>
      tpu.vector_store %arg6[%c0_10, %c0_11], %11 {strides = array<i32>} : memref<128x256xf32, #tpu.memory_space<vmem>>, vector<128x256xf32>,
    } else {
    }
    %c0 = arith.constant 0 : index
    %c0_1 = arith.constant 0 : index
    %3 = vector.load %arg6[%c0, %c0_1] : memref<128x256xf32, #tpu.memory_space<vmem>>, vector<128x256xf32>
    %c0_2 = arith.constant 0 : index
    %c0_3 = arith.constant 0 : index
    %4 = vector.load %arg3[%c0_2, %c0_3] : memref<128x1152xbf16, #tpu.memory_space<vmem>>, vector<128x1152xbf16>
    %c0_4 = arith.constant 0 : index
    %c0_5 = arith.constant 0 : index
    %5 = vector.load %arg4[%c0_4, %c0_5] : memref<1152x256xbf16, #tpu.memory_space<vmem>>, vector<1152x256xbf16>
    %cst = arith.constant dense<0.000000e+00> : vector<128x256xf32>
    %6 = tpu.matmul %4, %5, %cst {dimension_numbers = #tpu.dot_dimension_numbers<[1], [0], [0], [1], [0, 0, 1, 1], [], []>} : vector<128x1152xbf16>, vector<1152x256xbf16>, vector<128x256xf32> -> vector<128x256xf32>
    %7 = arith.addf %3, %6 : vector<128x256xf32>
    %c0_6 = arith.constant 0 : index
    %c0_7 = arith.constant 0 : index
    %8 = vector.load %arg6[%c0_6, %c0_7] : memref<128x256xf32, #tpu.memory_space<vmem>>, vector<128x256xf32>
    tpu.vector_store %arg6[%c0_6, %c0_7], %7 {strides = array<i32>} : memref<128x256xf32, #tpu.memory_space<vmem>>, vector<128x256xf32>,
    return
  }
  func.func @transform_0(%arg0: i32, %arg1: i32, %arg2: i32) -> (i32, i32) {
    %c0_i32 = arith.constant 0 : i32
    return %arg0, %arg2 : i32, i32
  }
  func.func @transform_1(%arg0: i32, %arg1: i32, %arg2: i32) -> (i32, i32) {
    %c0_i32 = arith.constant 0 : i32
    return %arg2, %arg1 : i32, i32
  }
  func.func @transform_2(%arg0: i32, %arg1: i32, %arg2: i32) -> (i32, i32) {
    %c0_i32 = arith.constant 0 : i32
    %c0_i32_0 = arith.constant 0 : i32
    return %c0_i32, %arg1 : i32, i32
  }
  func.func @transform_3(%arg0: i32, %arg1: i32, %arg2: i32) -> (i32, i32) {
    %c0_i32 = arith.constant 0 : i32
    return %arg0, %arg1 : i32, i32
  }
}

module attributes {stable_mosaic.version = 11 : i64} {
  func.func @_affine_act_kernel(%arg0: i32, %arg1: memref<128x256xf32, #tpu.memory_space<vmem>>, %arg2: memref<1x256xf32, #tpu.memory_space<vmem>>, %arg3: memref<1x256xf32, #tpu.memory_space<vmem>>, %arg4: memref<128x256xf32, #tpu.memory_space<vmem>>) attributes {dimension_semantics = [#tpu.dimension_semantics<parallel>], iteration_bounds = array<i64: 1>, scalar_prefetch = 0 : i64, scratch_operands = 0 : i64, tpu.core_type = #tpu.core_type<tc>, window_params = [{transform_indices = @transform_0, window_bounds = array<i64: 128, 256>}, {pipeline_mode = #tpu.pipeline_mode<synchronous>, transform_indices = @transform_1, window_bounds = array<i64: 1, 256>}, {pipeline_mode = #tpu.pipeline_mode<synchronous>, transform_indices = @transform_2, window_bounds = array<i64: 1, 256>}, {transform_indices = @transform_3, window_bounds = array<i64: 128, 256>}]} {
    %c0 = arith.constant 0 : index
    %c0_0 = arith.constant 0 : index
    %0 = vector.load %arg1[%c0, %c0_0] : memref<128x256xf32, #tpu.memory_space<vmem>>, vector<128x256xf32>
    %c0_1 = arith.constant 0 : index
    %c0_2 = arith.constant 0 : index
    %1 = vector.load %arg2[%c0_1, %c0_2] : memref<1x256xf32, #tpu.memory_space<vmem>>, vector<1x256xf32>
    %2 = vector.broadcast %1 : vector<1x256xf32> to vector<128x256xf32>
    %3 = arith.mulf %0, %2 : vector<128x256xf32>
    %c0_3 = arith.constant 0 : index
    %c0_4 = arith.constant 0 : index
    %4 = vector.load %arg3[%c0_3, %c0_4] : memref<1x256xf32, #tpu.memory_space<vmem>>, vector<1x256xf32>
    %5 = vector.broadcast %4 : vector<1x256xf32> to vector<128x256xf32>
    %6 = arith.addf %3, %5 : vector<128x256xf32>
    %cst = arith.constant 0.000000e+00 : f32
    %7 = vector.broadcast %cst : f32 to vector<128x256xf32>
    %8 = arith.maximumf %6, %7 : vector<128x256xf32>
    %c0_5 = arith.constant 0 : index
    %c0_6 = arith.constant 0 : index
    %9 = vector.load %arg4[%c0_5, %c0_6] : memref<128x256xf32, #tpu.memory_space<vmem>>, vector<128x256xf32>
    tpu.vector_store %arg4[%c0_5, %c0_6], %8 {strides = array<i32>} : memref<128x256xf32, #tpu.memory_space<vmem>>, vector<128x256xf32>,
    return
  }
  func.func @transform_0(%arg0: i32) -> (i32, i32) {
    %c0_i32 = arith.constant 0 : i32
    %c0_i32_0 = arith.constant 0 : i32
    return %arg0, %c0_i32 : i32, i32
  }
  func.func @transform_1(%arg0: i32) -> (i32, i32) {
    %c0_i32 = arith.constant 0 : i32
    %c0_i32_0 = arith.constant 0 : i32
    %c0_i32_1 = arith.constant 0 : i32
    return %c0_i32, %c0_i32_0 : i32, i32
  }
  func.func @transform_2(%arg0: i32) -> (i32, i32) {
    %c0_i32 = arith.constant 0 : i32
    %c0_i32_0 = arith.constant 0 : i32
    %c0_i32_1 = arith.constant 0 : i32
    return %c0_i32, %c0_i32_0 : i32, i32
  }
  func.func @transform_3(%arg0: i32) -> (i32, i32) {
    %c0_i32 = arith.constant 0 : i32
    %c0_i32_0 = arith.constant 0 : i32
    return %arg0, %c0_i32 : i32, i32
  }
}

module attributes {stable_mosaic.version = 11 : i64} {
  func.func @_matmul_kernel(%arg0: i32, %arg1: i32, %arg2: i32, %arg3: memref<128x640xbf16, #tpu.memory_space<vmem>>, %arg4: memref<640x128xbf16, #tpu.memory_space<vmem>>, %arg5: memref<1x128xf32, #tpu.memory_space<vmem>>, %arg6: memref<128x128xf32, #tpu.memory_space<vmem>>) attributes {dimension_semantics = [#tpu.dimension_semantics<parallel>, #tpu.dimension_semantics<parallel>, #tpu.dimension_semantics<arbitrary>], iteration_bounds = array<i64: 1, 1, 1>, scalar_prefetch = 0 : i64, scratch_operands = 0 : i64, tpu.core_type = #tpu.core_type<tc>, window_params = [{transform_indices = @transform_0, window_bounds = array<i64: 128, 640>}, {transform_indices = @transform_1, window_bounds = array<i64: 640, 128>}, {transform_indices = @transform_2, window_bounds = array<i64: 1, 128>}, {transform_indices = @transform_3, window_bounds = array<i64: 128, 128>}]} {
    %c0_i32 = arith.constant 0 : i32
    %0 = arith.cmpi eq, %arg2, %c0_i32 : i32
    %1 = arith.extui %0 : i1 to i32
    %c0_i32_0 = arith.constant 0 : i32
    %2 = arith.cmpi ne, %1, %c0_i32_0 : i32
    scf.if %2 {
      %c0_8 = arith.constant 0 : index
      %c0_9 = arith.constant 0 : index
      %9 = vector.load %arg5[%c0_8, %c0_9] : memref<1x128xf32, #tpu.memory_space<vmem>>, vector<1x128xf32>
      %10 = vector.shape_cast %9 : vector<1x128xf32> to vector<1x128xf32>
      %11 = vector.broadcast %10 : vector<1x128xf32> to vector<128x128xf32>
      %c0_10 = arith.constant 0 : index
      %c0_11 = arith.constant 0 : index
      %12 = vector.load %arg6[%c0_10, %c0_11] : memref<128x128xf32, #tpu.memory_space<vmem>>, vector<128x128xf32>
      tpu.vector_store %arg6[%c0_10, %c0_11], %11 {strides = array<i32>} : memref<128x128xf32, #tpu.memory_space<vmem>>, vector<128x128xf32>,
    } else {
    }
    %c0 = arith.constant 0 : index
    %c0_1 = arith.constant 0 : index
    %3 = vector.load %arg6[%c0, %c0_1] : memref<128x128xf32, #tpu.memory_space<vmem>>, vector<128x128xf32>
    %c0_2 = arith.constant 0 : index
    %c0_3 = arith.constant 0 : index
    %4 = vector.load %arg3[%c0_2, %c0_3] : memref<128x640xbf16, #tpu.memory_space<vmem>>, vector<128x640xbf16>
    %c0_4 = arith.constant 0 : index
    %c0_5 = arith.constant 0 : index
    %5 = vector.load %arg4[%c0_4, %c0_5] : memref<640x128xbf16, #tpu.memory_space<vmem>>, vector<640x128xbf16>
    %cst = arith.constant dense<0.000000e+00> : vector<128x128xf32>
    %6 = tpu.matmul %4, %5, %cst {dimension_numbers = #tpu.dot_dimension_numbers<[1], [0], [0], [1], [0, 0, 1, 1], [], []>} : vector<128x640xbf16>, vector<640x128xbf16>, vector<128x128xf32> -> vector<128x128xf32>
    %7 = arith.addf %3, %6 : vector<128x128xf32>
    %c0_6 = arith.constant 0 : index
    %c0_7 = arith.constant 0 : index
    %8 = vector.load %arg6[%c0_6, %c0_7] : memref<128x128xf32, #tpu.memory_space<vmem>>, vector<128x128xf32>
    tpu.vector_store %arg6[%c0_6, %c0_7], %7 {strides = array<i32>} : memref<128x128xf32, #tpu.memory_space<vmem>>, vector<128x128xf32>,
    return
  }
  func.func @transform_0(%arg0: i32, %arg1: i32, %arg2: i32) -> (i32, i32) {
    %c0_i32 = arith.constant 0 : i32
    return %arg0, %arg2 : i32, i32
  }
  func.func @transform_1(%arg0: i32, %arg1: i32, %arg2: i32) -> (i32, i32) {
    %c0_i32 = arith.constant 0 : i32
    return %arg2, %arg1 : i32, i32
  }
  func.func @transform_2(%arg0: i32, %arg1: i32, %arg2: i32) -> (i32, i32) {
    %c0_i32 = arith.constant 0 : i32
    %c0_i32_0 = arith.constant 0 : i32
    return %c0_i32, %arg1 : i32, i32
  }
  func.func @transform_3(%arg0: i32, %arg1: i32, %arg2: i32) -> (i32, i32) {
    %c0_i32 = arith.constant 0 : i32
    return %arg0, %arg1 : i32, i32
  }
}

module attributes {stable_mosaic.version = 11 : i64} {
  func.func @_matmul_kernel(%arg0: i32, %arg1: i32, %arg2: i32, %arg3: memref<256x384xbf16, #tpu.memory_space<vmem>>, %arg4: memref<384x128xbf16, #tpu.memory_space<vmem>>, %arg5: memref<1x128xf32, #tpu.memory_space<vmem>>, %arg6: memref<256x128xf32, #tpu.memory_space<vmem>>) attributes {dimension_semantics = [#tpu.dimension_semantics<parallel>, #tpu.dimension_semantics<parallel>, #tpu.dimension_semantics<arbitrary>], iteration_bounds = array<i64: 2, 1, 1>, scalar_prefetch = 0 : i64, scratch_operands = 0 : i64, tpu.core_type = #tpu.core_type<tc>, window_params = [{transform_indices = @transform_0, window_bounds = array<i64: 256, 384>}, {transform_indices = @transform_1, window_bounds = array<i64: 384, 128>}, {transform_indices = @transform_2, window_bounds = array<i64: 1, 128>}, {transform_indices = @transform_3, window_bounds = array<i64: 256, 128>}]} {
    %c0_i32 = arith.constant 0 : i32
    %0 = arith.cmpi eq, %arg2, %c0_i32 : i32
    %1 = arith.extui %0 : i1 to i32
    %c0_i32_0 = arith.constant 0 : i32
    %2 = arith.cmpi ne, %1, %c0_i32_0 : i32
    scf.if %2 {
      %c0_8 = arith.constant 0 : index
      %c0_9 = arith.constant 0 : index
      %9 = vector.load %arg5[%c0_8, %c0_9] : memref<1x128xf32, #tpu.memory_space<vmem>>, vector<1x128xf32>
      %10 = vector.shape_cast %9 : vector<1x128xf32> to vector<1x128xf32>
      %11 = vector.broadcast %10 : vector<1x128xf32> to vector<256x128xf32>
      %c0_10 = arith.constant 0 : index
      %c0_11 = arith.constant 0 : index
      %12 = vector.load %arg6[%c0_10, %c0_11] : memref<256x128xf32, #tpu.memory_space<vmem>>, vector<256x128xf32>
      tpu.vector_store %arg6[%c0_10, %c0_11], %11 {strides = array<i32>} : memref<256x128xf32, #tpu.memory_space<vmem>>, vector<256x128xf32>,
    } else {
    }
    %c0 = arith.constant 0 : index
    %c0_1 = arith.constant 0 : index
    %3 = vector.load %arg6[%c0, %c0_1] : memref<256x128xf32, #tpu.memory_space<vmem>>, vector<256x128xf32>
    %c0_2 = arith.constant 0 : index
    %c0_3 = arith.constant 0 : index
    %4 = vector.load %arg3[%c0_2, %c0_3] : memref<256x384xbf16, #tpu.memory_space<vmem>>, vector<256x384xbf16>
    %c0_4 = arith.constant 0 : index
    %c0_5 = arith.constant 0 : index
    %5 = vector.load %arg4[%c0_4, %c0_5] : memref<384x128xbf16, #tpu.memory_space<vmem>>, vector<384x128xbf16>
    %cst = arith.constant dense<0.000000e+00> : vector<256x128xf32>
    %6 = tpu.matmul %4, %5, %cst {dimension_numbers = #tpu.dot_dimension_numbers<[1], [0], [0], [1], [0, 0, 1, 1], [], []>} : vector<256x384xbf16>, vector<384x128xbf16>, vector<256x128xf32> -> vector<256x128xf32>
    %7 = arith.addf %3, %6 : vector<256x128xf32>
    %c0_6 = arith.constant 0 : index
    %c0_7 = arith.constant 0 : index
    %8 = vector.load %arg6[%c0_6, %c0_7] : memref<256x128xf32, #tpu.memory_space<vmem>>, vector<256x128xf32>
    tpu.vector_store %arg6[%c0_6, %c0_7], %7 {strides = array<i32>} : memref<256x128xf32, #tpu.memory_space<vmem>>, vector<256x128xf32>,
    return
  }
  func.func @transform_0(%arg0: i32, %arg1: i32, %arg2: i32) -> (i32, i32) {
    %c0_i32 = arith.constant 0 : i32
    return %arg0, %arg2 : i32, i32
  }
  func.func @transform_1(%arg0: i32, %arg1: i32, %arg2: i32) -> (i32, i32) {
    %c0_i32 = arith.constant 0 : i32
    return %arg2, %arg1 : i32, i32
  }
  func.func @transform_2(%arg0: i32, %arg1: i32, %arg2: i32) -> (i32, i32) {
    %c0_i32 = arith.constant 0 : i32
    %c0_i32_0 = arith.constant 0 : i32
    return %c0_i32, %arg1 : i32, i32
  }
  func.func @transform_3(%arg0: i32, %arg1: i32, %arg2: i32) -> (i32, i32) {
    %c0_i32 = arith.constant 0 : i32
    return %arg0, %arg1 : i32, i32
  }
}

module attributes {stable_mosaic.version = 11 : i64} {
  func.func @_affine_act_kernel(%arg0: i32, %arg1: memref<512x128xf32, #tpu.memory_space<vmem>>, %arg2: memref<1x128xf32, #tpu.memory_space<vmem>>, %arg3: memref<1x128xf32, #tpu.memory_space<vmem>>, %arg4: memref<512x128xf32, #tpu.memory_space<vmem>>) attributes {dimension_semantics = [#tpu.dimension_semantics<parallel>], iteration_bounds = array<i64: 1>, scalar_prefetch = 0 : i64, scratch_operands = 0 : i64, tpu.core_type = #tpu.core_type<tc>, window_params = [{transform_indices = @transform_0, window_bounds = array<i64: 512, 128>}, {pipeline_mode = #tpu.pipeline_mode<synchronous>, transform_indices = @transform_1, window_bounds = array<i64: 1, 128>}, {pipeline_mode = #tpu.pipeline_mode<synchronous>, transform_indices = @transform_2, window_bounds = array<i64: 1, 128>}, {transform_indices = @transform_3, window_bounds = array<i64: 512, 128>}]} {
    %c0 = arith.constant 0 : index
    %c0_0 = arith.constant 0 : index
    %0 = vector.load %arg1[%c0, %c0_0] : memref<512x128xf32, #tpu.memory_space<vmem>>, vector<512x128xf32>
    %c0_1 = arith.constant 0 : index
    %c0_2 = arith.constant 0 : index
    %1 = vector.load %arg2[%c0_1, %c0_2] : memref<1x128xf32, #tpu.memory_space<vmem>>, vector<1x128xf32>
    %2 = vector.broadcast %1 : vector<1x128xf32> to vector<512x128xf32>
    %3 = arith.mulf %0, %2 : vector<512x128xf32>
    %c0_3 = arith.constant 0 : index
    %c0_4 = arith.constant 0 : index
    %4 = vector.load %arg3[%c0_3, %c0_4] : memref<1x128xf32, #tpu.memory_space<vmem>>, vector<1x128xf32>
    %5 = vector.broadcast %4 : vector<1x128xf32> to vector<512x128xf32>
    %6 = arith.addf %3, %5 : vector<512x128xf32>
    %cst = arith.constant 0.000000e+00 : f32
    %7 = vector.broadcast %cst : f32 to vector<512x128xf32>
    %8 = arith.maximumf %6, %7 : vector<512x128xf32>
    %c0_5 = arith.constant 0 : index
    %c0_6 = arith.constant 0 : index
    %9 = vector.load %arg4[%c0_5, %c0_6] : memref<512x128xf32, #tpu.memory_space<vmem>>, vector<512x128xf32>
    tpu.vector_store %arg4[%c0_5, %c0_6], %8 {strides = array<i32>} : memref<512x128xf32, #tpu.memory_space<vmem>>, vector<512x128xf32>,
    return
  }
  func.func @transform_0(%arg0: i32) -> (i32, i32) {
    %c0_i32 = arith.constant 0 : i32
    %c0_i32_0 = arith.constant 0 : i32
    return %arg0, %c0_i32 : i32, i32
  }
  func.func @transform_1(%arg0: i32) -> (i32, i32) {
    %c0_i32 = arith.constant 0 : i32
    %c0_i32_0 = arith.constant 0 : i32
    %c0_i32_1 = arith.constant 0 : i32
    return %c0_i32, %c0_i32_0 : i32, i32
  }
  func.func @transform_2(%arg0: i32) -> (i32, i32) {
    %c0_i32 = arith.constant 0 : i32
    %c0_i32_0 = arith.constant 0 : i32
    %c0_i32_1 = arith.constant 0 : i32
    return %c0_i32, %c0_i32_0 : i32, i32
  }
  func.func @transform_3(%arg0: i32) -> (i32, i32) {
    %c0_i32 = arith.constant 0 : i32
    %c0_i32_0 = arith.constant 0 : i32
    return %arg0, %c0_i32 : i32, i32
  }
}

module attributes {stable_mosaic.version = 11 : i64} {
  func.func @_matmul_kernel(%arg0: i32, %arg1: i32, %arg2: i32, %arg3: memref<512x256xbf16, #tpu.memory_space<vmem>>, %arg4: memref<256x128xbf16, #tpu.memory_space<vmem>>, %arg5: memref<1x128xf32, #tpu.memory_space<vmem>>, %arg6: memref<512x128xf32, #tpu.memory_space<vmem>>) attributes {dimension_semantics = [#tpu.dimension_semantics<parallel>, #tpu.dimension_semantics<parallel>, #tpu.dimension_semantics<arbitrary>], iteration_bounds = array<i64: 4, 1, 1>, scalar_prefetch = 0 : i64, scratch_operands = 0 : i64, tpu.core_type = #tpu.core_type<tc>, window_params = [{transform_indices = @transform_0, window_bounds = array<i64: 512, 256>}, {transform_indices = @transform_1, window_bounds = array<i64: 256, 128>}, {transform_indices = @transform_2, window_bounds = array<i64: 1, 128>}, {transform_indices = @transform_3, window_bounds = array<i64: 512, 128>}]} {
    %c0_i32 = arith.constant 0 : i32
    %0 = arith.cmpi eq, %arg2, %c0_i32 : i32
    %1 = arith.extui %0 : i1 to i32
    %c0_i32_0 = arith.constant 0 : i32
    %2 = arith.cmpi ne, %1, %c0_i32_0 : i32
    scf.if %2 {
      %c0_10 = arith.constant 0 : index
      %c0_11 = arith.constant 0 : index
      %12 = vector.load %arg5[%c0_10, %c0_11] : memref<1x128xf32, #tpu.memory_space<vmem>>, vector<1x128xf32>
      %13 = vector.shape_cast %12 : vector<1x128xf32> to vector<1x128xf32>
      %14 = vector.broadcast %13 : vector<1x128xf32> to vector<512x128xf32>
      %c0_12 = arith.constant 0 : index
      %c0_13 = arith.constant 0 : index
      %15 = vector.load %arg6[%c0_12, %c0_13] : memref<512x128xf32, #tpu.memory_space<vmem>>, vector<512x128xf32>
      tpu.vector_store %arg6[%c0_12, %c0_13], %14 {strides = array<i32>} : memref<512x128xf32, #tpu.memory_space<vmem>>, vector<512x128xf32>,
    } else {
    }
    %c0 = arith.constant 0 : index
    %c0_1 = arith.constant 0 : index
    %3 = vector.load %arg6[%c0, %c0_1] : memref<512x128xf32, #tpu.memory_space<vmem>>, vector<512x128xf32>
    %c0_2 = arith.constant 0 : index
    %c0_3 = arith.constant 0 : index
    %4 = vector.load %arg3[%c0_2, %c0_3] : memref<512x256xbf16, #tpu.memory_space<vmem>>, vector<512x256xbf16>
    %c0_4 = arith.constant 0 : index
    %c0_5 = arith.constant 0 : index
    %5 = vector.load %arg4[%c0_4, %c0_5] : memref<256x128xbf16, #tpu.memory_space<vmem>>, vector<256x128xbf16>
    %cst = arith.constant dense<0.000000e+00> : vector<512x128xf32>
    %6 = tpu.matmul %4, %5, %cst {dimension_numbers = #tpu.dot_dimension_numbers<[1], [0], [0], [1], [0, 0, 1, 1], [], []>} : vector<512x256xbf16>, vector<256x128xbf16>, vector<512x128xf32> -> vector<512x128xf32>
    %7 = arith.addf %3, %6 : vector<512x128xf32>
    %c0_6 = arith.constant 0 : index
    %c0_7 = arith.constant 0 : index
    %8 = vector.load %arg6[%c0_6, %c0_7] : memref<512x128xf32, #tpu.memory_space<vmem>>, vector<512x128xf32>
    tpu.vector_store %arg6[%c0_6, %c0_7], %7 {strides = array<i32>} : memref<512x128xf32, #tpu.memory_space<vmem>>, vector<512x128xf32>,
    %c0_i32_8 = arith.constant 0 : i32
    %9 = arith.cmpi eq, %arg2, %c0_i32_8 : i32
    %10 = arith.extui %9 : i1 to i32
    %c0_i32_9 = arith.constant 0 : i32
    %11 = arith.cmpi ne, %10, %c0_i32_9 : i32
    scf.if %11 {
      %c0_10 = arith.constant 0 : index
      %c0_11 = arith.constant 0 : index
      %12 = vector.load %arg6[%c0_10, %c0_11] : memref<512x128xf32, #tpu.memory_space<vmem>>, vector<512x128xf32>
      %13 = math.tanh %12 : vector<512x128xf32>
      %c0_12 = arith.constant 0 : index
      %c0_13 = arith.constant 0 : index
      %14 = vector.load %arg6[%c0_12, %c0_13] : memref<512x128xf32, #tpu.memory_space<vmem>>, vector<512x128xf32>
      tpu.vector_store %arg6[%c0_12, %c0_13], %13 {strides = array<i32>} : memref<512x128xf32, #tpu.memory_space<vmem>>, vector<512x128xf32>,
    } else {
    }
    return
  }
  func.func @transform_0(%arg0: i32, %arg1: i32, %arg2: i32) -> (i32, i32) {
    %c0_i32 = arith.constant 0 : i32
    return %arg0, %arg2 : i32, i32
  }
  func.func @transform_1(%arg0: i32, %arg1: i32, %arg2: i32) -> (i32, i32) {
    %c0_i32 = arith.constant 0 : i32
    return %arg2, %arg1 : i32, i32
  }
  func.func @transform_2(%arg0: i32, %arg1: i32, %arg2: i32) -> (i32, i32) {
    %c0_i32 = arith.constant 0 : i32
    %c0_i32_0 = arith.constant 0 : i32
    return %c0_i32, %arg1 : i32, i32
  }
  func.func @transform_3(%arg0: i32, %arg1: i32, %arg2: i32) -> (i32, i32) {
    %c0_i32 = arith.constant 0 : i32
    return %arg0, %arg1 : i32, i32
  }
}

</mosaic_0001>

<bundles_post_ra>
// kernel: generator_forward.10
= control target key start
LH: loop header
LB: loop body
LE: loop exit
PB: predicated region body
PF: predicated region fallthrough
CT: control target
= control target key end

     0   :  { %s248_s0 = inlined_call_operand.vmem [shape: f32[128,128], index: 0, kind: input, shape index: {}]   ;;  %s249_s1 = inlined_call_operand.vmem [shape: f32[1,128], index: 1, kind: input, shape index: {}]   ;;  %s250_s2 = inlined_call_operand.vmem [shape: f32[1,128], index: 2, kind: input, shape index: {}]   ;;  %s251_s3 = inlined_call_operand.vmem [shape: f32[128,128], index: 3, kind: output, shape index: {}]  }
   0x1   :  { %v14_v0 = vld [vmem:[%s248_s0] sm:$0xff]  ;;  %v15_v3 = vld [vmem:[%s248_s0 + $0x8] sm:$0xff]  ;;  %v16_v6 = vld [vmem:[%s248_s0 + $0x10] sm:$0xff] }
   0x2   :  { %v106_v1 = vld [vmem:[%s249_s1] ss:$0 sm:$0xff]  ;;  %v17_v7 = vld [vmem:[%s248_s0 + $0x18] sm:$0xff]  ;;  %v19_v12 = vld [vmem:[%s248_s0 + $0x28] sm:$0xff] }
   0x3   :  { %v137_v2 = vld [vmem:[%s250_s2] ss:$0 sm:$0xff]  ;;  %v34_v4 = vmul.f32 %v106_v1, %v14_v0  ;;  %v35_v5 = vmul.f32 %v106_v1, %v15_v3  ;;  %v36_v9 = vmul.f32 %v106_v1, %v16_v6  ;;  %v37_v10 = vmul.f32 %v106_v1, %v17_v7  ;;  %v20_v13 = vld [vmem:[%s248_s0 + $0x30] sm:$0xff]  ;;  %v21_v14 = vld [vmem:[%s248_s0 + $0x38] sm:$0xff] }
   0x4   :  { %v18_v8 = vld [vmem:[%s248_s0 + $0x20] sm:$0xff]  ;;  %v39_v17 = vmul.f32 %v106_v1, %v19_v12  ;;  %v40_v18 = vmul.f32 %v106_v1, %v20_v13  ;;  %v41_v22 = vmul.f32 %v106_v1, %v21_v14  ;;  %v23_v24 = vld [vmem:[%s248_s0 + $0x48] sm:$0xff]  ;;  %v24_v29 = vld [vmem:[%s248_s0 + $0x50] sm:$0xff] }
   0x5   :  { %v38_v11 = vmul.f32 %v106_v1, %v18_v8  ;;  %v54_v15 = vadd.f32 %v137_v2, %v34_v4  ;;  %v55_v16 = vadd.f32 %v137_v2, %v35_v5  ;;  %v56_v19 = vadd.f32 %v137_v2, %v36_v9  ;;  %v22_v23 = vld [vmem:[%s248_s0 + $0x40] sm:$0xff]  ;;  %v25_v30 = vld [vmem:[%s248_s0 + $0x58] sm:$0xff]  ;;  %v27_v35 = vld [vmem:[%s248_s0 + $0x68] sm:$0xff] }
   0x6   :  { %v57_v20 = vadd.f32 %v137_v2, %v37_v10  ;;  %v59_v27 = vadd.f32 %v137_v2, %v39_v17  ;;  %v60_v28 = vadd.f32 %v137_v2, %v40_v18  ;;  %v26_v31 = vld [vmem:[%s248_s0 + $0x60] sm:$0xff]  ;;  %v61_v34 = vadd.f32 %v137_v2, %v41_v22  ;;  %v28_v36 = vld [vmem:[%s248_s0 + $0x70] sm:$0xff]  ;;  %v29_v41 = vld [vmem:[%s248_s0 + $0x78] sm:$0xff] }
   0x7   :  { %v58_v21 = vadd.f32 %v137_v2, %v38_v11  ;;  %v70_v25 = vmax.f32 %v54_v15, 0.0  ;;  %v71_v26 = vmax.f32 %v55_v16, 0.0  ;;  %v72_v32 = vmax.f32 %v56_v19, 0.0 }
   0x8   :  { %v73_v33 = vmax.f32 %v57_v20, 0.0  ;;  %v75_v38 = vmax.f32 %v59_v27, 0.0  ;;  %v42_v39 = vmul.f32 %v106_v1, %v22_v23  ;;  %v43_v40 = vmul.f32 %v106_v1, %v23_v24 }
   0x9   :  { %86 = vst [vmem:[%s251_s3] sm:$0xff] %v70_v25  ;;  %v74_v37 = vmax.f32 %v58_v21, 0.0  ;;  %v76_v42 = vmax.f32 %v60_v28, 0.0  ;;  %v44_v43 = vmul.f32 %v106_v1, %v24_v29  ;;  %v45_v44 = vmul.f32 %v106_v1, %v25_v30 }
   0xa   :  { %87 = vst [vmem:[%s251_s3 + $0x8] sm:$0xff] %v71_v26  ;;  %v46_v45 = vmul.f32 %v106_v1, %v26_v31  ;;  %v62_v46 = vadd.f32 %v137_v2, %v42_v39  ;;  %v63_v47 = vadd.f32 %v137_v2, %v43_v40  ;;  %v47_v48 = vmul.f32 %v106_v1, %v27_v35 }
   0xb   :  { %88 = vst [vmem:[%s251_s3 + $0x10] sm:$0xff] %v72_v32  ;;  %v48_v49 = vmul.f32 %v106_v1, %v28_v36  ;;  %v77_v50 = vmax.f32 %v61_v34, 0.0  ;;  %v64_v51 = vadd.f32 %v137_v2, %v44_v43  ;;  %v65_v52 = vadd.f32 %v137_v2, %v45_v44 }
   0xc   :  { %89 = vst [vmem:[%s251_s3 + $0x18] sm:$0xff] %v73_v33  ;;  %v49_v53 = vmul.f32 %v106_v1, %v29_v41  ;;  %v78_v54 = vmax.f32 %v62_v46, 0.0  ;;  %v66_v55 = vadd.f32 %v137_v2, %v46_v45  ;;  %v79_v56 = vmax.f32 %v63_v47, 0.0 }
   0xd   :  { %90 = vst [vmem:[%s251_s3 + $0x20] sm:$0xff] %v74_v37  ;;  %v67_v57 = vadd.f32 %v137_v2, %v47_v48  ;;  %v80_v58 = vmax.f32 %v64_v51, 0.0  ;;  %v68_v59 = vadd.f32 %v137_v2, %v48_v49  ;;  %v81_v60 = vmax.f32 %v65_v52, 0.0 }
   0xe   :  { %91 = vst [vmem:[%s251_s3 + $0x28] sm:$0xff] %v75_v38  ;;  %v69_v61 = vadd.f32 %v137_v2, %v49_v53  ;;  %v82_v62 = vmax.f32 %v66_v55, 0.0 }
   0xf   :  { %92 = vst [vmem:[%s251_s3 + $0x30] sm:$0xff] %v76_v42  ;;  %v83_v63 = vmax.f32 %v67_v57, 0.0  ;;  %v84_v0 = vmax.f32 %v68_v59, 0.0 }
  0x10   :  { %93 = vst [vmem:[%s251_s3 + $0x38] sm:$0xff] %v77_v50  ;;  %v85_v1 = vmax.f32 %v69_v61, 0.0 }
  0x11   :  { %94 = vst [vmem:[%s251_s3 + $0x40] sm:$0xff] %v78_v54 }
  0x12   :  { %95 = vst [vmem:[%s251_s3 + $0x48] sm:$0xff] %v79_v56 }
  0x13   :  { %96 = vst [vmem:[%s251_s3 + $0x50] sm:$0xff] %v80_v58 }
  0x14   :  { %97 = vst [vmem:[%s251_s3 + $0x58] sm:$0xff] %v81_v60 }
  0x15   :  { %98 = vst [vmem:[%s251_s3 + $0x60] sm:$0xff] %v82_v62 }
  0x16   :  { %99 = vst [vmem:[%s251_s3 + $0x68] sm:$0xff] %v83_v63 }
  0x17   :  { %100 = vst [vmem:[%s251_s3 + $0x70] sm:$0xff] %v84_v0 }
  0x18   :  { %101 = vst [vmem:[%s251_s3 + $0x78] sm:$0xff] %v85_v1 }

// kernel: generator_forward.9
= control target key start
LH: loop header
LB: loop body
LE: loop exit
PB: predicated region body
PF: predicated region fallthrough
CT: control target
= control target key end

     0   :  { %s1627_s12 = smov 0   ;;  %s1629_s13 = smov 0   ;;  %s2133_s0 = inlined_call_operand.vmem [shape: bf16[128,128], index: 0, kind: input, shape index: {}]   ;;  %s2134_s1 = inlined_call_operand.vmem [shape: bf16[128,2048], index: 1, kind: input, shape index: {}]   ;;  %s2135_s2 = inlined_call_operand.vmem [shape: f32[1,2048], index: 2, kind: input, shape index: {}]   ;;  %s2136_s3 = inlined_call_operand.vmem [shape: f32[128,2048], index: 3, kind: output, shape index: {}]  }
   0x1   :  { %s1631_s14 = smov 0   ;;  %s1633_s15 = smov 0  }
   0x2   :  { %s1635_s16 = smov 0  }
   0x3 LB: > { %s28_s17 = sadd.s32 1, %s1601_s15  ;;  %s1308_s18 = sadd.s32 4294967295, %s1605_s16   ;;  %s1605_s16 = sphi %s1635_s16, %s13_s16   ;;  %s1601_s15 = sphi %s1633_s15, %s2141_s15   ;;  %s1597_s14 = sphi %s1631_s14, %s2140_s14   ;;  %s1593_s13 = sphi %s1629_s13, %s2139_s13   ;;  %s1589_s12 = sphi %s1627_s12, %s2138_s12  }
   0x4   : > { %p30_p0 = scmp.ge.s32.totalorder %s28_s17, 4  ;;  %p76_p1 = scmp.ne.s32.totalorder %s1593_s13, %s1589_s12 }
   0x5   : > { %p77_p2 = scmp.eq.s32.totalorder %s1605_s16, 0  ;;  %p134_p4 = scmp.eq.s32.totalorder %s1308_s18, 3 }
   0x6   : > { %s2143_s17 = smov (%p30_p0, %s28_s17), 0  ;;  %s69_s20 = sadd.s32 1, %s1593_s13 }
   0x7   : > { %p78_p3 = por %p77_p2, %p76_p1  ;;  %s65_s19 = ssub.s32 %s1601_s15, %s2143_s17 }
   0x8   : > { %p67_p5 = scmp.eq.s32.totalorder %s65_s19, 0  ;;  %p1662_p6 = por %p134_p4, %p76_p1 }
   0x9   : > { %p1312_p7 = scmp.ge.s32.totalorder %s1605_s16, 4 }
   0xa   : > { %s1667_s22 = scalar_select %p67_p5, %s1593_s13, %s69_s20  }
   0xb   : > { %168 = sbr.rel (%p1312_p7) target bundleno = 52 (0x34), region = 20 }
  0x10   : > { %171 = sbr.rel (!%p78_p3) target bundleno = 52 (0x34), region = 24  ;;  %s173_s23 = sand.u32 (%p78_p3), 1, %s1593_s13  }
  0x11   : > { %s1485_s24 = sshll.u32 (%p78_p3), %s1601_s15, 4  ;;  %s1313_s25 = sshll.u32 (%p78_p3), %s173_s23, 8 }
  0x12   : > { %s1675_s28 = scalar_lea.vmem (%p78_p3), %s2134_s1, %s1485_s24  ;;  %s1680_s29 = scalar_lea.vmem (%p78_p3), [#allocation2], %s1313_s25 }
  0x13   : > { %v194_v0 = vld [vmem:[%s1675_s28] sm:$0xff] (%p78_p3)  ;;  %v196_v1 = vld [vmem:[%s1675_s28 + $0x8] sm:$0xff] (%p78_p3) }
  0x14   : > { %v198_v2 = vld [vmem:[%s1675_s28 + $0x40] sm:$0xff] (%p78_p3)  ;;  %195 = vst [vmem:[%s1680_s29] sm:$0xff] (%p78_p3), %v194_v0  ;;  %v200_v3 = vld [vmem:[%s1675_s28 + $0x48] sm:$0xff] (%p78_p3) }
  0x15   : > { %197 = vst [vmem:[%s1680_s29 + $0x8] sm:$0xff] %v196_v1  ;;  %v202_v4 = vld [vmem:[%s1675_s28 + $0x80] sm:$0xff]  ;;  %v204_v5 = vld [vmem:[%s1675_s28 + $0x88] sm:$0xff] }
  0x16   : > { %199 = vst [vmem:[%s1680_s29 + $0x10] sm:$0xff] %v198_v2  ;;  %v206_v6 = vld [vmem:[%s1675_s28 + $0xc0] sm:$0xff]  ;;  %v208_v7 = vld [vmem:[%s1675_s28 + $0xc8] sm:$0xff] }
  0x17   : > { %201 = vst [vmem:[%s1680_s29 + $0x18] sm:$0xff] %v200_v3  ;;  %v210_v8 = vld [vmem:[%s1675_s28 + $0x100] sm:$0xff]  ;;  %v212_v9 = vld [vmem:[%s1675_s28 + $0x108] sm:$0xff] }
  0x18   : > { %203 = vst [vmem:[%s1680_s29 + $0x20] sm:$0xff] %v202_v4  ;;  %v214_v10 = vld [vmem:[%s1675_s28 + $0x140] sm:$0xff]  ;;  %v216_v11 = vld [vmem:[%s1675_s28 + $0x148] sm:$0xff] }
  0x19   : > { %205 = vst [vmem:[%s1680_s29 + $0x28] sm:$0xff] %v204_v5  ;;  %v218_v12 = vld [vmem:[%s1675_s28 + $0x180] sm:$0xff]  ;;  %v220_v13 = vld [vmem:[%s1675_s28 + $0x188] sm:$0xff] }
  0x1a   : > { %207 = vst [vmem:[%s1680_s29 + $0x30] sm:$0xff] %v206_v6  ;;  %v222_v14 = vld [vmem:[%s1675_s28 + $0x1c0] sm:$0xff]  ;;  %v224_v15 = vld [vmem:[%s1675_s28 + $0x1c8] sm:$0xff] }
  0x1b   : > { %209 = vst [vmem:[%s1680_s29 + $0x38] sm:$0xff] %v208_v7  ;;  %v226_v16 = vld [vmem:[%s1675_s28 + $0x200] sm:$0xff]  ;;  %v228_v17 = vld [vmem:[%s1675_s28 + $0x208] sm:$0xff] }
  0x1c   : > { %211 = vst [vmem:[%s1680_s29 + $0x40] sm:$0xff] %v210_v8  ;;  %v230_v18 = vld [vmem:[%s1675_s28 + $0x240] sm:$0xff]  ;;  %v232_v19 = vld [vmem:[%s1675_s28 + $0x248] sm:$0xff] }
  0x1d   : > { %213 = vst [vmem:[%s1680_s29 + $0x48] sm:$0xff] %v212_v9  ;;  %v234_v20 = vld [vmem:[%s1675_s28 + $0x280] sm:$0xff]  ;;  %v236_v21 = vld [vmem:[%s1675_s28 + $0x288] sm:$0xff] }
  0x1e   : > { %215 = vst [vmem:[%s1680_s29 + $0x50] sm:$0xff] %v214_v10  ;;  %v238_v22 = vld [vmem:[%s1675_s28 + $0x2c0] sm:$0xff]  ;;  %v240_v23 = vld [vmem:[%s1675_s28 + $0x2c8] sm:$0xff] }
  0x1f   : > { %217 = vst [vmem:[%s1680_s29 + $0x58] sm:$0xff] %v216_v11  ;;  %v242_v24 = vld [vmem:[%s1675_s28 + $0x300] sm:$0xff]  ;;  %v244_v25 = vld [vmem:[%s1675_s28 + $0x308] sm:$0xff] }
  0x20   : > { %219 = vst [vmem:[%s1680_s29 + $0x60] sm:$0xff] %v218_v12  ;;  %v246_v26 = vld [vmem:[%s1675_s28 + $0x340] sm:$0xff]  ;;  %v248_v27 = vld [vmem:[%s1675_s28 + $0x348] sm:$0xff] }
  0x21   : > { %221 = vst [vmem:[%s1680_s29 + $0x68] sm:$0xff] %v220_v13  ;;  %v250_v28 = vld [vmem:[%s1675_s28 + $0x380] sm:$0xff]  ;;  %v252_v29 = vld [vmem:[%s1675_s28 + $0x388] sm:$0xff] }
  0x22   : > { %223 = vst [vmem:[%s1680_s29 + $0x70] sm:$0xff] %v222_v14  ;;  %v254_v30 = vld [vmem:[%s1675_s28 + $0x3c0] sm:$0xff]  ;;  %v256_v31 = vld [vmem:[%s1675_s28 + $0x3c8] sm:$0xff] }
  0x23   : > { %225 = vst [vmem:[%s1680_s29 + $0x78] sm:$0xff] %v224_v15 }
  0x24   : > { %227 = vst [vmem:[%s1680_s29 + $0x80] sm:$0xff] %v226_v16 }
  0x25   : > { %229 = vst [vmem:[%s1680_s29 + $0x88] sm:$0xff] %v228_v17 }
  0x26   : > { %231 = vst [vmem:[%s1680_s29 + $0x90] sm:$0xff] %v230_v18 }
  0x27   : > { %233 = vst [vmem:[%s1680_s29 + $0x98] sm:$0xff] %v232_v19 }
  0x28   : > { %235 = vst [vmem:[%s1680_s29 + $0xa0] sm:$0xff] %v234_v20 }
  0x29   : > { %237 = vst [vmem:[%s1680_s29 + $0xa8] sm:$0xff] %v236_v21 }
  0x2a   : > { %239 = vst [vmem:[%s1680_s29 + $0xb0] sm:$0xff] %v238_v22 }
  0x2b   : > { %241 = vst [vmem:[%s1680_s29 + $0xb8] sm:$0xff] %v240_v23 }
  0x2c   : > { %243 = vst [vmem:[%s1680_s29 + $0xc0] sm:$0xff] %v242_v24 }
  0x2d   : > { %245 = vst [vmem:[%s1680_s29 + $0xc8] sm:$0xff] %v244_v25 }
  0x2e   : > { %247 = vst [vmem:[%s1680_s29 + $0xd0] sm:$0xff] %v246_v26 }
  0x2f   : > { %249 = vst [vmem:[%s1680_s29 + $0xd8] sm:$0xff] %v248_v27 }
  0x30   : > { %251 = vst [vmem:[%s1680_s29 + $0xe0] sm:$0xff] %v250_v28 }
  0x31   : > { %253 = vst [vmem:[%s1680_s29 + $0xe8] sm:$0xff] %v252_v29 }
  0x32   : > { %255 = vst [vmem:[%s1680_s29 + $0xf0] sm:$0xff] %v254_v30 }
  0x33   : > { %257 = vst [vmem:[%s1680_s29 + $0xf8] sm:$0xff] %v256_v31 }
  0x34 PF: > { %p1316_p8 = scmp.ge.s32.totalorder %s1605_s16, 1  ;;  %p270_p9 = scmp.lt.s32.totalorder %s1605_s16, 5 }
  0x36   : > { %p271_p10 = pnand %p1316_p8, %p270_p9 }
  0x37   : > { %s277_s30 = sand.u32 (!%p271_p10), 1, %s1589_s12   ;;  %s1319_s28 = sshll.u32 (!%p271_p10), %s1597_s14, 2 }
  0x38   : > { %274 = sbr.rel (%p271_p10) target bundleno = 387 (0x183), region = 51  ;;  %s1317_s4 = sshll.u32 (!%p271_p10), %s277_s30, 8 }
  0x39   : > { %s1748_s5 = scalar_lea.vmem (!%p271_p10), [#allocation2], %s1317_s4  ;;  %p323_p11 = scmp.lt.s32.totalorder (!%p271_p10), %s1319_s28, 15 }
  0x3a   : > { %s1318_s8 = sshll.u32 (!%p271_p10), %s277_s30, 9 }
  0x3b   : > { %s1850_s9 = scalar_lea.vmem (!%p271_p10), [#allocation3], %s1318_s8 }
  0x3d   : > { %v1466_v32 = vld [vmem:[%s1748_s5 + $0xe0] sm:$0xf]  ;;  %v1524_v33 = vld [vmem:[%s1748_s5 + $0xec] sm:$0xf0]  ;;  %v1522_v34 = vld [vmem:[%s1748_s5 + $0xe4] sm:$0xf] }
  0x3e   : > { %v1467_v35 = vor.u32 %v1524_v33, %v1466_v32  ;;  %v1468_v36 = vld [vmem:[%s1748_s5 + $0xf0] sm:$0xf0]  ;;  %v1474_v37 = vld [vmem:[%s1748_s5 + $0xe8] sm:$0xf]  ;;  %v1525_v38 = vld [vmem:[%s1748_s5 + $0xf4] sm:$0xf0] }
  0x3f   : > { %v1471_v39 = vor.u32 %v1522_v34, %v1468_v36  ;;  %v1475_v40 = vor.u32 %v1525_v38, %v1474_v37  ;;  %v1523_v41 = vld [vmem:[%s1748_s5 + $0xec] sm:$0xf]  ;;  %v1476_v42 = vld [vmem:[%s1748_s5 + $0xf8] sm:$0xf0]  ;;  %v1450_v43 = vld [vmem:[%s1748_s5 + $0xc0] sm:$0xf] }
  0x40   : > { %727 = vmatpush.bf16.msra.mxu0 %v1467_v35  ;;  %v1479_v44 = vor.u32 %v1523_v41, %v1476_v42  ;;  %v1520_v45 = vld [vmem:[%s1748_s5 + $0xcc] sm:$0xf0]  ;;  %v1518_v46 = vld [vmem:[%s1748_s5 + $0xc4] sm:$0xf]  ;;  %v1452_v47 = vld [vmem:[%s1748_s5 + $0xd0] sm:$0xf0] }
  0x41   : > { %776 = vmatpush.bf16.msra.mxu1 %v1471_v39  ;;  %825 = vmatpush.bf16.msra.mxu2 %v1475_v40  ;;  %v1451_v48 = vor.u32 %v1520_v45, %v1450_v43  ;;  %v1455_v49 = vor.u32 %v1518_v46, %v1452_v47  ;;  %v1458_v50 = vld [vmem:[%s1748_s5 + $0xc8] sm:$0xf]  ;;  %v1521_v51 = vld [vmem:[%s1748_s5 + $0xd4] sm:$0xf0]  ;;  %v1519_v52 = vld [vmem:[%s1748_s5 + $0xcc] sm:$0xf] }
  0x42   : > { %874 = vmatpush.bf16.msra.mxu3 %v1479_v44  ;;  %v1459_v53 = vor.u32 %v1521_v51, %v1458_v50  ;;  %v1460_v54 = vld [vmem:[%s1748_s5 + $0xd8] sm:$0xf0]  ;;  %v1434_v55 = vld [vmem:[%s1748_s5 + $0xa0] sm:$0xf]  ;;  %v1516_v56 = vld [vmem:[%s1748_s5 + $0xac] sm:$0xf0] }
  0x43   : > { %v1463_v57 = vor.u32 %v1519_v52, %v1460_v54  ;;  %v1514_v58 = vld [vmem:[%s1748_s5 + $0xa4] sm:$0xf]  ;;  %v1436_v59 = vld [vmem:[%s1748_s5 + $0xb0] sm:$0xf0]  ;;  %v1442_v60 = vld [vmem:[%s1748_s5 + $0xa8] sm:$0xf]  ;;  %v1435_v61 = vor.u32 %v1516_v56, %v1434_v55 }
  0x44   : > { %728 = vmatpush.bf16.msra.mxu0 %v1451_v48  ;;  %v1517_v62 = vld [vmem:[%s1748_s5 + $0xb4] sm:$0xf0]  ;;  %v1515_v63 = vld [vmem:[%s1748_s5 + $0xac] sm:$0xf]  ;;  %v1444_v0 = vld [vmem:[%s1748_s5 + $0xb8] sm:$0xf0]  ;;  %v1439_v1 = vor.u32 %v1514_v58, %v1436_v59 }
  0x45   : > { %777 = vmatpush.bf16.msra.mxu1 %v1455_v49  ;;  %826 = vmatpush.bf16.msra.mxu2 %v1459_v53  ;;  %v1443_v2 = vor.u32 %v1517_v62, %v1442_v60  ;;  %v1418_v3 = vld [vmem:[%s1748_s5 + $0x80] sm:$0xf]  ;;  %v1512_v4 = vld [vmem:[%s1748_s5 + $0x8c] sm:$0xf0]  ;;  %v1510_v5 = vld [vmem:[%s1748_s5 + $0x84] sm:$0xf]  ;;  %v1447_v6 = vor.u32 %v1515_v63, %v1444_v0 }
  0x46   : > { %875 = vmatpush.bf16.msra.mxu3 %v1463_v57  ;;  %v1420_v7 = vld [vmem:[%s1748_s5 + $0x90] sm:$0xf0]  ;;  %v1426_v8 = vld [vmem:[%s1748_s5 + $0x88] sm:$0xf]  ;;  %v1513_v9 = vld [vmem:[%s1748_s5 + $0x94] sm:$0xf0]  ;;  %v1419_v12 = vor.u32 %v1512_v4, %v1418_v3 }
  0x47   : > { %v1511_v10 = vld [vmem:[%s1748_s5 + $0x8c] sm:$0xf]  ;;  %v1428_v11 = vld [vmem:[%s1748_s5 + $0x98] sm:$0xf0]  ;;  %v1423_v13 = vor.u32 %v1510_v5, %v1420_v7  ;;  %v1427_v14 = vor.u32 %v1513_v9, %v1426_v8  ;;  %v1402_v15 = vld [vmem:[%s1748_s5 + $0x60] sm:$0xf] }
  0x48   : > { %729 = vmatpush.bf16.msra.mxu0 %v1435_v61  ;;  %v1508_v16 = vld [vmem:[%s1748_s5 + $0x6c] sm:$0xf0]  ;;  %v1506_v17 = vld [vmem:[%s1748_s5 + $0x64] sm:$0xf]  ;;  %v1431_v18 = vor.u32 %v1511_v10, %v1428_v11  ;;  %v1404_v19 = vld [vmem:[%s1748_s5 + $0x70] sm:$0xf0] }
  0x49   : > { %778 = vmatpush.bf16.msra.mxu1 %v1439_v1  ;;  %827 = vmatpush.bf16.msra.mxu2 %v1443_v2  ;;  %v1410_v20 = vld [vmem:[%s1748_s5 + $0x68] sm:$0xf]  ;;  %v1509_v21 = vld [vmem:[%s1748_s5 + $0x74] sm:$0xf0]  ;;  %v1507_v22 = vld [vmem:[%s1748_s5 + $0x6c] sm:$0xf]  ;;  %v1403_v24 = vor.u32 %v1508_v16, %v1402_v15  ;;  %v1407_v25 = vor.u32 %v1506_v17, %v1404_v19 }
  0x4a   : > { %876 = vmatpush.bf16.msra.mxu3 %v1447_v6  ;;  %v1412_v23 = vld [vmem:[%s1748_s5 + $0x78] sm:$0xf0]  ;;  %v1411_v26 = vor.u32 %v1509_v21, %v1410_v20  ;;  %v1386_v27 = vld [vmem:[%s1748_s5 + $0x40] sm:$0xf]  ;;  %v1504_v28 = vld [vmem:[%s1748_s5 + $0x4c] sm:$0xf0] }
  0x4b   : > { %v1502_v29 = vld [vmem:[%s1748_s5 + $0x44] sm:$0xf]  ;;  %v1415_v30 = vor.u32 %v1507_v22, %v1412_v23  ;;  %v1388_v31 = vld [vmem:[%s1748_s5 + $0x50] sm:$0xf0]  ;;  %v1394_v32 = vld [vmem:[%s1748_s5 + $0x48] sm:$0xf]  ;;  %v1387_v36 = vor.u32 %v1504_v28, %v1386_v27 }
  0x4c   : > { %730 = vmatpush.bf16.msra.mxu0 %v1419_v12  ;;  %v1505_v33 = vld [vmem:[%s1748_s5 + $0x54] sm:$0xf0]  ;;  %v1503_v34 = vld [vmem:[%s1748_s5 + $0x4c] sm:$0xf]  ;;  %v1396_v35 = vld [vmem:[%s1748_s5 + $0x58] sm:$0xf0]  ;;  %v1391_v37 = vor.u32 %v1502_v29, %v1388_v31 }
  0x4d   : > { %779 = vmatpush.bf16.msra.mxu1 %v1423_v13  ;;  %828 = vmatpush.bf16.msra.mxu2 %v1427_v14  ;;  %v1395_v38 = vor.u32 %v1505_v33, %v1394_v32  ;;  %v1370_v39 = vld [vmem:[%s1748_s5 + $0x20] sm:$0xf]  ;;  %v1500_v40 = vld [vmem:[%s1748_s5 + $0x2c] sm:$0xf0]  ;;  %v1498_v41 = vld [vmem:[%s1748_s5 + $0x24] sm:$0xf]  ;;  %v1399_v42 = vor.u32 %v1503_v34, %v1396_v35 }
  0x4e   : > { %877 = vmatpush.bf16.msra.mxu3 %v1431_v18  ;;  %v1372_v43 = vld [vmem:[%s1748_s5 + $0x30] sm:$0xf0]  ;;  %v1378_v44 = vld [vmem:[%s1748_s5 + $0x28] sm:$0xf]  ;;  %v1501_v45 = vld [vmem:[%s1748_s5 + $0x34] sm:$0xf0]  ;;  %v1371_v48 = vor.u32 %v1500_v40, %v1370_v39 }
  0x4f   : > { %v1499_v46 = vld [vmem:[%s1748_s5 + $0x2c] sm:$0xf]  ;;  %v1380_v47 = vld [vmem:[%s1748_s5 + $0x38] sm:$0xf0]  ;;  %v1375_v49 = vor.u32 %v1498_v41, %v1372_v43  ;;  %v1379_v50 = vor.u32 %v1501_v45, %v1378_v44  ;;  %v1354_v51 = vld [vmem:[%s1748_s5] sm:$0xf] }
  0x50   : > { %731 = vmatpush.bf16.msra.mxu0 %v1403_v24  ;;  %v1496_v52 = vld [vmem:[%s1748_s5 + $0xc] sm:$0xf0]  ;;  %v1494_v53 = vld [vmem:[%s1748_s5 + $0x4] sm:$0xf]  ;;  %v1383_v54 = vor.u32 %v1499_v46, %v1380_v47  ;;  %v1356_v55 = vld [vmem:[%s1748_s5 + $0x10] sm:$0xf0] }
  0x51   : > { %780 = vmatpush.bf16.msra.mxu1 %v1407_v25  ;;  %829 = vmatpush.bf16.msra.mxu2 %v1411_v26  ;;  %v1362_v56 = vld [vmem:[%s1748_s5 + $0x8] sm:$0xf]  ;;  %v1497_v57 = vld [vmem:[%s1748_s5 + $0x14] sm:$0xf0]  ;;  %v1495_v58 = vld [vmem:[%s1748_s5 + $0xc] sm:$0xf]  ;;  %v1355_v60 = vor.u32 %v1496_v52, %v1354_v51  ;;  %v1359_v61 = vor.u32 %v1494_v53, %v1356_v55 }
  0x52   : > { %878 = vmatpush.bf16.msra.mxu3 %v1415_v30  ;;  %v1364_v59 = vld [vmem:[%s1748_s5 + $0x18] sm:$0xf0]  ;;  %v1363_v62 = vor.u32 %v1497_v57, %v1362_v56  ;;  %v1486_v0 = vld [vmem:[%s2133_s0] sm:$0xff]  ;;  %v1487_v1 = vld [vmem:[%s2133_s0 + $0x8] sm:$0xff]  ;;  %s2145_s28 = smov (!%p323_p11, %s1319_s28), 15  ;;  %s1526_s12 = sshll.u32 (%p1662_p6), %s1597_s14, 5 }
  0x53   : > { %v1367_v63 = vor.u32 %v1495_v58, %v1364_v59  ;;  %v1488_v2 = vld [vmem:[%s2133_s0 + $0x10] sm:$0xff]  ;;  %v1489_v3 = vld [vmem:[%s2133_s0 + $0x18] sm:$0xff]  ;;  %v1490_v4 = vld [vmem:[%s2133_s0 + $0x20] sm:$0xff]  ;;  %s325_s7 = scalar_lea.vmem %s2135_s2, %s2145_s28  ;;  %s1990_s11 = scalar_lea.vmem (%p1662_p6), %s2136_s3, %s1526_s12 }
  0x54   : > { %732 = vmatpush.bf16.msra.mxu0 %v1387_v36  ;;  %v1491_v5 = vld [vmem:[%s2133_s0 + $0x28] sm:$0xff]  ;;  %v1492_v6 = vld [vmem:[%s2133_s0 + $0x30] sm:$0xff]  ;;  %v1493_v7 = vld [vmem:[%s2133_s0 + $0x38] sm:$0xff] }
  0x55   : > { %781 = vmatpush.bf16.msra.mxu1 %v1391_v37  ;;  %830 = vmatpush.bf16.msra.mxu2 %v1395_v38  ;;  %v333_v8 = vld [vmem:[%s325_s7] sm:$0xf] }
  0x56   : > { %879 = vmatpush.bf16.msra.mxu3 %v1399_v42  ;;  %v1844_v9 = vperm.slane %v333_v8, 0  ;;  %v1846_v10 = vperm.slane %v333_v8, 1  ;;  %v1854_v15 = vperm.slane %v333_v8, 2  ;;  %v1856_v16 = vperm.slane %v333_v8, 3 }
  0x58   : > { %733 = vmatpush.bf16.msra.mxu0 %v1371_v48 }
  0x59   : > { %782 = vmatpush.bf16.msra.mxu1 %v1375_v49  ;;  %831 = vmatpush.bf16.msra.mxu2 %v1379_v50 }
  0x5a   : > { %880 = vmatpush.bf16.msra.mxu3 %v1383_v54 }
  0x5c   : > { %734 = vmatpush.bf16.msra.mxu0 %v1355_v60 }
  0x5d   : > { %783 = vmatpush.bf16.msra.mxu1 %v1359_v61  ;;  %832 = vmatpush.bf16.msra.mxu2 %v1363_v62 }
  0x5e   : > { %881 = vmatpush.bf16.msra.mxu3 %v1367_v63 }
  0x5f   : > { %735 = vmatmul.bf16.vlgmr.msra.gmra.mxu0 %v1486_v0 }
  0x60   : > { %784 = vmatmul.bf16.vlgmr.msra.gmra.mxu1 %v1486_v0  ;;  %833 = vmatmul.bf16.vlgmr.msra.gmra.mxu2 %v1486_v0 }
  0x61   : > { %882 = vmatmul.bf16.vlgmr.msra.gmra.mxu3 %v1486_v0 }
  0x6f   : > { %740 = vmatmul.bf16.gmra.mxu0 %v1487_v1 }
  0x70   : > { %789 = vmatmul.bf16.gmra.mxu1 %v1487_v1  ;;  %838 = vmatmul.bf16.gmra.mxu2 %v1487_v1 }
  0x71   : > { %887 = vmatmul.bf16.gmra.mxu3 %v1487_v1 }
  0x7f   : > { %745 = vmatmul.bf16.gmra.mxu0 %v1488_v2 }
  0x80   : > { %794 = vmatmul.bf16.gmra.mxu1 %v1488_v2  ;;  %843 = vmatmul.bf16.gmra.mxu2 %v1488_v2 }
  0x81   : > { %892 = vmatmul.bf16.gmra.mxu3 %v1488_v2 }
  0x8f   : > { %750 = vmatmul.bf16.gmra.mxu0 %v1489_v3 }
  0x90   : > { %799 = vmatmul.bf16.gmra.mxu1 %v1489_v3  ;;  %848 = vmatmul.bf16.gmra.mxu2 %v1489_v3 }
  0x91   : > { %897 = vmatmul.bf16.gmra.mxu3 %v1489_v3 }
  0x9f   : > { %755 = vmatmul.bf16.gmra.mxu0 %v1490_v4 }
  0xa0   : > { %804 = vmatmul.bf16.gmra.mxu1 %v1490_v4  ;;  %853 = vmatmul.bf16.gmra.mxu2 %v1490_v4 }
  0xa1   : > { %902 = vmatmul.bf16.gmra.mxu3 %v1490_v4 }
  0xaf   : > { %760 = vmatmul.bf16.gmra.mxu0 %v1491_v5 }
  0xb0   : > { %809 = vmatmul.bf16.gmra.mxu1 %v1491_v5  ;;  %858 = vmatmul.bf16.gmra.mxu2 %v1491_v5 }
  0xb1   : > { %907 = vmatmul.bf16.gmra.mxu3 %v1491_v5 }
  0xbf   : > { %765 = vmatmul.bf16.gmra.mxu0 %v1492_v6 }
  0xc0   : > { %814 = vmatmul.bf16.gmra.mxu1 %v1492_v6  ;;  %863 = vmatmul.bf16.gmra.mxu2 %v1492_v6 }
  0xc1   : > { %912 = vmatmul.bf16.gmra.mxu3 %v1492_v6 }
  0xcf   : > { %770 = vmatmul.bf16.gmra.mxu0 %v1493_v7 }
  0xd0   : > { %819 = vmatmul.bf16.gmra.mxu1 %v1493_v7  ;;  %868 = vmatmul.bf16.gmra.mxu2 %v1493_v7 }
  0xd1   : > { %917 = vmatmul.bf16.gmra.mxu3 %v1493_v7 }
  0xdc   : > { %v736_v11 = vpop.f32.mrf.mxu0 }
  0xdd   : > { %v923_v12 = vadd.f32 %v736_v11, %v1844_v9  ;;  %v785_v13 = vpop.f32.mrf.mxu1 }
  0xde   : > { %v924_v14 = vadd.f32 %v785_v13, %v1846_v10 }
  0xdf   : > { %987 = vst [vmem:[%s1850_s9] sm:$0xff] %v923_v12 }
  0xe0   : > { %988 = vst [vmem:[%s1850_s9 + $0x8] sm:$0xff] %v924_v14 }
  0xe3   : > { %v834_v17 = vpop.f32.mrf.mxu2 }
  0xe4   : > { %v925_v18 = vadd.f32 %v834_v17, %v1854_v15  ;;  %v883_v19 = vpop.f32.mrf.mxu3  ;;  %v738_v20 = vpop.f32.mrf.mxu0 }
  0xe5   : > { %v926_v21 = vadd.f32 %v883_v19, %v1856_v16  ;;  %v927_v22 = vadd.f32 %v738_v20, %v1844_v9  ;;  %v787_v23 = vpop.f32.mrf.mxu1 }
  0xe6   : > { %989 = vst [vmem:[%s1850_s9 + $0x10] sm:$0xff] %v925_v18  ;;  %v928_v24 = vadd.f32 %v787_v23, %v1846_v10 }
  0xe7   : > { %990 = vst [vmem:[%s1850_s9 + $0x18] sm:$0xff] %v926_v21 }
  0xe8   : > { %991 = vst [vmem:[%s1850_s9 + $0x20] sm:$0xff] %v927_v22 }
  0xe9   : > { %992 = vst [vmem:[%s1850_s9 + $0x28] sm:$0xff] %v928_v24 }
  0xeb   : > { %v836_v25 = vpop.f32.mrf.mxu2 }
  0xec   : > { %v929_v26 = vadd.f32 %v836_v25, %v1854_v15  ;;  %v885_v27 = vpop.f32.mrf.mxu3  ;;  %v741_v28 = vpop.f32.mrf.mxu0 }
  0xed   : > { %v930_v29 = vadd.f32 %v885_v27, %v1856_v16  ;;  %v931_v30 = vadd.f32 %v741_v28, %v1844_v9  ;;  %v790_v31 = vpop.f32.mrf.mxu1 }
  0xee   : > { %993 = vst [vmem:[%s1850_s9 + $0x30] sm:$0xff] %v929_v26  ;;  %v932_v32 = vadd.f32 %v790_v31, %v1846_v10 }
  0xef   : > { %994 = vst [vmem:[%s1850_s9 + $0x38] sm:$0xff] %v930_v29 }
  0xf0   : > { %995 = vst [vmem:[%s1850_s9 + $0x40] sm:$0xff] %v931_v30 }
  0xf1   : > { %996 = vst [vmem:[%s1850_s9 + $0x48] sm:$0xff] %v932_v32 }
  0xf3   : > { %v839_v33 = vpop.f32.mrf.mxu2 }
  0xf4   : > { %v933_v34 = vadd.f32 %v839_v33, %v1854_v15  ;;  %v888_v35 = vpop.f32.mrf.mxu3  ;;  %v743_v36 = vpop.f32.mrf.mxu0 }
  0xf5   : > { %v934_v37 = vadd.f32 %v888_v35, %v1856_v16  ;;  %v935_v38 = vadd.f32 %v743_v36, %v1844_v9  ;;  %v792_v39 = vpop.f32.mrf.mxu1 }
  0xf6   : > { %997 = vst [vmem:[%s1850_s9 + $0x50] sm:$0xff] %v933_v34  ;;  %v936_v40 = vadd.f32 %v792_v39, %v1846_v10 }
  0xf7   : > { %998 = vst [vmem:[%s1850_s9 + $0x58] sm:$0xff] %v934_v37 }
  0xf8   : > { %999 = vst [vmem:[%s1850_s9 + $0x60] sm:$0xff] %v935_v38 }
  0xf9   : > { %1000 = vst [vmem:[%s1850_s9 + $0x68] sm:$0xff] %v936_v40 }
  0xfb   : > { %v841_v41 = vpop.f32.mrf.mxu2 }
  0xfc   : > { %v937_v42 = vadd.f32 %v841_v41, %v1854_v15  ;;  %v890_v43 = vpop.f32.mrf.mxu3  ;;  %v746_v44 = vpop.f32.mrf.mxu0 }
  0xfd   : > { %v938_v45 = vadd.f32 %v890_v43, %v1856_v16  ;;  %v939_v46 = vadd.f32 %v746_v44, %v1844_v9  ;;  %v795_v47 = vpop.f32.mrf.mxu1 }
  0xfe   : > { %1001 = vst [vmem:[%s1850_s9 + $0x70] sm:$0xff] %v937_v42  ;;  %v940_v48 = vadd.f32 %v795_v47, %v1846_v10 }
  0xff   : > { %1002 = vst [vmem:[%s1850_s9 + $0x78] sm:$0xff] %v938_v45 }
 0x100   : > { %1003 = vst [vmem:[%s1850_s9 + $0x80] sm:$0xff] %v939_v46 }
 0x101   : > { %1004 = vst [vmem:[%s1850_s9 + $0x88] sm:$0xff] %v940_v48 }
 0x103   : > { %v844_v49 = vpop.f32.mrf.mxu2 }
 0x104   : > { %v941_v50 = vadd.f32 %v844_v49, %v1854_v15  ;;  %v893_v51 = vpop.f32.mrf.mxu3  ;;  %v748_v52 = vpop.f32.mrf.mxu0 }
 0x105   : > { %v942_v53 = vadd.f32 %v893_v51, %v1856_v16  ;;  %v943_v54 = vadd.f32 %v748_v52, %v1844_v9  ;;  %v797_v55 = vpop.f32.mrf.mxu1 }
 0x106   : > { %1005 = vst [vmem:[%s1850_s9 + $0x90] sm:$0xff] %v941_v50  ;;  %v944_v56 = vadd.f32 %v797_v55, %v1846_v10 }
 0x107   : > { %1006 = vst [vmem:[%s1850_s9 + $0x98] sm:$0xff] %v942_v53 }
 0x108   : > { %1007 = vst [vmem:[%s1850_s9 + $0xa0] sm:$0xff] %v943_v54 }
 0x109   : > { %1008 = vst [vmem:[%s1850_s9 + $0xa8] sm:$0xff] %v944_v56 }
 0x10b   : > { %v846_v57 = vpop.f32.mrf.mxu2 }
 0x10c   : > { %v945_v58 = vadd.f32 %v846_v57, %v1854_v15  ;;  %v895_v59 = vpop.f32.mrf.mxu3  ;;  %v751_v60 = vpop.f32.mrf.mxu0 }
 0x10d   : > { %v946_v61 = vadd.f32 %v895_v59, %v1856_v16  ;;  %v947_v62 = vadd.f32 %v751_v60, %v1844_v9  ;;  %v800_v63 = vpop.f32.mrf.mxu1 }
 0x10e   : > { %1009 = vst [vmem:[%s1850_s9 + $0xb0] sm:$0xff] %v945_v58  ;;  %v948_v0 = vadd.f32 %v800_v63, %v1846_v10 }
 0x10f   : > { %1010 = vst [vmem:[%s1850_s9 + $0xb8] sm:$0xff] %v946_v61 }
 0x110   : > { %1011 = vst [vmem:[%s1850_s9 + $0xc0] sm:$0xff] %v947_v62 }
 0x111   : > { %1012 = vst [vmem:[%s1850_s9 + $0xc8] sm:$0xff] %v948_v0 }
 0x113   : > { %v849_v1 = vpop.f32.mrf.mxu2 }
 0x114   : > { %v949_v2 = vadd.f32 %v849_v1, %v1854_v15  ;;  %v898_v3 = vpop.f32.mrf.mxu3  ;;  %v753_v4 = vpop.f32.mrf.mxu0 }
 0x115   : > { %v950_v5 = vadd.f32 %v898_v3, %v1856_v16  ;;  %v951_v6 = vadd.f32 %v753_v4, %v1844_v9  ;;  %v802_v7 = vpop.f32.mrf.mxu1 }
 0x116   : > { %1013 = vst [vmem:[%s1850_s9 + $0xd0] sm:$0xff] %v949_v2  ;;  %v952_v8 = vadd.f32 %v802_v7, %v1846_v10 }
 0x117   : > { %1014 = vst [vmem:[%s1850_s9 + $0xd8] sm:$0xff] %v950_v5 }
 0x118   : > { %1015 = vst [vmem:[%s1850_s9 + $0xe0] sm:$0xff] %v951_v6 }
 0x119   : > { %1016 = vst [vmem:[%s1850_s9 + $0xe8] sm:$0xff] %v952_v8 }
 0x11b   : > { %v851_v11 = vpop.f32.mrf.mxu2 }
 0x11c   : > { %v953_v12 = vadd.f32 %v851_v11, %v1854_v15  ;;  %v900_v13 = vpop.f32.mrf.mxu3  ;;  %v756_v14 = vpop.f32.mrf.mxu0 }
 0x11d   : > { %v954_v17 = vadd.f32 %v900_v13, %v1856_v16  ;;  %v955_v18 = vadd.f32 %v756_v14, %v1844_v9  ;;  %v805_v19 = vpop.f32.mrf.mxu1 }
 0x11e   : > { %1017 = vst [vmem:[%s1850_s9 + $0xf0] sm:$0xff] %v953_v12  ;;  %v956_v20 = vadd.f32 %v805_v19, %v1846_v10 }
 0x11f   : > { %1018 = vst [vmem:[%s1850_s9 + $0xf8] sm:$0xff] %v954_v17 }
 0x120   : > { %1019 = vst [vmem:[%s1850_s9 + $0x100] sm:$0xff] %v955_v18 }
 0x121   : > { %1020 = vst [vmem:[%s1850_s9 + $0x108] sm:$0xff] %v956_v20 }
 0x123   : > { %v854_v21 = vpop.f32.mrf.mxu2 }
 0x124   : > { %v957_v22 = vadd.f32 %v854_v21, %v1854_v15  ;;  %v903_v23 = vpop.f32.mrf.mxu3  ;;  %v758_v24 = vpop.f32.mrf.mxu0  ;;  %v1084_v21 = vld [vmem:[%s1850_s9 + $0x20] sm:$0xff] (%p1662_p6) }
 0x125   : > { %v958_v25 = vadd.f32 %v903_v23, %v1856_v16  ;;  %v959_v26 = vadd.f32 %v758_v24, %v1844_v9  ;;  %v807_v27 = vpop.f32.mrf.mxu1  ;;  %v1088_v23 = vld [vmem:[%s1850_s9 + $0x30] sm:$0xff] (%p1662_p6)  ;;  %1085 = vst [vmem:[%s1990_s11 + $0x80] sm:$0xff] (%p1662_p6), %v1084_v21  ;;  %v1090_v24 = vld [vmem:[%s1850_s9 + $0x38] sm:$0xff] (%p1662_p6) }
 0x126   : > { %1021 = vst [vmem:[%s1850_s9 + $0x110] sm:$0xff] %v957_v22  ;;  %v960_v28 = vadd.f32 %v807_v27, %v1846_v10  ;;  %v1086_v22 = vld [vmem:[%s1850_s9 + $0x28] sm:$0xff] (%p1662_p6)  ;;  %v1096_v27 = vld [vmem:[%s1850_s9 + $0x50] sm:$0xff] (%p1662_p6) }
 0x127   : > { %1022 = vst [vmem:[%s1850_s9 + $0x118] sm:$0xff] %v958_v25  ;;  %v1092_v25 = vld [vmem:[%s1850_s9 + $0x40] sm:$0xff] (%p1662_p6) }
 0x128   : > { %1023 = vst [vmem:[%s1850_s9 + $0x120] sm:$0xff] %v959_v26  ;;  %v1094_v26 = vld [vmem:[%s1850_s9 + $0x48] sm:$0xff] (%p1662_p6) }
 0x129   : > { %1024 = vst [vmem:[%s1850_s9 + $0x128] sm:$0xff] %v960_v28  ;;  %v1098_v28 = vld [vmem:[%s1850_s9 + $0x58] sm:$0xff] (%p1662_p6) }
 0x12a   : > { %1087 = vst [vmem:[%s1990_s11 + $0x88] sm:$0xff] (%p1662_p6), %v1086_v22 }
 0x12b   : > { %v856_v29 = vpop.f32.mrf.mxu2  ;;  %1089 = vst [vmem:[%s1990_s11 + $0x90] sm:$0xff] (%p1662_p6), %v1088_v23 }
 0x12c   : > { %v961_v30 = vadd.f32 %v856_v29, %v1854_v15  ;;  %v905_v31 = vpop.f32.mrf.mxu3  ;;  %v761_v32 = vpop.f32.mrf.mxu0  ;;  %1091 = vst [vmem:[%s1990_s11 + $0x98] sm:$0xff] (%p1662_p6), %v1090_v24  ;;  %v1100_v29 = vld [vmem:[%s1850_s9 + $0x60] sm:$0xff] (%p1662_p6) }
 0x12d   : > { %v962_v33 = vadd.f32 %v905_v31, %v1856_v16  ;;  %v963_v34 = vadd.f32 %v761_v32, %v1844_v9  ;;  %v810_v35 = vpop.f32.mrf.mxu1  ;;  %1093 = vst [vmem:[%s1990_s11 + $0x100] sm:$0xff] (%p1662_p6), %v1092_v25  ;;  %v1104_v31 = vld [vmem:[%s1850_s9 + $0x70] sm:$0xff] (%p1662_p6)  ;;  %v1106_v32 = vld [vmem:[%s1850_s9 + $0x78] sm:$0xff] (%p1662_p6) }
 0x12e   : > { %1025 = vst [vmem:[%s1850_s9 + $0x130] sm:$0xff] %v961_v30  ;;  %v964_v36 = vadd.f32 %v810_v35, %v1846_v10  ;;  %v1102_v30 = vld [vmem:[%s1850_s9 + $0x68] sm:$0xff] (%p1662_p6)  ;;  %v1112_v35 = vld [vmem:[%s1850_s9 + $0x90] sm:$0xff] (%p1662_p6) }
 0x12f   : > { %1026 = vst [vmem:[%s1850_s9 + $0x138] sm:$0xff] %v962_v33  ;;  %v1108_v33 = vld [vmem:[%s1850_s9 + $0x80] sm:$0xff] (%p1662_p6) }
 0x130   : > { %1027 = vst [vmem:[%s1850_s9 + $0x140] sm:$0xff] %v963_v34  ;;  %v1110_v34 = vld [vmem:[%s1850_s9 + $0x88] sm:$0xff] (%p1662_p6) }
 0x131   : > { %1028 = vst [vmem:[%s1850_s9 + $0x148] sm:$0xff] %v964_v36  ;;  %v1114_v36 = vld [vmem:[%s1850_s9 + $0x98] sm:$0xff] (%p1662_p6) }
 0x132   : > { %1095 = vst [vmem:[%s1990_s11 + $0x108] sm:$0xff] (%p1662_p6), %v1094_v26 }
 0x133   : > { %v859_v37 = vpop.f32.mrf.mxu2  ;;  %1097 = vst [vmem:[%s1990_s11 + $0x110] sm:$0xff] (%p1662_p6), %v1096_v27 }
 0x134   : > { %v965_v38 = vadd.f32 %v859_v37, %v1854_v15  ;;  %v908_v39 = vpop.f32.mrf.mxu3  ;;  %v763_v40 = vpop.f32.mrf.mxu0  ;;  %1099 = vst [vmem:[%s1990_s11 + $0x118] sm:$0xff] (%p1662_p6), %v1098_v28  ;;  %v1116_v37 = vld [vmem:[%s1850_s9 + $0xa0] sm:$0xff] (%p1662_p6) }
 0x135   : > { %v966_v41 = vadd.f32 %v908_v39, %v1856_v16  ;;  %v967_v42 = vadd.f32 %v763_v40, %v1844_v9  ;;  %v812_v43 = vpop.f32.mrf.mxu1  ;;  %1101 = vst [vmem:[%s1990_s11 + $0x180] sm:$0xff] (%p1662_p6), %v1100_v29  ;;  %v1120_v39 = vld [vmem:[%s1850_s9 + $0xb0] sm:$0xff] (%p1662_p6)  ;;  %v1122_v40 = vld [vmem:[%s1850_s9 + $0xb8] sm:$0xff] (%p1662_p6) }
 0x136   : > { %1029 = vst [vmem:[%s1850_s9 + $0x150] sm:$0xff] %v965_v38  ;;  %v968_v44 = vadd.f32 %v812_v43, %v1846_v10  ;;  %v1118_v38 = vld [vmem:[%s1850_s9 + $0xa8] sm:$0xff] (%p1662_p6)  ;;  %v1128_v43 = vld [vmem:[%s1850_s9 + $0xd0] sm:$0xff] (%p1662_p6) }
 0x137   : > { %1030 = vst [vmem:[%s1850_s9 + $0x158] sm:$0xff] %v966_v41  ;;  %v1124_v41 = vld [vmem:[%s1850_s9 + $0xc0] sm:$0xff] (%p1662_p6) }
 0x138   : > { %1031 = vst [vmem:[%s1850_s9 + $0x160] sm:$0xff] %v967_v42  ;;  %v1126_v42 = vld [vmem:[%s1850_s9 + $0xc8] sm:$0xff] (%p1662_p6) }
 0x139   : > { %1032 = vst [vmem:[%s1850_s9 + $0x168] sm:$0xff] %v968_v44  ;;  %v1130_v44 = vld [vmem:[%s1850_s9 + $0xd8] sm:$0xff] (%p1662_p6) }
 0x13a   : > { %1103 = vst [vmem:[%s1990_s11 + $0x188] sm:$0xff] (%p1662_p6), %v1102_v30 }
 0x13b   : > { %v861_v45 = vpop.f32.mrf.mxu2  ;;  %1105 = vst [vmem:[%s1990_s11 + $0x190] sm:$0xff] (%p1662_p6), %v1104_v31 }
 0x13c   : > { %v969_v46 = vadd.f32 %v861_v45, %v1854_v15  ;;  %v910_v47 = vpop.f32.mrf.mxu3  ;;  %v766_v48 = vpop.f32.mrf.mxu0  ;;  %1107 = vst [vmem:[%s1990_s11 + $0x198] sm:$0xff] (%p1662_p6), %v1106_v32  ;;  %v1132_v45 = vld [vmem:[%s1850_s9 + $0xe0] sm:$0xff] (%p1662_p6) }
 0x13d   : > { %v970_v49 = vadd.f32 %v910_v47, %v1856_v16  ;;  %v971_v50 = vadd.f32 %v766_v48, %v1844_v9  ;;  %v815_v51 = vpop.f32.mrf.mxu1  ;;  %1109 = vst [vmem:[%s1990_s11 + $0x200] sm:$0xff] (%p1662_p6), %v1108_v33  ;;  %v1136_v47 = vld [vmem:[%s1850_s9 + $0xf0] sm:$0xff] (%p1662_p6)  ;;  %v1138_v48 = vld [vmem:[%s1850_s9 + $0xf8] sm:$0xff] (%p1662_p6) }
 0x13e   : > { %1033 = vst [vmem:[%s1850_s9 + $0x170] sm:$0xff] %v969_v46  ;;  %v972_v52 = vadd.f32 %v815_v51, %v1846_v10  ;;  %v1134_v46 = vld [vmem:[%s1850_s9 + $0xe8] sm:$0xff] (%p1662_p6)  ;;  %v1144_v51 = vld [vmem:[%s1850_s9 + $0x110] sm:$0xff] (%p1662_p6) }
 0x13f   : > { %1034 = vst [vmem:[%s1850_s9 + $0x178] sm:$0xff] %v970_v49  ;;  %v1140_v49 = vld [vmem:[%s1850_s9 + $0x100] sm:$0xff] (%p1662_p6) }
 0x140   : > { %1035 = vst [vmem:[%s1850_s9 + $0x180] sm:$0xff] %v971_v50  ;;  %v1142_v50 = vld [vmem:[%s1850_s9 + $0x108] sm:$0xff] (%p1662_p6) }
 0x141   : > { %1036 = vst [vmem:[%s1850_s9 + $0x188] sm:$0xff] %v972_v52  ;;  %v1146_v52 = vld [vmem:[%s1850_s9 + $0x118] sm:$0xff] (%p1662_p6) }
 0x142   : > { %1111 = vst [vmem:[%s1990_s11 + $0x208] sm:$0xff] (%p1662_p6), %v1110_v34 }
 0x143   : > { %v864_v53 = vpop.f32.mrf.mxu2  ;;  %1113 = vst [vmem:[%s1990_s11 + $0x210] sm:$0xff] (%p1662_p6), %v1112_v35 }
 0x144   : > { %v973_v54 = vadd.f32 %v864_v53, %v1854_v15  ;;  %v913_v55 = vpop.f32.mrf.mxu3  ;;  %v768_v56 = vpop.f32.mrf.mxu0  ;;  %1115 = vst [vmem:[%s1990_s11 + $0x218] sm:$0xff] (%p1662_p6), %v1114_v36  ;;  %v1148_v53 = vld [vmem:[%s1850_s9 + $0x120] sm:$0xff] (%p1662_p6) }
 0x145   : > { %v974_v57 = vadd.f32 %v913_v55, %v1856_v16  ;;  %v975_v58 = vadd.f32 %v768_v56, %v1844_v9  ;;  %v817_v59 = vpop.f32.mrf.mxu1  ;;  %1117 = vst [vmem:[%s1990_s11 + $0x280] sm:$0xff] (%p1662_p6), %v1116_v37  ;;  %v1152_v55 = vld [vmem:[%s1850_s9 + $0x130] sm:$0xff] (%p1662_p6)  ;;  %v1154_v56 = vld [vmem:[%s1850_s9 + $0x138] sm:$0xff] (%p1662_p6) }
 0x146   : > { %1037 = vst [vmem:[%s1850_s9 + $0x190] sm:$0xff] %v973_v54  ;;  %v976_v60 = vadd.f32 %v817_v59, %v1846_v10  ;;  %v1150_v54 = vld [vmem:[%s1850_s9 + $0x128] sm:$0xff] (%p1662_p6)  ;;  %v1160_v59 = vld [vmem:[%s1850_s9 + $0x150] sm:$0xff] (%p1662_p6) }
 0x147   : > { %1038 = vst [vmem:[%s1850_s9 + $0x198] sm:$0xff] %v974_v57  ;;  %v1156_v57 = vld [vmem:[%s1850_s9 + $0x140] sm:$0xff] (%p1662_p6) }
 0x148   : > { %1039 = vst [vmem:[%s1850_s9 + $0x1a0] sm:$0xff] %v975_v58  ;;  %v1158_v58 = vld [vmem:[%s1850_s9 + $0x148] sm:$0xff] (%p1662_p6) }
 0x149   : > { %1040 = vst [vmem:[%s1850_s9 + $0x1a8] sm:$0xff] %v976_v60  ;;  %v1162_v60 = vld [vmem:[%s1850_s9 + $0x158] sm:$0xff] (%p1662_p6) }
 0x14a   : > { %1119 = vst [vmem:[%s1990_s11 + $0x288] sm:$0xff] (%p1662_p6), %v1118_v38 }
 0x14b   : > { %v866_v61 = vpop.f32.mrf.mxu2  ;;  %1121 = vst [vmem:[%s1990_s11 + $0x290] sm:$0xff] (%p1662_p6), %v1120_v39 }
 0x14c   : > { %v977_v62 = vadd.f32 %v866_v61, %v1854_v15  ;;  %v915_v63 = vpop.f32.mrf.mxu3  ;;  %v771_v0 = vpop.f32.mrf.mxu0  ;;  %1123 = vst [vmem:[%s1990_s11 + $0x298] sm:$0xff] (%p1662_p6), %v1122_v40  ;;  %v1164_v61 = vld [vmem:[%s1850_s9 + $0x160] sm:$0xff] (%p1662_p6) }
 0x14d   : > { %v978_v1 = vadd.f32 %v915_v63, %v1856_v16  ;;  %v979_v2 = vadd.f32 %v771_v0, %v1844_v9  ;;  %v820_v3 = vpop.f32.mrf.mxu1  ;;  %1125 = vst [vmem:[%s1990_s11 + $0x300] sm:$0xff] (%p1662_p6), %v1124_v41  ;;  %v1168_v63 = vld [vmem:[%s1850_s9 + $0x170] sm:$0xff] (%p1662_p6)  ;;  %v1170_v0 = vld [vmem:[%s1850_s9 + $0x178] sm:$0xff] (%p1662_p6) }
 0x14e   : > { %1041 = vst [vmem:[%s1850_s9 + $0x1b0] sm:$0xff] %v977_v62  ;;  %v980_v4 = vadd.f32 %v820_v3, %v1846_v10  ;;  %v1166_v62 = vld [vmem:[%s1850_s9 + $0x168] sm:$0xff] (%p1662_p6)  ;;  %v1176_v3 = vld [vmem:[%s1850_s9 + $0x190] sm:$0xff] (%p1662_p6) }
 0x14f   : > { %1042 = vst [vmem:[%s1850_s9 + $0x1b8] sm:$0xff] %v978_v1  ;;  %v1172_v1 = vld [vmem:[%s1850_s9 + $0x180] sm:$0xff] (%p1662_p6) }
 0x150   : > { %1043 = vst [vmem:[%s1850_s9 + $0x1c0] sm:$0xff] %v979_v2  ;;  %v1174_v2 = vld [vmem:[%s1850_s9 + $0x188] sm:$0xff] (%p1662_p6) }
 0x151   : > { %1044 = vst [vmem:[%s1850_s9 + $0x1c8] sm:$0xff] %v980_v4  ;;  %v1178_v4 = vld [vmem:[%s1850_s9 + $0x198] sm:$0xff] (%p1662_p6) }
 0x152   : > { %1127 = vst [vmem:[%s1990_s11 + $0x308] sm:$0xff] (%p1662_p6), %v1126_v42 }
 0x153   : > { %v869_v5 = vpop.f32.mrf.mxu2  ;;  %1129 = vst [vmem:[%s1990_s11 + $0x310] sm:$0xff] (%p1662_p6), %v1128_v43 }
 0x154   : > { %v981_v6 = vadd.f32 %v869_v5, %v1854_v15  ;;  %v918_v7 = vpop.f32.mrf.mxu3  ;;  %v773_v8 = vpop.f32.mrf.mxu0  ;;  %1131 = vst [vmem:[%s1990_s11 + $0x318] sm:$0xff] (%p1662_p6), %v1130_v44  ;;  %v1180_v5 = vld [vmem:[%s1850_s9 + $0x1a0] sm:$0xff] (%p1662_p6) }
 0x155   : > { %v982_v11 = vadd.f32 %v918_v7, %v1856_v16  ;;  %v983_v12 = vadd.f32 %v773_v8, %v1844_v9  ;;  %v822_v13 = vpop.f32.mrf.mxu1  ;;  %v1076_v9 = vld [vmem:[%s1850_s9] sm:$0xff] (%p1662_p6)  ;;  %1133 = vst [vmem:[%s1990_s11 + $0x380] sm:$0xff] (%p1662_p6), %v1132_v45  ;;  %v1184_v7 = vld [vmem:[%s1850_s9 + $0x1b0] sm:$0xff] (%p1662_p6) }
 0x156   : > { %1045 = vst [vmem:[%s1850_s9 + $0x1d0] sm:$0xff] %v981_v6  ;;  %v984_v14 = vadd.f32 %v822_v13, %v1846_v10  ;;  %v1078_v10 = vld [vmem:[%s1850_s9 + $0x8] sm:$0xff] (%p1662_p6)  ;;  %v1186_v8 = vld [vmem:[%s1850_s9 + $0x1b8] sm:$0xff] (%p1662_p6) }
 0x157   : > { %1046 = vst [vmem:[%s1850_s9 + $0x1d8] sm:$0xff] %v982_v11  ;;  %v1182_v6 = vld [vmem:[%s1850_s9 + $0x1a8] sm:$0xff] (%p1662_p6)  ;;  %v1188_v11 = vld [vmem:[%s1850_s9 + $0x1c0] sm:$0xff] (%p1662_p6) }
 0x158   : > { %1047 = vst [vmem:[%s1850_s9 + $0x1e0] sm:$0xff] %v983_v12  ;;  %v1190_v12 = vld [vmem:[%s1850_s9 + $0x1c8] sm:$0xff] (%p1662_p6) }
 0x159   : > { %1048 = vst [vmem:[%s1850_s9 + $0x1e8] sm:$0xff] %v984_v14 }
 0x15a   : > { %1077 = vst [vmem:[%s1990_s11] sm:$0xff] (%p1662_p6), %v1076_v9 }
 0x15b   : > { %v871_v17 = vpop.f32.mrf.mxu2  ;;  %1057 = sbr.rel (!%p1662_p6) target bundleno = 387 (0x183), region = 63  ;;  %1079 = vst [vmem:[%s1990_s11 + $0x8] sm:$0xff] (%p1662_p6), %v1078_v10 }
 0x15c   : > { %v985_v18 = vadd.f32 %v871_v17, %v1854_v15  ;;  %v920_v19 = vpop.f32.mrf.mxu3  ;;  %v1080_v15 = vld [vmem:[%s1850_s9 + $0x10] sm:$0xff] (%p1662_p6)  ;;  %1135 = vst [vmem:[%s1990_s11 + $0x388] sm:$0xff] (%p1662_p6), %v1134_v46 }
 0x15d   : > { %v986_v20 = vadd.f32 %v920_v19, %v1856_v16  ;;  %v1082_v16 = vld [vmem:[%s1850_s9 + $0x18] sm:$0xff] (%p1662_p6)  ;;  %1081 = vst [vmem:[%s1990_s11 + $0x10] sm:$0xff] (%p1662_p6), %v1080_v15  ;;  %v1192_v13 = vld [vmem:[%s1850_s9 + $0x1d0] sm:$0xff] (%p1662_p6) }
 0x15e   : > { %1049 = vst [vmem:[%s1850_s9 + $0x1f0] sm:$0xff] %v985_v18  ;;  %v1194_v14 = vld [vmem:[%s1850_s9 + $0x1d8] sm:$0xff] (%p1662_p6) }
 0x15f   : > { %1050 = vst [vmem:[%s1850_s9 + $0x1f8] sm:$0xff] %v986_v20  ;;  %v1196_v17 = vld [vmem:[%s1850_s9 + $0x1e0] sm:$0xff] (%p1662_p6) }
 0x160   : > { %1083 = vst [vmem:[%s1990_s11 + $0x18] sm:$0xff] %v1082_v16  ;;  %v1198_v18 = vld [vmem:[%s1850_s9 + $0x1e8] sm:$0xff] }
 0x161   : > { %1137 = vst [vmem:[%s1990_s11 + $0x390] sm:$0xff] %v1136_v47 }
 0x162   : > { %1139 = vst [vmem:[%s1990_s11 + $0x398] sm:$0xff] %v1138_v48 }
 0x163   : > { %1141 = vst [vmem:[%s1990_s11 + $0x400] sm:$0xff] %v1140_v49 }
 0x164   : > { %1143 = vst [vmem:[%s1990_s11 + $0x408] sm:$0xff] %v1142_v50 }
 0x165   : > { %1145 = vst [vmem:[%s1990_s11 + $0x410] sm:$0xff] %v1144_v51  ;;  %v1200_v19 = vld [vmem:[%s1850_s9 + $0x1f0] sm:$0xff] }
 0x166   : > { %1147 = vst [vmem:[%s1990_s11 + $0x418] sm:$0xff] %v1146_v52  ;;  %v1202_v20 = vld [vmem:[%s1850_s9 + $0x1f8] sm:$0xff] }
 0x167   : > { %1149 = vst [vmem:[%s1990_s11 + $0x480] sm:$0xff] %v1148_v53 }
 0x168   : > { %1151 = vst [vmem:[%s1990_s11 + $0x488] sm:$0xff] %v1150_v54 }
 0x169   : > { %1153 = vst [vmem:[%s1990_s11 + $0x490] sm:$0xff] %v1152_v55 }
 0x16a   : > { %1155 = vst [vmem:[%s1990_s11 + $0x498] sm:$0xff] %v1154_v56 }
 0x16b   : > { %1157 = vst [vmem:[%s1990_s11 + $0x500] sm:$0xff] %v1156_v57 }
 0x16c   : > { %1159 = vst [vmem:[%s1990_s11 + $0x508] sm:$0xff] %v1158_v58 }
 0x16d   : > { %1161 = vst [vmem:[%s1990_s11 + $0x510] sm:$0xff] %v1160_v59 }
 0x16e   : > { %1163 = vst [vmem:[%s1990_s11 + $0x518] sm:$0xff] %v1162_v60 }
 0x16f   : > { %1165 = vst [vmem:[%s1990_s11 + $0x580] sm:$0xff] %v1164_v61 }
 0x170   : > { %1167 = vst [vmem:[%s1990_s11 + $0x588] sm:$0xff] %v1166_v62 }
 0x171   : > { %1169 = vst [vmem:[%s1990_s11 + $0x590] sm:$0xff] %v1168_v63 }
 0x172   : > { %1171 = vst [vmem:[%s1990_s11 + $0x598] sm:$0xff] %v1170_v0 }
 0x173   : > { %1173 = vst [vmem:[%s1990_s11 + $0x600] sm:$0xff] %v1172_v1 }
 0x174   : > { %1175 = vst [vmem:[%s1990_s11 + $0x608] sm:$0xff] %v1174_v2 }
 0x175   : > { %1177 = vst [vmem:[%s1990_s11 + $0x610] sm:$0xff] %v1176_v3 }
 0x176   : > { %1179 = vst [vmem:[%s1990_s11 + $0x618] sm:$0xff] %v1178_v4 }
 0x177   : > { %1181 = vst [vmem:[%s1990_s11 + $0x680] sm:$0xff] %v1180_v5 }
 0x178   : > { %1183 = vst [vmem:[%s1990_s11 + $0x688] sm:$0xff] %v1182_v6 }
 0x179   : > { %1185 = vst [vmem:[%s1990_s11 + $0x690] sm:$0xff] %v1184_v7 }
 0x17a   : > { %1187 = vst [vmem:[%s1990_s11 + $0x698] sm:$0xff] %v1186_v8 }
 0x17b   : > { %1189 = vst [vmem:[%s1990_s11 + $0x700] sm:$0xff] %v1188_v11 }
 0x17c   : > { %1191 = vst [vmem:[%s1990_s11 + $0x708] sm:$0xff] %v1190_v12 }
 0x17d   : > { %1193 = vst [vmem:[%s1990_s11 + $0x710] sm:$0xff] %v1192_v13 }
 0x17e   : > { %1195 = vst [vmem:[%s1990_s11 + $0x718] sm:$0xff] %v1194_v14 }
 0x17f   : > { %1197 = vst [vmem:[%s1990_s11 + $0x780] sm:$0xff] %v1196_v17 }
 0x180   : > { %1199 = vst [vmem:[%s1990_s11 + $0x788] sm:$0xff] %v1198_v18 }
 0x181   : > { %1201 = vst [vmem:[%s1990_s11 + $0x790] sm:$0xff] %v1200_v19 }
 0x182   : > { %1203 = vst [vmem:[%s1990_s11 + $0x798] sm:$0xff] %v1202_v20 }
 0x183 PF: > { %s13_s16 = sadd.s32 1, %s1605_s16   ;;  %s2138_s12 = smov %s1593_s13 }
 0x184   : > { %p10_p12 = scmp.ge.s32.totalorder %s13_s16, 6   ;;  %s2139_s13 = smov %s1667_s22 }
 0x185   : > { %s2140_s14 = smov %s1601_s15  ;;  %s2141_s15 = smov %s2143_s17 }
 0x186   :  { %12 = sbr.rel (!%p10_p12) target bundleno = 3 (0x3), region = 123 }

// kernel: generator_forward.11
= control target key start
LH: loop header
LB: loop body
LE: loop exit
PB: predicated region body
PF: predicated region fallthrough
CT: control target
= control target key end

     0   :  { %s5381_s1 = inlined_call_operand.vmem [shape: bf16[1152,256], index: 1, kind: input, shape index: {}]   ;;  %s5382_s0 = inlined_call_operand.vmem [shape: bf16[128,1152], index: 0, kind: input, shape index: {}]   ;;  %s5383_s2 = inlined_call_operand.vmem [shape: f32[1,256], index: 2, kind: input, shape index: {}]   ;;  %s5384_s3 = inlined_call_operand.vmem [shape: f32[128,256], index: 3, kind: output, shape index: {}]  }
   0x1   :  { %v2696_v0 = vld [vmem:[%s5381_s1 + $0x70] sm:$0xf]  ;;  %v3301_v1 = vld [vmem:[%s5381_s1 + $0x74] sm:$0xf0]  ;;  %v2688_v5 = vld [vmem:[%s5381_s1 + $0x60] sm:$0xf] }
   0x2   :  { %v2760_v2 = vld [vmem:[%s5381_s1 + $0xf0] sm:$0xf]  ;;  %v2697_v3 = vor.u32 %v3301_v1, %v2696_v0  ;;  %v3317_v4 = vld [vmem:[%s5381_s1 + $0xf4] sm:$0xf0]  ;;  %v3299_v6 = vld [vmem:[%s5381_s1 + $0x64] sm:$0xf0] }
   0x3   :  { %v2761_v7 = vor.u32 %v3317_v4, %v2760_v2  ;;  %v2752_v8 = vld [vmem:[%s5381_s1 + $0xe0] sm:$0xf]  ;;  %v3315_v9 = vld [vmem:[%s5381_s1 + $0xe4] sm:$0xf0]  ;;  %v2689_v10 = vor.u32 %v3299_v6, %v2688_v5  ;;  %v2680_v12 = vld [vmem:[%s5381_s1 + $0x50] sm:$0xf] }
   0x4   :  { %3430 = vmatpush.bf16.msra.mxu2 %v2697_v3  ;;  %1400 = vmatpush.bf16.msra.mxu0 %v2697_v3  ;;  %v2753_v11 = vor.u32 %v3315_v9, %v2752_v8  ;;  %v3297_v13 = vld [vmem:[%s5381_s1 + $0x54] sm:$0xf0]  ;;  %v2744_v14 = vld [vmem:[%s5381_s1 + $0xd0] sm:$0xf]  ;;  %v2672_v18 = vld [vmem:[%s5381_s1 + $0x40] sm:$0xf] }
   0x5   :  { %3438 = vmatpush.bf16.msra.mxu3 %v2761_v7  ;;  %1449 = vmatpush.bf16.msra.mxu1 %v2761_v7  ;;  %v3313_v15 = vld [vmem:[%s5381_s1 + $0xd4] sm:$0xf0]  ;;  %v2681_v16 = vor.u32 %v3297_v13, %v2680_v12  ;;  %v3295_v19 = vld [vmem:[%s5381_s1 + $0x44] sm:$0xf0]  ;;  %v2736_v20 = vld [vmem:[%s5381_s1 + $0xc0] sm:$0xf] }
   0x6   :  { %v2745_v17 = vor.u32 %v3313_v15, %v2744_v14  ;;  %v3311_v21 = vld [vmem:[%s5381_s1 + $0xc4] sm:$0xf0]  ;;  %v2673_v22 = vor.u32 %v3295_v19, %v2672_v18  ;;  %v2664_v24 = vld [vmem:[%s5381_s1 + $0x30] sm:$0xf]  ;;  %v3293_v25 = vld [vmem:[%s5381_s1 + $0x34] sm:$0xf0] }
   0x7   :  { %v2737_v23 = vor.u32 %v3311_v21, %v2736_v20  ;;  %v2728_v26 = vld [vmem:[%s5381_s1 + $0xb0] sm:$0xf]  ;;  %v3309_v27 = vld [vmem:[%s5381_s1 + $0xb4] sm:$0xf0]  ;;  %v2665_v28 = vor.u32 %v3293_v25, %v2664_v24  ;;  %v2656_v30 = vld [vmem:[%s5381_s1 + $0x20] sm:$0xf] }
   0x8   :  { %3431 = vmatpush.bf16.msra.mxu2 %v2689_v10  ;;  %1401 = vmatpush.bf16.msra.mxu0 %v2689_v10  ;;  %v2729_v29 = vor.u32 %v3309_v27, %v2728_v26  ;;  %v3291_v31 = vld [vmem:[%s5381_s1 + $0x24] sm:$0xf0]  ;;  %v2720_v32 = vld [vmem:[%s5381_s1 + $0xa0] sm:$0xf]  ;;  %v2648_v36 = vld [vmem:[%s5381_s1 + $0x10] sm:$0xf] }
   0x9   :  { %3439 = vmatpush.bf16.msra.mxu3 %v2753_v11  ;;  %1450 = vmatpush.bf16.msra.mxu1 %v2753_v11  ;;  %v3307_v33 = vld [vmem:[%s5381_s1 + $0xa4] sm:$0xf0]  ;;  %v2657_v34 = vor.u32 %v3291_v31, %v2656_v30  ;;  %v3289_v37 = vld [vmem:[%s5381_s1 + $0x14] sm:$0xf0]  ;;  %v2712_v38 = vld [vmem:[%s5381_s1 + $0x90] sm:$0xf] }
   0xa   :  { %v2721_v35 = vor.u32 %v3307_v33, %v2720_v32  ;;  %v3305_v39 = vld [vmem:[%s5381_s1 + $0x94] sm:$0xf0]  ;;  %v2649_v40 = vor.u32 %v3289_v37, %v2648_v36  ;;  %v2640_v41 = vld [vmem:[%s5381_s1] sm:$0xf]  ;;  %v3287_v43 = vld [vmem:[%s5381_s1 + $0x4] sm:$0xf0] }
   0xb   :  { %v2713_v42 = vor.u32 %v3305_v39, %v2712_v38  ;;  %v2704_v44 = vld [vmem:[%s5381_s1 + $0x80] sm:$0xf]  ;;  %v3303_v45 = vld [vmem:[%s5381_s1 + $0x84] sm:$0xf0]  ;;  %v3254_v47 = vld [vmem:[%s5382_s0 + $0x140] sm:$0xf0]  ;;  %v2641_v54 = vor.u32 %v3287_v43, %v2640_v41 }
   0xc   :  { %3432 = vmatpush.bf16.msra.mxu2 %v2681_v16  ;;  %1402 = vmatpush.bf16.msra.mxu0 %v2681_v16  ;;  %v2496_v46 = vld [vmem:[%s5382_s0 + $0x120] sm:$0xf]  ;;  %v2824_v48 = vld [vmem:[%s5381_s1 + $0x170] sm:$0xf]  ;;  %v3250_v49 = vld [vmem:[%s5382_s0 + $0x124] sm:$0xf]  ;;  %v2705_v58 = vor.u32 %v3303_v45, %v2704_v44 }
   0xd   :  { %3440 = vmatpush.bf16.msra.mxu3 %v2745_v17  ;;  %1451 = vmatpush.bf16.msra.mxu1 %v2745_v17  ;;  %v2498_v50 = vld [vmem:[%s5382_s0 + $0x144] sm:$0xf0]  ;;  %v3333_v51 = vld [vmem:[%s5381_s1 + $0x174] sm:$0xf0]  ;;  %v2888_v52 = vld [vmem:[%s5381_s1 + $0x1f0] sm:$0xf]  ;;  %v3613_v3 = vor.u32 %v3254_v47, %v2496_v46 }
   0xe   :  { %v3349_v53 = vld [vmem:[%s5381_s1 + $0x1f4] sm:$0xf0]  ;;  %v2352_v55 = vld [vmem:[%s5382_s0] sm:$0xf]  ;;  %v3218_v56 = vld [vmem:[%s5382_s0 + $0x20] sm:$0xf0]  ;;  %v2825_v62 = vor.u32 %v3333_v51, %v2824_v48  ;;  %v3626_v8 = vor.u32 %v3250_v49, %v2498_v50 }
   0xf   :  { %v3214_v57 = vld [vmem:[%s5382_s0 + $0x4] sm:$0xf]  ;;  %v2354_v59 = vld [vmem:[%s5382_s0 + $0x24] sm:$0xf0]  ;;  %v2816_v60 = vld [vmem:[%s5381_s1 + $0x160] sm:$0xf]  ;;  %v2889_v63 = vor.u32 %v3349_v53, %v2888_v52  ;;  %v3615_v4 = vor.u32 %v3218_v56, %v2352_v55 }
  0x10   :  { %3433 = vmatpush.bf16.msra.mxu2 %v2673_v22  ;;  %1403 = vmatpush.bf16.msra.mxu0 %v2673_v22  ;;  %v2952_v61 = vld [vmem:[%s5381_s1 + $0x270] sm:$0xf]  ;;  %v3365_v0 = vld [vmem:[%s5381_s1 + $0x274] sm:$0xf0]  ;;  %v3331_v5 = vld [vmem:[%s5381_s1 + $0x164] sm:$0xf0]  ;;  %v3628_v9 = vor.u32 %v3214_v57, %v2354_v59 }
  0x11   :  { %3441 = vmatpush.bf16.msra.mxu3 %v2737_v23  ;;  %1452 = vmatpush.bf16.msra.mxu1 %v2737_v23  ;;  %v3016_v1 = vld [vmem:[%s5381_s1 + $0x2f0] sm:$0xf]  ;;  %v3381_v2 = vld [vmem:[%s5381_s1 + $0x2f4] sm:$0xf0]  ;;  %v2880_v6 = vld [vmem:[%s5381_s1 + $0x1e0] sm:$0xf]  ;;  %v2953_v10 = vor.u32 %v3365_v0, %v2952_v61  ;;  %v2817_v14 = vor.u32 %v3331_v5, %v2816_v60 }
  0x12   :  { %v3347_v7 = vld [vmem:[%s5381_s1 + $0x1e4] sm:$0xf0]  ;;  %v3017_v11 = vor.u32 %v3381_v2, %v3016_v1  ;;  %v2808_v12 = vld [vmem:[%s5381_s1 + $0x150] sm:$0xf]  ;;  %v2944_v13 = vld [vmem:[%s5381_s1 + $0x260] sm:$0xf] }
  0x13   :  { %v2881_v15 = vor.u32 %v3347_v7, %v2880_v6  ;;  %v3363_v16 = vld [vmem:[%s5381_s1 + $0x264] sm:$0xf0]  ;;  %v3008_v17 = vld [vmem:[%s5381_s1 + $0x2e0] sm:$0xf]  ;;  %v3329_v19 = vld [vmem:[%s5381_s1 + $0x154] sm:$0xf0] }
  0x14   :  { %3434 = vmatpush.bf16.msra.mxu2 %v2665_v28  ;;  %1404 = vmatpush.bf16.msra.mxu0 %v2665_v28  ;;  %v3379_v18 = vld [vmem:[%s5381_s1 + $0x2e4] sm:$0xf0]  ;;  %v2872_v20 = vld [vmem:[%s5381_s1 + $0x1d0] sm:$0xf]  ;;  %v3345_v21 = vld [vmem:[%s5381_s1 + $0x1d4] sm:$0xf0]  ;;  %v2945_v22 = vor.u32 %v3363_v16, %v2944_v13  ;;  %v2809_v26 = vor.u32 %v3329_v19, %v2808_v12 }
  0x15   :  { %3442 = vmatpush.bf16.msra.mxu3 %v2729_v29  ;;  %1453 = vmatpush.bf16.msra.mxu1 %v2729_v29  ;;  %v3009_v23 = vor.u32 %v3379_v18, %v3008_v17  ;;  %v2800_v24 = vld [vmem:[%s5381_s1 + $0x140] sm:$0xf]  ;;  %v2936_v25 = vld [vmem:[%s5381_s1 + $0x250] sm:$0xf]  ;;  %v2873_v27 = vor.u32 %v3345_v21, %v2872_v20  ;;  %v3361_v28 = vld [vmem:[%s5381_s1 + $0x254] sm:$0xf0] }
  0x16   :  { %v3000_v29 = vld [vmem:[%s5381_s1 + $0x2d0] sm:$0xf]  ;;  %v3377_v30 = vld [vmem:[%s5381_s1 + $0x2d4] sm:$0xf0]  ;;  %v3327_v31 = vld [vmem:[%s5381_s1 + $0x144] sm:$0xf0] }
  0x17   :  { %v2864_v32 = vld [vmem:[%s5381_s1 + $0x1c0] sm:$0xf]  ;;  %v3343_v33 = vld [vmem:[%s5381_s1 + $0x1c4] sm:$0xf0]  ;;  %v2792_v36 = vld [vmem:[%s5381_s1 + $0x130] sm:$0xf] }
  0x18   :  { %3435 = vmatpush.bf16.msra.mxu2 %v2657_v34  ;;  %1405 = vmatpush.bf16.msra.mxu0 %v2657_v34  ;;  %v2937_v34 = vor.u32 %v3361_v28, %v2936_v25  ;;  %v2928_v37 = vld [vmem:[%s5381_s1 + $0x240] sm:$0xf]  ;;  %v2532_v38 = vld [vmem:[%s5382_s0 + $0x168] sm:$0xf]  ;;  %v3263_v39 = vld [vmem:[%s5382_s0 + $0x188] sm:$0xf0]  ;;  %v2865_v41 = vor.u32 %v3343_v33, %v2864_v32 }
  0x19   :  { %3443 = vmatpush.bf16.msra.mxu3 %v2721_v35  ;;  %1454 = vmatpush.bf16.msra.mxu1 %v2721_v35  ;;  %v3001_v35 = vor.u32 %v3377_v30, %v3000_v29  ;;  %v2992_v43 = vld [vmem:[%s5381_s1 + $0x2c0] sm:$0xf]  ;;  %v3375_v44 = vld [vmem:[%s5381_s1 + $0x2c4] sm:$0xf0]  ;;  %v3259_v45 = vld [vmem:[%s5382_s0 + $0x16c] sm:$0xf] }
  0x1a   :  { %v2534_v46 = vld [vmem:[%s5382_s0 + $0x18c] sm:$0xf0]  ;;  %v3325_v47 = vld [vmem:[%s5381_s1 + $0x134] sm:$0xf0]  ;;  %v2388_v50 = vld [vmem:[%s5382_s0 + $0x48] sm:$0xf]  ;;  %v2993_v55 = vor.u32 %v3375_v44, %v2992_v43 }
  0x1b   :  { %v2856_v48 = vld [vmem:[%s5381_s1 + $0x1b0] sm:$0xf]  ;;  %v3341_v49 = vld [vmem:[%s5381_s1 + $0x1b4] sm:$0xf0]  ;;  %v3227_v51 = vld [vmem:[%s5382_s0 + $0x68] sm:$0xf0]  ;;  %v3758_v6 = vor.u32 %v3259_v45, %v2534_v46 }
  0x1c   :  { %3436 = vmatpush.bf16.msra.mxu2 %v2649_v40  ;;  %1406 = vmatpush.bf16.msra.mxu0 %v2649_v40  ;;  %v2801_v40 = vor.u32 %v3327_v31, %v2800_v24  ;;  %v3223_v52 = vld [vmem:[%s5382_s0 + $0x4c] sm:$0xf]  ;;  %v2390_v53 = vld [vmem:[%s5382_s0 + $0x6c] sm:$0xf0]  ;;  %v2784_v56 = vld [vmem:[%s5381_s1 + $0x120] sm:$0xf]  ;;  %v2857_v59 = vor.u32 %v3341_v49, %v2856_v48  ;;  %v3747_v0 = vor.u32 %v3227_v51, %v2388_v50 }
  0x1d   :  { %3444 = vmatpush.bf16.msra.mxu3 %v2713_v42  ;;  %1455 = vmatpush.bf16.msra.mxu1 %v2713_v42  ;;  %v3359_v42 = vld [vmem:[%s5381_s1 + $0x244] sm:$0xf0]  ;;  %v2920_v57 = vld [vmem:[%s5381_s1 + $0x230] sm:$0xf]  ;;  %v3357_v60 = vld [vmem:[%s5381_s1 + $0x234] sm:$0xf0]  ;;  %v3760_v7 = vor.u32 %v3223_v52, %v2390_v53 }
  0x1e   :  { %v2984_v61 = vld [vmem:[%s5381_s1 + $0x2b0] sm:$0xf]  ;;  %v3323_v1 = vld [vmem:[%s5381_s1 + $0x124] sm:$0xf0]  ;;  %v2848_v2 = vld [vmem:[%s5381_s1 + $0x1a0] sm:$0xf] }
  0x1f   :  { %v3339_v5 = vld [vmem:[%s5381_s1 + $0x1a4] sm:$0xf0]  ;;  %5420 = vst [vmem:[#allocation2_spill] sm:$0xff] %v3758_v6  ;;  %v2785_v12 = vor.u32 %v3323_v1, %v2784_v56  ;;  %v2840_v16 = vld [vmem:[%s5381_s1 + $0x190] sm:$0xf] }
  0x20   :  { %3437 = vmatpush.bf16.msra.mxu2 %v2641_v54  ;;  %1407 = vmatpush.bf16.msra.mxu0 %v2641_v54  ;;  %v2929_v54 = vor.u32 %v3359_v42, %v2928_v37  ;;  %v2849_v13 = vor.u32 %v3339_v5, %v2848_v2  ;;  %v3337_v17 = vld [vmem:[%s5381_s1 + $0x194] sm:$0xf0]  ;;  %v2912_v18 = vld [vmem:[%s5381_s1 + $0x220] sm:$0xf]  ;;  %v3355_v21 = vld [vmem:[%s5381_s1 + $0x224] sm:$0xf0] }
  0x21   :  { %3445 = vmatpush.bf16.msra.mxu3 %v2705_v58  ;;  %1456 = vmatpush.bf16.msra.mxu1 %v2705_v58  ;;  %v2793_v58 = vor.u32 %v3325_v47, %v2792_v36  ;;  %v2841_v20 = vor.u32 %v3337_v17, %v2840_v16  ;;  %v2913_v24 = vor.u32 %v3355_v21, %v2912_v18  ;;  %v2832_v28 = vld [vmem:[%s5381_s1 + $0x180] sm:$0xf]  ;;  %v3335_v29 = vld [vmem:[%s5381_s1 + $0x184] sm:$0xf0]  ;;  %v2904_v30 = vld [vmem:[%s5381_s1 + $0x210] sm:$0xf] }
  0x22   :  { %v3353_v31 = vld [vmem:[%s5381_s1 + $0x214] sm:$0xf0]  ;;  %v2968_v33 = vld [vmem:[%s5381_s1 + $0x290] sm:$0xf]  ;;  %v2833_v36 = vor.u32 %v3335_v29, %v2832_v28  ;;  %v3268_v42 = vld [vmem:[%s5382_s0 + $0x1b4] sm:$0xf] }
  0x23   :  { %1428 = vmatmul.bf16.vlgmr.msra.gmra.mxu2 %v3613_v3  ;;  %1408 = vmatmul.bf16.vlgmr.msra.gmra.mxu0 %v3615_v4  ;;  %v2905_v32 = vor.u32 %v3353_v31, %v2904_v30  ;;  %v2424_v43 = vld [vmem:[%s5382_s0 + $0x90] sm:$0xf]  ;;  %v3236_v44 = vld [vmem:[%s5382_s0 + $0xb0] sm:$0xf0]  ;;  %v2570_v45 = vld [vmem:[%s5382_s0 + $0x1d4] sm:$0xf0] }
  0x24   :  { %1498 = vmatpush.bf16.msrb.mxu2 %v2825_v62  ;;  %1477 = vmatmul.bf16.vlgmr.msra.gmra.mxu3 %v3626_v8  ;;  %v3373_v62 = vld [vmem:[%s5381_s1 + $0x2b4] sm:$0xf0]  ;;  %v3232_v46 = vld [vmem:[%s5382_s0 + $0x94] sm:$0xf]  ;;  %v3846_v50 = vor.u32 %v3236_v44, %v2424_v43  ;;  %v3848_v51 = vor.u32 %v3268_v42, %v2570_v45  ;;  %v2960_v53 = vld [vmem:[%s5381_s1 + $0x280] sm:$0xf] }
  0x25   :  { %1547 = vmatpush.bf16.msrb.mxu3 %v2889_v63  ;;  %1457 = vmatmul.bf16.vlgmr.msra.gmra.mxu1 %v3628_v9  ;;  %v3745_v63 = vor.u32 %v3263_v39, %v2532_v38  ;;  %v2896_v38 = vld [vmem:[%s5381_s1 + $0x200] sm:$0xf]  ;;  %v3351_v39 = vld [vmem:[%s5381_s1 + $0x204] sm:$0xf0]  ;;  %v2426_v47 = vld [vmem:[%s5382_s0 + $0xb4] sm:$0xf0] }
  0x26   :  { %1596 = vmatpush.bf16.msrb.mxu0 %v2953_v10  ;;  %1645 = vmatpush.bf16.msrb.mxu1 %v3017_v11  ;;  %v2921_v10 = vor.u32 %v3357_v60, %v2920_v57  ;;  %v2985_v11 = vor.u32 %v3373_v62, %v2984_v61  ;;  %v2897_v48 = vor.u32 %v3351_v39, %v2896_v38  ;;  %v3080_v56 = vld [vmem:[%s5381_s1 + $0x370] sm:$0xf]  ;;  %v3397_v57 = vld [vmem:[%s5381_s1 + $0x374] sm:$0xf0]  ;;  %v3300_v2 = vld [vmem:[%s5381_s1 + $0x74] sm:$0xf] }
  0x27   :  { %5421 = vst [vmem:[#allocation3_spill] sm:$0xff] %v3848_v51  ;;  %v3850_v52 = vor.u32 %v3232_v46, %v2426_v47  ;;  %v3413_v60 = vld [vmem:[%s5381_s1 + $0x3f4] sm:$0xf0]  ;;  %v3208_v62 = vld [vmem:[%s5381_s1 + $0x470] sm:$0xf] }
  0x28   :  { %1499 = vmatpush.bf16.msrb.mxu2 %v2817_v14  ;;  %v2776_v14 = vld [vmem:[%s5381_s1 + $0x110] sm:$0xf]  ;;  %v3429_v1 = vld [vmem:[%s5381_s1 + $0x474] sm:$0xf0]  ;;  %v3245_v16 = vld [vmem:[%s5382_s0 + $0xf8] sm:$0xf0] }
  0x29   :  { %1548 = vmatpush.bf16.msrb.mxu3 %v2881_v15  ;;  %v3321_v15 = vld [vmem:[%s5381_s1 + $0x114] sm:$0xf0]  ;;  %v3209_v5 = vor.u32 %v3429_v1, %v3208_v62  ;;  %v2606_v17 = vld [vmem:[%s5382_s0 + $0x21c] sm:$0xf0]  ;;  %v3241_v18 = vld [vmem:[%s5382_s0 + $0xdc] sm:$0xf] }
  0x2a   :  { %1597 = vmatpush.bf16.msrb.mxu0 %v2945_v22  ;;  %1646 = vmatpush.bf16.msrb.mxu1 %v3009_v23  ;;  %v2777_v19 = vor.u32 %v3321_v15, %v2776_v14  ;;  %v2976_v22 = vld [vmem:[%s5381_s1 + $0x2a0] sm:$0xf]  ;;  %v3371_v23 = vld [vmem:[%s5381_s1 + $0x2a4] sm:$0xf0]  ;;  %v3277_v14 = vld [vmem:[%s5382_s0 + $0x1fc] sm:$0xf] }
  0x2b   :  { %v2977_v25 = vor.u32 %v3371_v23, %v2976_v22  ;;  %v2460_v15 = vld [vmem:[%s5382_s0 + $0xd8] sm:$0xf]  ;;  %v3914_v22 = vor.u32 %v3277_v14, %v2606_v17  ;;  %v3411_v28 = vld [vmem:[%s5381_s1 + $0x3e4] sm:$0xf0]  ;;  %v3200_v30 = vld [vmem:[%s5381_s1 + $0x460] sm:$0xf] }
  0x2c   :  { %1500 = vmatpush.bf16.msrb.mxu2 %v2809_v26  ;;  %v2768_v26 = vld [vmem:[%s5381_s1 + $0x100] sm:$0xf]  ;;  %v3912_v21 = vor.u32 %v3245_v16, %v2460_v15  ;;  %v3427_v31 = vld [vmem:[%s5381_s1 + $0x464] sm:$0xf0]  ;;  %v3215_v38 = vld [vmem:[%s5382_s0 + $0xc] sm:$0xf] }
  0x2d   :  { %1549 = vmatpush.bf16.msrb.mxu3 %v2873_v27  ;;  %v3319_v27 = vld [vmem:[%s5381_s1 + $0x104] sm:$0xf0]  ;;  %5422 = vst [vmem:[#allocation4_spill] sm:$0xff] %v3914_v22  ;;  %v2368_v39 = vld [vmem:[%s5382_s0 + $0x10] sm:$0xf] }
  0x2e   :  { %1598 = vmatpush.bf16.msrb.mxu0 %v2937_v34  ;;  %1647 = vmatpush.bf16.msrb.mxu1 %v3001_v35  ;;  %v3369_v34 = vld [vmem:[%s5381_s1 + $0x294] sm:$0xf0]  ;;  %v2769_v35 = vor.u32 %v3319_v27, %v2768_v26  ;;  %v3136_v26 = vld [vmem:[%s5381_s1 + $0x3e0] sm:$0xf]  ;;  %v3216_v42 = vld [vmem:[%s5382_s0 + $0x14] sm:$0xf] }
  0x2f   :  { %v2969_v37 = vor.u32 %v3369_v34, %v2968_v33  ;;  %v3137_v29 = vor.u32 %v3411_v28, %v3136_v26  ;;  %v3201_v33 = vor.u32 %v3427_v31, %v3200_v30  ;;  %v2690_v34 = vld [vmem:[%s5381_s1 + $0x68] sm:$0xf0]  ;;  %v2370_v43 = vld [vmem:[%s5382_s0 + $0x34] sm:$0xf0]  ;;  %v2682_v62 = vld [vmem:[%s5381_s1 + $0x58] sm:$0xf0] }
  0x30   :  { %1501 = vmatpush.bf16.msrb.mxu2 %v2801_v40  ;;  %v2568_v40 = vld [vmem:[%s5382_s0 + $0x1b0] sm:$0xf]  ;;  %v3976_v47 = vor.u32 %v3216_v42, %v2370_v43  ;;  %v3225_v14 = vld [vmem:[%s5382_s0 + $0x5c] sm:$0xf]  ;;  %v2406_v15 = vld [vmem:[%s5382_s0 + $0x7c] sm:$0xf0] }
  0x31   :  { %1550 = vmatpush.bf16.msrb.mxu3 %v2865_v41  ;;  %v3272_v41 = vld [vmem:[%s5382_s0 + $0x1d0] sm:$0xf0]  ;;  %v3120_v26 = vld [vmem:[%s5381_s1 + $0x3c0] sm:$0xf]  ;;  %v3407_v28 = vld [vmem:[%s5381_s1 + $0x3c4] sm:$0xf0] }
  0x32   :  { %1599 = vmatpush.bf16.msrb.mxu0 %v2929_v54  ;;  %1648 = vmatpush.bf16.msrb.mxu1 %v2993_v55  ;;  %v3844_v49 = vor.u32 %v3272_v41, %v2568_v40  ;;  %v3367_v54 = vld [vmem:[%s5381_s1 + $0x284] sm:$0xf0]  ;;  %v3220_v40 = vld [vmem:[%s5382_s0 + $0x30] sm:$0xf0]  ;;  %v2362_v41 = vld [vmem:[%s5382_s0 + $0x2c] sm:$0xf0] }
  0x33   :  { %1433 = vmatmul.bf16.gmra.mxu2 %v3745_v63  ;;  %1413 = vmatmul.bf16.gmra.mxu0 %v3747_v0  ;;  %v2961_v55 = vor.u32 %v3367_v54, %v2960_v53  ;;  %v3972_v45 = vor.u32 %v3220_v40, %v2368_v39  ;;  %v3974_v46 = vor.u32 %v3215_v38, %v2362_v41  ;;  %v3393_v53 = vld [vmem:[%s5381_s1 + $0x354] sm:$0xf0]  ;;  %v3128_v54 = vld [vmem:[%s5381_s1 + $0x3d0] sm:$0xf]  ;;  %v3184_v30 = vld [vmem:[%s5381_s1 + $0x440] sm:$0xf] }
  0x34   :  { %1502 = vmatpush.bf16.msrb.mxu2 %v2793_v58  ;;  %1482 = vmatmul.bf16.gmra.mxu3 %v3758_v6  ;;  %v3144_v58 = vld [vmem:[%s5381_s1 + $0x3f0] sm:$0xf]  ;;  %5423 = vst [vmem:[#allocation5_spill] sm:$0xff] %v3976_v47  ;;  %v3423_v31 = vld [vmem:[%s5381_s1 + $0x444] sm:$0xf0] }
  0x35   :  { %1551 = vmatpush.bf16.msrb.mxu3 %v2857_v59  ;;  %1462 = vmatmul.bf16.gmra.mxu1 %v3760_v7  ;;  %v3081_v59 = vor.u32 %v3397_v57, %v3080_v56  ;;  %v3145_v61 = vor.u32 %v3413_v60, %v3144_v58  ;;  %v3409_v56 = vld [vmem:[%s5381_s1 + $0x3d4] sm:$0xf0]  ;;  %v3192_v58 = vld [vmem:[%s5381_s1 + $0x450] sm:$0xf]  ;;  %v3296_v60 = vld [vmem:[%s5381_s1 + $0x54] sm:$0xf] }
  0x36   :  { %1600 = vmatpush.bf16.msrb.mxu0 %v2921_v10  ;;  %1649 = vmatpush.bf16.msrb.mxu1 %v2985_v11  ;;  %v2698_v10 = vld [vmem:[%s5381_s1 + $0x78] sm:$0xf0]  ;;  %v3129_v57 = vor.u32 %v3409_v56, %v3128_v54  ;;  %v2685_v1 = vor.u32 %v3296_v60, %v2682_v62  ;;  %v2440_v39 = vld [vmem:[%s5382_s0 + $0xa0] sm:$0xf]  ;;  %v3238_v40 = vld [vmem:[%s5382_s0 + $0xc0] sm:$0xf0] }
  0x37   :  { %v2701_v11 = vor.u32 %v3300_v2, %v2698_v10  ;;  %v2396_v2 = vld [vmem:[%s5382_s0 + $0x50] sm:$0xf]  ;;  %v3224_v10 = vld [vmem:[%s5382_s0 + $0x54] sm:$0xf]  ;;  %v3233_v38 = vld [vmem:[%s5382_s0 + $0x9c] sm:$0xf] }
  0x38   :  { %1503 = vmatpush.bf16.msrb.mxu2 %v2785_v12  ;;  %v2604_v12 = vld [vmem:[%s5382_s0 + $0x1f8] sm:$0xf]  ;;  %v2434_v41 = vld [vmem:[%s5382_s0 + $0xbc] sm:$0xf0]  ;;  %v3234_v42 = vld [vmem:[%s5382_s0 + $0xa4] sm:$0xf] }
  0x39   :  { %1552 = vmatpush.bf16.msrb.mxu3 %v2849_v13  ;;  %v3281_v13 = vld [vmem:[%s5382_s0 + $0x218] sm:$0xf0]  ;;  %v2442_v43 = vld [vmem:[%s5382_s0 + $0xc4] sm:$0xf0]  ;;  %v4094_v54 = vor.u32 %v3233_v38, %v2434_v41  ;;  %v3048_v56 = vld [vmem:[%s5381_s1 + $0x330] sm:$0xf] }
  0x3a   :  { %1601 = vmatpush.bf16.msrb.mxu0 %v2913_v24  ;;  %1650 = vmatpush.bf16.msrb.mxu1 %v2977_v25  ;;  %v3072_v24 = vld [vmem:[%s5381_s1 + $0x360] sm:$0xf]  ;;  %v3395_v25 = vld [vmem:[%s5381_s1 + $0x364] sm:$0xf0]  ;;  %v3405_v60 = vld [vmem:[%s5381_s1 + $0x3b4] sm:$0xf0] }
  0x3b   :  { %v3073_v27 = vor.u32 %v3395_v25, %v3072_v24  ;;  %v3056_v24 = vld [vmem:[%s5381_s1 + $0x340] sm:$0xf]  ;;  %v3391_v25 = vld [vmem:[%s5381_s1 + $0x344] sm:$0xf0]  ;;  %v3176_v62 = vld [vmem:[%s5381_s1 + $0x430] sm:$0xf] }
  0x3c   :  { %1504 = vmatpush.bf16.msrb.mxu2 %v2777_v19  ;;  %v2462_v19 = vld [vmem:[%s5382_s0 + $0xfc] sm:$0xf0]  ;;  %v3255_v41 = vld [vmem:[%s5382_s0 + $0x148] sm:$0xf0] }
  0x3d   :  { %1553 = vmatpush.bf16.msrb.mxu3 %v2841_v20  ;;  %v3910_v20 = vor.u32 %v3281_v13, %v2604_v12  ;;  %v3916_v23 = vor.u32 %v3241_v18, %v2462_v19  ;;  %v3229_v12 = vld [vmem:[%s5382_s0 + $0x78] sm:$0xf0]  ;;  %v2398_v13 = vld [vmem:[%s5382_s0 + $0x74] sm:$0xf0]  ;;  %v4036_v19 = vor.u32 %v3225_v14, %v2406_v15  ;;  %v2470_v14 = vld [vmem:[%s5382_s0 + $0x104] sm:$0xf0] }
  0x3e   :  { %1602 = vmatpush.bf16.msrb.mxu0 %v2905_v32  ;;  %1651 = vmatpush.bf16.msrb.mxu1 %v2969_v37  ;;  %v3298_v32 = vld [vmem:[%s5381_s1 + $0x64] sm:$0xf]  ;;  %v3219_v37 = vld [vmem:[%s5382_s0 + $0x28] sm:$0xf0]  ;;  %v4034_v18 = vor.u32 %v3224_v10, %v2398_v13  ;;  %v3168_v38 = vld [vmem:[%s5381_s1 + $0x420] sm:$0xf] }
  0x3f   :  { %5424 = vst [vmem:[#allocation6_spill] sm:$0xff] %v4036_v19  ;;  %v3247_v13 = vld [vmem:[%s5382_s0 + $0x108] sm:$0xf0] }
  0x40   :  { %1505 = vmatpush.bf16.msrb.mxu2 %v2769_v35  ;;  %v2693_v35 = vor.u32 %v3298_v32, %v2690_v34  ;;  %v3294_v32 = vld [vmem:[%s5381_s1 + $0x44] sm:$0xf]  ;;  %v2674_v34 = vld [vmem:[%s5381_s1 + $0x48] sm:$0xf0] }
  0x41   :  { %1554 = vmatpush.bf16.msrb.mxu3 %v2833_v36  ;;  %v2360_v36 = vld [vmem:[%s5382_s0 + $0x8] sm:$0xf]  ;;  %v3243_v15 = vld [vmem:[%s5382_s0 + $0xec] sm:$0xf] }
  0x42   :  { %1603 = vmatpush.bf16.msrb.mxu0 %v2897_v48  ;;  %1652 = vmatpush.bf16.msrb.mxu1 %v2961_v55  ;;  %v3970_v44 = vor.u32 %v3219_v37, %v2360_v36  ;;  %v3064_v48 = vld [vmem:[%s5381_s1 + $0x350] sm:$0xf]  ;;  %v2432_v36 = vld [vmem:[%s5382_s0 + $0x98] sm:$0xf]  ;;  %v3237_v37 = vld [vmem:[%s5382_s0 + $0xb8] sm:$0xf0] }
  0x43   :  { %1438 = vmatmul.bf16.gmra.mxu2 %v3844_v49  ;;  %1418 = vmatmul.bf16.gmra.mxu0 %v3846_v50  ;;  %v3065_v55 = vor.u32 %v3393_v53, %v3064_v48  ;;  %v4090_v48 = vor.u32 %v3237_v37, %v2432_v36  ;;  %v4092_v53 = vor.u32 %v3238_v40, %v2440_v39  ;;  %v3403_v36 = vld [vmem:[%s5381_s1 + $0x3a4] sm:$0xf0] }
  0x44   :  { %1487 = vmatmul.bf16.gmra.mxu3 %v3848_v51  ;;  %1694 = vmatpush.bf16.msra.mxu2 %v3081_v59  ;;  %v3425_v59 = vld [vmem:[%s5381_s1 + $0x454] sm:$0xf0]  ;;  %v3419_v39 = vld [vmem:[%s5381_s1 + $0x424] sm:$0xf0] }
  0x45   :  { %1467 = vmatmul.bf16.gmra.mxu1 %v3850_v52  ;;  %1743 = vmatpush.bf16.msra.mxu3 %v3145_v61  ;;  %v3193_v61 = vor.u32 %v3425_v59, %v3192_v58  ;;  %v3112_v58 = vld [vmem:[%s5381_s1 + $0x3b0] sm:$0xf]  ;;  %v2504_v40 = vld [vmem:[%s5382_s0 + $0x128] sm:$0xf] }
  0x46   :  { %1792 = vmatpush.bf16.msra.mxu0 %v3209_v5  ;;  %1841 = vmatpush.bf16.msra.mxu1 %v2701_v11  ;;  %v3228_v5 = vld [vmem:[%s5382_s0 + $0x70] sm:$0xf0]  ;;  %v2404_v11 = vld [vmem:[%s5382_s0 + $0x58] sm:$0xf] }
  0x47   :  { %v4030_v16 = vor.u32 %v3228_v5, %v2396_v2  ;;  %v4032_v17 = vor.u32 %v3229_v12, %v2404_v11  ;;  %v2468_v2 = vld [vmem:[%s5382_s0 + $0xe0] sm:$0xf]  ;;  %v3246_v5 = vld [vmem:[%s5382_s0 + $0x100] sm:$0xf0]  ;;  %v2476_v12 = vld [vmem:[%s5382_s0 + $0xe8] sm:$0xf] }
  0x48   :  { %1695 = vmatpush.bf16.msra.mxu2 %v3073_v27  ;;  %v3057_v27 = vor.u32 %v3391_v25, %v3056_v24  ;;  %v3242_v11 = vld [vmem:[%s5382_s0 + $0xe4] sm:$0xf]  ;;  %v2478_v24 = vld [vmem:[%s5382_s0 + $0x10c] sm:$0xf0]  ;;  %v4144_v25 = vor.u32 %v3246_v5, %v2468_v2 }
  0x49   :  { %1744 = vmatpush.bf16.msra.mxu3 %v3137_v29  ;;  %v3121_v29 = vor.u32 %v3407_v28, %v3120_v26  ;;  %v4146_v26 = vor.u32 %v3247_v13, %v2476_v12  ;;  %v4150_v28 = vor.u32 %v3243_v15, %v2478_v24  ;;  %v3032_v15 = vld [vmem:[%s5381_s1 + $0x310] sm:$0xf]  ;;  %v3385_v24 = vld [vmem:[%s5381_s1 + $0x314] sm:$0xf0] }
  0x4a   :  { %1793 = vmatpush.bf16.msra.mxu0 %v3201_v33  ;;  %1842 = vmatpush.bf16.msra.mxu1 %v2693_v35  ;;  %v3185_v33 = vor.u32 %v3423_v31, %v3184_v30  ;;  %v2677_v35 = vor.u32 %v3294_v32, %v2674_v34  ;;  %v2666_v30 = vld [vmem:[%s5381_s1 + $0x38] sm:$0xf0]  ;;  %v3040_v32 = vld [vmem:[%s5381_s1 + $0x320] sm:$0xf] }
  0x4b   :  { %5426 = vst [vmem:[#allocation8_spill] sm:$0xff] %v4150_v28  ;;  %v3104_v34 = vld [vmem:[%s5381_s1 + $0x3a0] sm:$0xf] }
  0x4c   :  { %1696 = vmatpush.bf16.msra.mxu2 %v3065_v55  ;;  %v4096_v55 = vor.u32 %v3234_v42, %v2442_v43  ;;  %v3105_v37 = vor.u32 %v3403_v36, %v3104_v34  ;;  %v3169_v42 = vor.u32 %v3419_v39, %v3168_v38  ;;  %v3251_v43 = vld [vmem:[%s5382_s0 + $0x12c] sm:$0xf]  ;;  %v3160_v39 = vld [vmem:[%s5381_s1 + $0x410] sm:$0xf] }
  0x4d   :  { %1745 = vmatpush.bf16.msra.mxu3 %v3129_v57  ;;  %v3389_v57 = vld [vmem:[%s5381_s1 + $0x334] sm:$0xf0] }
  0x4e   :  { %1794 = vmatpush.bf16.msra.mxu0 %v3193_v61  ;;  %1843 = vmatpush.bf16.msra.mxu1 %v2685_v1  ;;  %5425 = vst [vmem:[#allocation7_spill] sm:$0xff] %v4096_v55  ;;  %v3049_v59 = vor.u32 %v3389_v57, %v3048_v56  ;;  %v3113_v61 = vor.u32 %v3405_v60, %v3112_v58  ;;  %v3421_v1 = vld [vmem:[%s5381_s1 + $0x434] sm:$0xf0]  ;;  %v2512_v56 = vld [vmem:[%s5382_s0 + $0x130] sm:$0xf] }
  0x4f   :  { %v3177_v10 = vor.u32 %v3421_v1, %v3176_v62  ;;  %v3256_v57 = vld [vmem:[%s5382_s0 + $0x150] sm:$0xf0]  ;;  %v2506_v58 = vld [vmem:[%s5382_s0 + $0x14c] sm:$0xf0]  ;;  %v2514_v60 = vld [vmem:[%s5382_s0 + $0x154] sm:$0xf0] }
  0x50   :  { %1697 = vmatpush.bf16.msra.mxu2 %v3057_v27  ;;  %v4148_v27 = vor.u32 %v3242_v11, %v2470_v14  ;;  %v4206_v62 = vor.u32 %v3256_v57, %v2512_v56  ;;  %v4208_v2 = vor.u32 %v3251_v43, %v2506_v58  ;;  %v2658_v11 = vld [vmem:[%s5381_s1 + $0x28] sm:$0xf0]  ;;  %v3260_v56 = vld [vmem:[%s5382_s0 + $0x174] sm:$0xf]  ;;  %v2548_v57 = vld [vmem:[%s5382_s0 + $0x178] sm:$0xf] }
  0x51   :  { %1746 = vmatpush.bf16.msra.mxu3 %v3121_v29  ;;  %v3292_v29 = vld [vmem:[%s5381_s1 + $0x34] sm:$0xf]  ;;  %v3265_v58 = vld [vmem:[%s5382_s0 + $0x198] sm:$0xf0] }
  0x52   :  { %1795 = vmatpush.bf16.msra.mxu0 %v3185_v33  ;;  %1844 = vmatpush.bf16.msra.mxu1 %v2677_v35  ;;  %v2669_v31 = vor.u32 %v3292_v29, %v2666_v30  ;;  %v3387_v33 = vld [vmem:[%s5381_s1 + $0x324] sm:$0xf0]  ;;  %v3096_v29 = vld [vmem:[%s5381_s1 + $0x390] sm:$0xf]  ;;  %v3033_v30 = vor.u32 %v3385_v24, %v3032_v15 }
  0x53   :  { %1443 = vmatmul.bf16.gmra.mxu2 %v3910_v20  ;;  %1423 = vmatmul.bf16.gmra.mxu0 %v3912_v21  ;;  %v3041_v35 = vor.u32 %v3387_v33, %v3040_v32 }
  0x54   :  { %1492 = vmatmul.bf16.gmra.mxu3 %v3914_v22  ;;  %1698 = vmatpush.bf16.msra.mxu2 %v3049_v59  ;;  %v3252_v59 = vld [vmem:[%s5382_s0 + $0x134] sm:$0xf] }
  0x55   :  { %1472 = vmatmul.bf16.gmra.mxu1 %v3916_v23  ;;  %1747 = vmatpush.bf16.msra.mxu3 %v3113_v61  ;;  %v4204_v61 = vor.u32 %v3255_v41, %v2504_v40  ;;  %v4210_v5 = vor.u32 %v3252_v59, %v2514_v60  ;;  %v3417_v40 = vld [vmem:[%s5381_s1 + $0x414] sm:$0xf0]  ;;  %v2540_v41 = vld [vmem:[%s5382_s0 + $0x170] sm:$0xf]  ;;  %v3261_v60 = vld [vmem:[%s5382_s0 + $0x17c] sm:$0xf] }
  0x56   :  { %1796 = vmatpush.bf16.msra.mxu0 %v3177_v10  ;;  %1845 = vmatpush.bf16.msra.mxu1 %v2669_v31  ;;  %v3290_v10 = vld [vmem:[%s5381_s1 + $0x24] sm:$0xf]  ;;  %v3401_v31 = vld [vmem:[%s5381_s1 + $0x394] sm:$0xf0]  ;;  %v3161_v43 = vor.u32 %v3417_v40, %v3160_v39  ;;  %v3383_v39 = vld [vmem:[%s5381_s1 + $0x304] sm:$0xf0] }
  0x57   :  { %5427 = vst [vmem:[#allocation9_spill] sm:$0xff] %v4210_v5  ;;  %v2661_v13 = vor.u32 %v3290_v10, %v2658_v11  ;;  %v3097_v33 = vor.u32 %v3401_v31, %v3096_v29  ;;  %v2542_v59 = vld [vmem:[%s5382_s0 + $0x194] sm:$0xf0]  ;;  %v3288_v31 = vld [vmem:[%s5381_s1 + $0x14] sm:$0xf] }
  0x58   :  { %1699 = vmatpush.bf16.msra.mxu2 %v3041_v35  ;;  %v4276_v29 = vor.u32 %v3260_v56, %v2542_v59  ;;  %v3088_v40 = vld [vmem:[%s5381_s1 + $0x380] sm:$0xf] }
  0x59   :  { %1748 = vmatpush.bf16.msra.mxu3 %v3105_v37 }
  0x5a   :  { %1797 = vmatpush.bf16.msra.mxu0 %v3169_v42  ;;  %1846 = vmatpush.bf16.msra.mxu1 %v2661_v13  ;;  %v3264_v42 = vld [vmem:[%s5382_s0 + $0x190] sm:$0xf0]  ;;  %v4272_v13 = vor.u32 %v3265_v58, %v2548_v57  ;;  %5430 = vst [vmem:[#allocation12_spill] sm:$0xff] %v4276_v29 }
  0x5c   :  { %1700 = vmatpush.bf16.msra.mxu2 %v3033_v30  ;;  %5429 = vst [vmem:[#allocation11_spill] sm:$0xff] %v4272_v13 }
  0x5d   :  { %1749 = vmatpush.bf16.msra.mxu3 %v3097_v33 }
  0x5e   :  { %1798 = vmatpush.bf16.msra.mxu0 %v3161_v43 }
  0x63   :  { %1506 = vmatmul.bf16.vlgmr.msrb.gmra.mxu2 %v3970_v44  ;;  %1604 = vmatmul.bf16.vlgmr.msrb.gmra.mxu0 %v3972_v45 }
  0x64   :  { %1555 = vmatmul.bf16.vlgmr.msrb.gmra.mxu3 %v3974_v46 }
  0x65   :  { %1653 = vmatmul.bf16.vlgmr.msrb.gmra.mxu1 %v3976_v47 }
  0x73   :  { %1511 = vmatmul.bf16.gmra.mxu2 %v4030_v16  ;;  %1609 = vmatmul.bf16.gmra.mxu0 %v4032_v17 }
  0x74   :  { %1560 = vmatmul.bf16.gmra.mxu3 %v4034_v18 }
  0x75   :  { %1658 = vmatmul.bf16.gmra.mxu1 %v4036_v19 }
  0x83   :  { %1516 = vmatmul.bf16.gmra.mxu2 %v4090_v48  ;;  %1614 = vmatmul.bf16.gmra.mxu0 %v4092_v53 }
  0x84   :  { %1565 = vmatmul.bf16.gmra.mxu3 %v4094_v54 }
  0x85   :  { %1663 = vmatmul.bf16.gmra.mxu1 %v4096_v55 }
  0x93   :  { %1521 = vmatmul.bf16.gmra.mxu2 %v4144_v25  ;;  %1619 = vmatmul.bf16.gmra.mxu0 %v4146_v26 }
  0x94   :  { %1570 = vmatmul.bf16.gmra.mxu3 %v4148_v27 }
  0x95   :  { %1668 = vmatmul.bf16.gmra.mxu1 %v4150_v28 }
  0xa0   :  { %v1409_v1 = vpop.f32.mrf.mxu0 }
  0xa2   :  { %v1458_v12 = vpop.f32.mrf.mxu1 }
  0xa3   :  { %v4218_v14 = vadd.f32 %v1458_v12, %v1409_v1  ;;  %1526 = vmatmul.bf16.gmra.mxu2 %v4204_v61  ;;  %1624 = vmatmul.bf16.gmra.mxu0 %v4206_v62  ;;  %v2550_v1 = vld [vmem:[%s5382_s0 + $0x19c] sm:$0xf0]  ;;  %v4270_v12 = vor.u32 %v3264_v42, %v2540_v41  ;;  %v3399_v42 = vld [vmem:[%s5381_s1 + $0x384] sm:$0xf0] }
  0xa4   :  { %1575 = vmatmul.bf16.gmra.mxu3 %v4208_v2  ;;  %v4278_v30 = vor.u32 %v3261_v60, %v2550_v1  ;;  %v3089_v56 = vor.u32 %v3399_v42, %v3088_v40  ;;  %v3270_v40 = vld [vmem:[%s5382_s0 + $0x1c4] sm:$0xf] }
  0xa5   :  { %1673 = vmatmul.bf16.gmra.mxu1 %v4210_v5  ;;  %5428 = vst [vmem:[#allocation10_spill] sm:$0xff] %v4270_v12 }
  0xa6   :  { %v1429_v32 = vpop.f32.mrf.mxu2  ;;  %5431 = vst [vmem:[#allocation13_spill] sm:$0xff] %v4278_v30  ;;  %1750 = vmatpush.bf16.msra.mxu3 %v3089_v56 }
  0xa7   :  { %v1478_v34 = vpop.f32.mrf.mxu3 }
  0xa8   :  { %v4236_v35 = vadd.f32 %v1478_v34, %v1429_v32  ;;  %v1411_v36 = vpop.f32.mrf.mxu0  ;;  %v2650_v32 = vld [vmem:[%s5381_s1 + $0x18] sm:$0xf0] }
  0xa9   :  { %v2653_v34 = vor.u32 %v3288_v31, %v2650_v32  ;;  %v3273_v31 = vld [vmem:[%s5382_s0 + $0x1d8] sm:$0xf0] }
  0xaa   :  { %v1460_v37 = vpop.f32.mrf.mxu1 }
  0xab   :  { %v4238_v38 = vadd.f32 %v1460_v37, %v1411_v36  ;;  %v3024_v37 = vld [vmem:[%s5381_s1 + $0x300] sm:$0xf]  ;;  %1847 = vmatpush.bf16.msra.mxu1 %v2653_v34 }
  0xac   :  { %v3025_v41 = vor.u32 %v3383_v39, %v3024_v37  ;;  %v2584_v34 = vld [vmem:[%s5382_s0 + $0x1c0] sm:$0xf]  ;;  %v3274_v37 = vld [vmem:[%s5382_s0 + $0x1e0] sm:$0xf0] }
  0xad   :  { %v2578_v39 = vld [vmem:[%s5382_s0 + $0x1dc] sm:$0xf0] }
  0xae   :  { %v1431_v10 = vpop.f32.mrf.mxu2  ;;  %1701 = vmatpush.bf16.msra.mxu2 %v3025_v41  ;;  %v2586_v41 = vld [vmem:[%s5382_s0 + $0x1e4] sm:$0xf0] }
  0xaf   :  { %v1480_v11 = vpop.f32.mrf.mxu3 }
  0xb0   :  { %v4274_v15 = vadd.f32 %v1480_v11, %v1431_v10  ;;  %v1414_v24 = vpop.f32.mrf.mxu0  ;;  %v3152_v10 = vld [vmem:[%s5381_s1 + $0x400] sm:$0xf]  ;;  %v3415_v11 = vld [vmem:[%s5381_s1 + $0x404] sm:$0xf0] }
  0xb1   :  { %v3153_v32 = vor.u32 %v3415_v11, %v3152_v10  ;;  %v4346_v11 = vor.u32 %v3270_v40, %v2586_v41 }
  0xb2   :  { %v1463_v33 = vpop.f32.mrf.mxu1 }
  0xb3   :  { %v4286_v36 = vadd.f32 %v1463_v33, %v1414_v24  ;;  %1531 = vmatmul.bf16.gmra.mxu2 %v4270_v12  ;;  %1629 = vmatmul.bf16.gmra.mxu0 %v4272_v13  ;;  %v2576_v24 = vld [vmem:[%s5382_s0 + $0x1b8] sm:$0xf]  ;;  %v3269_v33 = vld [vmem:[%s5382_s0 + $0x1bc] sm:$0xf]  ;;  %5435 = vst [vmem:[#allocation17_spill] sm:$0xff] %v4346_v11 }
  0xb4   :  { %1580 = vmatmul.bf16.gmra.mxu3 %v4276_v29  ;;  %1799 = vmatpush.bf16.msra.mxu0 %v3153_v32  ;;  %v4338_v56 = vor.u32 %v3273_v31, %v2576_v24  ;;  %v4344_v10 = vor.u32 %v3269_v33, %v2578_v39  ;;  %v2642_v32 = vld [vmem:[%s5381_s1 + $0x8] sm:$0xf0]  ;;  %v3316_v33 = vld [vmem:[%s5381_s1 + $0xf4] sm:$0xf] }
  0xb5   :  { %1678 = vmatmul.bf16.gmra.mxu1 %v4278_v30  ;;  %v3286_v30 = vld [vmem:[%s5381_s1 + $0x4] sm:$0xf] }
  0xb6   :  { %v1434_v43 = vpop.f32.mrf.mxu2  ;;  %5432 = vst [vmem:[#allocation14_spill] sm:$0xff] %v4338_v56  ;;  %v2645_v24 = vor.u32 %v3286_v30, %v2642_v32 }
  0xb7   :  { %v1483_v57 = vpop.f32.mrf.mxu3  ;;  %5434 = vst [vmem:[#allocation16_spill] sm:$0xff] %v4344_v10 }
  0xb8   :  { %v4304_v58 = vadd.f32 %v1483_v57, %v1434_v43  ;;  %v1416_v59 = vpop.f32.mrf.mxu0  ;;  %v4340_v57 = vor.u32 %v3274_v37, %v2584_v34  ;;  %v2762_v34 = vld [vmem:[%s5381_s1 + $0xf8] sm:$0xf0]  ;;  %1848 = vmatpush.bf16.msra.mxu1 %v2645_v24  ;;  %v2612_v24 = vld [vmem:[%s5382_s0 + $0x200] sm:$0xf] }
  0xb9   :  { %v2765_v30 = vor.u32 %v3316_v33, %v2762_v34  ;;  %v2826_v37 = vld [vmem:[%s5381_s1 + $0x178] sm:$0xf0]  ;;  %v3282_v33 = vld [vmem:[%s5382_s0 + $0x220] sm:$0xf0]  ;;  %v3348_v34 = vld [vmem:[%s5381_s1 + $0x1f4] sm:$0xf] }
  0xba   :  { %v1465_v60 = vpop.f32.mrf.mxu1  ;;  %5433 = vst [vmem:[#allocation15_spill] sm:$0xff] %v4340_v57  ;;  %v4406_v55 = vor.u32 %v3282_v33, %v2612_v24  ;;  %v3364_v24 = vld [vmem:[%s5381_s1 + $0x274] sm:$0xf]  ;;  %v2754_v33 = vld [vmem:[%s5381_s1 + $0xe8] sm:$0xf0] }
  0xbb   :  { %v4306_v1 = vadd.f32 %v1465_v60, %v1416_v59  ;;  %1890 = vmatpush.bf16.msrb.mxu2 %v2765_v30  ;;  %v3278_v30 = vld [vmem:[%s5382_s0 + $0x204] sm:$0xf] }
  0xbc   :  { %5436 = vst [vmem:[#allocation18_spill] sm:$0xff] %v4406_v55 }
  0xbe   :  { %v1436_v42 = vpop.f32.mrf.mxu2 }
  0xbf   :  { %v1485_v43 = vpop.f32.mrf.mxu3 }
  0xc0   :  { %v4342_v59 = vadd.f32 %v1485_v43, %v1436_v42  ;;  %v1419_v60 = vpop.f32.mrf.mxu0 }
  0xc2   :  { %v1468_v5 = vpop.f32.mrf.mxu1 }
  0xc3   :  { %v4354_v31 = vadd.f32 %v1468_v5, %v1419_v60  ;;  %1536 = vmatmul.bf16.gmra.mxu2 %v4338_v56  ;;  %1634 = vmatmul.bf16.gmra.mxu0 %v4340_v57  ;;  %v3332_v5 = vld [vmem:[%s5381_s1 + $0x174] sm:$0xf] }
  0xc4   :  { %1585 = vmatmul.bf16.gmra.mxu3 %v4344_v10  ;;  %v2829_v40 = vor.u32 %v3332_v5, %v2826_v37  ;;  %v2890_v5 = vld [vmem:[%s5381_s1 + $0x1f8] sm:$0xf0]  ;;  %v2620_v37 = vld [vmem:[%s5382_s0 + $0x208] sm:$0xf] }
  0xc5   :  { %1683 = vmatmul.bf16.gmra.mxu1 %v4346_v11 }
  0xc6   :  { %v1439_v39 = vpop.f32.mrf.mxu2  ;;  %1939 = vmatpush.bf16.msrb.mxu3 %v2829_v40  ;;  %v2893_v40 = vor.u32 %v3348_v34, %v2890_v5 }
  0xc7   :  { %v1488_v41 = vpop.f32.mrf.mxu3 }
  0xc8   :  { %v4372_v42 = vadd.f32 %v1488_v41, %v1439_v39  ;;  %v1421_v43 = vpop.f32.mrf.mxu0  ;;  %v3283_v39 = vld [vmem:[%s5382_s0 + $0x228] sm:$0xf0]  ;;  %v2614_v41 = vld [vmem:[%s5382_s0 + $0x224] sm:$0xf0]  ;;  %1988 = vmatpush.bf16.msrb.mxu0 %v2893_v40 }
  0xc9   :  { %v4408_v19 = vor.u32 %v3283_v39, %v2620_v37  ;;  %v4412_v47 = vor.u32 %v3278_v30, %v2614_v41  ;;  %v3330_v37 = vld [vmem:[%s5381_s1 + $0x164] sm:$0xf]  ;;  %v2818_v39 = vld [vmem:[%s5381_s1 + $0x168] sm:$0xf0] }
  0xca   :  { %v1470_v60 = vpop.f32.mrf.mxu1  ;;  %v2821_v41 = vor.u32 %v3330_v37, %v2818_v39  ;;  %v2384_v37 = vld [vmem:[%s5382_s0 + $0x20] sm:$0xf]  ;;  %v3222_v39 = vld [vmem:[%s5382_s0 + $0x40] sm:$0xf0] }
  0xcb   :  { %v4374_v32 = vadd.f32 %v1470_v60, %v1421_v43  ;;  %v3279_v43 = vld [vmem:[%s5382_s0 + $0x20c] sm:$0xf]  ;;  %v2622_v60 = vld [vmem:[%s5382_s0 + $0x22c] sm:$0xf0]  ;;  %5437 = vst [vmem:[#allocation19_spill] sm:$0xff] %v4408_v19 }
  0xcc   :  { %5438 = vst [vmem:[#allocation20_spill] sm:$0xff] %v4412_v47  ;;  %v4414_v22 = vor.u32 %v3279_v43, %v2622_v60  ;;  %1940 = vmatpush.bf16.msrb.mxu3 %v2821_v41  ;;  %v3217_v41 = vld [vmem:[%s5382_s0 + $0x1c] sm:$0xf] }
  0xce   :  { %v1441_v11 = vpop.f32.mrf.mxu2  ;;  %5439 = vst [vmem:[#allocation21_spill] sm:$0xff] %v4414_v22 }
  0xcf   :  { %v1490_v28 = vpop.f32.mrf.mxu3 }
  0xd0   :  { %v4410_v34 = vadd.f32 %v1490_v28, %v1441_v11  ;;  %v1424_v5 = vpop.f32.mrf.mxu0  ;;  %v2954_v28 = vld [vmem:[%s5381_s1 + $0x278] sm:$0xf0] }
  0xd1   :  { %v2957_v11 = vor.u32 %v3364_v24, %v2954_v28 }
  0xd2   :  { %v1473_v57 = vpop.f32.mrf.mxu1 }
  0xd3   :  { %v4416_v56 = vadd.f32 %v1473_v57, %v1424_v5  ;;  %1541 = vmatmul.bf16.gmra.mxu2 %v4406_v55  ;;  %1639 = vmatmul.bf16.gmra.mxu0 %v4408_v19  ;;  %v3314_v57 = vld [vmem:[%s5381_s1 + $0xe4] sm:$0xf]  ;;  %v4470_v19 = vor.u32 %v3222_v39, %v2384_v37  ;;  %v3312_v37 = vld [vmem:[%s5381_s1 + $0xd4] sm:$0xf]  ;;  %v2746_v39 = vld [vmem:[%s5381_s1 + $0xd8] sm:$0xf0] }
  0xd4   :  { %1590 = vmatmul.bf16.gmra.mxu3 %v4412_v47  ;;  %v2757_v30 = vor.u32 %v3314_v57, %v2754_v33  ;;  %2037 = vmatpush.bf16.msrb.mxu1 %v2957_v11  ;;  %v2376_v57 = vld [vmem:[%s5382_s0 + $0x18] sm:$0xf]  ;;  %v3346_v33 = vld [vmem:[%s5381_s1 + $0x1e4] sm:$0xf]  ;;  %v2882_v11 = vld [vmem:[%s5381_s1 + $0x1e8] sm:$0xf0] }
  0xd5   :  { %1688 = vmatmul.bf16.gmra.mxu1 %v4414_v22  ;;  %5441 = vst [vmem:[#allocation23_spill] sm:$0xff] %v4470_v19 }
  0xd6   :  { %v1444_v40 = vpop.f32.mrf.mxu2  ;;  %1891 = vmatpush.bf16.msrb.mxu2 %v2757_v30  ;;  %v3221_v30 = vld [vmem:[%s5382_s0 + $0x38] sm:$0xf0] }
  0xd7   :  { %v1493_v43 = vpop.f32.mrf.mxu3  ;;  %v4468_v22 = vor.u32 %v3221_v30, %v2376_v57  ;;  %v2946_v57 = vld [vmem:[%s5381_s1 + $0x268] sm:$0xf0] }
  0xd8   :  { %v4440_v60 = vadd.f32 %v1493_v43, %v1444_v40  ;;  %v1426_v5 = vpop.f32.mrf.mxu0  ;;  %v2885_v40 = vor.u32 %v3346_v33, %v2882_v11  ;;  %v2378_v43 = vld [vmem:[%s5382_s0 + $0x3c] sm:$0xf0]  ;;  %v3362_v11 = vld [vmem:[%s5381_s1 + $0x264] sm:$0xf] }
  0xd9   :  { %5440 = vst [vmem:[#allocation22_spill] sm:$0xff] %v4468_v22  ;;  %v4474_v10 = vor.u32 %v3217_v41, %v2378_v43  ;;  %v2949_v30 = vor.u32 %v3362_v11, %v2946_v57  ;;  %v3328_v41 = vld [vmem:[%s5381_s1 + $0x154] sm:$0xf]  ;;  %v2810_v43 = vld [vmem:[%s5381_s1 + $0x158] sm:$0xf0] }
  0xda   :  { %v1475_v24 = vpop.f32.mrf.mxu1  ;;  %1989 = vmatpush.bf16.msrb.mxu0 %v2885_v40  ;;  %v2749_v40 = vor.u32 %v3312_v37, %v2746_v39  ;;  %v2412_v39 = vld [vmem:[%s5382_s0 + $0x60] sm:$0xf] }
  0xdb   :  { %v4442_v28 = vadd.f32 %v1475_v24, %v1426_v5  ;;  %5442 = vst [vmem:[#allocation24_spill] sm:$0xff] %v4474_v10  ;;  %2038 = vmatpush.bf16.msrb.mxu1 %v2949_v30  ;;  %v2874_v30 = vld [vmem:[%s5381_s1 + $0x1d8] sm:$0xf0] }
  0xdc   :  { %1892 = vmatpush.bf16.msrb.mxu2 %v2749_v40 }
  0xde   :  { %v1446_v5 = vpop.f32.mrf.mxu2 }
  0xdf   :  { %v1495_v24 = vpop.f32.mrf.mxu3 }
  0xe0   :  { %v4472_v55 = vadd.f32 %v1495_v24, %v1446_v5  ;;  %v1605_v47 = vpop.f32.mrf.mxu0 }
  0xe2   :  { %v1654_v33 = vpop.f32.mrf.mxu1 }
  0xe3   :  { %1702 = vmatmul.bf16.vlgmr.msra.gmra.mxu2 %v4468_v22  ;;  %1800 = vmatmul.bf16.vlgmr.msra.gmra.mxu0 %v4470_v19 }
  0xe4   :  { %1751 = vmatmul.bf16.vlgmr.msra.gmra.mxu3 %v4474_v10  ;;  %v3344_v10 = vld [vmem:[%s5381_s1 + $0x1d4] sm:$0xf] }
  0xe5   :  { %1849 = vmatmul.bf16.vlgmr.msra.gmra.mxu1 %v3615_v4  ;;  %v2813_v4 = vor.u32 %v3328_v41, %v2810_v43  ;;  %v2877_v40 = vor.u32 %v3344_v10, %v2874_v30  ;;  %v3226_v41 = vld [vmem:[%s5382_s0 + $0x64] sm:$0xf]  ;;  %v2414_v43 = vld [vmem:[%s5382_s0 + $0x84] sm:$0xf0] }
  0xe6   :  { %v1507_v5 = vpop.f32.mrf.mxu2  ;;  %v4530_v30 = vor.u32 %v3226_v41, %v2414_v43 }
  0xe7   :  { %v1508_v24 = vadd.f32 %v1507_v5, %v4218_v14  ;;  %v1556_v11 = vpop.f32.mrf.mxu3  ;;  %1941 = vmatpush.bf16.msrb.mxu3 %v2813_v4  ;;  %v3230_v14 = vld [vmem:[%s5382_s0 + $0x80] sm:$0xf0]  ;;  %1990 = vmatpush.bf16.msrb.mxu0 %v2877_v40 }
  0xe8   :  { %v1607_v57 = vpop.f32.mrf.mxu0  ;;  %v4526_v51 = vor.u32 %v3230_v14, %v2412_v39  ;;  %v3326_v14 = vld [vmem:[%s5381_s1 + $0x144] sm:$0xf] }
  0xe9   :  { %v1557_v19 = vadd.f32 %v1556_v11, %v1508_v24 }
  0xea   :  { %v1656_v22 = vpop.f32.mrf.mxu1  ;;  %5443 = vst [vmem:[#allocation25_spill] sm:$0xff] %v4526_v51 }
  0xeb   :  { %v1606_v37 = vadd.f32 %v1605_v47, %v1557_v19  ;;  %v2420_v47 = vld [vmem:[%s5382_s0 + $0x68] sm:$0xf]  ;;  %v3231_v19 = vld [vmem:[%s5382_s0 + $0x88] sm:$0xf0] }
  0xec   :  { %v4528_v13 = vor.u32 %v3231_v19, %v2420_v47  ;;  %v2802_v47 = vld [vmem:[%s5381_s1 + $0x148] sm:$0xf0] }
  0xed   :  { %v4523_v5 = vadd.f32 %v1654_v33, %v1606_v37  ;;  %v3360_v33 = vld [vmem:[%s5381_s1 + $0x254] sm:$0xf]  ;;  %v2805_v40 = vor.u32 %v3326_v14, %v2802_v47 }
  0xee   :  { %v1509_v4 = vpop.f32.mrf.mxu2  ;;  %5444 = vst [vmem:[#allocation26_spill] sm:$0xff] %v4528_v13 }
  0xef   :  { %v1510_v24 = vadd.f32 %v1509_v4, %v4238_v38  ;;  %v1558_v11 = vpop.f32.mrf.mxu3  ;;  %v2938_v38 = vld [vmem:[%s5381_s1 + $0x258] sm:$0xf0]  ;;  %1942 = vmatpush.bf16.msrb.mxu3 %v2805_v40 }
  0xf0   :  { %v1610_v10 = vpop.f32.mrf.mxu0  ;;  %v2941_v37 = vor.u32 %v3360_v33, %v2938_v38  ;;  %v2448_v38 = vld [vmem:[%s5382_s0 + $0xa8] sm:$0xf] }
  0xf1   :  { %v1559_v12 = vadd.f32 %v1558_v11, %v1510_v24 }
  0xf2   :  { %v1659_v29 = vpop.f32.mrf.mxu1  ;;  %2039 = vmatpush.bf16.msrb.mxu1 %v2941_v37  ;;  %v3240_v37 = vld [vmem:[%s5382_s0 + $0xd0] sm:$0xf0] }
  0xf3   :  { %v1608_v6 = vadd.f32 %v1607_v57, %v1559_v12  ;;  %1707 = vmatmul.bf16.gmra.mxu2 %v4526_v51  ;;  %1805 = vmatmul.bf16.gmra.mxu0 %v4528_v13  ;;  %v3310_v12 = vld [vmem:[%s5381_s1 + $0xc4] sm:$0xf]  ;;  %v2738_v57 = vld [vmem:[%s5381_s1 + $0xc8] sm:$0xf0] }
  0xf4   :  { %1756 = vmatmul.bf16.gmra.mxu3 %v4530_v30  ;;  %v2741_v39 = vor.u32 %v3310_v12, %v2738_v57  ;;  %v3235_v57 = vld [vmem:[%s5382_s0 + $0xac] sm:$0xf] }
  0xf5   :  { %1854 = vmatmul.bf16.gmra.mxu1 %v3747_v0  ;;  %v4554_v19 = vadd.f32 %v1656_v22, %v1608_v6  ;;  %v3342_v6 = vld [vmem:[%s5381_s1 + $0x1c4] sm:$0xf]  ;;  %v2866_v22 = vld [vmem:[%s5381_s1 + $0x1c8] sm:$0xf0] }
  0xf6   :  { %v1512_v0 = vpop.f32.mrf.mxu2  ;;  %1893 = vmatpush.bf16.msrb.mxu2 %v2741_v39  ;;  %v2869_v12 = vor.u32 %v3342_v6, %v2866_v22  ;;  %v2450_v39 = vld [vmem:[%s5382_s0 + $0xcc] sm:$0xf0] }
  0xf7   :  { %v1513_v41 = vadd.f32 %v1512_v0, %v4286_v36  ;;  %v1561_v43 = vpop.f32.mrf.mxu3  ;;  %v3239_v36 = vld [vmem:[%s5382_s0 + $0xc8] sm:$0xf0]  ;;  %v4588_v6 = vor.u32 %v3235_v57, %v2450_v39 }
  0xf8   :  { %v1612_v4 = vpop.f32.mrf.mxu0  ;;  %1991 = vmatpush.bf16.msrb.mxu0 %v2869_v12 }
  0xf9   :  { %v1562_v24 = vadd.f32 %v1561_v43, %v1513_v41  ;;  %v4584_v41 = vor.u32 %v3239_v36, %v2448_v38  ;;  %v2730_v38 = vld [vmem:[%s5381_s1 + $0xb8] sm:$0xf0] }
  0xfa   :  { %v1661_v11 = vpop.f32.mrf.mxu1 }
  0xfb   :  { %v1611_v33 = vadd.f32 %v1610_v10, %v1562_v24  ;;  %v2456_v10 = vld [vmem:[%s5382_s0 + $0xb0] sm:$0xf]  ;;  %5445 = vst [vmem:[#allocation27_spill] sm:$0xff] %v4584_v41 }
  0xfc   :  { %v4586_v43 = vor.u32 %v3240_v37, %v2456_v10  ;;  %v3324_v10 = vld [vmem:[%s5381_s1 + $0x134] sm:$0xf]  ;;  %v2794_v37 = vld [vmem:[%s5381_s1 + $0x138] sm:$0xf0] }
  0xfd   :  { %v4581_v14 = vadd.f32 %v1659_v29, %v1611_v33  ;;  %v3358_v29 = vld [vmem:[%s5381_s1 + $0x244] sm:$0xf]  ;;  %v2797_v57 = vor.u32 %v3324_v10, %v2794_v37 }
  0xfe   :  { %v1514_v47 = vpop.f32.mrf.mxu2  ;;  %5446 = vst [vmem:[#allocation28_spill] sm:$0xff] %v4586_v43 }
  0xff   :  { %v1515_v0 = vadd.f32 %v1514_v47, %v4306_v1  ;;  %v1563_v40 = vpop.f32.mrf.mxu3  ;;  %v2930_v1 = vld [vmem:[%s5381_s1 + $0x248] sm:$0xf0]  ;;  %1943 = vmatpush.bf16.msrb.mxu3 %v2797_v57 }
 0x100   :  { %v1615_v24 = vpop.f32.mrf.mxu0  ;;  %v2933_v33 = vor.u32 %v3358_v29, %v2930_v1  ;;  %v2484_v1 = vld [vmem:[%s5382_s0 + $0xf0] sm:$0xf] }
 0x101   :  { %v1564_v22 = vadd.f32 %v1563_v40, %v1515_v0 }
 0x102   :  { %v1664_v13 = vpop.f32.mrf.mxu1  ;;  %2040 = vmatpush.bf16.msrb.mxu1 %v2933_v33  ;;  %v3249_v33 = vld [vmem:[%s5382_s0 + $0x118] sm:$0xf0] }
 0x103   :  { %v1613_v51 = vadd.f32 %v1612_v4, %v1564_v22  ;;  %1712 = vmatmul.bf16.gmra.mxu2 %v4584_v41  ;;  %1810 = vmatmul.bf16.gmra.mxu0 %v4586_v43  ;;  %v3308_v4 = vld [vmem:[%s5381_s1 + $0xb4] sm:$0xf] }
 0x104   :  { %1761 = vmatmul.bf16.gmra.mxu3 %v4588_v6  ;;  %v2733_v36 = vor.u32 %v3308_v4, %v2730_v38  ;;  %v3244_v38 = vld [vmem:[%s5382_s0 + $0xf4] sm:$0xf] }
 0x105   :  { %1859 = vmatmul.bf16.gmra.mxu1 %v3846_v50  ;;  %v4612_v12 = vadd.f32 %v1661_v11, %v1613_v51  ;;  %v3340_v51 = vld [vmem:[%s5381_s1 + $0x1b4] sm:$0xf]  ;;  %v2858_v11 = vld [vmem:[%s5381_s1 + $0x1b8] sm:$0xf0] }
 0x106   :  { %v1517_v50 = vpop.f32.mrf.mxu2  ;;  %1894 = vmatpush.bf16.msrb.mxu2 %v2733_v36  ;;  %v2861_v4 = vor.u32 %v3340_v51, %v2858_v11  ;;  %v2486_v36 = vld [vmem:[%s5382_s0 + $0x114] sm:$0xf0] }
 0x107   :  { %v1518_v39 = vadd.f32 %v1517_v50, %v4354_v31  ;;  %v1566_v47 = vpop.f32.mrf.mxu3  ;;  %v3248_v31 = vld [vmem:[%s5382_s0 + $0x110] sm:$0xf0]  ;;  %v4646_v51 = vor.u32 %v3244_v38, %v2486_v36 }
 0x108   :  { %v1617_v0 = vpop.f32.mrf.mxu0  ;;  %1992 = vmatpush.bf16.msrb.mxu0 %v2861_v4 }
 0x109   :  { %v1567_v40 = vadd.f32 %v1566_v47, %v1518_v39  ;;  %v4642_v39 = vor.u32 %v3248_v31, %v2484_v1  ;;  %v2722_v1 = vld [vmem:[%s5381_s1 + $0xa8] sm:$0xf0] }
 0x10a   :  { %v1666_v22 = vpop.f32.mrf.mxu1 }
 0x10b   :  { %v1616_v29 = vadd.f32 %v1615_v24, %v1567_v40  ;;  %v2492_v24 = vld [vmem:[%s5382_s0 + $0xf8] sm:$0xf]  ;;  %5447 = vst [vmem:[#allocation29_spill] sm:$0xff] %v4642_v39 }
 0x10c   :  { %v4644_v47 = vor.u32 %v3249_v33, %v2492_v24  ;;  %v3322_v24 = vld [vmem:[%s5381_s1 + $0x124] sm:$0xf]  ;;  %v2786_v33 = vld [vmem:[%s5381_s1 + $0x128] sm:$0xf0] }
 0x10d   :  { %v4639_v10 = vadd.f32 %v1664_v13, %v1616_v29  ;;  %v3356_v13 = vld [vmem:[%s5381_s1 + $0x234] sm:$0xf]  ;;  %v2789_v38 = vor.u32 %v3322_v24, %v2786_v33 }
 0x10e   :  { %v1519_v37 = vpop.f32.mrf.mxu2  ;;  %5448 = vst [vmem:[#allocation30_spill] sm:$0xff] %v4644_v47 }
 0x10f   :  { %v1520_v50 = vadd.f32 %v1519_v37, %v4374_v32  ;;  %v1568_v57 = vpop.f32.mrf.mxu3  ;;  %v2922_v32 = vld [vmem:[%s5381_s1 + $0x238] sm:$0xf0]  ;;  %1944 = vmatpush.bf16.msrb.mxu3 %v2789_v38 }
 0x110   :  { %v1620_v40 = vpop.f32.mrf.mxu0  ;;  %v2925_v29 = vor.u32 %v3356_v13, %v2922_v32  ;;  %v2520_v32 = vld [vmem:[%s5382_s0 + $0x138] sm:$0xf] }
 0x111   :  { %v1569_v11 = vadd.f32 %v1568_v57, %v1520_v50 }
 0x112   :  { %v1669_v43 = vpop.f32.mrf.mxu1  ;;  %2041 = vmatpush.bf16.msrb.mxu1 %v2925_v29  ;;  %v3258_v29 = vld [vmem:[%s5382_s0 + $0x160] sm:$0xf0] }
 0x113   :  { %v1618_v41 = vadd.f32 %v1617_v0, %v1569_v11  ;;  %1717 = vmatmul.bf16.gmra.mxu2 %v4642_v39  ;;  %1815 = vmatmul.bf16.gmra.mxu0 %v4644_v47  ;;  %v3306_v0 = vld [vmem:[%s5381_s1 + $0xa4] sm:$0xf] }
 0x114   :  { %1766 = vmatmul.bf16.gmra.mxu3 %v4646_v51  ;;  %v2725_v31 = vor.u32 %v3306_v0, %v2722_v1  ;;  %v3253_v1 = vld [vmem:[%s5382_s0 + $0x13c] sm:$0xf] }
 0x115   :  { %1864 = vmatmul.bf16.gmra.mxu1 %v3912_v21  ;;  %v4670_v4 = vadd.f32 %v1666_v22, %v1618_v41  ;;  %v3338_v41 = vld [vmem:[%s5381_s1 + $0x1a4] sm:$0xf]  ;;  %v2850_v22 = vld [vmem:[%s5381_s1 + $0x1a8] sm:$0xf0] }
 0x116   :  { %v1522_v21 = vpop.f32.mrf.mxu2  ;;  %1895 = vmatpush.bf16.msrb.mxu2 %v2725_v31  ;;  %v2853_v0 = vor.u32 %v3338_v41, %v2850_v22  ;;  %v2522_v31 = vld [vmem:[%s5382_s0 + $0x15c] sm:$0xf0] }
 0x117   :  { %v1523_v36 = vadd.f32 %v1522_v21, %v4416_v56  ;;  %v1571_v37 = vpop.f32.mrf.mxu3  ;;  %v3257_v56 = vld [vmem:[%s5382_s0 + $0x158] sm:$0xf0]  ;;  %v4704_v41 = vor.u32 %v3253_v1, %v2522_v31 }
 0x118   :  { %v1622_v50 = vpop.f32.mrf.mxu0  ;;  %1993 = vmatpush.bf16.msrb.mxu0 %v2853_v0 }
 0x119   :  { %v1572_v57 = vadd.f32 %v1571_v37, %v1523_v36  ;;  %v4700_v36 = vor.u32 %v3257_v56, %v2520_v32  ;;  %v2714_v32 = vld [vmem:[%s5381_s1 + $0x98] sm:$0xf0] }
 0x11a   :  { %v1671_v11 = vpop.f32.mrf.mxu1 }
 0x11b   :  { %v1621_v13 = vadd.f32 %v1620_v40, %v1572_v57  ;;  %v2528_v40 = vld [vmem:[%s5382_s0 + $0x140] sm:$0xf]  ;;  %5449 = vst [vmem:[#allocation31_spill] sm:$0xff] %v4700_v36 }
 0x11c   :  { %v4702_v37 = vor.u32 %v3258_v29, %v2528_v40  ;;  %v3320_v40 = vld [vmem:[%s5381_s1 + $0x114] sm:$0xf]  ;;  %v2778_v29 = vld [vmem:[%s5381_s1 + $0x118] sm:$0xf0] }
 0x11d   :  { %v4697_v24 = vadd.f32 %v1669_v43, %v1621_v13  ;;  %v3354_v43 = vld [vmem:[%s5381_s1 + $0x224] sm:$0xf]  ;;  %v2781_v1 = vor.u32 %v3320_v40, %v2778_v29 }
 0x11e   :  { %v1524_v33 = vpop.f32.mrf.mxu2  ;;  %5450 = vst [vmem:[#allocation32_spill] sm:$0xff] %v4702_v37 }
 0x11f   :  { %v1525_v21 = vadd.f32 %v1524_v33, %v4442_v28  ;;  %v1573_v38 = vpop.f32.mrf.mxu3  ;;  %v2914_v28 = vld [vmem:[%s5381_s1 + $0x228] sm:$0xf0]  ;;  %1945 = vmatpush.bf16.msrb.mxu3 %v2781_v1 }
 0x120   :  { %v1625_v57 = vpop.f32.mrf.mxu0  ;;  %v2917_v13 = vor.u32 %v3354_v43, %v2914_v28  ;;  %v2556_v28 = vld [vmem:[%s5382_s0 + $0x180] sm:$0xf] }
 0x121   :  { %v1574_v22 = vadd.f32 %v1573_v38, %v1525_v21 }
 0x122   :  { %v1674_v47 = vpop.f32.mrf.mxu1  ;;  %2042 = vmatpush.bf16.msrb.mxu1 %v2917_v13  ;;  %v3267_v13 = vld [vmem:[%s5382_s0 + $0x1a8] sm:$0xf0] }
 0x123   :  { %v1623_v39 = vadd.f32 %v1622_v50, %v1574_v22  ;;  %1722 = vmatmul.bf16.gmra.mxu2 %v4700_v36  ;;  %1820 = vmatmul.bf16.gmra.mxu0 %v4702_v37  ;;  %v3304_v50 = vld [vmem:[%s5381_s1 + $0x94] sm:$0xf] }
 0x124   :  { %1771 = vmatmul.bf16.gmra.mxu3 %v4704_v41  ;;  %v2717_v56 = vor.u32 %v3304_v50, %v2714_v32  ;;  %v3262_v32 = vld [vmem:[%s5382_s0 + $0x184] sm:$0xf] }
 0x125   :  { %1869 = vmatmul.bf16.gmra.mxu1 %v3613_v3  ;;  %v4728_v0 = vadd.f32 %v1671_v11, %v1623_v39  ;;  %v3336_v39 = vld [vmem:[%s5381_s1 + $0x194] sm:$0xf]  ;;  %v2842_v11 = vld [vmem:[%s5381_s1 + $0x198] sm:$0xf0] }
 0x126   :  { %v1527_v3 = vpop.f32.mrf.mxu2  ;;  %1896 = vmatpush.bf16.msrb.mxu2 %v2717_v56  ;;  %v2845_v50 = vor.u32 %v3336_v39, %v2842_v11  ;;  %v2558_v56 = vld [vmem:[%s5382_s0 + $0x1a4] sm:$0xf0] }
 0x127   :  { %v1528_v31 = vadd.f32 %v1527_v3, %v4236_v35  ;;  %v1576_v33 = vpop.f32.mrf.mxu3  ;;  %v3266_v35 = vld [vmem:[%s5382_s0 + $0x1a0] sm:$0xf0]  ;;  %v4762_v39 = vor.u32 %v3262_v32, %v2558_v56 }
 0x128   :  { %v1627_v21 = vpop.f32.mrf.mxu0  ;;  %1994 = vmatpush.bf16.msrb.mxu0 %v2845_v50 }
 0x129   :  { %v1577_v38 = vadd.f32 %v1576_v33, %v1528_v31  ;;  %v4758_v31 = vor.u32 %v3266_v35, %v2556_v28  ;;  %v2706_v28 = vld [vmem:[%s5381_s1 + $0x88] sm:$0xf0] }
 0x12a   :  { %v1676_v22 = vpop.f32.mrf.mxu1 }
 0x12b   :  { %v1626_v43 = vadd.f32 %v1625_v57, %v1577_v38  ;;  %v2564_v57 = vld [vmem:[%s5382_s0 + $0x188] sm:$0xf]  ;;  %5451 = vst [vmem:[#allocation33_spill] sm:$0xff] %v4758_v31 }
 0x12c   :  { %v4760_v33 = vor.u32 %v3267_v13, %v2564_v57  ;;  %v3318_v57 = vld [vmem:[%s5381_s1 + $0x104] sm:$0xf]  ;;  %v2770_v13 = vld [vmem:[%s5381_s1 + $0x108] sm:$0xf0] }
 0x12d   :  { %v4755_v40 = vadd.f32 %v1674_v47, %v1626_v43  ;;  %v3352_v47 = vld [vmem:[%s5381_s1 + $0x214] sm:$0xf]  ;;  %v2773_v32 = vor.u32 %v3318_v57, %v2770_v13 }
 0x12e   :  { %v1529_v29 = vpop.f32.mrf.mxu2  ;;  %5452 = vst [vmem:[#allocation34_spill] sm:$0xff] %v4760_v33 }
 0x12f   :  { %v1530_v3 = vadd.f32 %v1529_v29, %v4274_v15  ;;  %v1578_v1 = vpop.f32.mrf.mxu3  ;;  %v2906_v15 = vld [vmem:[%s5381_s1 + $0x218] sm:$0xf0]  ;;  %1946 = vmatpush.bf16.msrb.mxu3 %v2773_v32 }
 0x130   :  { %v1630_v38 = vpop.f32.mrf.mxu0  ;;  %v2909_v43 = vor.u32 %v3352_v47, %v2906_v15  ;;  %v2592_v15 = vld [vmem:[%s5382_s0 + $0x1c8] sm:$0xf] }
 0x131   :  { %v1579_v11 = vadd.f32 %v1578_v1, %v1530_v3 }
 0x132   :  { %v1679_v37 = vpop.f32.mrf.mxu1  ;;  %2043 = vmatpush.bf16.msrb.mxu1 %v2909_v43  ;;  %v3276_v43 = vld [vmem:[%s5382_s0 + $0x1f0] sm:$0xf0] }
 0x133   :  { %v1628_v36 = vadd.f32 %v1627_v21, %v1579_v11  ;;  %1727 = vmatmul.bf16.gmra.mxu2 %v4758_v31  ;;  %1825 = vmatmul.bf16.gmra.mxu0 %v4760_v33  ;;  %v3302_v21 = vld [vmem:[%s5381_s1 + $0x84] sm:$0xf] }
 0x134   :  { %1776 = vmatmul.bf16.gmra.mxu3 %v4762_v39  ;;  %v2709_v35 = vor.u32 %v3302_v21, %v2706_v28  ;;  %v3271_v28 = vld [vmem:[%s5382_s0 + $0x1cc] sm:$0xf]  ;;  %v3350_v31 = vld [vmem:[%s5381_s1 + $0x204] sm:$0xf] }
 0x135   :  { %1874 = vmatmul.bf16.gmra.mxu1 %v3745_v63  ;;  %v4786_v50 = vadd.f32 %v1676_v22, %v1628_v36  ;;  %v3334_v36 = vld [vmem:[%s5381_s1 + $0x184] sm:$0xf]  ;;  %v2834_v22 = vld [vmem:[%s5381_s1 + $0x188] sm:$0xf0] }
 0x136   :  { %v1532_v63 = vpop.f32.mrf.mxu2  ;;  %1897 = vmatpush.bf16.msrb.mxu2 %v2709_v35  ;;  %v2837_v21 = vor.u32 %v3334_v36, %v2834_v22  ;;  %v2594_v35 = vld [vmem:[%s5382_s0 + $0x1ec] sm:$0xf0] }
 0x137   :  { %v1533_v56 = vadd.f32 %v1532_v63, %v4304_v58  ;;  %v1581_v29 = vpop.f32.mrf.mxu3  ;;  %v3275_v58 = vld [vmem:[%s5382_s0 + $0x1e8] sm:$0xf0]  ;;  %v4820_v36 = vor.u32 %v3271_v28, %v2594_v35 }
 0x138   :  { %v1632_v3 = vpop.f32.mrf.mxu0  ;;  %1995 = vmatpush.bf16.msrb.mxu0 %v2837_v21 }
 0x139   :  { %v1582_v1 = vadd.f32 %v1581_v29, %v1533_v56  ;;  %v4816_v56 = vor.u32 %v3275_v58, %v2592_v15  ;;  %v3380_v15 = vld [vmem:[%s5381_s1 + $0x2f4] sm:$0xf]  ;;  %v3018_v58 = vld [vmem:[%s5381_s1 + $0x2f8] sm:$0xf0] }
 0x13a   :  { %v1681_v11 = vpop.f32.mrf.mxu1 }
 0x13b   :  { %v1631_v47 = vadd.f32 %v1630_v38, %v1582_v1  ;;  %v2600_v38 = vld [vmem:[%s5382_s0 + $0x1d0] sm:$0xf] }
 0x13c   :  { %v4818_v29 = vor.u32 %v3276_v43, %v2600_v38  ;;  %v3021_v38 = vor.u32 %v3380_v15, %v3018_v58 }
 0x13d   :  { %v4813_v57 = vadd.f32 %v1679_v37, %v1631_v47  ;;  %v2898_v37 = vld [vmem:[%s5381_s1 + $0x208] sm:$0xf0] }
 0x13e   :  { %v1534_v13 = vpop.f32.mrf.mxu2  ;;  %5453 = vst [vmem:[#allocation35_spill] sm:$0xff] %v4818_v29  ;;  %2086 = vmatpush.bf16.msra.mxu2 %v3021_v38 }
 0x13f   :  { %v1535_v63 = vadd.f32 %v1534_v13, %v4342_v59  ;;  %v1583_v32 = vpop.f32.mrf.mxu3  ;;  %v2901_v59 = vor.u32 %v3350_v31, %v2898_v37  ;;  %v3082_v31 = vld [vmem:[%s5381_s1 + $0x378] sm:$0xf0]  ;;  %v2628_v37 = vld [vmem:[%s5382_s0 + $0x210] sm:$0xf] }
 0x140   :  { %v1635_v1 = vpop.f32.mrf.mxu0 }
 0x141   :  { %v1584_v22 = vadd.f32 %v1583_v32, %v1535_v63  ;;  %2044 = vmatpush.bf16.msrb.mxu1 %v2901_v59  ;;  %v2630_v59 = vld [vmem:[%s5382_s0 + $0x234] sm:$0xf0] }
 0x142   :  { %v1684_v33 = vpop.f32.mrf.mxu1 }
 0x143   :  { %v1633_v47 = vadd.f32 %v1632_v3, %v1584_v22  ;;  %1732 = vmatmul.bf16.gmra.mxu2 %v4816_v56  ;;  %1830 = vmatmul.bf16.gmra.mxu0 %v4818_v29  ;;  %v3396_v3 = vld [vmem:[%s5381_s1 + $0x374] sm:$0xf] }
 0x144   :  { %1781 = vmatmul.bf16.gmra.mxu3 %v4820_v36  ;;  %v3085_v21 = vor.u32 %v3396_v3, %v3082_v31 }
 0x145   :  { %1879 = vmatmul.bf16.gmra.mxu1 %v3844_v49  ;;  %v4844_v43 = vadd.f32 %v1681_v11, %v1633_v47  ;;  %v3284_v11 = vld [vmem:[%s5382_s0 + $0x230] sm:$0xf0]  ;;  %v2636_v47 = vld [vmem:[%s5382_s0 + $0x218] sm:$0xf] }
 0x146   :  { %v1537_v49 = vpop.f32.mrf.mxu2  ;;  %2135 = vmatpush.bf16.msra.mxu3 %v3085_v21  ;;  %v4868_v31 = vor.u32 %v3284_v11, %v2628_v37  ;;  %v3412_v21 = vld [vmem:[%s5381_s1 + $0x3f4] sm:$0xf] }
 0x147   :  { %v1538_v28 = vadd.f32 %v1537_v49, %v4372_v42  ;;  %v1586_v35 = vpop.f32.mrf.mxu3  ;;  %v3285_v42 = vld [vmem:[%s5382_s0 + $0x238] sm:$0xf0] }
 0x148   :  { %v1637_v13 = vpop.f32.mrf.mxu0  ;;  %v4870_v49 = vor.u32 %v3285_v42, %v2636_v47 }
 0x149   :  { %v1587_v63 = vadd.f32 %v1586_v35, %v1538_v28  ;;  %v3146_v28 = vld [vmem:[%s5381_s1 + $0x3f8] sm:$0xf0] }
 0x14a   :  { %v1686_v32 = vpop.f32.mrf.mxu1  ;;  %5454 = vst [vmem:[#allocation36_spill] sm:$0xff] %v4870_v49 }
 0x14b   :  { %v1636_v22 = vadd.f32 %v1635_v1, %v1587_v63  ;;  %v3280_v1 = vld [vmem:[%s5382_s0 + $0x214] sm:$0xf] }
 0x14c   :  { %v4878_v63 = vor.u32 %v3280_v1, %v2630_v59  ;;  %v3428_v1 = vld [vmem:[%s5381_s1 + $0x474] sm:$0xf]  ;;  %v3378_v59 = vld [vmem:[%s5381_s1 + $0x2e4] sm:$0xf] }
 0x14d   :  { %v4865_v15 = vadd.f32 %v1684_v33, %v1636_v22  ;;  %v3149_v33 = vor.u32 %v3412_v21, %v3146_v28 }
 0x14e   :  { %v1539_v58 = vpop.f32.mrf.mxu2 }
 0x14f   :  { %v1540_v3 = vadd.f32 %v1539_v58, %v4410_v34  ;;  %v1588_v38 = vpop.f32.mrf.mxu3  ;;  %2184 = vmatpush.bf16.msra.mxu0 %v3149_v33 }
 0x150   :  { %v1640_v35 = vpop.f32.mrf.mxu0 }
 0x151   :  { %v1589_v22 = vadd.f32 %v1588_v38, %v1540_v3  ;;  %v3074_v3 = vld [vmem:[%s5381_s1 + $0x368] sm:$0xf0] }
 0x152   :  { %v1689_v29 = vpop.f32.mrf.mxu1 }
 0x153   :  { %v1638_v34 = vadd.f32 %v1637_v13, %v1589_v22  ;;  %1737 = vmatmul.bf16.gmra.mxu2 %v4868_v31  ;;  %1835 = vmatmul.bf16.gmra.mxu0 %v4870_v49  ;;  %v3210_v13 = vld [vmem:[%s5381_s1 + $0x478] sm:$0xf0]  ;;  %v3410_v49 = vld [vmem:[%s5381_s1 + $0x3e4] sm:$0xf] }
 0x154   :  { %1786 = vmatmul.bf16.gmra.mxu3 %v4878_v63 }
 0x155   :  { %1884 = vmatmul.bf16.gmra.mxu1 %v3910_v20  ;;  %v4884_v37 = vadd.f32 %v1686_v32, %v1638_v34  ;;  %v3213_v20 = vor.u32 %v3428_v1, %v3210_v13  ;;  %v3010_v32 = vld [vmem:[%s5381_s1 + $0x2e8] sm:$0xf0] }
 0x156   :  { %v1542_v11 = vpop.f32.mrf.mxu2  ;;  %v3013_v28 = vor.u32 %v3378_v59, %v3010_v32 }
 0x157   :  { %v1543_v47 = vadd.f32 %v1542_v11, %v4440_v60  ;;  %v1591_v42 = vpop.f32.mrf.mxu3  ;;  %v3394_v60 = vld [vmem:[%s5381_s1 + $0x364] sm:$0xf]  ;;  %2233 = vmatpush.bf16.msra.mxu1 %v3213_v20 }
 0x158   :  { %v1642_v58 = vpop.f32.mrf.mxu0  ;;  %v3077_v33 = vor.u32 %v3394_v60, %v3074_v3  ;;  %2087 = vmatpush.bf16.msra.mxu2 %v3013_v28 }
 0x159   :  { %v1592_v38 = vadd.f32 %v1591_v42, %v1543_v47  ;;  %v3138_v47 = vld [vmem:[%s5381_s1 + $0x3e8] sm:$0xf0] }
 0x15a   :  { %v1691_v21 = vpop.f32.mrf.mxu1  ;;  %2136 = vmatpush.bf16.msra.mxu3 %v3077_v33  ;;  %v3141_v59 = vor.u32 %v3410_v49, %v3138_v47  ;;  %v4925_v49 = vld [vmem:[%s5383_s2] sm:$0x3] }
 0x15b   :  { %v1641_v22 = vadd.f32 %v1640_v35, %v1592_v38  ;;  %v3002_v38 = vld [vmem:[%s5381_s1 + $0x2d8] sm:$0xf0]  ;;  %v4947_v28 = vperm.slane %v4925_v49, 0 }
 0x15c   :  { %2185 = vmatpush.bf16.msra.mxu0 %v3141_v59 }
 0x15d   :  { %v4905_v34 = vadd.f32 %v1689_v29, %v1641_v22 }
 0x15e   :  { %v1544_v11 = vpop.f32.mrf.mxu2 }
 0x15f   :  { %v1545_v1 = vadd.f32 %v1544_v11, %v4472_v55  ;;  %v1593_v13 = vpop.f32.mrf.mxu3 }
 0x160   :  { %v1801_v42 = vpop.f32.mrf.mxu0 }
 0x161   :  { %v1594_v20 = vadd.f32 %v1593_v13, %v1545_v1 }
 0x162   :  { %v4914_v35 = vpop.f32.mrf.mxu1 }
 0x163   :  { %v1643_v29 = vadd.f32 %v1642_v58, %v1594_v20  ;;  %1898 = vmatmul.bf16.vlgmr.msrb.gmra.mxu2 %v3628_v9  ;;  %1996 = vmatmul.bf16.vlgmr.msrb.gmra.mxu0 %v3974_v46  ;;  %v3426_v9 = vld [vmem:[%s5381_s1 + $0x464] sm:$0xf] }
 0x164   :  { %1947 = vmatmul.bf16.vlgmr.msrb.gmra.mxu3 %v3970_v44  ;;  %v3202_v44 = vld [vmem:[%s5381_s1 + $0x468] sm:$0xf0] }
 0x165   :  { %2045 = vmatmul.bf16.vlgmr.msrb.gmra.mxu1 %v3972_v45  ;;  %v4920_v55 = vadd.f32 %v1691_v21, %v1643_v29  ;;  %v3376_v45 = vld [vmem:[%s5381_s1 + $0x2d4] sm:$0xf]  ;;  %v3205_v58 = vor.u32 %v3426_v9, %v3202_v44  ;;  %v3066_v21 = vld [vmem:[%s5381_s1 + $0x358] sm:$0xf0] }
 0x166   :  { %v1703_v32 = vpop.f32.mrf.mxu2  ;;  %v3005_v11 = vor.u32 %v3376_v45, %v3002_v38 }
 0x167   :  { %v1704_v60 = vadd.f32 %v1703_v32, %v4523_v5  ;;  %v1752_v3 = vpop.f32.mrf.mxu3  ;;  %v3392_v5 = vld [vmem:[%s5381_s1 + $0x354] sm:$0xf]  ;;  %2234 = vmatpush.bf16.msra.mxu1 %v3205_v58 }
 0x168   :  { %v1803_v46 = vpop.f32.mrf.mxu0  ;;  %v3069_v1 = vor.u32 %v3392_v5, %v3066_v21  ;;  %2088 = vmatpush.bf16.msra.mxu2 %v3005_v11  ;;  %v3408_v32 = vld [vmem:[%s5381_s1 + $0x3d4] sm:$0xf]  ;;  %v2994_v21 = vld [vmem:[%s5381_s1 + $0x2c8] sm:$0xf0] }
 0x169   :  { %v1753_v33 = vadd.f32 %v1752_v3, %v1704_v60 }
 0x16a   :  { %v4949_v22 = vpop.f32.mrf.mxu1  ;;  %2137 = vmatpush.bf16.msra.mxu3 %v3069_v1 }
 0x16b   :  { %v1802_v13 = vadd.f32 %v1801_v42, %v1753_v33  ;;  %v3130_v42 = vld [vmem:[%s5381_s1 + $0x3d8] sm:$0xf0] }
 0x16c   :  { %v3133_v3 = vor.u32 %v3408_v32, %v3130_v42 }
 0x16d   :  { %v2282_v47 = vadd.f32 %v1802_v13, %v4947_v28  ;;  %v3058_v13 = vld [vmem:[%s5381_s1 + $0x348] sm:$0xf0] }
 0x16e   :  { %v1705_v59 = vpop.f32.mrf.mxu2  ;;  %2186 = vmatpush.bf16.msra.mxu0 %v3133_v3  ;;  %v3406_v3 = vld [vmem:[%s5381_s1 + $0x3c4] sm:$0xf] }
 0x16f   :  { %2314 = vst [vmem:[%s5384_s3] sm:$0xff] %v2282_v47  ;;  %v1706_v20 = vadd.f32 %v1705_v59, %v4554_v19  ;;  %v1754_v29 = vpop.f32.mrf.mxu3 }
 0x170   :  { %v1806_v60 = vpop.f32.mrf.mxu0 }
 0x171   :  { %v1755_v9 = vadd.f32 %v1754_v29, %v1706_v20 }
 0x172   :  { %v4962_v44 = vpop.f32.mrf.mxu1 }
 0x173   :  { %v1804_v45 = vadd.f32 %v1803_v46, %v1755_v9  ;;  %1903 = vmatmul.bf16.gmra.mxu2 %v3760_v7  ;;  %2001 = vmatmul.bf16.gmra.mxu0 %v4034_v18  ;;  %v3424_v7 = vld [vmem:[%s5381_s1 + $0x454] sm:$0xf]  ;;  %v3374_v46 = vld [vmem:[%s5381_s1 + $0x2c4] sm:$0xf] }
 0x174   :  { %1952 = vmatmul.bf16.gmra.mxu3 %v4030_v16  ;;  %v3194_v16 = vld [vmem:[%s5381_s1 + $0x458] sm:$0xf0]  ;;  %v2997_v1 = vor.u32 %v3374_v46, %v2994_v21 }
 0x175   :  { %2050 = vmatmul.bf16.gmra.mxu1 %v4032_v17  ;;  %v2284_v19 = vadd.f32 %v1804_v45, %v4947_v28  ;;  %v3197_v17 = vor.u32 %v3424_v7, %v3194_v16 }
 0x176   :  { %v1708_v58 = vpop.f32.mrf.mxu2  ;;  %2089 = vmatpush.bf16.msra.mxu2 %v2997_v1 }
 0x177   :  { %2316 = vst [vmem:[%s5384_s3 + $0x10] sm:$0xff] %v2284_v19  ;;  %v1709_v38 = vadd.f32 %v1708_v58, %v4581_v14  ;;  %v1757_v5 = vpop.f32.mrf.mxu3  ;;  %v3390_v14 = vld [vmem:[%s5381_s1 + $0x344] sm:$0xf]  ;;  %2235 = vmatpush.bf16.msra.mxu1 %v3197_v17  ;;  %v2986_v17 = vld [vmem:[%s5381_s1 + $0x2b8] sm:$0xf0] }
 0x178   :  { %v1808_v18 = vpop.f32.mrf.mxu0  ;;  %v3061_v47 = vor.u32 %v3390_v14, %v3058_v13 }
 0x179   :  { %v1758_v33 = vadd.f32 %v1757_v5, %v1709_v38 }
 0x17a   :  { %v4988_v11 = vpop.f32.mrf.mxu1  ;;  %2138 = vmatpush.bf16.msra.mxu3 %v3061_v47 }
 0x17b   :  { %v1807_v59 = vadd.f32 %v1806_v60, %v1758_v33  ;;  %v3122_v60 = vld [vmem:[%s5381_s1 + $0x3c8] sm:$0xf0]  ;;  %v3050_v33 = vld [vmem:[%s5381_s1 + $0x338] sm:$0xf0] }
 0x17c   :  { %v3125_v45 = vor.u32 %v3406_v3, %v3122_v60 }
 0x17d   :  { %v2286_v20 = vadd.f32 %v1807_v59, %v4947_v28 }
 0x17e   :  { %v1710_v29 = vpop.f32.mrf.mxu2  ;;  %2187 = vmatpush.bf16.msra.mxu0 %v3125_v45 }
 0x17f   :  { %2318 = vst [vmem:[%s5384_s3 + $0x20] sm:$0xff] %v2286_v20  ;;  %v1711_v32 = vadd.f32 %v1710_v29, %v4612_v12  ;;  %v1759_v42 = vpop.f32.mrf.mxu3 }
 0x180   :  { %v1811_v9 = vpop.f32.mrf.mxu0 }
 0x181   :  { %v1760_v19 = vadd.f32 %v1759_v42, %v1711_v32  ;;  %v3404_v32 = vld [vmem:[%s5381_s1 + $0x3b4] sm:$0xf]  ;;  %v3114_v42 = vld [vmem:[%s5381_s1 + $0x3b8] sm:$0xf0] }
 0x182   :  { %v5004_v58 = vpop.f32.mrf.mxu1  ;;  %v3117_v60 = vor.u32 %v3404_v32, %v3114_v42 }
 0x183   :  { %v1809_v38 = vadd.f32 %v1808_v18, %v1760_v19  ;;  %1908 = vmatmul.bf16.gmra.mxu2 %v3850_v52  ;;  %2006 = vmatmul.bf16.gmra.mxu0 %v4094_v54  ;;  %v3422_v52 = vld [vmem:[%s5381_s1 + $0x444] sm:$0xf]  ;;  %v3372_v18 = vld [vmem:[%s5381_s1 + $0x2b4] sm:$0xf] }
 0x184   :  { %1957 = vmatmul.bf16.gmra.mxu3 %v4090_v48  ;;  %v3186_v48 = vld [vmem:[%s5381_s1 + $0x448] sm:$0xf0]  ;;  %v2989_v14 = vor.u32 %v3372_v18, %v2986_v17  ;;  %2188 = vmatpush.bf16.msra.mxu0 %v3117_v60 }
 0x185   :  { %2055 = vmatmul.bf16.gmra.mxu1 %v4092_v53  ;;  %v2288_v12 = vadd.f32 %v1809_v38, %v4947_v28  ;;  %v3189_v53 = vor.u32 %v3422_v52, %v3186_v48 }
 0x186   :  { %v1713_v5 = vpop.f32.mrf.mxu2  ;;  %2090 = vmatpush.bf16.msra.mxu2 %v2989_v14 }
 0x187   :  { %2320 = vst [vmem:[%s5384_s3 + $0x30] sm:$0xff] %v2288_v12  ;;  %v1714_v7 = vadd.f32 %v1713_v5, %v4639_v10  ;;  %v1762_v16 = vpop.f32.mrf.mxu3  ;;  %v3388_v10 = vld [vmem:[%s5381_s1 + $0x334] sm:$0xf]  ;;  %2236 = vmatpush.bf16.msra.mxu1 %v3189_v53  ;;  %v3042_v53 = vld [vmem:[%s5381_s1 + $0x328] sm:$0xf0] }
 0x188   :  { %v1813_v54 = vpop.f32.mrf.mxu0  ;;  %v3053_v1 = vor.u32 %v3388_v10, %v3050_v33 }
 0x189   :  { %v1763_v46 = vadd.f32 %v1762_v16, %v1714_v7  ;;  %v3370_v7 = vld [vmem:[%s5381_s1 + $0x2a4] sm:$0xf]  ;;  %v2978_v16 = vld [vmem:[%s5381_s1 + $0x2a8] sm:$0xf0] }
 0x18a   :  { %v5030_v21 = vpop.f32.mrf.mxu1  ;;  %2139 = vmatpush.bf16.msra.mxu3 %v3053_v1  ;;  %v3402_v1 = vld [vmem:[%s5381_s1 + $0x3a4] sm:$0xf] }
 0x18b   :  { %v1812_v13 = vadd.f32 %v1811_v9, %v1763_v46 }
 0x18d   :  { %v2290_v47 = vadd.f32 %v1812_v13, %v4947_v28  ;;  %v3106_v13 = vld [vmem:[%s5381_s1 + $0x3a8] sm:$0xf0] }
 0x18e   :  { %v1715_v59 = vpop.f32.mrf.mxu2 }
 0x18f   :  { %2322 = vst [vmem:[%s5384_s3 + $0x40] sm:$0xff] %v2290_v47  ;;  %v1716_v20 = vadd.f32 %v1715_v59, %v4670_v4  ;;  %v1764_v29 = vpop.f32.mrf.mxu3  ;;  %v3109_v59 = vor.u32 %v3402_v1, %v3106_v13 }
 0x190   :  { %v1816_v3 = vpop.f32.mrf.mxu0 }
 0x191   :  { %v1765_v9 = vadd.f32 %v1764_v29, %v1716_v20  ;;  %2189 = vmatpush.bf16.msra.mxu0 %v3109_v59 }
 0x192   :  { %v5046_v45 = vpop.f32.mrf.mxu1 }
 0x193   :  { %v1814_v19 = vadd.f32 %v1813_v54, %v1765_v9  ;;  %1913 = vmatmul.bf16.gmra.mxu2 %v3916_v23  ;;  %2011 = vmatmul.bf16.gmra.mxu0 %v4148_v27  ;;  %v3420_v23 = vld [vmem:[%s5381_s1 + $0x434] sm:$0xf]  ;;  %v2981_v54 = vor.u32 %v3370_v7, %v2978_v16 }
 0x194   :  { %1962 = vmatmul.bf16.gmra.mxu3 %v4144_v25  ;;  %v3178_v25 = vld [vmem:[%s5381_s1 + $0x438] sm:$0xf0]  ;;  %v3368_v9 = vld [vmem:[%s5381_s1 + $0x294] sm:$0xf] }
 0x195   :  { %2060 = vmatmul.bf16.gmra.mxu1 %v4146_v26  ;;  %v2292_v4 = vadd.f32 %v1814_v19, %v4947_v28  ;;  %v3181_v26 = vor.u32 %v3420_v23, %v3178_v25  ;;  %2091 = vmatpush.bf16.msra.mxu2 %v2981_v54  ;;  %v2970_v19 = vld [vmem:[%s5381_s1 + $0x298] sm:$0xf0] }
 0x196   :  { %v1718_v38 = vpop.f32.mrf.mxu2 }
 0x197   :  { %2324 = vst [vmem:[%s5384_s3 + $0x50] sm:$0xff] %v2292_v4  ;;  %v1719_v12 = vadd.f32 %v1718_v38, %v4697_v24  ;;  %v1767_v5 = vpop.f32.mrf.mxu3  ;;  %v3386_v24 = vld [vmem:[%s5381_s1 + $0x324] sm:$0xf]  ;;  %2237 = vmatpush.bf16.msra.mxu1 %v3181_v26 }
 0x198   :  { %v1818_v27 = vpop.f32.mrf.mxu0  ;;  %v3045_v18 = vor.u32 %v3386_v24, %v3042_v53  ;;  %v3400_v24 = vld [vmem:[%s5381_s1 + $0x394] sm:$0xf] }
 0x199   :  { %v1768_v52 = vadd.f32 %v1767_v5, %v1719_v12  ;;  %v2973_v12 = vor.u32 %v3368_v9, %v2970_v19  ;;  %v3034_v5 = vld [vmem:[%s5381_s1 + $0x318] sm:$0xf0] }
 0x19a   :  { %v5072_v48 = vpop.f32.mrf.mxu1  ;;  %2140 = vmatpush.bf16.msra.mxu3 %v3045_v18 }
 0x19b   :  { %v1817_v17 = vadd.f32 %v1816_v3, %v1768_v52  ;;  %2092 = vmatpush.bf16.msra.mxu2 %v2973_v12  ;;  %v3098_v52 = vld [vmem:[%s5381_s1 + $0x398] sm:$0xf0] }
 0x19c   :  { %v3101_v53 = vor.u32 %v3400_v24, %v3098_v52  ;;  %v3414_v24 = vld [vmem:[%s5381_s1 + $0x404] sm:$0xf] }
 0x19d   :  { %v2294_v10 = vadd.f32 %v1817_v17, %v4947_v28 }
 0x19e   :  { %v1720_v46 = vpop.f32.mrf.mxu2  ;;  %2190 = vmatpush.bf16.msra.mxu0 %v3101_v53  ;;  %v5460_v53 = vld [vmem:[#allocation16_spill] sm:$0xff] }
 0x19f   :  { %2326 = vst [vmem:[%s5384_s3 + $0x60] sm:$0xff] %v2294_v10  ;;  %v1721_v14 = vadd.f32 %v1720_v46, %v4728_v0  ;;  %v1769_v33 = vpop.f32.mrf.mxu3  ;;  %v5455_v46 = vld [vmem:[#allocation2_spill] sm:$0xff] }
 0x1a0   :  { %v1821_v47 = vpop.f32.mrf.mxu0 }
 0x1a1   :  { %v1770_v20 = vadd.f32 %v1769_v33, %v1721_v14  ;;  %v5456_v14 = vld [vmem:[#allocation12_spill] sm:$0xff]  ;;  %v5458_v33 = vld [vmem:[#allocation11_spill] sm:$0xff] }
 0x1a2   :  { %v5088_v29 = vpop.f32.mrf.mxu1 }
 0x1a3   :  { %v1819_v32 = vadd.f32 %v1818_v27, %v1770_v20  ;;  %1918 = vmatmul.bf16.gmra.mxu2 %v3626_v8  ;;  %2016 = vmatmul.bf16.gmra.mxu0 %v4208_v2  ;;  %v3418_v8 = vld [vmem:[%s5381_s1 + $0x424] sm:$0xf]  ;;  %v3416_v20 = vld [vmem:[%s5381_s1 + $0x414] sm:$0xf] }
 0x1a4   :  { %1967 = vmatmul.bf16.gmra.mxu3 %v4204_v61  ;;  %v3170_v61 = vld [vmem:[%s5381_s1 + $0x428] sm:$0xf0] }
 0x1a5   :  { %2065 = vmatmul.bf16.gmra.mxu1 %v4206_v62  ;;  %v2296_v0 = vadd.f32 %v1819_v32, %v4947_v28  ;;  %v3173_v62 = vor.u32 %v3418_v8, %v3170_v61  ;;  %v3162_v32 = vld [vmem:[%s5381_s1 + $0x418] sm:$0xf0] }
 0x1a6   :  { %v1723_v42 = vpop.f32.mrf.mxu2 }
 0x1a7   :  { %2328 = vst [vmem:[%s5384_s3 + $0x70] sm:$0xff] %v2296_v0  ;;  %v1724_v3 = vadd.f32 %v1723_v42, %v4755_v40  ;;  %v1772_v60 = vpop.f32.mrf.mxu3  ;;  %v3384_v40 = vld [vmem:[%s5381_s1 + $0x314] sm:$0xf]  ;;  %2238 = vmatpush.bf16.msra.mxu1 %v3173_v62  ;;  %v3165_v42 = vor.u32 %v3416_v20, %v3162_v32  ;;  %v3026_v62 = vld [vmem:[%s5381_s1 + $0x308] sm:$0xf0] }
 0x1a8   :  { %v1823_v2 = vpop.f32.mrf.mxu0  ;;  %v3037_v23 = vor.u32 %v3384_v40, %v3034_v5 }
 0x1a9   :  { %v1773_v4 = vadd.f32 %v1772_v60, %v1724_v3  ;;  %v3366_v3 = vld [vmem:[%s5381_s1 + $0x284] sm:$0xf]  ;;  %v2962_v60 = vld [vmem:[%s5381_s1 + $0x288] sm:$0xf0] }
 0x1aa   :  { %v5114_v38 = vpop.f32.mrf.mxu1  ;;  %2141 = vmatpush.bf16.msra.mxu3 %v3037_v23  ;;  %v3398_v23 = vld [vmem:[%s5381_s1 + $0x384] sm:$0xf] }
 0x1ab   :  { %v1822_v25 = vadd.f32 %v1821_v47, %v1773_v4  ;;  %2239 = vmatpush.bf16.msra.mxu1 %v3165_v42 }
 0x1ad   :  { %v2298_v27 = vadd.f32 %v1822_v25, %v4947_v28  ;;  %v3090_v25 = vld [vmem:[%s5381_s1 + $0x388] sm:$0xf0] }
 0x1ae   :  { %v1725_v26 = vpop.f32.mrf.mxu2 }
 0x1af   :  { %2330 = vst [vmem:[%s5384_s3 + $0x80] sm:$0xff] %v2298_v27  ;;  %v1726_v7 = vadd.f32 %v1725_v26, %v4786_v50  ;;  %v1774_v16 = vpop.f32.mrf.mxu3  ;;  %v5457_v50 = vld [vmem:[#allocation10_spill] sm:$0xff]  ;;  %v3093_v26 = vor.u32 %v3398_v23, %v3090_v25 }
 0x1b0   :  { %v1826_v54 = vpop.f32.mrf.mxu0 }
 0x1b1   :  { %v1775_v18 = vadd.f32 %v1774_v16, %v1726_v7  ;;  %2191 = vmatpush.bf16.msra.mxu0 %v3093_v26 }
 0x1b2   :  { %v5130_v17 = vpop.f32.mrf.mxu1 }
 0x1b3   :  { %v1824_v10 = vadd.f32 %v1823_v2, %v1775_v18  ;;  %1923 = vmatmul.bf16.gmra.mxu2 %v5455_v46  ;;  %2021 = vmatmul.bf16.gmra.mxu0 %v5456_v14  ;;  %v2965_v2 = vor.u32 %v3366_v3, %v2962_v60  ;;  %v5462_v46 = vld [vmem:[#allocation15_spill] sm:$0xff] }
 0x1b4   :  { %1972 = vmatmul.bf16.gmra.mxu3 %v5457_v50 }
 0x1b5   :  { %2070 = vmatmul.bf16.gmra.mxu1 %v5458_v33  ;;  %v2300_v1 = vadd.f32 %v1824_v10, %v4947_v28  ;;  %2093 = vmatpush.bf16.msra.mxu2 %v2965_v2  ;;  %v5461_v10 = vld [vmem:[#allocation14_spill] sm:$0xff]  ;;  %v5463_v2 = vld [vmem:[#allocation4_spill] sm:$0xff] }
 0x1b6   :  { %v1728_v13 = vpop.f32.mrf.mxu2 }
 0x1b7   :  { %2332 = vst [vmem:[%s5384_s3 + $0x90] sm:$0xff] %v2300_v1  ;;  %v1729_v47 = vadd.f32 %v1728_v13, %v4813_v57  ;;  %v1777_v59 = vpop.f32.mrf.mxu3  ;;  %v3382_v57 = vld [vmem:[%s5381_s1 + $0x304] sm:$0xf] }
 0x1b8   :  { %v1828_v0 = vpop.f32.mrf.mxu0  ;;  %v3029_v9 = vor.u32 %v3382_v57, %v3026_v62  ;;  %v5464_v62 = vld [vmem:[#allocation20_spill] sm:$0xff] }
 0x1b9   :  { %v1778_v8 = vadd.f32 %v1777_v59, %v1729_v47 }
 0x1ba   :  { %v5156_v61 = vpop.f32.mrf.mxu1  ;;  %2142 = vmatpush.bf16.msra.mxu3 %v3029_v9  ;;  %v5465_v9 = vld [vmem:[#allocation18_spill] sm:$0xff] }
 0x1bb   :  { %v1827_v19 = vadd.f32 %v1826_v54, %v1778_v8  ;;  %v5459_v54 = vld [vmem:[#allocation3_spill] sm:$0xff] }
 0x1bd   :  { %v2302_v40 = vadd.f32 %v1827_v19, %v4947_v28  ;;  %v5466_v19 = vld [vmem:[#allocation19_spill] sm:$0xff] }
 0x1be   :  { %v1730_v4 = vpop.f32.mrf.mxu2 }
 0x1bf   :  { %2334 = vst [vmem:[%s5384_s3 + $0xa0] sm:$0xff] %v2302_v40  ;;  %v1731_v12 = vadd.f32 %v1730_v4, %v4844_v43  ;;  %v1779_v5 = vpop.f32.mrf.mxu3  ;;  %v3154_v43 = vld [vmem:[%s5381_s1 + $0x408] sm:$0xf0] }
 0x1c0   :  { %v1831_v27 = vpop.f32.mrf.mxu0  ;;  %v3157_v18 = vor.u32 %v3414_v24, %v3154_v43 }
 0x1c1   :  { %v1780_v7 = vadd.f32 %v1779_v5, %v1731_v12 }
 0x1c2   :  { %v5172_v16 = vpop.f32.mrf.mxu1  ;;  %2240 = vmatpush.bf16.msra.mxu1 %v3157_v18  ;;  %v5467_v18 = vld [vmem:[#allocation5_spill] sm:$0xff] }
 0x1c3   :  { %v1829_v52 = vadd.f32 %v1828_v0, %v1780_v7  ;;  %1928 = vmatmul.bf16.gmra.mxu2 %v5459_v54  ;;  %2026 = vmatmul.bf16.gmra.mxu0 %v5460_v53 }
 0x1c4   :  { %1977 = vmatmul.bf16.gmra.mxu3 %v5461_v10  ;;  %v5468_v10 = vld [vmem:[#allocation24_spill] sm:$0xff] }
 0x1c5   :  { %2075 = vmatmul.bf16.gmra.mxu1 %v5462_v46  ;;  %v2304_v14 = vadd.f32 %v1829_v52, %v4947_v28  ;;  %v5469_v46 = vld [vmem:[#allocation22_spill] sm:$0xff] }
 0x1c6   :  { %v1733_v50 = vpop.f32.mrf.mxu2 }
 0x1c7   :  { %2336 = vst [vmem:[%s5384_s3 + $0xb0] sm:$0xff] %v2304_v14  ;;  %v1734_v33 = vadd.f32 %v1733_v50, %v4865_v15  ;;  %v1782_v1 = vpop.f32.mrf.mxu3  ;;  %v5470_v14 = vld [vmem:[#allocation23_spill] sm:$0xff] }
 0x1c8   :  { %v1833_v13 = vpop.f32.mrf.mxu0 }
 0x1c9   :  { %v1783_v47 = vadd.f32 %v1782_v1, %v1734_v33 }
 0x1ca   :  { %v5189_v59 = vpop.f32.mrf.mxu1 }
 0x1cb   :  { %v1832_v20 = vadd.f32 %v1831_v27, %v1783_v47 }
 0x1cd   :  { %v2306_v32 = vadd.f32 %v1832_v20, %v4947_v28 }
 0x1ce   :  { %v1735_v0 = vpop.f32.mrf.mxu2 }
 0x1cf   :  { %2338 = vst [vmem:[%s5384_s3 + $0xc0] sm:$0xff] %v2306_v32  ;;  %v1736_v42 = vadd.f32 %v1735_v0, %v4884_v37  ;;  %v1784_v3 = vpop.f32.mrf.mxu3 }
 0x1d0   :  { %v1836_v60 = vpop.f32.mrf.mxu0 }
 0x1d1   :  { %v1785_v57 = vadd.f32 %v1784_v3, %v1736_v42 }
 0x1d2   :  { %v5196_v8 = vpop.f32.mrf.mxu1 }
 0x1d3   :  { %v1834_v15 = vadd.f32 %v1833_v13, %v1785_v57  ;;  %1933 = vmatmul.bf16.gmra.mxu2 %v5463_v2  ;;  %2031 = vmatmul.bf16.gmra.mxu0 %v5464_v62  ;;  %v5471_v62 = vld [vmem:[#allocation6_spill] sm:$0xff] }
 0x1d4   :  { %1982 = vmatmul.bf16.gmra.mxu3 %v5465_v9  ;;  %v5473_v9 = vld [vmem:[#allocation26_spill] sm:$0xff] }
 0x1d5   :  { %2080 = vmatmul.bf16.gmra.mxu1 %v5466_v19  ;;  %v2308_v40 = vadd.f32 %v1834_v15, %v4947_v28 }
 0x1d6   :  { %v1738_v4 = vpop.f32.mrf.mxu2 }
 0x1d7   :  { %2340 = vst [vmem:[%s5384_s3 + $0xd0] sm:$0xff] %v2308_v40  ;;  %v1739_v37 = vadd.f32 %v1738_v4, %v4905_v34  ;;  %v1787_v12 = vpop.f32.mrf.mxu3 }
 0x1d8   :  { %v1838_v5 = vpop.f32.mrf.mxu0 }
 0x1d9   :  { %v1788_v23 = vadd.f32 %v1787_v12, %v1739_v37 }
 0x1da   :  { %v5207_v25 = vpop.f32.mrf.mxu1 }
 0x1db   :  { %v1837_v27 = vadd.f32 %v1836_v60, %v1788_v23 }
 0x1dd   :  { %v2310_v26 = vadd.f32 %v1837_v27, %v4947_v28 }
 0x1de   :  { %v1740_v7 = vpop.f32.mrf.mxu2 }
 0x1df   :  { %2342 = vst [vmem:[%s5384_s3 + $0xe0] sm:$0xff] %v2310_v26  ;;  %v1741_v24 = vadd.f32 %v1740_v7, %v4920_v55  ;;  %v1789_v43 = vpop.f32.mrf.mxu3 }
 0x1e0   :  { %v1997_v52 = vpop.f32.mrf.mxu0 }
 0x1e1   :  { %v1790_v54 = vadd.f32 %v1789_v43, %v1741_v24 }
 0x1e2   :  { %v2046_v53 = vpop.f32.mrf.mxu1 }
 0x1e3   :  { %v1839_v34 = vadd.f32 %v1838_v5, %v1790_v54  ;;  %2094 = vmatmul.bf16.vlgmr.msra.gmra.mxu2 %v5467_v18  ;;  %2192 = vmatmul.bf16.vlgmr.msra.gmra.mxu0 %v5468_v10 }
 0x1e4   :  { %2143 = vmatmul.bf16.vlgmr.msra.gmra.mxu3 %v5469_v46 }
 0x1e5   :  { %2241 = vmatmul.bf16.vlgmr.msra.gmra.mxu1 %v5470_v14  ;;  %v2312_v50 = vadd.f32 %v1839_v34, %v4947_v28  ;;  %v5476_v34 = vld [vmem:[#allocation28_spill] sm:$0xff] }
 0x1e6   :  { %v1899_v33 = vpop.f32.mrf.mxu2 }
 0x1e7   :  { %2344 = vst [vmem:[%s5384_s3 + $0xf0] sm:$0xff] %v2312_v50  ;;  %v1900_v55 = vadd.f32 %v1899_v33, %v4914_v35  ;;  %v1948_v1 = vpop.f32.mrf.mxu3  ;;  %v5472_v35 = vld [vmem:[#allocation25_spill] sm:$0xff] }
 0x1e8   :  { %v1999_v13 = vpop.f32.mrf.mxu0 }
 0x1e9   :  { %v1949_v47 = vadd.f32 %v1948_v1, %v1900_v55 }
 0x1ea   :  { %v2048_v20 = vpop.f32.mrf.mxu1 }
 0x1eb   :  { %v1998_v32 = vadd.f32 %v1997_v52, %v1949_v47 }
 0x1ed   :  { %v5223_v0 = vadd.f32 %v2046_v53, %v1998_v32  ;;  %v5474_v53 = vld [vmem:[#allocation7_spill] sm:$0xff] }
 0x1ee   :  { %v1901_v42 = vpop.f32.mrf.mxu2 }
 0x1ef   :  { %v1902_v3 = vadd.f32 %v1901_v42, %v4949_v22  ;;  %v1950_v60 = vpop.f32.mrf.mxu3 }
 0x1f0   :  { %v2002_v57 = vpop.f32.mrf.mxu0 }
 0x1f1   :  { %v1951_v28 = vadd.f32 %v1950_v60, %v1902_v3  ;;  %v5477_v60 = vld [vmem:[#allocation8_spill] sm:$0xff] }
 0x1f2   :  { %v2051_v15 = vpop.f32.mrf.mxu1 }
 0x1f3   :  { %v2000_v2 = vadd.f32 %v1999_v13, %v1951_v28  ;;  %2099 = vmatmul.bf16.gmra.mxu2 %v5471_v62  ;;  %2197 = vmatmul.bf16.gmra.mxu0 %v4530_v30 }
 0x1f4   :  { %2148 = vmatmul.bf16.gmra.mxu3 %v5472_v35 }
 0x1f5   :  { %2246 = vmatmul.bf16.gmra.mxu1 %v5473_v9  ;;  %v5230_v19 = vadd.f32 %v2048_v20, %v2000_v2 }
 0x1f6   :  { %v1904_v40 = vpop.f32.mrf.mxu2 }
 0x1f7   :  { %v1905_v4 = vadd.f32 %v1904_v40, %v4962_v44  ;;  %v1953_v37 = vpop.f32.mrf.mxu3  ;;  %v5475_v44 = vld [vmem:[#allocation27_spill] sm:$0xff] }
 0x1f8   :  { %v2004_v22 = vpop.f32.mrf.mxu0 }
 0x1f9   :  { %v1954_v12 = vadd.f32 %v1953_v37, %v1905_v4 }
 0x1fa   :  { %v2053_v5 = vpop.f32.mrf.mxu1 }
 0x1fb   :  { %v2003_v23 = vadd.f32 %v2002_v57, %v1954_v12  ;;  %v5479_v57 = vld [vmem:[#allocation30_spill] sm:$0xff] }
 0x1fd   :  { %v5233_v27 = vadd.f32 %v2051_v15, %v2003_v23 }
 0x1fe   :  { %v1906_v26 = vpop.f32.mrf.mxu2 }
 0x1ff   :  { %v1907_v7 = vadd.f32 %v1906_v26, %v4988_v11  ;;  %v1955_v30 = vpop.f32.mrf.mxu3 }
 0x200   :  { %v2007_v24 = vpop.f32.mrf.mxu0 }
 0x201   :  { %v1956_v43 = vadd.f32 %v1955_v30, %v1907_v7  ;;  %v5480_v7 = vld [vmem:[#allocation9_spill] sm:$0xff]  ;;  %v5482_v30 = vld [vmem:[#allocation32_spill] sm:$0xff] }
 0x202   :  { %v2056_v52 = vpop.f32.mrf.mxu1 }
 0x203   :  { %v2005_v54 = vadd.f32 %v2004_v22, %v1956_v43  ;;  %2104 = vmatmul.bf16.gmra.mxu2 %v5474_v53  ;;  %2202 = vmatmul.bf16.gmra.mxu0 %v4588_v6 }
 0x204   :  { %2153 = vmatmul.bf16.gmra.mxu3 %v5475_v44 }
 0x205   :  { %2251 = vmatmul.bf16.gmra.mxu1 %v5476_v34  ;;  %v5240_v18 = vadd.f32 %v2053_v5, %v2005_v54 }
 0x206   :  { %v1909_v10 = vpop.f32.mrf.mxu2 }
 0x207   :  { %v1910_v46 = vadd.f32 %v1909_v10, %v5004_v58  ;;  %v1958_v14 = vpop.f32.mrf.mxu3  ;;  %v5478_v58 = vld [vmem:[#allocation29_spill] sm:$0xff] }
 0x208   :  { %v2009_v11 = vpop.f32.mrf.mxu0 }
 0x209   :  { %v1959_v50 = vadd.f32 %v1958_v14, %v1910_v46 }
 0x20a   :  { %v2058_v33 = vpop.f32.mrf.mxu1 }
 0x20b   :  { %v2008_v55 = vadd.f32 %v2007_v24, %v1959_v50 }
 0x20d   :  { %v5243_v1 = vadd.f32 %v2056_v52, %v2008_v55 }
 0x20e   :  { %v1911_v13 = vpop.f32.mrf.mxu2 }
 0x20f   :  { %v1912_v47 = vadd.f32 %v1911_v13, %v5030_v21  ;;  %v1960_v6 = vpop.f32.mrf.mxu3  ;;  %v5483_v13 = vld [vmem:[#allocation13_spill] sm:$0xff] }
 0x210   :  { %v2012_v20 = vpop.f32.mrf.mxu0 }
 0x211   :  { %v1961_v32 = vadd.f32 %v1960_v6, %v1912_v47  ;;  %v5485_v47 = vld [vmem:[#allocation34_spill] sm:$0xff] }
 0x212   :  { %v2061_v42 = vpop.f32.mrf.mxu1 }
 0x213   :  { %v2010_v3 = vadd.f32 %v2009_v11, %v1961_v32  ;;  %2109 = vmatmul.bf16.gmra.mxu2 %v5477_v60  ;;  %2207 = vmatmul.bf16.gmra.mxu0 %v4646_v51 }
 0x214   :  { %2158 = vmatmul.bf16.gmra.mxu3 %v5478_v58 }
 0x215   :  { %2256 = vmatmul.bf16.gmra.mxu1 %v5479_v57  ;;  %v5250_v28 = vadd.f32 %v2058_v33, %v2010_v3 }
 0x216   :  { %v1914_v15 = vpop.f32.mrf.mxu2 }
 0x217   :  { %v1915_v2 = vadd.f32 %v1914_v15, %v5046_v45  ;;  %v1963_v62 = vpop.f32.mrf.mxu3  ;;  %v5481_v45 = vld [vmem:[#allocation31_spill] sm:$0xff] }
 0x218   :  { %v2014_v21 = vpop.f32.mrf.mxu0 }
 0x219   :  { %v1964_v35 = vadd.f32 %v1963_v62, %v1915_v2 }
 0x21a   :  { %v2063_v9 = vpop.f32.mrf.mxu1 }
 0x21b   :  { %v2013_v40 = vadd.f32 %v2012_v20, %v1964_v35 }
 0x21d   :  { %v5253_v4 = vadd.f32 %v2061_v42, %v2013_v40  ;;  %v5486_v40 = vld [vmem:[#allocation17_spill] sm:$0xff] }
 0x21e   :  { %v1916_v37 = vpop.f32.mrf.mxu2 }
 0x21f   :  { %v1917_v22 = vadd.f32 %v1916_v37, %v5072_v48  ;;  %v1965_v51 = vpop.f32.mrf.mxu3 }
 0x220   :  { %v2017_v12 = vpop.f32.mrf.mxu0 }
 0x221   :  { %v1966_v5 = vadd.f32 %v1965_v51, %v1917_v22 }
 0x222   :  { %v2066_v23 = vpop.f32.mrf.mxu1 }
 0x223   :  { %v2015_v26 = vadd.f32 %v2014_v21, %v1966_v5  ;;  %2114 = vmatmul.bf16.gmra.mxu2 %v5480_v7  ;;  %2212 = vmatmul.bf16.gmra.mxu0 %v4704_v41 }
 0x224   :  { %2163 = vmatmul.bf16.gmra.mxu3 %v5481_v45 }
 0x225   :  { %2261 = vmatmul.bf16.gmra.mxu1 %v5482_v30  ;;  %v5260_v24 = vadd.f32 %v2063_v9, %v2015_v26 }
 0x226   :  { %v1919_v43 = vpop.f32.mrf.mxu2 }
 0x227   :  { %v1920_v52 = vadd.f32 %v1919_v43, %v5088_v29  ;;  %v1968_v54 = vpop.f32.mrf.mxu3  ;;  %v5484_v29 = vld [vmem:[#allocation33_spill] sm:$0xff] }
 0x228   :  { %v2019_v48 = vpop.f32.mrf.mxu0 }
 0x229   :  { %v1969_v53 = vadd.f32 %v1968_v54, %v1920_v52 }
 0x22a   :  { %v2068_v44 = vpop.f32.mrf.mxu1 }
 0x22b   :  { %v2018_v34 = vadd.f32 %v2017_v12, %v1969_v53 }
 0x22d   :  { %v5263_v10 = vadd.f32 %v2066_v23, %v2018_v34 }
 0x22e   :  { %v1921_v46 = vpop.f32.mrf.mxu2 }
 0x22f   :  { %v1922_v14 = vadd.f32 %v1921_v46, %v5114_v38  ;;  %v1970_v41 = vpop.f32.mrf.mxu3 }
 0x230   :  { %v2022_v11 = vpop.f32.mrf.mxu0 }
 0x231   :  { %v1971_v50 = vadd.f32 %v1970_v41, %v1922_v14 }
 0x232   :  { %v2071_v33 = vpop.f32.mrf.mxu1 }
 0x233   :  { %v2020_v55 = vadd.f32 %v2019_v48, %v1971_v50  ;;  %2119 = vmatmul.bf16.gmra.mxu2 %v5483_v13  ;;  %2217 = vmatmul.bf16.gmra.mxu0 %v4762_v39  ;;  %v5488_v48 = vld [vmem:[#allocation21_spill] sm:$0xff] }
 0x234   :  { %2168 = vmatmul.bf16.gmra.mxu3 %v5484_v29 }
 0x235   :  { %2266 = vmatmul.bf16.gmra.mxu1 %v5485_v47  ;;  %v5270_v6 = vadd.f32 %v2068_v44, %v2020_v55 }
 0x236   :  { %v1924_v20 = vpop.f32.mrf.mxu2 }
 0x237   :  { %v1925_v32 = vadd.f32 %v1924_v20, %v5130_v17  ;;  %v1973_v42 = vpop.f32.mrf.mxu3  ;;  %v5487_v17 = vld [vmem:[#allocation35_spill] sm:$0xff] }
 0x238   :  { %v2024_v38 = vpop.f32.mrf.mxu0 }
 0x239   :  { %v1974_v3 = vadd.f32 %v1973_v42, %v1925_v32 }
 0x23a   :  { %v2073_v60 = vpop.f32.mrf.mxu1 }
 0x23b   :  { %v2023_v58 = vadd.f32 %v2022_v11, %v1974_v3 }
 0x23d   :  { %v5273_v57 = vadd.f32 %v2071_v33, %v2023_v58  ;;  %v5300_v58 = vperm.slane %v4925_v49, 1 }
 0x23e   :  { %v1926_v15 = vpop.f32.mrf.mxu2 }
 0x23f   :  { %v1927_v2 = vadd.f32 %v1926_v15, %v5156_v61  ;;  %v1975_v39 = vpop.f32.mrf.mxu3 }
 0x240   :  { %v2027_v62 = vpop.f32.mrf.mxu0 }
 0x241   :  { %v1976_v21 = vadd.f32 %v1975_v39, %v1927_v2 }
 0x242   :  { %v2076_v35 = vpop.f32.mrf.mxu1 }
 0x243   :  { %v2025_v9 = vadd.f32 %v2024_v38, %v1976_v21  ;;  %2124 = vmatmul.bf16.gmra.mxu2 %v5486_v40  ;;  %2222 = vmatmul.bf16.gmra.mxu0 %v4820_v36 }
 0x244   :  { %2173 = vmatmul.bf16.gmra.mxu3 %v4816_v56 }
 0x245   :  { %2271 = vmatmul.bf16.gmra.mxu1 %v5487_v17  ;;  %v5280_v37 = vadd.f32 %v2073_v60, %v2025_v9 }
 0x246   :  { %v1929_v22 = vpop.f32.mrf.mxu2 }
 0x247   :  { %v1930_v51 = vadd.f32 %v1929_v22, %v5172_v16  ;;  %v1978_v12 = vpop.f32.mrf.mxu3  ;;  %v5489_v16 = vld [vmem:[#allocation36_spill] sm:$0xff] }
 0x248   :  { %v2029_v61 = vpop.f32.mrf.mxu0 }
 0x249   :  { %v1979_v5 = vadd.f32 %v1978_v12, %v1930_v51 }
 0x24a   :  { %v2078_v23 = vpop.f32.mrf.mxu1 }
 0x24b   :  { %v2028_v26 = vadd.f32 %v2027_v62, %v1979_v5 }
 0x24d   :  { %v5283_v7 = vadd.f32 %v2076_v35, %v2028_v26 }
 0x24e   :  { %v1931_v45 = vpop.f32.mrf.mxu2 }
 0x24f   :  { %v1932_v30 = vadd.f32 %v1931_v45, %v5189_v59  ;;  %v1980_v36 = vpop.f32.mrf.mxu3 }
 0x250   :  { %v2032_v43 = vpop.f32.mrf.mxu0 }
 0x251   :  { %v1981_v56 = vadd.f32 %v1980_v36, %v1932_v30 }
 0x252   :  { %v2081_v52 = vpop.f32.mrf.mxu1 }
 0x253   :  { %v2030_v54 = vadd.f32 %v2029_v61, %v1981_v56  ;;  %2129 = vmatmul.bf16.gmra.mxu2 %v5488_v48  ;;  %2227 = vmatmul.bf16.gmra.mxu0 %v4878_v63 }
 0x254   :  { %2178 = vmatmul.bf16.gmra.mxu3 %v4868_v31 }
 0x255   :  { %2276 = vmatmul.bf16.gmra.mxu1 %v5489_v16  ;;  %v5290_v53 = vadd.f32 %v2078_v23, %v2030_v54 }
 0x256   :  { %v1934_v44 = vpop.f32.mrf.mxu2 }
 0x257   :  { %v1935_v34 = vadd.f32 %v1934_v44, %v5196_v8  ;;  %v1983_v46 = vpop.f32.mrf.mxu3 }
 0x258   :  { %v2034_v59 = vpop.f32.mrf.mxu0 }
 0x259   :  { %v1984_v14 = vadd.f32 %v1983_v46, %v1935_v34 }
 0x25a   :  { %v2083_v41 = vpop.f32.mrf.mxu1 }
 0x25b   :  { %v2033_v11 = vadd.f32 %v2032_v43, %v1984_v14 }
 0x25d   :  { %v5293_v50 = vadd.f32 %v2081_v52, %v2033_v11 }
 0x25e   :  { %v1936_v33 = vpop.f32.mrf.mxu2 }
 0x25f   :  { %v1937_v55 = vadd.f32 %v1936_v33, %v5207_v25  ;;  %v1985_v63 = vpop.f32.mrf.mxu3 }
 0x260   :  { %v2193_v13 = vpop.f32.mrf.mxu0 }
 0x261   :  { %v1986_v31 = vadd.f32 %v1985_v63, %v1937_v55 }
 0x262   :  { %v2242_v29 = vpop.f32.mrf.mxu1 }
 0x263   :  { %v2035_v47 = vadd.f32 %v2034_v59, %v1986_v31 }
 0x265   :  { %v5296_v20 = vadd.f32 %v2083_v41, %v2035_v47 }
 0x266   :  { %v2095_v32 = vpop.f32.mrf.mxu2 }
 0x267   :  { %v2096_v8 = vadd.f32 %v2095_v32, %v5223_v0  ;;  %v2144_v42 = vpop.f32.mrf.mxu3 }
 0x268   :  { %v2195_v38 = vpop.f32.mrf.mxu0 }
 0x269   :  { %v2145_v3 = vadd.f32 %v2144_v42, %v2096_v8 }
 0x26a   :  { %v2244_v60 = vpop.f32.mrf.mxu1 }
 0x26b   :  { %v2194_v15 = vadd.f32 %v2193_v13, %v2145_v3 }
 0x26d   :  { %v2243_v2 = vadd.f32 %v2242_v29, %v2194_v15 }
 0x26e   :  { %v2097_v25 = vpop.f32.mrf.mxu2 }
 0x26f   :  { %v2283_v39 = vadd.f32 %v2243_v2, %v5300_v58  ;;  %v2098_v62 = vadd.f32 %v2097_v25, %v5230_v19  ;;  %v2146_v21 = vpop.f32.mrf.mxu3 }
 0x270   :  { %v2198_v35 = vpop.f32.mrf.mxu0 }
 0x271   :  { %2315 = vst [vmem:[%s5384_s3 + $0x8] sm:$0xff] %v2283_v39  ;;  %v2147_v0 = vadd.f32 %v2146_v21, %v2098_v62 }
 0x272   :  { %v2247_v9 = vpop.f32.mrf.mxu1 }
 0x273   :  { %v2196_v40 = vadd.f32 %v2195_v38, %v2147_v0 }
 0x275   :  { %v2245_v17 = vadd.f32 %v2244_v60, %v2196_v40 }
 0x276   :  { %v2100_v22 = vpop.f32.mrf.mxu2 }
 0x277   :  { %v2285_v49 = vadd.f32 %v2245_v17, %v5300_v58  ;;  %v2101_v51 = vadd.f32 %v2100_v22, %v5233_v27  ;;  %v2149_v12 = vpop.f32.mrf.mxu3 }
 0x278   :  { %v2200_v61 = vpop.f32.mrf.mxu0 }
 0x279   :  { %2317 = vst [vmem:[%s5384_s3 + $0x18] sm:$0xff] %v2285_v49  ;;  %v2150_v19 = vadd.f32 %v2149_v12, %v2101_v51 }
 0x27a   :  { %v2249_v5 = vpop.f32.mrf.mxu1 }
 0x27b   :  { %v2199_v23 = vadd.f32 %v2198_v35, %v2150_v19 }
 0x27d   :  { %v2248_v26 = vadd.f32 %v2247_v9, %v2199_v23 }
 0x27e   :  { %v2102_v45 = vpop.f32.mrf.mxu2 }
 0x27f   :  { %v2287_v30 = vadd.f32 %v2248_v26, %v5300_v58  ;;  %v2103_v36 = vadd.f32 %v2102_v45, %v5240_v18  ;;  %v2151_v43 = vpop.f32.mrf.mxu3 }
 0x280   :  { %v2203_v56 = vpop.f32.mrf.mxu0 }
 0x281   :  { %2319 = vst [vmem:[%s5384_s3 + $0x28] sm:$0xff] %v2287_v30  ;;  %v2152_v27 = vadd.f32 %v2151_v43, %v2103_v36 }
 0x282   :  { %v2252_v52 = vpop.f32.mrf.mxu1 }
 0x283   :  { %v2201_v54 = vadd.f32 %v2200_v61, %v2152_v27 }
 0x285   :  { %v2250_v48 = vadd.f32 %v2249_v5, %v2201_v54 }
 0x286   :  { %v2105_v16 = vpop.f32.mrf.mxu2 }
 0x287   :  { %v2289_v44 = vadd.f32 %v2250_v48, %v5300_v58  ;;  %v2106_v34 = vadd.f32 %v2105_v16, %v5243_v1  ;;  %v2154_v46 = vpop.f32.mrf.mxu3 }
 0x288   :  { %v2205_v59 = vpop.f32.mrf.mxu0 }
 0x289   :  { %2321 = vst [vmem:[%s5384_s3 + $0x38] sm:$0xff] %v2289_v44  ;;  %v2155_v18 = vadd.f32 %v2154_v46, %v2106_v34 }
 0x28a   :  { %v2254_v14 = vpop.f32.mrf.mxu1 }
 0x28b   :  { %v2204_v41 = vadd.f32 %v2203_v56, %v2155_v18 }
 0x28d   :  { %v2253_v11 = vadd.f32 %v2252_v52, %v2204_v41 }
 0x28e   :  { %v2107_v33 = vpop.f32.mrf.mxu2 }
 0x28f   :  { %v2291_v55 = vadd.f32 %v2253_v11, %v5300_v58  ;;  %v2108_v63 = vadd.f32 %v2107_v33, %v5250_v28  ;;  %v2156_v13 = vpop.f32.mrf.mxu3 }
 0x290   :  { %v2208_v31 = vpop.f32.mrf.mxu0 }
 0x291   :  { %2323 = vst [vmem:[%s5384_s3 + $0x48] sm:$0xff] %v2291_v55  ;;  %v2157_v1 = vadd.f32 %v2156_v13, %v2108_v63 }
 0x292   :  { %v2257_v29 = vpop.f32.mrf.mxu1 }
 0x293   :  { %v2206_v47 = vadd.f32 %v2205_v59, %v2157_v1 }
 0x295   :  { %v2255_v32 = vadd.f32 %v2254_v14, %v2206_v47 }
 0x296   :  { %v2110_v8 = vpop.f32.mrf.mxu2 }
 0x297   :  { %v2293_v42 = vadd.f32 %v2255_v32, %v5300_v58  ;;  %v2111_v38 = vadd.f32 %v2110_v8, %v5253_v4  ;;  %v2159_v3 = vpop.f32.mrf.mxu3 }
 0x298   :  { %v2210_v60 = vpop.f32.mrf.mxu0 }
 0x299   :  { %2325 = vst [vmem:[%s5384_s3 + $0x58] sm:$0xff] %v2293_v42  ;;  %v2160_v28 = vadd.f32 %v2159_v3, %v2111_v38 }
 0x29a   :  { %v2259_v15 = vpop.f32.mrf.mxu1 }
 0x29b   :  { %v2209_v2 = vadd.f32 %v2208_v31, %v2160_v28 }
 0x29d   :  { %v2258_v25 = vadd.f32 %v2257_v29, %v2209_v2 }
 0x29e   :  { %v2112_v39 = vpop.f32.mrf.mxu2 }
 0x29f   :  { %v2295_v62 = vadd.f32 %v2258_v25, %v5300_v58  ;;  %v2113_v21 = vadd.f32 %v2112_v39, %v5260_v24  ;;  %v2161_v35 = vpop.f32.mrf.mxu3 }
 0x2a0   :  { %v2213_v0 = vpop.f32.mrf.mxu0 }
 0x2a1   :  { %2327 = vst [vmem:[%s5384_s3 + $0x68] sm:$0xff] %v2295_v62  ;;  %v2162_v4 = vadd.f32 %v2161_v35, %v2113_v21 }
 0x2a2   :  { %v2262_v9 = vpop.f32.mrf.mxu1 }
 0x2a3   :  { %v2211_v40 = vadd.f32 %v2210_v60, %v2162_v4 }
 0x2a5   :  { %v2260_v17 = vadd.f32 %v2259_v15, %v2211_v40 }
 0x2a6   :  { %v2115_v22 = vpop.f32.mrf.mxu2 }
 0x2a7   :  { %v2297_v49 = vadd.f32 %v2260_v17, %v5300_v58  ;;  %v2116_v51 = vadd.f32 %v2115_v22, %v5263_v10  ;;  %v2164_v12 = vpop.f32.mrf.mxu3 }
 0x2a8   :  { %v2215_v61 = vpop.f32.mrf.mxu0 }
 0x2a9   :  { %2329 = vst [vmem:[%s5384_s3 + $0x78] sm:$0xff] %v2297_v49  ;;  %v2165_v24 = vadd.f32 %v2164_v12, %v2116_v51 }
 0x2aa   :  { %v2264_v19 = vpop.f32.mrf.mxu1 }
 0x2ab   :  { %v2214_v5 = vadd.f32 %v2213_v0, %v2165_v24 }
 0x2ad   :  { %v2263_v23 = vadd.f32 %v2262_v9, %v2214_v5 }
 0x2ae   :  { %v2117_v26 = vpop.f32.mrf.mxu2 }
 0x2af   :  { %v2299_v45 = vadd.f32 %v2263_v23, %v5300_v58  ;;  %v2118_v30 = vadd.f32 %v2117_v26, %v5270_v6  ;;  %v2166_v36 = vpop.f32.mrf.mxu3 }
 0x2b0   :  { %v2218_v43 = vpop.f32.mrf.mxu0 }
 0x2b1   :  { %2331 = vst [vmem:[%s5384_s3 + $0x88] sm:$0xff] %v2299_v45  ;;  %v2167_v10 = vadd.f32 %v2166_v36, %v2118_v30 }
 0x2b2   :  { %v2267_v56 = vpop.f32.mrf.mxu1 }
 0x2b3   :  { %v2216_v27 = vadd.f32 %v2215_v61, %v2167_v10 }
 0x2b5   :  { %v2265_v52 = vadd.f32 %v2264_v19, %v2216_v27 }
 0x2b6   :  { %v2120_v54 = vpop.f32.mrf.mxu2 }
 0x2b7   :  { %v2301_v48 = vadd.f32 %v2265_v52, %v5300_v58  ;;  %v2121_v16 = vadd.f32 %v2120_v54, %v5273_v57  ;;  %v2169_v44 = vpop.f32.mrf.mxu3 }
 0x2b8   :  { %v2220_v34 = vpop.f32.mrf.mxu0 }
 0x2b9   :  { %2333 = vst [vmem:[%s5384_s3 + $0x98] sm:$0xff] %v2301_v48  ;;  %v2170_v6 = vadd.f32 %v2169_v44, %v2121_v16 }
 0x2ba   :  { %v2269_v59 = vpop.f32.mrf.mxu1 }
 0x2bb   :  { %v2219_v46 = vadd.f32 %v2218_v43, %v2170_v6 }
 0x2bd   :  { %v2268_v18 = vadd.f32 %v2267_v56, %v2219_v46 }
 0x2be   :  { %v2122_v14 = vpop.f32.mrf.mxu2 }
 0x2bf   :  { %v2303_v41 = vadd.f32 %v2268_v18, %v5300_v58  ;;  %v2123_v11 = vadd.f32 %v2122_v14, %v5280_v37  ;;  %v2171_v33 = vpop.f32.mrf.mxu3 }
 0x2c0   :  { %v2223_v63 = vpop.f32.mrf.mxu0 }
 0x2c1   :  { %2335 = vst [vmem:[%s5384_s3 + $0xa8] sm:$0xff] %v2303_v41  ;;  %v2172_v57 = vadd.f32 %v2171_v33, %v2123_v11 }
 0x2c2   :  { %v2272_v31 = vpop.f32.mrf.mxu1 }
 0x2c3   :  { %v2221_v55 = vadd.f32 %v2220_v34, %v2172_v57 }
 0x2c5   :  { %v2270_v13 = vadd.f32 %v2269_v59, %v2221_v55 }
 0x2c6   :  { %v2125_v1 = vpop.f32.mrf.mxu2 }
 0x2c7   :  { %v2305_v29 = vadd.f32 %v2270_v13, %v5300_v58  ;;  %v2126_v47 = vadd.f32 %v2125_v1, %v5283_v7  ;;  %v2174_v32 = vpop.f32.mrf.mxu3 }
 0x2c8   :  { %v2225_v38 = vpop.f32.mrf.mxu0 }
 0x2c9   :  { %2337 = vst [vmem:[%s5384_s3 + $0xb8] sm:$0xff] %v2305_v29  ;;  %v2175_v37 = vadd.f32 %v2174_v32, %v2126_v47 }
 0x2ca   :  { %v2274_v2 = vpop.f32.mrf.mxu1 }
 0x2cb   :  { %v2224_v8 = vadd.f32 %v2223_v63, %v2175_v37 }
 0x2cd   :  { %v2273_v42 = vadd.f32 %v2272_v31, %v2224_v8 }
 0x2ce   :  { %v2127_v3 = vpop.f32.mrf.mxu2 }
 0x2cf   :  { %v2307_v60 = vadd.f32 %v2273_v42, %v5300_v58  ;;  %v2128_v28 = vadd.f32 %v2127_v3, %v5290_v53  ;;  %v2176_v15 = vpop.f32.mrf.mxu3 }
 0x2d0   :  { %v2228_v4 = vpop.f32.mrf.mxu0 }
 0x2d1   :  { %2339 = vst [vmem:[%s5384_s3 + $0xc8] sm:$0xff] %v2307_v60  ;;  %v2177_v7 = vadd.f32 %v2176_v15, %v2128_v28 }
 0x2d2   :  { %v2277_v9 = vpop.f32.mrf.mxu1 }
 0x2d3   :  { %v2226_v25 = vadd.f32 %v2225_v38, %v2177_v7 }
 0x2d5   :  { %v2275_v39 = vadd.f32 %v2274_v2, %v2226_v25 }
 0x2d6   :  { %v2130_v62 = vpop.f32.mrf.mxu2 }
 0x2d7   :  { %v2309_v21 = vadd.f32 %v2275_v39, %v5300_v58  ;;  %v2131_v35 = vadd.f32 %v2130_v62, %v5293_v50  ;;  %v2179_v0 = vpop.f32.mrf.mxu3 }
 0x2d8   :  { %v2230_v61 = vpop.f32.mrf.mxu0 }
 0x2d9   :  { %2341 = vst [vmem:[%s5384_s3 + $0xd8] sm:$0xff] %v2309_v21  ;;  %v2180_v53 = vadd.f32 %v2179_v0, %v2131_v35 }
 0x2da   :  { %v2279_v19 = vpop.f32.mrf.mxu1 }
 0x2db   :  { %v2229_v40 = vadd.f32 %v2228_v4, %v2180_v53 }
 0x2dd   :  { %v2278_v17 = vadd.f32 %v2277_v9, %v2229_v40 }
 0x2de   :  { %v2132_v22 = vpop.f32.mrf.mxu2 }
 0x2df   :  { %v2311_v49 = vadd.f32 %v2278_v17, %v5300_v58  ;;  %v2133_v51 = vadd.f32 %v2132_v22, %v5296_v20  ;;  %v2181_v12 = vpop.f32.mrf.mxu3 }
 0x2e1   :  { %2343 = vst [vmem:[%s5384_s3 + $0xe8] sm:$0xff] %v2311_v49  ;;  %v2182_v50 = vadd.f32 %v2181_v12, %v2133_v51 }
 0x2e3   :  { %v2231_v24 = vadd.f32 %v2230_v61, %v2182_v50 }
 0x2e5   :  { %v2280_v5 = vadd.f32 %v2279_v19, %v2231_v24 }
 0x2e7   :  { %v2313_v23 = vadd.f32 %v2280_v5, %v5300_v58 }
 0x2e9   :  { %2345 = vst [vmem:[%s5384_s3 + $0xf8] sm:$0xff] %v2313_v23 }

// kernel: generator_forward.12
= control target key start
LH: loop header
LB: loop body
LE: loop exit
PB: predicated region body
PF: predicated region fallthrough
CT: control target
= control target key end

     0   :  { %s480_s0 = inlined_call_operand.vmem [shape: f32[128,256], index: 0, kind: input, shape index: {}]   ;;  %s481_s1 = inlined_call_operand.vmem [shape: f32[1,256], index: 1, kind: input, shape index: {}]   ;;  %s482_s2 = inlined_call_operand.vmem [shape: f32[1,256], index: 2, kind: input, shape index: {}]   ;;  %s483_s3 = inlined_call_operand.vmem [shape: f32[128,256], index: 3, kind: output, shape index: {}]  }
   0x1   :  { %v14_v0 = vld [vmem:[%s480_s0] sm:$0xff]  ;;  %v15_v5 = vld [vmem:[%s480_s0 + $0x8] sm:$0xff]  ;;  %v16_v8 = vld [vmem:[%s480_s0 + $0x10] sm:$0xff] }
   0x2   :  { %v46_v1 = vld [vmem:[%s481_s1] sm:$0x3]  ;;  %v17_v9 = vld [vmem:[%s480_s0 + $0x18] sm:$0xff]  ;;  %v19_v11 = vld [vmem:[%s480_s0 + $0x28] sm:$0xff] }
   0x3   :  { %v84_v2 = vld [vmem:[%s482_s2] sm:$0x3]  ;;  %v219_v3 = vperm.slane %v46_v1, 0  ;;  %v226_v6 = vperm.slane %v46_v1, 1  ;;  %v20_v16 = vld [vmem:[%s480_s0 + $0x30] sm:$0xff]  ;;  %v21_v17 = vld [vmem:[%s480_s0 + $0x38] sm:$0xff] }
   0x4   :  { %v221_v4 = vperm.slane %v84_v2, 0  ;;  %v228_v7 = vperm.slane %v84_v2, 1  ;;  %v18_v10 = vld [vmem:[%s480_s0 + $0x20] sm:$0xff]  ;;  %v23_v29 = vld [vmem:[%s480_s0 + $0x48] sm:$0xff]  ;;  %v24_v30 = vld [vmem:[%s480_s0 + $0x50] sm:$0xff] }
   0x5   :  { %v52_v12 = vmul.f32 %v219_v3, %v14_v0  ;;  %v53_v13 = vmul.f32 %v226_v6, %v15_v5  ;;  %v54_v14 = vmul.f32 %v219_v3, %v16_v8  ;;  %v55_v15 = vmul.f32 %v226_v6, %v17_v9  ;;  %v22_v26 = vld [vmem:[%s480_s0 + $0x40] sm:$0xff]  ;;  %v25_v31 = vld [vmem:[%s480_s0 + $0x58] sm:$0xff]  ;;  %v27_v37 = vld [vmem:[%s480_s0 + $0x68] sm:$0xff] }
   0x6   :  { %v56_v18 = vmul.f32 %v219_v3, %v18_v10  ;;  %v57_v19 = vmul.f32 %v226_v6, %v19_v11  ;;  %v58_v20 = vmul.f32 %v219_v3, %v20_v16  ;;  %v59_v21 = vmul.f32 %v226_v6, %v21_v17  ;;  %v26_v36 = vld [vmem:[%s480_s0 + $0x60] sm:$0xff]  ;;  %v28_v38 = vld [vmem:[%s480_s0 + $0x70] sm:$0xff]  ;;  %v29_v46 = vld [vmem:[%s480_s0 + $0x78] sm:$0xff] }
   0x7   :  { %v90_v22 = vadd.f32 %v221_v4, %v52_v12  ;;  %v91_v23 = vadd.f32 %v228_v7, %v53_v13  ;;  %v92_v24 = vadd.f32 %v221_v4, %v54_v14  ;;  %v93_v25 = vadd.f32 %v228_v7, %v55_v15  ;;  %v30_v58 = vld [vmem:[%s480_s0 + $0x80] sm:$0xff]  ;;  %v31_v59 = vld [vmem:[%s480_s0 + $0x88] sm:$0xff]  ;;  %v32_v60 = vld [vmem:[%s480_s0 + $0x90] sm:$0xff] }
   0x8   :  { %v94_v27 = vadd.f32 %v221_v4, %v56_v18  ;;  %v95_v28 = vadd.f32 %v228_v7, %v57_v19  ;;  %v96_v35 = vadd.f32 %v221_v4, %v58_v20  ;;  %v97_v41 = vadd.f32 %v228_v7, %v59_v21  ;;  %v33_v63 = vld [vmem:[%s480_s0 + $0x98] sm:$0xff]  ;;  %v34_v5 = vld [vmem:[%s480_s0 + $0xa0] sm:$0xff]  ;;  %v35_v12 = vld [vmem:[%s480_s0 + $0xa8] sm:$0xff] }
   0x9   :  { %v122_v32 = vmax.f32 %v90_v22, 0.0  ;;  %v123_v33 = vmax.f32 %v91_v23, 0.0  ;;  %v124_v34 = vmax.f32 %v92_v24, 0.0  ;;  %v125_v39 = vmax.f32 %v93_v25, 0.0  ;;  %v36_v16 = vld [vmem:[%s480_s0 + $0xb0] sm:$0xff]  ;;  %v37_v20 = vld [vmem:[%s480_s0 + $0xb8] sm:$0xff] }
   0xa   :  { %v126_v40 = vmax.f32 %v94_v27, 0.0  ;;  %v60_v42 = vmul.f32 %v219_v3, %v22_v26  ;;  %v61_v43 = vmul.f32 %v226_v6, %v23_v29  ;;  %v62_v44 = vmul.f32 %v219_v3, %v24_v30  ;;  %v38_v24 = vld [vmem:[%s480_s0 + $0xc0] sm:$0xff] }
   0xb   :  { %154 = vst [vmem:[%s483_s3] sm:$0xff] %v122_v32  ;;  %v63_v45 = vmul.f32 %v226_v6, %v25_v31  ;;  %v127_v47 = vmax.f32 %v95_v28, 0.0  ;;  %v64_v48 = vmul.f32 %v219_v3, %v26_v36  ;;  %v65_v49 = vmul.f32 %v226_v6, %v27_v37  ;;  %v39_v28 = vld [vmem:[%s480_s0 + $0xc8] sm:$0xff]  ;;  %v40_v32 = vld [vmem:[%s480_s0 + $0xd0] sm:$0xff]  ;;  %v41_v36 = vld [vmem:[%s480_s0 + $0xd8] sm:$0xff] }
   0xc   :  { %155 = vst [vmem:[%s483_s3 + $0x8] sm:$0xff] %v123_v33  ;;  %v66_v50 = vmul.f32 %v219_v3, %v28_v38  ;;  %v128_v51 = vmax.f32 %v96_v35, 0.0  ;;  %v98_v52 = vadd.f32 %v221_v4, %v60_v42  ;;  %v99_v53 = vadd.f32 %v228_v7, %v61_v43 }
   0xd   :  { %156 = vst [vmem:[%s483_s3 + $0x10] sm:$0xff] %v124_v34  ;;  %v100_v54 = vadd.f32 %v221_v4, %v62_v44  ;;  %v129_v55 = vmax.f32 %v97_v41, 0.0  ;;  %v101_v56 = vadd.f32 %v228_v7, %v63_v45  ;;  %v67_v57 = vmul.f32 %v226_v6, %v29_v46  ;;  %v43_v44 = vld [vmem:[%s480_s0 + $0xe8] sm:$0xff] }
   0xe   :  { %157 = vst [vmem:[%s483_s3 + $0x18] sm:$0xff] %v125_v39  ;;  %v130_v61 = vmax.f32 %v98_v52, 0.0  ;;  %v102_v62 = vadd.f32 %v221_v4, %v64_v48  ;;  %v131_v0 = vmax.f32 %v99_v53, 0.0  ;;  %v103_v1 = vadd.f32 %v228_v7, %v65_v49  ;;  %v44_v48 = vld [vmem:[%s480_s0 + $0xf0] sm:$0xff]  ;;  %v45_v52 = vld [vmem:[%s480_s0 + $0xf8] sm:$0xff] }
   0xf   :  { %158 = vst [vmem:[%s483_s3 + $0x20] sm:$0xff] %v126_v40  ;;  %v104_v2 = vadd.f32 %v221_v4, %v66_v50  ;;  %v132_v8 = vmax.f32 %v100_v54, 0.0  ;;  %v68_v9 = vmul.f32 %v219_v3, %v30_v58  ;;  %v69_v10 = vmul.f32 %v226_v6, %v31_v59  ;;  %v42_v40 = vld [vmem:[%s480_s0 + $0xe0] sm:$0xff] }
  0x10   :  { %159 = vst [vmem:[%s483_s3 + $0x28] sm:$0xff] %v127_v47  ;;  %v70_v11 = vmul.f32 %v219_v3, %v32_v60  ;;  %v133_v13 = vmax.f32 %v101_v56, 0.0  ;;  %v105_v14 = vadd.f32 %v228_v7, %v67_v57  ;;  %v71_v15 = vmul.f32 %v226_v6, %v33_v63 }
  0x11   :  { %160 = vst [vmem:[%s483_s3 + $0x30] sm:$0xff] %v128_v51  ;;  %v134_v17 = vmax.f32 %v102_v62, 0.0  ;;  %v106_v18 = vadd.f32 %v221_v4, %v68_v9  ;;  %v72_v19 = vmul.f32 %v219_v3, %v34_v5  ;;  %v135_v21 = vmax.f32 %v103_v1, 0.0 }
  0x12   :  { %161 = vst [vmem:[%s483_s3 + $0x38] sm:$0xff] %v129_v55  ;;  %v107_v22 = vadd.f32 %v228_v7, %v69_v10  ;;  %v73_v23 = vmul.f32 %v226_v6, %v35_v12  ;;  %v136_v25 = vmax.f32 %v104_v2, 0.0  ;;  %v108_v26 = vadd.f32 %v221_v4, %v70_v11 }
  0x13   :  { %162 = vst [vmem:[%s483_s3 + $0x40] sm:$0xff] %v130_v61  ;;  %v74_v27 = vmul.f32 %v219_v3, %v36_v16  ;;  %v137_v29 = vmax.f32 %v105_v14, 0.0  ;;  %v109_v30 = vadd.f32 %v228_v7, %v71_v15  ;;  %v75_v31 = vmul.f32 %v226_v6, %v37_v20 }
  0x14   :  { %163 = vst [vmem:[%s483_s3 + $0x48] sm:$0xff] %v131_v0  ;;  %v138_v33 = vmax.f32 %v106_v18, 0.0  ;;  %v110_v34 = vadd.f32 %v221_v4, %v72_v19  ;;  %v76_v35 = vmul.f32 %v219_v3, %v38_v24  ;;  %v139_v37 = vmax.f32 %v107_v22, 0.0 }
  0x15   :  { %164 = vst [vmem:[%s483_s3 + $0x50] sm:$0xff] %v132_v8  ;;  %v111_v38 = vadd.f32 %v228_v7, %v73_v23  ;;  %v77_v39 = vmul.f32 %v226_v6, %v39_v28  ;;  %v140_v41 = vmax.f32 %v108_v26, 0.0  ;;  %v112_v42 = vadd.f32 %v221_v4, %v74_v27 }
  0x16   :  { %165 = vst [vmem:[%s483_s3 + $0x58] sm:$0xff] %v133_v13  ;;  %v78_v43 = vmul.f32 %v219_v3, %v40_v32  ;;  %v141_v45 = vmax.f32 %v109_v30, 0.0  ;;  %v113_v46 = vadd.f32 %v228_v7, %v75_v31  ;;  %v79_v47 = vmul.f32 %v226_v6, %v41_v36 }
  0x17   :  { %166 = vst [vmem:[%s483_s3 + $0x60] sm:$0xff] %v134_v17  ;;  %v142_v49 = vmax.f32 %v110_v34, 0.0  ;;  %v114_v50 = vadd.f32 %v221_v4, %v76_v35  ;;  %v80_v51 = vmul.f32 %v219_v3, %v42_v40  ;;  %v143_v53 = vmax.f32 %v111_v38, 0.0 }
  0x18   :  { %167 = vst [vmem:[%s483_s3 + $0x68] sm:$0xff] %v135_v21  ;;  %v115_v54 = vadd.f32 %v228_v7, %v77_v39  ;;  %v81_v55 = vmul.f32 %v226_v6, %v43_v44  ;;  %v144_v56 = vmax.f32 %v112_v42, 0.0  ;;  %v116_v57 = vadd.f32 %v221_v4, %v78_v43 }
  0x19   :  { %168 = vst [vmem:[%s483_s3 + $0x70] sm:$0xff] %v136_v25  ;;  %v82_v58 = vmul.f32 %v219_v3, %v44_v48  ;;  %v145_v59 = vmax.f32 %v113_v46, 0.0  ;;  %v117_v60 = vadd.f32 %v228_v7, %v79_v47  ;;  %v83_v61 = vmul.f32 %v226_v6, %v45_v52 }
  0x1a   :  { %169 = vst [vmem:[%s483_s3 + $0x78] sm:$0xff] %v137_v29  ;;  %v146_v62 = vmax.f32 %v114_v50, 0.0  ;;  %v118_v63 = vadd.f32 %v221_v4, %v80_v51  ;;  %v147_v3 = vmax.f32 %v115_v54, 0.0  ;;  %v119_v0 = vadd.f32 %v228_v7, %v81_v55 }
  0x1b   :  { %170 = vst [vmem:[%s483_s3 + $0x80] sm:$0xff] %v138_v33  ;;  %v148_v1 = vmax.f32 %v116_v57, 0.0  ;;  %v120_v6 = vadd.f32 %v221_v4, %v82_v58  ;;  %v149_v2 = vmax.f32 %v117_v60, 0.0  ;;  %v121_v5 = vadd.f32 %v228_v7, %v83_v61 }
  0x1c   :  { %171 = vst [vmem:[%s483_s3 + $0x88] sm:$0xff] %v139_v37  ;;  %v150_v8 = vmax.f32 %v118_v63, 0.0  ;;  %v151_v9 = vmax.f32 %v119_v0, 0.0 }
  0x1d   :  { %172 = vst [vmem:[%s483_s3 + $0x90] sm:$0xff] %v140_v41  ;;  %v152_v4 = vmax.f32 %v120_v6, 0.0  ;;  %v153_v7 = vmax.f32 %v121_v5, 0.0 }
  0x1e   :  { %173 = vst [vmem:[%s483_s3 + $0x98] sm:$0xff] %v141_v45 }
  0x1f   :  { %174 = vst [vmem:[%s483_s3 + $0xa0] sm:$0xff] %v142_v49 }
  0x20   :  { %175 = vst [vmem:[%s483_s3 + $0xa8] sm:$0xff] %v143_v53 }
  0x21   :  { %176 = vst [vmem:[%s483_s3 + $0xb0] sm:$0xff] %v144_v56 }
  0x22   :  { %177 = vst [vmem:[%s483_s3 + $0xb8] sm:$0xff] %v145_v59 }
  0x23   :  { %178 = vst [vmem:[%s483_s3 + $0xc0] sm:$0xff] %v146_v62 }
  0x24   :  { %179 = vst [vmem:[%s483_s3 + $0xc8] sm:$0xff] %v147_v3 }
  0x25   :  { %180 = vst [vmem:[%s483_s3 + $0xd0] sm:$0xff] %v148_v1 }
  0x26   :  { %181 = vst [vmem:[%s483_s3 + $0xd8] sm:$0xff] %v149_v2 }
  0x27   :  { %182 = vst [vmem:[%s483_s3 + $0xe0] sm:$0xff] %v150_v8 }
  0x28   :  { %183 = vst [vmem:[%s483_s3 + $0xe8] sm:$0xff] %v151_v9 }
  0x29   :  { %184 = vst [vmem:[%s483_s3 + $0xf0] sm:$0xff] %v152_v4 }
  0x2a   :  { %185 = vst [vmem:[%s483_s3 + $0xf8] sm:$0xff] %v153_v7 }

// kernel: generator_forward.13
= control target key start
LH: loop header
LB: loop body
LE: loop exit
PB: predicated region body
PF: predicated region fallthrough
CT: control target
= control target key end

     0   :  { %s1821_s1 = inlined_call_operand.vmem [shape: bf16[640,128], index: 1, kind: input, shape index: {}]   ;;  %s1822_s0 = inlined_call_operand.vmem [shape: bf16[128,640], index: 0, kind: input, shape index: {}]   ;;  %s1823_s2 = inlined_call_operand.vmem [shape: f32[1,128], index: 2, kind: input, shape index: {}]   ;;  %s1824_s3 = inlined_call_operand.vmem [shape: f32[128,128], index: 3, kind: output, shape index: {}]  }
   0x1   :  { %v1278_v0 = vld [vmem:[%s1821_s1 + $0x38] sm:$0xff]  ;;  %v1277_v1 = vld [vmem:[%s1821_s1 + $0x30] sm:$0xff]  ;;  %v1276_v2 = vld [vmem:[%s1821_s1 + $0x28] sm:$0xff] }
   0x2   :  { %1311 = vmatpush.bf16.msra.mxu1 %v1278_v0  ;;  %1312 = vmatpush.bf16.msra.mxu2 %v1278_v0  ;;  %v1275_v3 = vld [vmem:[%s1821_s1 + $0x20] sm:$0xff]  ;;  %v1274_v4 = vld [vmem:[%s1821_s1 + $0x18] sm:$0xff]  ;;  %v1273_v5 = vld [vmem:[%s1821_s1 + $0x10] sm:$0xff] }
   0x3   :  { %1313 = vmatpush.bf16.msra.mxu3 %v1278_v0  ;;  %630 = vmatpush.bf16.msra.mxu0 %v1278_v0  ;;  %v1272_v6 = vld [vmem:[%s1821_s1 + $0x8] sm:$0xff]  ;;  %v1271_v7 = vld [vmem:[%s1821_s1] sm:$0xff]  ;;  %v953_v8 = vld [vmem:[%s1822_s0 + $0x50] sm:$0xf] }
   0x4   :  { %v1243_v9 = vld [vmem:[%s1822_s0 + $0x60] sm:$0xf0]  ;;  %v993_v10 = vld [vmem:[%s1822_s0 + $0xa0] sm:$0xf]  ;;  %v1253_v11 = vld [vmem:[%s1822_s0 + $0xb0] sm:$0xf0] }
   0x5   :  { %v1033_v12 = vld [vmem:[%s1822_s0 + $0xf0] sm:$0xf]  ;;  %v1263_v13 = vld [vmem:[%s1822_s0 + $0x100] sm:$0xf0]  ;;  %v913_v14 = vld [vmem:[%s1822_s0] sm:$0xf]  ;;  %v954_v18 = vor.u32 %v1243_v9, %v953_v8  ;;  %v994_v19 = vor.u32 %v1253_v11, %v993_v10 }
   0x6   :  { %1314 = vmatpush.bf16.msra.mxu1 %v1277_v1  ;;  %1315 = vmatpush.bf16.msra.mxu2 %v1277_v1  ;;  %v1233_v15 = vld [vmem:[%s1822_s0 + $0x10] sm:$0xf0]  ;;  %v1294_v16 = vld [vmem:[%s1821_s1 + $0xb8] sm:$0xff]  ;;  %v1034_v20 = vor.u32 %v1263_v13, %v1033_v12  ;;  %v1292_v28 = vld [vmem:[%s1821_s1 + $0xa8] sm:$0xff] }
   0x7   :  { %1316 = vmatpush.bf16.msra.mxu3 %v1277_v1  ;;  %631 = vmatpush.bf16.msra.mxu0 %v1277_v1  ;;  %v1286_v17 = vld [vmem:[%s1821_s1 + $0x78] sm:$0xff]  ;;  %v914_v21 = vor.u32 %v1233_v15, %v913_v14  ;;  %v1293_v24 = vld [vmem:[%s1821_s1 + $0xb0] sm:$0xff]  ;;  %v1284_v29 = vld [vmem:[%s1821_s1 + $0x68] sm:$0xff] }
   0x8   :  { %v1302_v22 = vld [vmem:[%s1821_s1 + $0xf8] sm:$0xff]  ;;  %v1285_v25 = vld [vmem:[%s1821_s1 + $0x70] sm:$0xff]  ;;  %v1300_v30 = vld [vmem:[%s1821_s1 + $0xe8] sm:$0xff] }
   0x9   :  { %v1310_v23 = vld [vmem:[%s1821_s1 + $0x138] sm:$0xff]  ;;  %v1301_v26 = vld [vmem:[%s1821_s1 + $0xf0] sm:$0xff]  ;;  %v1308_v31 = vld [vmem:[%s1821_s1 + $0x128] sm:$0xff] }
   0xa   :  { %1317 = vmatpush.bf16.msra.mxu1 %v1276_v2  ;;  %1318 = vmatpush.bf16.msra.mxu2 %v1276_v2  ;;  %v1309_v27 = vld [vmem:[%s1821_s1 + $0x130] sm:$0xff]  ;;  %v1291_v32 = vld [vmem:[%s1821_s1 + $0xa0] sm:$0xff]  ;;  %v973_v36 = vld [vmem:[%s1822_s0 + $0x78] sm:$0xf] }
   0xb   :  { %1319 = vmatpush.bf16.msra.mxu3 %v1276_v2  ;;  %632 = vmatpush.bf16.msra.mxu0 %v1276_v2  ;;  %v1283_v33 = vld [vmem:[%s1821_s1 + $0x60] sm:$0xff]  ;;  %v1248_v37 = vld [vmem:[%s1822_s0 + $0x88] sm:$0xf0]  ;;  %v1013_v38 = vld [vmem:[%s1822_s0 + $0xc8] sm:$0xf] }
   0xc   :  { %v1299_v34 = vld [vmem:[%s1821_s1 + $0xe0] sm:$0xff]  ;;  %v1258_v39 = vld [vmem:[%s1822_s0 + $0xd8] sm:$0xf0]  ;;  %v1053_v40 = vld [vmem:[%s1822_s0 + $0x118] sm:$0xf]  ;;  %v974_v46 = vor.u32 %v1248_v37, %v973_v36 }
   0xd   :  { %v1307_v35 = vld [vmem:[%s1821_s1 + $0x120] sm:$0xff]  ;;  %v1268_v41 = vld [vmem:[%s1822_s0 + $0x128] sm:$0xf0]  ;;  %v933_v42 = vld [vmem:[%s1822_s0 + $0x28] sm:$0xf]  ;;  %v1014_v47 = vor.u32 %v1258_v39, %v1013_v38 }
   0xe   :  { %1320 = vmatpush.bf16.msra.mxu1 %v1275_v3  ;;  %1321 = vmatpush.bf16.msra.mxu2 %v1275_v3  ;;  %v1238_v43 = vld [vmem:[%s1822_s0 + $0x38] sm:$0xf0]  ;;  %v1054_v48 = vor.u32 %v1268_v41, %v1053_v40  ;;  %v1289_v52 = vld [vmem:[%s1821_s1 + $0x90] sm:$0xff]  ;;  %v1288_v56 = vld [vmem:[%s1821_s1 + $0x88] sm:$0xff] }
   0xf   :  { %1322 = vmatpush.bf16.msra.mxu3 %v1275_v3  ;;  %633 = vmatpush.bf16.msra.mxu0 %v1275_v3  ;;  %v1290_v44 = vld [vmem:[%s1821_s1 + $0x98] sm:$0xff]  ;;  %v934_v49 = vor.u32 %v1238_v43, %v933_v42  ;;  %v1281_v53 = vld [vmem:[%s1821_s1 + $0x50] sm:$0xff]  ;;  %v1280_v57 = vld [vmem:[%s1821_s1 + $0x48] sm:$0xff] }
  0x10   :  { %v1282_v45 = vld [vmem:[%s1821_s1 + $0x58] sm:$0xff]  ;;  %v1297_v54 = vld [vmem:[%s1821_s1 + $0xd0] sm:$0xff]  ;;  %v1296_v58 = vld [vmem:[%s1821_s1 + $0xc8] sm:$0xff] }
  0x11   :  { %v1298_v50 = vld [vmem:[%s1821_s1 + $0xd8] sm:$0xff]  ;;  %v1305_v55 = vld [vmem:[%s1821_s1 + $0x110] sm:$0xff]  ;;  %v1304_v59 = vld [vmem:[%s1821_s1 + $0x108] sm:$0xff] }
  0x12   :  { %1323 = vmatpush.bf16.msra.mxu1 %v1274_v4  ;;  %1324 = vmatpush.bf16.msra.mxu2 %v1274_v4  ;;  %v1306_v51 = vld [vmem:[%s1821_s1 + $0x118] sm:$0xff]  ;;  %v1287_v60 = vld [vmem:[%s1821_s1 + $0x80] sm:$0xff]  ;;  %v921_v2 = vld [vmem:[%s1822_s0 + $0x8] sm:$0xf] }
  0x13   :  { %1325 = vmatpush.bf16.msra.mxu3 %v1274_v4  ;;  %634 = vmatpush.bf16.msra.mxu0 %v1274_v4  ;;  %v1279_v61 = vld [vmem:[%s1821_s1 + $0x40] sm:$0xff]  ;;  %v915_v1 = vld [vmem:[%s1822_s0 + $0x14] sm:$0xf0]  ;;  %v1234_v3 = vld [vmem:[%s1822_s0 + $0x18] sm:$0xf0] }
  0x14   :  { %v1295_v62 = vld [vmem:[%s1821_s1 + $0xc0] sm:$0xff]  ;;  %v1232_v4 = vld [vmem:[%s1822_s0 + $0xc] sm:$0xf]  ;;  %v922_v9 = vor.u32 %v1234_v3, %v921_v2  ;;  %v941_v14 = vld [vmem:[%s1822_s0 + $0x30] sm:$0xf] }
  0x15   :  { %v1303_v63 = vld [vmem:[%s1821_s1 + $0x100] sm:$0xff]  ;;  %v1236_v12 = vld [vmem:[%s1822_s0 + $0x2c] sm:$0xf]  ;;  %v1246_v36 = vld [vmem:[%s1822_s0 + $0x7c] sm:$0xf] }
  0x16   :  { %1326 = vmatpush.bf16.msra.mxu1 %v1273_v5  ;;  %1327 = vmatpush.bf16.msra.mxu2 %v1273_v5  ;;  %v1231_v0 = vld [vmem:[%s1822_s0 + $0x4] sm:$0xf]  ;;  %v935_v13 = vld [vmem:[%s1822_s0 + $0x3c] sm:$0xf0]  ;;  %v975_v37 = vld [vmem:[%s1822_s0 + $0x8c] sm:$0xf0] }
  0x17   :  { %1328 = vmatpush.bf16.msra.mxu3 %v1273_v5  ;;  %635 = vmatpush.bf16.msra.mxu0 %v1273_v5  ;;  %v923_v5 = vld [vmem:[%s1822_s0 + $0x1c] sm:$0xf0]  ;;  %v918_v8 = vor.u32 %v1231_v0, %v915_v1  ;;  %v1239_v15 = vld [vmem:[%s1822_s0 + $0x40] sm:$0xf0]  ;;  %v1249_v39 = vld [vmem:[%s1822_s0 + $0x90] sm:$0xf0] }
  0x18   :  { %v926_v10 = vor.u32 %v1232_v4, %v923_v5  ;;  %v981_v38 = vld [vmem:[%s1822_s0 + $0x80] sm:$0xf]  ;;  %v1247_v40 = vld [vmem:[%s1822_s0 + $0x84] sm:$0xf]  ;;  %v983_v41 = vld [vmem:[%s1822_s0 + $0x94] sm:$0xf0] }
  0x19   :  { %v989_v42 = vld [vmem:[%s1822_s0 + $0x88] sm:$0xf]  ;;  %v1250_v43 = vld [vmem:[%s1822_s0 + $0x98] sm:$0xf0]  ;;  %v1257_v0 = vld [vmem:[%s1822_s0 + $0xd4] sm:$0xf] }
  0x1a   :  { %1329 = vmatpush.bf16.msra.mxu1 %v1272_v6  ;;  %1330 = vmatpush.bf16.msra.mxu2 %v1272_v6  ;;  %v1023_v1 = vld [vmem:[%s1822_s0 + $0xe4] sm:$0xf0]  ;;  %v1029_v2 = vld [vmem:[%s1822_s0 + $0xd8] sm:$0xf]  ;;  %v1260_v3 = vld [vmem:[%s1822_s0 + $0xe8] sm:$0xf0] }
  0x1b   :  { %1331 = vmatpush.bf16.msra.mxu3 %v1272_v6  ;;  %636 = vmatpush.bf16.msra.mxu0 %v1272_v6  ;;  %v929_v6 = vld [vmem:[%s1822_s0 + $0x10] sm:$0xf] }
  0x1e   :  { %1332 = vmatpush.bf16.msra.mxu1 %v1271_v7  ;;  %1333 = vmatpush.bf16.msra.mxu2 %v1271_v7 }
  0x1f   :  { %1334 = vmatpush.bf16.msra.mxu3 %v1271_v7  ;;  %637 = vmatpush.bf16.msra.mxu0 %v1271_v7  ;;  %v1235_v7 = vld [vmem:[%s1822_s0 + $0x20] sm:$0xf0] }
  0x20   :  { %v930_v11 = vor.u32 %v1235_v7, %v929_v6  ;;  %v1026_v6 = vor.u32 %v1257_v0, %v1023_v1  ;;  %v1030_v7 = vor.u32 %v1260_v3, %v1029_v2 }
  0x21   :  { %648 = vmatmul.bf16.vlgmr.msra.gmra.mxu1 %v954_v18  ;;  %658 = vmatmul.bf16.vlgmr.msra.gmra.mxu2 %v994_v19  ;;  %v949_v18 = vld [vmem:[%s1822_s0 + $0x38] sm:$0xf]  ;;  %v1240_v19 = vld [vmem:[%s1822_s0 + $0x48] sm:$0xf0] }
  0x22   :  { %728 = vmatpush.bf16.msrb.mxu2 %v1294_v16  ;;  %679 = vmatpush.bf16.msrb.mxu1 %v1286_v17  ;;  %v1237_v16 = vld [vmem:[%s1822_s0 + $0x34] sm:$0xf]  ;;  %v943_v17 = vld [vmem:[%s1822_s0 + $0x44] sm:$0xf0] }
  0x23   :  { %668 = vmatmul.bf16.vlgmr.msra.gmra.mxu3 %v1034_v20  ;;  %638 = vmatmul.bf16.vlgmr.msra.gmra.mxu0 %v914_v21  ;;  %v938_v20 = vor.u32 %v1236_v12, %v935_v13  ;;  %v942_v21 = vor.u32 %v1239_v15, %v941_v14  ;;  %v1262_v12 = vld [vmem:[%s1822_s0 + $0xfc] sm:$0xf]  ;;  %v1043_v13 = vld [vmem:[%s1822_s0 + $0x10c] sm:$0xf0]  ;;  %v1049_v14 = vld [vmem:[%s1822_s0 + $0x100] sm:$0xf] }
  0x24   :  { %777 = vmatpush.bf16.msrb.mxu3 %v1302_v22  ;;  %826 = vmatpush.bf16.msrb.mxu0 %v1310_v23  ;;  %v946_v22 = vor.u32 %v1237_v16, %v943_v17  ;;  %v950_v23 = vor.u32 %v1240_v19, %v949_v18  ;;  %v1265_v15 = vld [vmem:[%s1822_s0 + $0x110] sm:$0xf0]  ;;  %v1046_v19 = vor.u32 %v1262_v12, %v1043_v13 }
  0x26   :  { %729 = vmatpush.bf16.msrb.mxu2 %v1293_v24  ;;  %680 = vmatpush.bf16.msrb.mxu1 %v1285_v25  ;;  %v1241_v24 = vld [vmem:[%s1822_s0 + $0x54] sm:$0xf]  ;;  %v955_v25 = vld [vmem:[%s1822_s0 + $0x64] sm:$0xf0] }
  0x28   :  { %778 = vmatpush.bf16.msrb.mxu3 %v1301_v26  ;;  %827 = vmatpush.bf16.msrb.mxu0 %v1309_v27  ;;  %v961_v26 = vld [vmem:[%s1822_s0 + $0x58] sm:$0xf]  ;;  %v1244_v27 = vld [vmem:[%s1822_s0 + $0x68] sm:$0xf0] }
  0x2a   :  { %730 = vmatpush.bf16.msrb.mxu2 %v1292_v28  ;;  %681 = vmatpush.bf16.msrb.mxu1 %v1284_v29  ;;  %v1242_v28 = vld [vmem:[%s1822_s0 + $0x5c] sm:$0xf]  ;;  %v963_v29 = vld [vmem:[%s1822_s0 + $0x6c] sm:$0xf0] }
  0x2c   :  { %779 = vmatpush.bf16.msrb.mxu3 %v1300_v30  ;;  %828 = vmatpush.bf16.msrb.mxu0 %v1308_v31  ;;  %v969_v30 = vld [vmem:[%s1822_s0 + $0x60] sm:$0xf]  ;;  %v1245_v31 = vld [vmem:[%s1822_s0 + $0x70] sm:$0xf0] }
  0x2e   :  { %731 = vmatpush.bf16.msrb.mxu2 %v1291_v32  ;;  %682 = vmatpush.bf16.msrb.mxu1 %v1283_v33  ;;  %v958_v32 = vor.u32 %v1241_v24, %v955_v25  ;;  %v962_v33 = vor.u32 %v1244_v27, %v961_v26  ;;  %v1266_v26 = vld [vmem:[%s1822_s0 + $0x11c] sm:$0xf]  ;;  %v1055_v27 = vld [vmem:[%s1822_s0 + $0x12c] sm:$0xf0] }
  0x30   :  { %780 = vmatpush.bf16.msrb.mxu3 %v1299_v34  ;;  %829 = vmatpush.bf16.msrb.mxu0 %v1307_v35  ;;  %v966_v34 = vor.u32 %v1242_v28, %v963_v29  ;;  %v970_v35 = vor.u32 %v1245_v31, %v969_v30  ;;  %v1061_v28 = vld [vmem:[%s1822_s0 + $0x120] sm:$0xf]  ;;  %v1269_v29 = vld [vmem:[%s1822_s0 + $0x130] sm:$0xf0]  ;;  %v1267_v30 = vld [vmem:[%s1822_s0 + $0x124] sm:$0xf] }
  0x31   :  { %653 = vmatmul.bf16.gmra.mxu1 %v974_v46  ;;  %663 = vmatmul.bf16.gmra.mxu2 %v1014_v47  ;;  %v986_v46 = vor.u32 %v1247_v40, %v983_v41  ;;  %v990_v47 = vor.u32 %v1250_v43, %v989_v42  ;;  %v1063_v31 = vld [vmem:[%s1822_s0 + $0x134] sm:$0xf0] }
  0x32   :  { %732 = vmatpush.bf16.msrb.mxu2 %v1290_v44  ;;  %683 = vmatpush.bf16.msrb.mxu1 %v1282_v45  ;;  %v978_v44 = vor.u32 %v1246_v36, %v975_v37  ;;  %v982_v45 = vor.u32 %v1249_v39, %v981_v38  ;;  %v1058_v36 = vor.u32 %v1266_v26, %v1055_v27 }
  0x33   :  { %673 = vmatmul.bf16.gmra.mxu3 %v1054_v48  ;;  %643 = vmatmul.bf16.gmra.mxu0 %v934_v49  ;;  %v1251_v48 = vld [vmem:[%s1822_s0 + $0xa4] sm:$0xf]  ;;  %v995_v49 = vld [vmem:[%s1822_s0 + $0xb4] sm:$0xf0]  ;;  %v1062_v37 = vor.u32 %v1269_v29, %v1061_v28  ;;  %v1066_v39 = vor.u32 %v1267_v30, %v1063_v31 }
  0x34   :  { %781 = vmatpush.bf16.msrb.mxu3 %v1298_v50  ;;  %830 = vmatpush.bf16.msrb.mxu0 %v1306_v51  ;;  %v1001_v50 = vld [vmem:[%s1822_s0 + $0xa8] sm:$0xf]  ;;  %v1254_v51 = vld [vmem:[%s1822_s0 + $0xb8] sm:$0xf0] }
  0x36   :  { %733 = vmatpush.bf16.msrb.mxu2 %v1289_v52  ;;  %684 = vmatpush.bf16.msrb.mxu1 %v1281_v53  ;;  %v1252_v52 = vld [vmem:[%s1822_s0 + $0xac] sm:$0xf]  ;;  %v1003_v53 = vld [vmem:[%s1822_s0 + $0xbc] sm:$0xf0] }
  0x38   :  { %782 = vmatpush.bf16.msrb.mxu3 %v1297_v54  ;;  %831 = vmatpush.bf16.msrb.mxu0 %v1305_v55  ;;  %v1009_v54 = vld [vmem:[%s1822_s0 + $0xb0] sm:$0xf]  ;;  %v1255_v55 = vld [vmem:[%s1822_s0 + $0xc0] sm:$0xf0] }
  0x3a   :  { %734 = vmatpush.bf16.msrb.mxu2 %v1288_v56  ;;  %685 = vmatpush.bf16.msrb.mxu1 %v1280_v57  ;;  %v998_v56 = vor.u32 %v1251_v48, %v995_v49  ;;  %v1002_v57 = vor.u32 %v1254_v51, %v1001_v50 }
  0x3c   :  { %783 = vmatpush.bf16.msrb.mxu3 %v1296_v58  ;;  %832 = vmatpush.bf16.msrb.mxu0 %v1304_v59  ;;  %v1006_v58 = vor.u32 %v1252_v52, %v1003_v53  ;;  %v1010_v59 = vor.u32 %v1255_v55, %v1009_v54  ;;  %v1743_v55 = vld [vmem:[%s1823_s2] ss:$0 sm:$0xff] }
  0x3e   :  { %735 = vmatpush.bf16.msrb.mxu2 %v1287_v60  ;;  %686 = vmatpush.bf16.msrb.mxu1 %v1279_v61  ;;  %v1256_v60 = vld [vmem:[%s1822_s0 + $0xcc] sm:$0xf]  ;;  %v1015_v61 = vld [vmem:[%s1822_s0 + $0xdc] sm:$0xf0] }
  0x3f   :  { %v1018_v4 = vor.u32 %v1256_v60, %v1015_v61 }
  0x40   :  { %784 = vmatpush.bf16.msrb.mxu3 %v1295_v62  ;;  %833 = vmatpush.bf16.msrb.mxu0 %v1303_v63  ;;  %v1021_v62 = vld [vmem:[%s1822_s0 + $0xd0] sm:$0xf]  ;;  %v1259_v63 = vld [vmem:[%s1822_s0 + $0xe0] sm:$0xf0] }
  0x41   :  { %687 = vmatmul.bf16.vlgmr.msrb.gmra.mxu1 %v918_v8  ;;  %736 = vmatmul.bf16.vlgmr.msrb.gmra.mxu2 %v922_v9  ;;  %v1022_v5 = vor.u32 %v1259_v63, %v1021_v62  ;;  %v1261_v8 = vld [vmem:[%s1822_s0 + $0xf4] sm:$0xf]  ;;  %v1035_v9 = vld [vmem:[%s1822_s0 + $0x104] sm:$0xf0] }
  0x42   :  { %v1038_v16 = vor.u32 %v1261_v8, %v1035_v9 }
  0x43   :  { %785 = vmatmul.bf16.vlgmr.msrb.gmra.mxu3 %v926_v10  ;;  %834 = vmatmul.bf16.vlgmr.msrb.gmra.mxu0 %v930_v11  ;;  %v1041_v10 = vld [vmem:[%s1822_s0 + $0xf8] sm:$0xf]  ;;  %v1264_v11 = vld [vmem:[%s1822_s0 + $0x108] sm:$0xf0] }
  0x44   :  { %v1042_v17 = vor.u32 %v1264_v11, %v1041_v10 }
  0x51   :  { %692 = vmatmul.bf16.gmra.mxu1 %v938_v20  ;;  %741 = vmatmul.bf16.gmra.mxu2 %v942_v21  ;;  %v1050_v20 = vor.u32 %v1265_v15, %v1049_v14 }
  0x53   :  { %790 = vmatmul.bf16.gmra.mxu3 %v946_v22  ;;  %839 = vmatmul.bf16.gmra.mxu0 %v950_v23 }
  0x61   :  { %697 = vmatmul.bf16.gmra.mxu1 %v958_v32  ;;  %746 = vmatmul.bf16.gmra.mxu2 %v962_v33  ;;  %v1069_v32 = vld [vmem:[%s1822_s0 + $0x128] sm:$0xf]  ;;  %v1270_v33 = vld [vmem:[%s1822_s0 + $0x138] sm:$0xf0] }
  0x62   :  { %v1070_v40 = vor.u32 %v1270_v33, %v1069_v32 }
  0x63   :  { %795 = vmatmul.bf16.gmra.mxu3 %v966_v34  ;;  %844 = vmatmul.bf16.gmra.mxu0 %v970_v35 }
  0x71   :  { %702 = vmatmul.bf16.gmra.mxu1 %v978_v44  ;;  %751 = vmatmul.bf16.gmra.mxu2 %v982_v45 }
  0x73   :  { %800 = vmatmul.bf16.gmra.mxu3 %v986_v46  ;;  %849 = vmatmul.bf16.gmra.mxu0 %v990_v47 }
  0x81   :  { %707 = vmatmul.bf16.gmra.mxu1 %v998_v56  ;;  %756 = vmatmul.bf16.gmra.mxu2 %v1002_v57 }
  0x83   :  { %805 = vmatmul.bf16.gmra.mxu3 %v1006_v58  ;;  %854 = vmatmul.bf16.gmra.mxu0 %v1010_v59 }
  0x91   :  { %712 = vmatmul.bf16.gmra.mxu1 %v1018_v4  ;;  %761 = vmatmul.bf16.gmra.mxu2 %v1022_v5 }
  0x93   :  { %810 = vmatmul.bf16.gmra.mxu3 %v1026_v6  ;;  %859 = vmatmul.bf16.gmra.mxu0 %v1030_v7 }
  0x9e   :  { %v1692_v18 = vpop.f32.mrf.mxu1 }
  0xa0   :  { %v639_v21 = vpop.f32.mrf.mxu0 }
  0xa1   :  { %717 = vmatmul.bf16.gmra.mxu1 %v1038_v16  ;;  %766 = vmatmul.bf16.gmra.mxu2 %v1042_v17 }
  0xa3   :  { %815 = vmatmul.bf16.gmra.mxu3 %v1046_v19  ;;  %864 = vmatmul.bf16.gmra.mxu0 %v1050_v20 }
  0xa4   :  { %v1694_v22 = vpop.f32.mrf.mxu2 }
  0xa6   :  { %v1696_v23 = vpop.f32.mrf.mxu3  ;;  %v1698_v24 = vpop.f32.mrf.mxu1 }
  0xa8   :  { %v641_v25 = vpop.f32.mrf.mxu0 }
  0xac   :  { %v1724_v34 = vpop.f32.mrf.mxu2 }
  0xae   :  { %v1726_v35 = vpop.f32.mrf.mxu3  ;;  %v1728_v38 = vpop.f32.mrf.mxu1 }
  0xb0   :  { %v644_v41 = vpop.f32.mrf.mxu0 }
  0xb1   :  { %722 = vmatmul.bf16.gmra.mxu1 %v1058_v36  ;;  %771 = vmatmul.bf16.gmra.mxu2 %v1062_v37 }
  0xb3   :  { %820 = vmatmul.bf16.gmra.mxu3 %v1066_v39  ;;  %869 = vmatmul.bf16.gmra.mxu0 %v1070_v40 }
  0xb4   :  { %v1730_v42 = vpop.f32.mrf.mxu2 }
  0xb6   :  { %v1732_v43 = vpop.f32.mrf.mxu3  ;;  %v1734_v44 = vpop.f32.mrf.mxu1 }
  0xb8   :  { %v646_v45 = vpop.f32.mrf.mxu0 }
  0xbc   :  { %v1736_v46 = vpop.f32.mrf.mxu2 }
  0xbe   :  { %v1738_v47 = vpop.f32.mrf.mxu3  ;;  %v688_v48 = vpop.f32.mrf.mxu1 }
  0xbf   :  { %v689_v50 = vadd.f32 %v688_v48, %v639_v21 }
  0xc0   :  { %v835_v49 = vpop.f32.mrf.mxu0 }
  0xc4   :  { %v737_v51 = vpop.f32.mrf.mxu2 }
  0xc5   :  { %v738_v52 = vadd.f32 %v737_v51, %v689_v50 }
  0xc6   :  { %v786_v53 = vpop.f32.mrf.mxu3  ;;  %v690_v54 = vpop.f32.mrf.mxu1 }
  0xc7   :  { %v787_v56 = vadd.f32 %v786_v53, %v738_v52  ;;  %v691_v60 = vadd.f32 %v690_v54, %v641_v25 }
  0xc8   :  { %v837_v57 = vpop.f32.mrf.mxu0 }
  0xc9   :  { %v836_v58 = vadd.f32 %v835_v49, %v787_v56 }
  0xcb   :  { %v875_v59 = vadd.f32 %v1743_v55, %v836_v58 }
  0xcc   :  { %v739_v61 = vpop.f32.mrf.mxu2 }
  0xcd   :  { %891 = vst [vmem:[%s1824_s3] sm:$0xff] %v875_v59  ;;  %v740_v62 = vadd.f32 %v739_v61, %v691_v60 }
  0xce   :  { %v788_v63 = vpop.f32.mrf.mxu3  ;;  %v693_v0 = vpop.f32.mrf.mxu1 }
  0xcf   :  { %v789_v1 = vadd.f32 %v788_v63, %v740_v62  ;;  %v694_v5 = vadd.f32 %v693_v0, %v644_v41 }
  0xd0   :  { %v840_v2 = vpop.f32.mrf.mxu0 }
  0xd1   :  { %v838_v3 = vadd.f32 %v837_v57, %v789_v1 }
  0xd3   :  { %v876_v4 = vadd.f32 %v1743_v55, %v838_v3 }
  0xd4   :  { %v742_v6 = vpop.f32.mrf.mxu2 }
  0xd5   :  { %892 = vst [vmem:[%s1824_s3 + $0x8] sm:$0xff] %v876_v4  ;;  %v743_v7 = vadd.f32 %v742_v6, %v694_v5 }
  0xd6   :  { %v791_v8 = vpop.f32.mrf.mxu3  ;;  %v695_v9 = vpop.f32.mrf.mxu1 }
  0xd7   :  { %v792_v10 = vadd.f32 %v791_v8, %v743_v7  ;;  %v696_v14 = vadd.f32 %v695_v9, %v646_v45 }
  0xd8   :  { %v842_v11 = vpop.f32.mrf.mxu0 }
  0xd9   :  { %v841_v12 = vadd.f32 %v840_v2, %v792_v10 }
  0xdb   :  { %v877_v13 = vadd.f32 %v1743_v55, %v841_v12 }
  0xdc   :  { %v744_v15 = vpop.f32.mrf.mxu2 }
  0xdd   :  { %893 = vst [vmem:[%s1824_s3 + $0x10] sm:$0xff] %v877_v13  ;;  %v745_v16 = vadd.f32 %v744_v15, %v696_v14 }
  0xde   :  { %v793_v17 = vpop.f32.mrf.mxu3  ;;  %v698_v19 = vpop.f32.mrf.mxu1 }
  0xdf   :  { %v794_v20 = vadd.f32 %v793_v17, %v745_v16  ;;  %v699_v27 = vadd.f32 %v698_v19, %v1692_v18 }
  0xe0   :  { %v845_v21 = vpop.f32.mrf.mxu0 }
  0xe1   :  { %v843_v25 = vadd.f32 %v842_v11, %v794_v20 }
  0xe3   :  { %v878_v26 = vadd.f32 %v1743_v55, %v843_v25 }
  0xe4   :  { %v747_v28 = vpop.f32.mrf.mxu2 }
  0xe5   :  { %894 = vst [vmem:[%s1824_s3 + $0x18] sm:$0xff] %v878_v26  ;;  %v748_v29 = vadd.f32 %v747_v28, %v699_v27 }
  0xe6   :  { %v796_v30 = vpop.f32.mrf.mxu3  ;;  %v700_v31 = vpop.f32.mrf.mxu1 }
  0xe7   :  { %v797_v32 = vadd.f32 %v796_v30, %v748_v29  ;;  %v701_v39 = vadd.f32 %v700_v31, %v1698_v24 }
  0xe8   :  { %v847_v33 = vpop.f32.mrf.mxu0 }
  0xe9   :  { %v846_v36 = vadd.f32 %v845_v21, %v797_v32 }
  0xeb   :  { %v879_v37 = vadd.f32 %v1743_v55, %v846_v36 }
  0xec   :  { %v749_v40 = vpop.f32.mrf.mxu2 }
  0xed   :  { %895 = vst [vmem:[%s1824_s3 + $0x20] sm:$0xff] %v879_v37  ;;  %v750_v18 = vadd.f32 %v749_v40, %v701_v39 }
  0xee   :  { %v798_v41 = vpop.f32.mrf.mxu3  ;;  %v703_v45 = vpop.f32.mrf.mxu1 }
  0xef   :  { %v799_v48 = vadd.f32 %v798_v41, %v750_v18  ;;  %v704_v52 = vadd.f32 %v703_v45, %v1728_v38 }
  0xf0   :  { %v850_v49 = vpop.f32.mrf.mxu0 }
  0xf1   :  { %v848_v50 = vadd.f32 %v847_v33, %v799_v48 }
  0xf3   :  { %v880_v51 = vadd.f32 %v1743_v55, %v848_v50 }
  0xf4   :  { %v752_v53 = vpop.f32.mrf.mxu2 }
  0xf5   :  { %896 = vst [vmem:[%s1824_s3 + $0x28] sm:$0xff] %v880_v51  ;;  %v753_v24 = vadd.f32 %v752_v53, %v704_v52 }
  0xf6   :  { %v801_v54 = vpop.f32.mrf.mxu3  ;;  %v705_v56 = vpop.f32.mrf.mxu1 }
  0xf7   :  { %v802_v57 = vadd.f32 %v801_v54, %v753_v24  ;;  %v706_v61 = vadd.f32 %v705_v56, %v1734_v44 }
  0xf8   :  { %v852_v58 = vpop.f32.mrf.mxu0 }
  0xf9   :  { %v851_v59 = vadd.f32 %v850_v49, %v802_v57 }
  0xfb   :  { %v881_v60 = vadd.f32 %v1743_v55, %v851_v59 }
  0xfc   :  { %v754_v62 = vpop.f32.mrf.mxu2 }
  0xfd   :  { %897 = vst [vmem:[%s1824_s3 + $0x30] sm:$0xff] %v881_v60  ;;  %v755_v38 = vadd.f32 %v754_v62, %v706_v61 }
  0xfe   :  { %v803_v63 = vpop.f32.mrf.mxu3  ;;  %v708_v0 = vpop.f32.mrf.mxu1 }
  0xff   :  { %v804_v1 = vadd.f32 %v803_v63, %v755_v38  ;;  %v709_v5 = vadd.f32 %v708_v0, %v1694_v22 }
 0x100   :  { %v855_v2 = vpop.f32.mrf.mxu0 }
 0x101   :  { %v853_v3 = vadd.f32 %v852_v58, %v804_v1 }
 0x103   :  { %v882_v4 = vadd.f32 %v1743_v55, %v853_v3 }
 0x104   :  { %v757_v6 = vpop.f32.mrf.mxu2 }
 0x105   :  { %898 = vst [vmem:[%s1824_s3 + $0x38] sm:$0xff] %v882_v4  ;;  %v758_v44 = vadd.f32 %v757_v6, %v709_v5 }
 0x106   :  { %v806_v7 = vpop.f32.mrf.mxu3  ;;  %v710_v8 = vpop.f32.mrf.mxu1 }
 0x107   :  { %v807_v9 = vadd.f32 %v806_v7, %v758_v44  ;;  %v711_v13 = vadd.f32 %v710_v8, %v1724_v34 }
 0x108   :  { %v857_v10 = vpop.f32.mrf.mxu0 }
 0x109   :  { %v856_v11 = vadd.f32 %v855_v2, %v807_v9 }
 0x10b   :  { %v883_v12 = vadd.f32 %v1743_v55, %v856_v11 }
 0x10c   :  { %v759_v14 = vpop.f32.mrf.mxu2 }
 0x10d   :  { %899 = vst [vmem:[%s1824_s3 + $0x40] sm:$0xff] %v883_v12  ;;  %v760_v22 = vadd.f32 %v759_v14, %v711_v13 }
 0x10e   :  { %v808_v15 = vpop.f32.mrf.mxu3  ;;  %v713_v16 = vpop.f32.mrf.mxu1 }
 0x10f   :  { %v809_v17 = vadd.f32 %v808_v15, %v760_v22  ;;  %v714_v25 = vadd.f32 %v713_v16, %v1730_v42 }
 0x110   :  { %v860_v19 = vpop.f32.mrf.mxu0 }
 0x111   :  { %v858_v20 = vadd.f32 %v857_v10, %v809_v17 }
 0x113   :  { %v884_v21 = vadd.f32 %v1743_v55, %v858_v20 }
 0x114   :  { %v762_v26 = vpop.f32.mrf.mxu2 }
 0x115   :  { %900 = vst [vmem:[%s1824_s3 + $0x48] sm:$0xff] %v884_v21  ;;  %v763_v34 = vadd.f32 %v762_v26, %v714_v25 }
 0x116   :  { %v811_v27 = vpop.f32.mrf.mxu3  ;;  %v715_v28 = vpop.f32.mrf.mxu1 }
 0x117   :  { %v812_v29 = vadd.f32 %v811_v27, %v763_v34  ;;  %v716_v33 = vadd.f32 %v715_v28, %v1736_v46 }
 0x118   :  { %v862_v30 = vpop.f32.mrf.mxu0 }
 0x119   :  { %v861_v31 = vadd.f32 %v860_v19, %v812_v29 }
 0x11b   :  { %v885_v32 = vadd.f32 %v1743_v55, %v861_v31 }
 0x11c   :  { %v764_v36 = vpop.f32.mrf.mxu2 }
 0x11d   :  { %901 = vst [vmem:[%s1824_s3 + $0x50] sm:$0xff] %v885_v32  ;;  %v765_v42 = vadd.f32 %v764_v36, %v716_v33 }
 0x11e   :  { %v813_v37 = vpop.f32.mrf.mxu3  ;;  %v718_v39 = vpop.f32.mrf.mxu1 }
 0x11f   :  { %v814_v40 = vadd.f32 %v813_v37, %v765_v42  ;;  %v719_v48 = vadd.f32 %v718_v39, %v1696_v23 }
 0x120   :  { %v865_v41 = vpop.f32.mrf.mxu0 }
 0x121   :  { %v863_v18 = vadd.f32 %v862_v30, %v814_v40 }
 0x123   :  { %v886_v45 = vadd.f32 %v1743_v55, %v863_v18 }
 0x124   :  { %v767_v49 = vpop.f32.mrf.mxu2 }
 0x125   :  { %902 = vst [vmem:[%s1824_s3 + $0x58] sm:$0xff] %v886_v45  ;;  %v768_v46 = vadd.f32 %v767_v49, %v719_v48 }
 0x126   :  { %v816_v50 = vpop.f32.mrf.mxu3  ;;  %v720_v51 = vpop.f32.mrf.mxu1 }
 0x127   :  { %v817_v52 = vadd.f32 %v816_v50, %v768_v46  ;;  %v721_v54 = vadd.f32 %v720_v51, %v1726_v35 }
 0x128   :  { %v867_v56 = vpop.f32.mrf.mxu0 }
 0x129   :  { %v866_v53 = vadd.f32 %v865_v41, %v817_v52 }
 0x12b   :  { %v887_v24 = vadd.f32 %v1743_v55, %v866_v53 }
 0x12c   :  { %v769_v57 = vpop.f32.mrf.mxu2 }
 0x12d   :  { %903 = vst [vmem:[%s1824_s3 + $0x60] sm:$0xff] %v887_v24  ;;  %v770_v23 = vadd.f32 %v769_v57, %v721_v54 }
 0x12e   :  { %v818_v58 = vpop.f32.mrf.mxu3  ;;  %v723_v59 = vpop.f32.mrf.mxu1 }
 0x12f   :  { %v819_v60 = vadd.f32 %v818_v58, %v770_v23  ;;  %v724_v38 = vadd.f32 %v723_v59, %v1732_v43 }
 0x130   :  { %v870_v1 = vpop.f32.mrf.mxu0 }
 0x131   :  { %v868_v61 = vadd.f32 %v867_v56, %v819_v60 }
 0x133   :  { %v888_v62 = vadd.f32 %v1743_v55, %v868_v61 }
 0x134   :  { %v772_v63 = vpop.f32.mrf.mxu2 }
 0x135   :  { %904 = vst [vmem:[%s1824_s3 + $0x68] sm:$0xff] %v888_v62  ;;  %v773_v35 = vadd.f32 %v772_v63, %v724_v38 }
 0x136   :  { %v821_v0 = vpop.f32.mrf.mxu3  ;;  %v725_v3 = vpop.f32.mrf.mxu1 }
 0x137   :  { %v822_v2 = vadd.f32 %v821_v0, %v773_v35  ;;  %v726_v6 = vadd.f32 %v725_v3, %v1738_v47 }
 0x138   :  { %v872_v9 = vpop.f32.mrf.mxu0 }
 0x139   :  { %v871_v4 = vadd.f32 %v870_v1, %v822_v2 }
 0x13b   :  { %v889_v5 = vadd.f32 %v1743_v55, %v871_v4 }
 0x13c   :  { %v774_v44 = vpop.f32.mrf.mxu2 }
 0x13d   :  { %905 = vst [vmem:[%s1824_s3 + $0x70] sm:$0xff] %v889_v5  ;;  %v775_v43 = vadd.f32 %v774_v44, %v726_v6 }
 0x13e   :  { %v823_v7 = vpop.f32.mrf.mxu3 }
 0x13f   :  { %v824_v8 = vadd.f32 %v823_v7, %v775_v43 }
 0x141   :  { %v873_v10 = vadd.f32 %v872_v9, %v824_v8 }
 0x143   :  { %v890_v11 = vadd.f32 %v1743_v55, %v873_v10 }
 0x145   :  { %906 = vst [vmem:[%s1824_s3 + $0x78] sm:$0xff] %v890_v11 }

// kernel: generator_forward.15
= control target key start
LH: loop header
LB: loop body
LE: loop exit
PB: predicated region body
PF: predicated region fallthrough
CT: control target
= control target key end

     0   :  { %s1763_s12 = smov 0   ;;  %s1765_s13 = smov 0   ;;  %s2140_s0 = inlined_call_operand.vmem [shape: bf16[512,384], index: 0, kind: input, shape index: {}]   ;;  %s2141_s1 = inlined_call_operand.vmem [shape: bf16[384,128], index: 1, kind: input, shape index: {}]   ;;  %s2142_s2 = inlined_call_operand.vmem [shape: f32[1,128], index: 2, kind: input, shape index: {}]   ;;  %s2143_s3 = inlined_call_operand.vmem [shape: f32[512,128], index: 3, kind: output, shape index: {}]  }
   0x1   :  { %s1767_s14 = smov 0  }
   0x2 LB: > { %s32_s15 = sadd.s32 1, %s1737_s13  ;;  %p1302_p0 = scmp.ge.s32.totalorder %s1741_s14, 1  ;;  %s1741_s14 = sphi %s1767_s14, %s13_s14   ;;  %s1737_s13 = sphi %s1765_s13, %s2145_s13   ;;  %s1733_s12 = sphi %s1763_s12, %s2144_s12  }
   0x3   : > { %p34_p1 = scmp.ge.s32.totalorder %s32_s15, 2  ;;  %p191_p2 = scmp.lt.s32.totalorder %s1741_s14, 3 }
   0x5   : > { %s2147_s15 = smov (%p34_p1, %s32_s15), 0  ;;  %p192_p3 = pnand %p1302_p0, %p191_p2 }
   0x6   : > { %s1303_s7 = sshll.u32 (!%p192_p3), %s1733_s12, 5 }
   0x7   : > { %195 = sbr.rel (%p192_p3) target bundleno = 367 (0x16f), region = 32  ;;  %p236_p4 = scmp.lt.s32.totalorder (!%p192_p3), %s1303_s7, 63 }
   0xc   : > { %v1652_v0 = vld [vmem:[%s2141_s1 + $0x38] sm:$0xff]  ;;  %v1651_v3 = vld [vmem:[%s2141_s1 + $0x30] sm:$0xff]  ;;  %v1650_v6 = vld [vmem:[%s2141_s1 + $0x28] sm:$0xff]  ;;  %s2149_s7 = smov (!%p236_p4, %s1303_s7), 63 }
   0xd   : > { %v1789_v1 = vld [vmem:[%s2141_s1 + $0x78] sm:$0xff]  ;;  %851 = vmatpush.bf16.msra.mxu0 %v1652_v0  ;;  %1669 = vmatpush.bf16.msra.mxu3 %v1652_v0  ;;  %v1804_v4 = vld [vmem:[%s2141_s1 + $0x70] sm:$0xff]  ;;  %v1819_v7 = vld [vmem:[%s2141_s1 + $0x68] sm:$0xff]  ;;  %s1693_s25 = smul.u32 12, %s2149_s7  ;;  %s1306_s22 = sshll.u32 %s2149_s7, 3 }
   0xe   : > { %v1794_v2 = vld [vmem:[%s2141_s1 + $0xb8] sm:$0xff]  ;;  %940 = vmatpush.bf16.msra.mxu1 %v1789_v1  ;;  %v1809_v5 = vld [vmem:[%s2141_s1 + $0xb0] sm:$0xff]  ;;  %v1824_v8 = vld [vmem:[%s2141_s1 + $0xa8] sm:$0xff]  ;;  %s1995_s27 = scalar_lea.vmem %s2143_s3, %s1306_s22 }
   0xf   : > { %1029 = vmatpush.bf16.msra.mxu2 %v1794_v2  ;;  %v1649_v9 = vld [vmem:[%s2141_s1 + $0x20] sm:$0xff]  ;;  %v1648_v12 = vld [vmem:[%s2141_s1 + $0x18] sm:$0xff]  ;;  %v1647_v15 = vld [vmem:[%s2141_s1 + $0x10] sm:$0xff]  ;;  %s1876_s8 = scalar_lea.vmem %s2140_s0, %s1693_s25 }
  0x10   : > { %v1835_v10 = vld [vmem:[%s2141_s1 + $0x60] sm:$0xff]  ;;  %v1656_v13 = vld [vmem:[%s2141_s1 + $0x58] sm:$0xff]  ;;  %v1655_v16 = vld [vmem:[%s2141_s1 + $0x50] sm:$0xff] }
  0x11   : > { %852 = vmatpush.bf16.msra.mxu0 %v1651_v3  ;;  %1670 = vmatpush.bf16.msra.mxu3 %v1651_v3  ;;  %v1840_v11 = vld [vmem:[%s2141_s1 + $0xa0] sm:$0xff]  ;;  %v1855_v14 = vld [vmem:[%s2141_s1 + $0x98] sm:$0xff]  ;;  %v1868_v17 = vld [vmem:[%s2141_s1 + $0x90] sm:$0xff] }
  0x12   : > { %941 = vmatpush.bf16.msra.mxu1 %v1804_v4  ;;  %v1646_v18 = vld [vmem:[%s2141_s1 + $0x8] sm:$0xff]  ;;  %v1645_v21 = vld [vmem:[%s2141_s1] sm:$0xff]  ;;  %v1311_v29 = vld [vmem:[%s1876_s8 + $0xc] sm:$0xf0] }
  0x13   : > { %1030 = vmatpush.bf16.msra.mxu2 %v1809_v5  ;;  %v1654_v19 = vld [vmem:[%s2141_s1 + $0x48] sm:$0xff]  ;;  %v1653_v22 = vld [vmem:[%s2141_s1 + $0x40] sm:$0xff]  ;;  %v1599_v31 = vld [vmem:[%s1876_s8 + $0x10] sm:$0xf0] }
  0x14   : > { %v1885_v20 = vld [vmem:[%s2141_s1 + $0x88] sm:$0xff]  ;;  %v1896_v23 = vld [vmem:[%s2141_s1 + $0x80] sm:$0xff]  ;;  %v1321_v36 = vld [vmem:[%s1876_s8 + $0x18] sm:$0xf] }
  0x15   : > { %853 = vmatpush.bf16.msra.mxu0 %v1650_v6  ;;  %1671 = vmatpush.bf16.msra.mxu3 %v1650_v6  ;;  %v1309_v24 = vld [vmem:[%s1876_s8] sm:$0xf]  ;;  %v1598_v25 = vld [vmem:[%s1876_s8 + $0x8] sm:$0xf0]  ;;  %v1597_v28 = vld [vmem:[%s1876_s8 + $0x4] sm:$0xf] }
  0x16   : > { %942 = vmatpush.bf16.msra.mxu1 %v1819_v7  ;;  %v1453_v26 = vld [vmem:[%s1876_s8 + $0x120] sm:$0xf]  ;;  %v1634_v27 = vld [vmem:[%s1876_s8 + $0x128] sm:$0xf0]  ;;  %v1317_v30 = vld [vmem:[%s1876_s8 + $0x8] sm:$0xf]  ;;  %v1310_v32 = vor.u32 %v1598_v25, %v1309_v24  ;;  %v1314_v34 = vor.u32 %v1597_v28, %v1311_v29 }
  0x17   : > { %1031 = vmatpush.bf16.msra.mxu2 %v1824_v8  ;;  %v1454_v33 = vor.u32 %v1634_v27, %v1453_v26  ;;  %v1318_v35 = vor.u32 %v1599_v31, %v1317_v30  ;;  %v1601_v37 = vld [vmem:[%s1876_s8 + $0x20] sm:$0xf0]  ;;  %v1465_v38 = vld [vmem:[%s1876_s8 + $0x138] sm:$0xf]  ;;  %v1600_v40 = vld [vmem:[%s1876_s8 + $0x1c] sm:$0xf] }
  0x18   : > { %v1637_v39 = vld [vmem:[%s1876_s8 + $0x140] sm:$0xf0]  ;;  %v1323_v41 = vld [vmem:[%s1876_s8 + $0x24] sm:$0xf0]  ;;  %v1329_v42 = vld [vmem:[%s1876_s8 + $0x20] sm:$0xf]  ;;  %v1322_v44 = vor.u32 %v1601_v37, %v1321_v36 }
  0x19   : > { %854 = vmatpush.bf16.msra.mxu0 %v1649_v9  ;;  %1672 = vmatpush.bf16.msra.mxu3 %v1649_v9  ;;  %v1602_v43 = vld [vmem:[%s1876_s8 + $0x28] sm:$0xf0]  ;;  %v1466_v45 = vor.u32 %v1637_v39, %v1465_v38  ;;  %v1326_v46 = vor.u32 %v1600_v40, %v1323_v41  ;;  %v1333_v48 = vld [vmem:[%s1876_s8 + $0x30] sm:$0xf]  ;;  %v1604_v49 = vld [vmem:[%s1876_s8 + $0x38] sm:$0xf0] }
  0x1a   : > { %943 = vmatpush.bf16.msra.mxu1 %v1835_v10  ;;  %v1330_v47 = vor.u32 %v1602_v43, %v1329_v42  ;;  %v1477_v50 = vld [vmem:[%s1876_s8 + $0x150] sm:$0xf]  ;;  %v1640_v51 = vld [vmem:[%s1876_s8 + $0x158] sm:$0xf0]  ;;  %v1603_v52 = vld [vmem:[%s1876_s8 + $0x34] sm:$0xf]  ;;  %v1334_v56 = vor.u32 %v1604_v49, %v1333_v48 }
  0x1b   : > { %1032 = vmatpush.bf16.msra.mxu2 %v1840_v11  ;;  %v1335_v53 = vld [vmem:[%s1876_s8 + $0x3c] sm:$0xf0]  ;;  %v1341_v54 = vld [vmem:[%s1876_s8 + $0x38] sm:$0xf]  ;;  %v1605_v55 = vld [vmem:[%s1876_s8 + $0x40] sm:$0xf0]  ;;  %v1478_v57 = vor.u32 %v1640_v51, %v1477_v50 }
  0x1c   : > { %v1338_v58 = vor.u32 %v1603_v52, %v1335_v53  ;;  %v1342_v59 = vor.u32 %v1605_v55, %v1341_v54  ;;  %v1345_v60 = vld [vmem:[%s1876_s8 + $0x48] sm:$0xf]  ;;  %v1607_v61 = vld [vmem:[%s1876_s8 + $0x50] sm:$0xf0]  ;;  %v1606_v0 = vld [vmem:[%s1876_s8 + $0x4c] sm:$0xf] }
  0x1d   : > { %855 = vmatpush.bf16.msra.mxu0 %v1648_v12  ;;  %1673 = vmatpush.bf16.msra.mxu3 %v1648_v12  ;;  %v1489_v62 = vld [vmem:[%s1876_s8 + $0x168] sm:$0xf]  ;;  %v1643_v63 = vld [vmem:[%s1876_s8 + $0x170] sm:$0xf0]  ;;  %v1608_v3 = vld [vmem:[%s1876_s8 + $0x58] sm:$0xf0] }
  0x1e   : > { %944 = vmatpush.bf16.msra.mxu1 %v1656_v13  ;;  %v1610_v9 = vld [vmem:[%s1876_s8 + $0x68] sm:$0xf0]  ;;  %v1455_v12 = vld [vmem:[%s1876_s8 + $0x12c] sm:$0xf0]  ;;  %v1636_v24 = vld [vmem:[%s1876_s8 + $0x13c] sm:$0xf] }
  0x1f   : > { %1033 = vmatpush.bf16.msra.mxu2 %v1855_v14  ;;  %v1467_v25 = vld [vmem:[%s1876_s8 + $0x144] sm:$0xf0]  ;;  %v1377_v26 = vld [vmem:[%s1876_s8 + $0x80] sm:$0xf]  ;;  %v1614_v27 = vld [vmem:[%s1876_s8 + $0x88] sm:$0xf0] }
  0x20   : > { %v1470_v29 = vor.u32 %v1636_v24, %v1467_v25  ;;  %v1378_v31 = vor.u32 %v1614_v27, %v1377_v26  ;;  %v1479_v36 = vld [vmem:[%s1876_s8 + $0x15c] sm:$0xf0]  ;;  %v1389_v38 = vld [vmem:[%s1876_s8 + $0x98] sm:$0xf]  ;;  %v1617_v39 = vld [vmem:[%s1876_s8 + $0xa0] sm:$0xf0] }
  0x21   : > { %856 = vmatpush.bf16.msra.mxu0 %v1647_v15  ;;  %1674 = vmatpush.bf16.msra.mxu3 %v1647_v15  ;;  %v1611_v15 = vld [vmem:[%s1876_s8 + $0x70] sm:$0xf0]  ;;  %v1383_v37 = vld [vmem:[%s1876_s8 + $0x9c] sm:$0xf0]  ;;  %v1390_v43 = vor.u32 %v1617_v39, %v1389_v38  ;;  %v1491_v48 = vld [vmem:[%s1876_s8 + $0x174] sm:$0xf0] }
  0x22   : > { %945 = vmatpush.bf16.msra.mxu1 %v1655_v16  ;;  %v1395_v49 = vld [vmem:[%s1876_s8 + $0xb4] sm:$0xf0]  ;;  %v1401_v50 = vld [vmem:[%s1876_s8 + $0xb0] sm:$0xf]  ;;  %v1620_v51 = vld [vmem:[%s1876_s8 + $0xb8] sm:$0xf0] }
  0x23   : > { %1034 = vmatpush.bf16.msra.mxu2 %v1868_v17  ;;  %v1402_v55 = vor.u32 %v1620_v51, %v1401_v50 }
  0x25   : > { %857 = vmatpush.bf16.msra.mxu0 %v1646_v18  ;;  %1675 = vmatpush.bf16.msra.mxu3 %v1646_v18 }
  0x26   : > { %946 = vmatpush.bf16.msra.mxu1 %v1654_v19 }
  0x27   : > { %1035 = vmatpush.bf16.msra.mxu2 %v1885_v20 }
  0x29   : > { %858 = vmatpush.bf16.msra.mxu0 %v1645_v21  ;;  %1676 = vmatpush.bf16.msra.mxu3 %v1645_v21  ;;  %v1613_v21 = vld [vmem:[%s1876_s8 + $0x80] sm:$0xf0] }
  0x2a   : > { %947 = vmatpush.bf16.msra.mxu1 %v1653_v22 }
  0x2b   : > { %1036 = vmatpush.bf16.msra.mxu2 %v1896_v23 }
  0x2c   : > { %859 = vmatmul.bf16.vlgmr.msra.gmra.mxu0 %v1310_v32  ;;  %919 = vmatmul.bf16.vlgmr.msra.gmra.mxu3 %v1454_v33  ;;  %v1381_v32 = vld [vmem:[%s1876_s8 + $0x90] sm:$0xf]  ;;  %v1616_v33 = vld [vmem:[%s1876_s8 + $0x98] sm:$0xf0] }
  0x2d   : > { %1677 = vmatpush.bf16.msrb.mxu3 %v1789_v1  ;;  %948 = vmatmul.bf16.vlgmr.msra.gmra.mxu1 %v1314_v34  ;;  %v1347_v1 = vld [vmem:[%s1876_s8 + $0x54] sm:$0xf0]  ;;  %v1615_v34 = vld [vmem:[%s1876_s8 + $0x94] sm:$0xf]  ;;  %v1382_v40 = vor.u32 %v1616_v33, %v1381_v32 }
  0x2e   : > { %1037 = vmatmul.bf16.vlgmr.msra.gmra.mxu2 %v1318_v35  ;;  %v1350_v6 = vor.u32 %v1606_v0, %v1347_v1  ;;  %v1639_v35 = vld [vmem:[%s1876_s8 + $0x154] sm:$0xf]  ;;  %v1386_v42 = vor.u32 %v1615_v34, %v1383_v37 }
  0x2f   : > { %v1482_v41 = vor.u32 %v1639_v35, %v1479_v36 }
  0x31   : > { %1678 = vmatpush.bf16.msrb.mxu3 %v1804_v4  ;;  %v1346_v4 = vor.u32 %v1607_v61, %v1345_v60  ;;  %v1635_v60 = vld [vmem:[%s1876_s8 + $0x130] sm:$0xf0]  ;;  %v1407_v61 = vld [vmem:[%s1876_s8 + $0xcc] sm:$0xf0] }
  0x35   : > { %1679 = vmatpush.bf16.msrb.mxu3 %v1819_v7 }
  0x39   : > { %1680 = vmatpush.bf16.msrb.mxu3 %v1835_v10  ;;  %v1609_v10 = vld [vmem:[%s1876_s8 + $0x64] sm:$0xf] }
  0x3c   : > { %864 = vmatmul.bf16.gmra.mxu0 %v1322_v44  ;;  %924 = vmatmul.bf16.gmra.mxu3 %v1466_v45  ;;  %v1393_v44 = vld [vmem:[%s1876_s8 + $0xa8] sm:$0xf]  ;;  %v1619_v45 = vld [vmem:[%s1876_s8 + $0xb0] sm:$0xf0] }
  0x3d   : > { %1681 = vmatpush.bf16.msrb.mxu3 %v1656_v13  ;;  %953 = vmatmul.bf16.gmra.mxu1 %v1326_v46  ;;  %v1359_v13 = vld [vmem:[%s1876_s8 + $0x6c] sm:$0xf0]  ;;  %v1618_v46 = vld [vmem:[%s1876_s8 + $0xac] sm:$0xf]  ;;  %v1394_v52 = vor.u32 %v1619_v45, %v1393_v44  ;;  %v1641_v44 = vld [vmem:[%s1876_s8 + $0x160] sm:$0xf0] }
  0x3e   : > { %1042 = vmatmul.bf16.gmra.mxu2 %v1330_v47  ;;  %v1362_v18 = vor.u32 %v1609_v10, %v1359_v13  ;;  %v1642_v47 = vld [vmem:[%s1876_s8 + $0x16c] sm:$0xf]  ;;  %v1398_v54 = vor.u32 %v1618_v46, %v1395_v49  ;;  %v1431_v45 = vld [vmem:[%s1876_s8 + $0xfc] sm:$0xf0]  ;;  %v1437_v46 = vld [vmem:[%s1876_s8 + $0xf8] sm:$0xf] }
  0x3f   : > { %v1494_v53 = vor.u32 %v1642_v47, %v1491_v48  ;;  %v1629_v47 = vld [vmem:[%s1876_s8 + $0x100] sm:$0xf0] }
  0x41   : > { %1682 = vmatpush.bf16.msrb.mxu3 %v1655_v16 }
  0x45   : > { %1683 = vmatpush.bf16.msrb.mxu3 %v1654_v19 }
  0x49   : > { %1684 = vmatpush.bf16.msrb.mxu3 %v1653_v22  ;;  %v1612_v22 = vld [vmem:[%s1876_s8 + $0x7c] sm:$0xf] }
  0x4c   : > { %869 = vmatmul.bf16.gmra.mxu0 %v1334_v56  ;;  %929 = vmatmul.bf16.gmra.mxu3 %v1478_v57  ;;  %v1405_v56 = vld [vmem:[%s1876_s8 + $0xc0] sm:$0xf]  ;;  %v1622_v57 = vld [vmem:[%s1876_s8 + $0xc8] sm:$0xf0] }
  0x4d   : > { %1685 = vmatpush.bf16.msra.mxu3 %v1794_v2  ;;  %958 = vmatmul.bf16.gmra.mxu1 %v1338_v58  ;;  %v1353_v2 = vld [vmem:[%s1876_s8 + $0x50] sm:$0xf]  ;;  %v1621_v58 = vld [vmem:[%s1876_s8 + $0xc4] sm:$0xf]  ;;  %v1406_v0 = vor.u32 %v1622_v57, %v1405_v56  ;;  %v1438_v56 = vor.u32 %v1629_v47, %v1437_v46 }
  0x4e   : > { %1047 = vmatmul.bf16.gmra.mxu2 %v1342_v59  ;;  %v1354_v7 = vor.u32 %v1608_v3, %v1353_v2  ;;  %v1461_v59 = vld [vmem:[%s1876_s8 + $0x128] sm:$0xf]  ;;  %v1410_v3 = vor.u32 %v1621_v58, %v1407_v61 }
  0x4f   : > { %v1462_v1 = vor.u32 %v1635_v60, %v1461_v59 }
  0x51   : > { %1686 = vmatpush.bf16.msra.mxu3 %v1809_v5  ;;  %v1490_v5 = vor.u32 %v1643_v63, %v1489_v62  ;;  %v1413_v62 = vld [vmem:[%s1876_s8 + $0xc8] sm:$0xf]  ;;  %v1623_v63 = vld [vmem:[%s1876_s8 + $0xd0] sm:$0xf0] }
  0x55   : > { %1687 = vmatpush.bf16.msra.mxu3 %v1824_v8  ;;  %v1357_v8 = vld [vmem:[%s1876_s8 + $0x60] sm:$0xf] }
  0x56   : > { %v1358_v16 = vor.u32 %v1610_v9, %v1357_v8  ;;  %v1990_v8 = vld [vmem:[%s2142_s2] ss:$0 sm:$0xff] }
  0x59   : > { %1688 = vmatpush.bf16.msra.mxu3 %v1840_v11  ;;  %v1633_v11 = vld [vmem:[%s1876_s8 + $0x124] sm:$0xf] }
  0x5c   : > { %874 = vmatmul.bf16.gmra.mxu0 %v1346_v4  ;;  %934 = vmatmul.bf16.gmra.mxu3 %v1490_v5  ;;  %v1414_v4 = vor.u32 %v1623_v63, %v1413_v62 }
  0x5d   : > { %1689 = vmatpush.bf16.msra.mxu3 %v1855_v14  ;;  %963 = vmatmul.bf16.gmra.mxu1 %v1350_v6  ;;  %v1365_v14 = vld [vmem:[%s1876_s8 + $0x68] sm:$0xf] }
  0x5e   : > { %1052 = vmatmul.bf16.gmra.mxu2 %v1354_v7  ;;  %v1366_v19 = vor.u32 %v1611_v15, %v1365_v14  ;;  %v1417_v14 = vld [vmem:[%s1876_s8 + $0xd8] sm:$0xf]  ;;  %v1625_v15 = vld [vmem:[%s1876_s8 + $0xe0] sm:$0xf0] }
  0x61   : > { %1690 = vmatpush.bf16.msra.mxu3 %v1868_v17  ;;  %v1458_v17 = vor.u32 %v1633_v11, %v1455_v12 }
  0x65   : > { %1691 = vmatpush.bf16.msra.mxu3 %v1885_v20  ;;  %v1369_v20 = vld [vmem:[%s1876_s8 + $0x78] sm:$0xf] }
  0x66   : > { %v1370_v28 = vor.u32 %v1613_v21, %v1369_v20  ;;  %v1425_v20 = vld [vmem:[%s1876_s8 + $0xe0] sm:$0xf]  ;;  %v1626_v21 = vld [vmem:[%s1876_s8 + $0xe8] sm:$0xf0] }
  0x69   : > { %1692 = vmatpush.bf16.msra.mxu3 %v1896_v23  ;;  %v1371_v23 = vld [vmem:[%s1876_s8 + $0x84] sm:$0xf0] }
  0x6a   : > { %v1374_v30 = vor.u32 %v1612_v22, %v1371_v23  ;;  %v1418_v23 = vor.u32 %v1625_v15, %v1417_v14 }
  0x6c   : > { %879 = vmatmul.bf16.gmra.mxu0 %v1358_v16  ;;  %1008 = vmatmul.bf16.vlgmr.msrb.gmra.mxu3 %v1458_v17  ;;  %v1624_v16 = vld [vmem:[%s1876_s8 + $0xdc] sm:$0xf]  ;;  %v1473_v17 = vld [vmem:[%s1876_s8 + $0x140] sm:$0xf] }
  0x6d   : > { %968 = vmatmul.bf16.gmra.mxu1 %v1362_v18  ;;  %v1638_v18 = vld [vmem:[%s1876_s8 + $0x148] sm:$0xf0] }
  0x6e   : > { %1057 = vmatmul.bf16.gmra.mxu2 %v1366_v19  ;;  %v1419_v19 = vld [vmem:[%s1876_s8 + $0xe4] sm:$0xf0]  ;;  %v1474_v26 = vor.u32 %v1638_v18, %v1473_v17 }
  0x7c   : > { %884 = vmatmul.bf16.gmra.mxu0 %v1370_v28  ;;  %1013 = vmatmul.bf16.gmra.mxu3 %v1470_v29  ;;  %v1422_v29 = vor.u32 %v1624_v16, %v1419_v19 }
  0x7d   : > { %973 = vmatmul.bf16.gmra.mxu1 %v1374_v30  ;;  %v1426_v30 = vor.u32 %v1626_v21, %v1425_v20 }
  0x7e   : > { %1062 = vmatmul.bf16.gmra.mxu2 %v1378_v31 }
  0x8c   : > { %889 = vmatmul.bf16.gmra.mxu0 %v1382_v40  ;;  %1018 = vmatmul.bf16.gmra.mxu3 %v1482_v41  ;;  %v1429_v40 = vld [vmem:[%s1876_s8 + $0xf0] sm:$0xf]  ;;  %v1628_v41 = vld [vmem:[%s1876_s8 + $0xf8] sm:$0xf0] }
  0x8d   : > { %978 = vmatmul.bf16.gmra.mxu1 %v1386_v42  ;;  %v1627_v42 = vld [vmem:[%s1876_s8 + $0xf4] sm:$0xf]  ;;  %v1430_v51 = vor.u32 %v1628_v41, %v1429_v40 }
  0x8e   : > { %1067 = vmatmul.bf16.gmra.mxu2 %v1390_v43  ;;  %v1485_v43 = vld [vmem:[%s1876_s8 + $0x158] sm:$0xf] }
  0x9c   : > { %894 = vmatmul.bf16.gmra.mxu0 %v1394_v52  ;;  %1023 = vmatmul.bf16.gmra.mxu3 %v1494_v53  ;;  %v1486_v52 = vor.u32 %v1641_v44, %v1485_v43 }
  0x9d   : > { %983 = vmatmul.bf16.gmra.mxu1 %v1398_v54 }
  0x9e   : > { %1072 = vmatmul.bf16.gmra.mxu2 %v1402_v55  ;;  %v1434_v55 = vor.u32 %v1627_v42, %v1431_v45 }
  0xa9   : > { %v860_v2 = vpop.f32.mrf.mxu0 }
  0xaa   : > { %v949_v5 = vpop.f32.mrf.mxu1 }
  0xab   : > { %v950_v6 = vadd.f32 %v949_v5, %v860_v2  ;;  %v1441_v2 = vld [vmem:[%s1876_s8 + $0x108] sm:$0xf]  ;;  %v1497_v5 = vld [vmem:[%s1876_s8 + $0x170] sm:$0xf] }
  0xac   : > { %899 = vmatmul.bf16.gmra.mxu0 %v1406_v0  ;;  %1097 = vmatmul.bf16.vlgmr.msra.gmra.mxu3 %v1462_v1 }
  0xad   : > { %988 = vmatmul.bf16.gmra.mxu1 %v1410_v3  ;;  %v1631_v3 = vld [vmem:[%s1876_s8 + $0x110] sm:$0xf0] }
  0xae   : > { %1077 = vmatmul.bf16.gmra.mxu2 %v1414_v4  ;;  %v1630_v4 = vld [vmem:[%s1876_s8 + $0x10c] sm:$0xf]  ;;  %v1442_v15 = vor.u32 %v1631_v3, %v1441_v2 }
  0xaf   : > { %v1984_v7 = vpop.f32.mrf.mxu3 }
  0xb1   : > { %v1038_v9 = vpop.f32.mrf.mxu2  ;;  %v862_v11 = vpop.f32.mrf.mxu0 }
  0xb2   : > { %v1039_v10 = vadd.f32 %v1038_v9, %v950_v6  ;;  %v951_v12 = vpop.f32.mrf.mxu1  ;;  %v1644_v6 = vld [vmem:[%s1876_s8 + $0x178] sm:$0xf0]  ;;  %v1443_v9 = vld [vmem:[%s1876_s8 + $0x114] sm:$0xf0] }
  0xb3   : > { %v952_v22 = vadd.f32 %v951_v12, %v862_v11  ;;  %v1632_v11 = vld [vmem:[%s1876_s8 + $0x118] sm:$0xf0]  ;;  %v1498_v16 = vor.u32 %v1644_v6, %v1497_v5  ;;  %v1446_v19 = vor.u32 %v1630_v4, %v1443_v9 }
  0xb4   : > { %v1118_v13 = vadd.f32 %v1990_v8, %v1039_v10  ;;  %v1449_v10 = vld [vmem:[%s1876_s8 + $0x110] sm:$0xf] }
  0xb5   : > { %v1450_v20 = vor.u32 %v1632_v11, %v1449_v10 }
  0xb6   : > { %1150 = vst [vmem:[%s1995_s27] sm:$0xff] %v1118_v13 }
  0xb7   : > { %v2007_v24 = vpop.f32.mrf.mxu3 }
  0xb9   : > { %v1040_v25 = vpop.f32.mrf.mxu2  ;;  %v865_v28 = vpop.f32.mrf.mxu0 }
  0xba   : > { %v1041_v27 = vadd.f32 %v1040_v25, %v952_v22  ;;  %v954_v31 = vpop.f32.mrf.mxu1 }
  0xbb   : > { %v955_v33 = vadd.f32 %v954_v31, %v865_v28 }
  0xbc   : > { %v1119_v32 = vadd.f32 %v1990_v8, %v1041_v27  ;;  %904 = vmatmul.bf16.gmra.mxu0 %v1418_v23  ;;  %1102 = vmatmul.bf16.gmra.mxu3 %v1474_v26 }
  0xbd   : > { %993 = vmatmul.bf16.gmra.mxu1 %v1422_v29 }
  0xbe   : > { %1151 = vst [vmem:[%s1995_s27 + $0x8] sm:$0xff] %v1119_v32  ;;  %1082 = vmatmul.bf16.gmra.mxu2 %v1426_v30 }
  0xbf   : > { %v2011_v34 = vpop.f32.mrf.mxu3 }
  0xc1   : > { %v1043_v35 = vpop.f32.mrf.mxu2  ;;  %v867_v37 = vpop.f32.mrf.mxu0 }
  0xc2   : > { %v1044_v36 = vadd.f32 %v1043_v35, %v955_v33  ;;  %v956_v38 = vpop.f32.mrf.mxu1 }
  0xc3   : > { %v957_v48 = vadd.f32 %v956_v38, %v867_v37 }
  0xc4   : > { %v1120_v39 = vadd.f32 %v1990_v8, %v1044_v36 }
  0xc6   : > { %1152 = vst [vmem:[%s1995_s27 + $0x10] sm:$0xff] %v1120_v39 }
  0xc7   : > { %v2023_v49 = vpop.f32.mrf.mxu3 }
  0xc9   : > { %v1045_v50 = vpop.f32.mrf.mxu2  ;;  %v870_v54 = vpop.f32.mrf.mxu0 }
  0xca   : > { %v1046_v53 = vadd.f32 %v1045_v50, %v957_v48  ;;  %v959_v57 = vpop.f32.mrf.mxu1 }
  0xcb   : > { %v960_v59 = vadd.f32 %v959_v57, %v870_v54 }
  0xcc   : > { %v1121_v58 = vadd.f32 %v1990_v8, %v1046_v53  ;;  %909 = vmatmul.bf16.gmra.mxu0 %v1430_v51  ;;  %1107 = vmatmul.bf16.gmra.mxu3 %v1486_v52 }
  0xcd   : > { %998 = vmatmul.bf16.gmra.mxu1 %v1434_v55 }
  0xce   : > { %1153 = vst [vmem:[%s1995_s27 + $0x18] sm:$0xff] %v1121_v58  ;;  %1087 = vmatmul.bf16.gmra.mxu2 %v1438_v56 }
  0xcf   : > { %v2027_v60 = vpop.f32.mrf.mxu3 }
  0xd1   : > { %v1048_v61 = vpop.f32.mrf.mxu2  ;;  %v872_v63 = vpop.f32.mrf.mxu0 }
  0xd2   : > { %v1049_v62 = vadd.f32 %v1048_v61, %v960_v59  ;;  %v961_v0 = vpop.f32.mrf.mxu1 }
  0xd3   : > { %v962_v12 = vadd.f32 %v961_v0, %v872_v63 }
  0xd4   : > { %v1122_v1 = vadd.f32 %v1990_v8, %v1049_v62 }
  0xd6   : > { %1154 = vst [vmem:[%s1995_s27 + $0x20] sm:$0xff] %v1122_v1 }
  0xd7   : > { %v2039_v13 = vpop.f32.mrf.mxu3 }
  0xd9   : > { %v1050_v14 = vpop.f32.mrf.mxu2  ;;  %v875_v18 = vpop.f32.mrf.mxu0 }
  0xda   : > { %v1051_v17 = vadd.f32 %v1050_v14, %v962_v12  ;;  %v964_v21 = vpop.f32.mrf.mxu1 }
  0xdb   : > { %v965_v25 = vadd.f32 %v964_v21, %v875_v18 }
  0xdc   : > { %v1123_v22 = vadd.f32 %v1990_v8, %v1051_v17  ;;  %914 = vmatmul.bf16.gmra.mxu0 %v1442_v15  ;;  %1112 = vmatmul.bf16.gmra.mxu3 %v1498_v16 }
  0xdd   : > { %1003 = vmatmul.bf16.gmra.mxu1 %v1446_v19 }
  0xde   : > { %1155 = vst [vmem:[%s1995_s27 + $0x28] sm:$0xff] %v1123_v22  ;;  %1092 = vmatmul.bf16.gmra.mxu2 %v1450_v20 }
  0xdf   : > { %v2043_v23 = vpop.f32.mrf.mxu3 }
  0xe1   : > { %v1053_v26 = vpop.f32.mrf.mxu2  ;;  %v877_v28 = vpop.f32.mrf.mxu0 }
  0xe2   : > { %v1054_v27 = vadd.f32 %v1053_v26, %v965_v25  ;;  %v966_v29 = vpop.f32.mrf.mxu1 }
  0xe3   : > { %v967_v31 = vadd.f32 %v966_v29, %v877_v28 }
  0xe4   : > { %v1124_v30 = vadd.f32 %v1990_v8, %v1054_v27 }
  0xe6   : > { %1156 = vst [vmem:[%s1995_s27 + $0x30] sm:$0xff] %v1124_v30 }
  0xe7   : > { %v2047_v32 = vpop.f32.mrf.mxu3 }
  0xe9   : > { %v1055_v33 = vpop.f32.mrf.mxu2  ;;  %v880_v36 = vpop.f32.mrf.mxu0 }
  0xea   : > { %v1056_v35 = vadd.f32 %v1055_v33, %v967_v31  ;;  %v969_v37 = vpop.f32.mrf.mxu1 }
  0xeb   : > { %v970_v39 = vadd.f32 %v969_v37, %v880_v36 }
  0xec   : > { %v1125_v38 = vadd.f32 %v1990_v8, %v1056_v35 }
  0xee   : > { %1157 = vst [vmem:[%s1995_s27 + $0x38] sm:$0xff] %v1125_v38 }
  0xef   : > { %v2051_v40 = vpop.f32.mrf.mxu3 }
  0xf1   : > { %v1058_v41 = vpop.f32.mrf.mxu2  ;;  %v882_v43 = vpop.f32.mrf.mxu0 }
  0xf2   : > { %v1059_v42 = vadd.f32 %v1058_v41, %v970_v39  ;;  %v971_v44 = vpop.f32.mrf.mxu1 }
  0xf3   : > { %v972_v46 = vadd.f32 %v971_v44, %v882_v43 }
  0xf4   : > { %v1126_v45 = vadd.f32 %v1990_v8, %v1059_v42  ;;  %v1010_v42 = vadd.f32 %v2051_v40, %v1984_v7 }
  0xf6   : > { %1158 = vst [vmem:[%s1995_s27 + $0x40] sm:$0xff] %v1126_v45 }
  0xf7   : > { %v2055_v47 = vpop.f32.mrf.mxu3 }
  0xf9   : > { %v1060_v48 = vpop.f32.mrf.mxu2  ;;  %v885_v51 = vpop.f32.mrf.mxu0 }
  0xfa   : > { %v1061_v50 = vadd.f32 %v1060_v48, %v972_v46  ;;  %v974_v52 = vpop.f32.mrf.mxu1 }
  0xfb   : > { %v975_v54 = vadd.f32 %v974_v52, %v885_v51 }
  0xfc   : > { %v1127_v53 = vadd.f32 %v1990_v8, %v1061_v50 }
  0xfe   : > { %1159 = vst [vmem:[%s1995_s27 + $0x48] sm:$0xff] %v1127_v53  ;;  %v1012_v53 = vadd.f32 %v2055_v47, %v2007_v24 }
  0xff   : > { %v2059_v55 = vpop.f32.mrf.mxu3 }
 0x101   : > { %v1063_v56 = vpop.f32.mrf.mxu2  ;;  %v887_v58 = vpop.f32.mrf.mxu0 }
 0x102   : > { %v1064_v57 = vadd.f32 %v1063_v56, %v975_v54  ;;  %v976_v59 = vpop.f32.mrf.mxu1 }
 0x103   : > { %v977_v62 = vadd.f32 %v976_v59, %v887_v58 }
 0x104   : > { %v1128_v61 = vadd.f32 %v1990_v8, %v1064_v57 }
 0x106   : > { %1160 = vst [vmem:[%s1995_s27 + $0x50] sm:$0xff] %v1128_v61 }
 0x107   : > { %v2063_v63 = vpop.f32.mrf.mxu3 }
 0x109   : > { %v1065_v0 = vpop.f32.mrf.mxu2  ;;  %v890_v2 = vpop.f32.mrf.mxu0 }
 0x10a   : > { %v1066_v1 = vadd.f32 %v1065_v0, %v977_v62  ;;  %v979_v3 = vpop.f32.mrf.mxu1 }
 0x10b   : > { %v980_v5 = vadd.f32 %v979_v3, %v890_v2 }
 0x10c   : > { %v1129_v4 = vadd.f32 %v1990_v8, %v1066_v1  ;;  %v1015_v1 = vadd.f32 %v2059_v55, %v2011_v34 }
 0x10e   : > { %1161 = vst [vmem:[%s1995_s27 + $0x58] sm:$0xff] %v1129_v4 }
 0x10f   : > { %v2067_v6 = vpop.f32.mrf.mxu3 }
 0x111   : > { %v1068_v9 = vpop.f32.mrf.mxu2  ;;  %v892_v11 = vpop.f32.mrf.mxu0 }
 0x112   : > { %v1069_v10 = vadd.f32 %v1068_v9, %v980_v5  ;;  %v981_v12 = vpop.f32.mrf.mxu1 }
 0x113   : > { %v982_v15 = vadd.f32 %v981_v12, %v892_v11  ;;  %v1017_v11 = vadd.f32 %v2063_v63, %v2023_v49 }
 0x114   : > { %v1130_v14 = vadd.f32 %v1990_v8, %v1069_v10 }
 0x116   : > { %1162 = vst [vmem:[%s1995_s27 + $0x60] sm:$0xff] %v1130_v14 }
 0x117   : > { %v2071_v16 = vpop.f32.mrf.mxu3 }
 0x119   : > { %v1070_v17 = vpop.f32.mrf.mxu2  ;;  %v895_v19 = vpop.f32.mrf.mxu0 }
 0x11a   : > { %v1071_v18 = vadd.f32 %v1070_v17, %v982_v15  ;;  %v984_v20 = vpop.f32.mrf.mxu1 }
 0x11b   : > { %v985_v22 = vadd.f32 %v984_v20, %v895_v19 }
 0x11c   : > { %v1131_v21 = vadd.f32 %v1990_v8, %v1071_v18 }
 0x11e   : > { %1163 = vst [vmem:[%s1995_s27 + $0x68] sm:$0xff] %v1131_v21 }
 0x11f   : > { %v2075_v25 = vpop.f32.mrf.mxu3 }
 0x121   : > { %v1073_v26 = vpop.f32.mrf.mxu2  ;;  %v897_v28 = vpop.f32.mrf.mxu0 }
 0x122   : > { %v1074_v27 = vadd.f32 %v1073_v26, %v985_v22  ;;  %v986_v29 = vpop.f32.mrf.mxu1  ;;  %v1020_v22 = vadd.f32 %v2067_v6, %v2027_v60 }
 0x123   : > { %v987_v31 = vadd.f32 %v986_v29, %v897_v28 }
 0x124   : > { %v1132_v30 = vadd.f32 %v1990_v8, %v1074_v27 }
 0x126   : > { %1164 = vst [vmem:[%s1995_s27 + $0x70] sm:$0xff] %v1132_v30 }
 0x127   : > { %v2079_v33 = vpop.f32.mrf.mxu3 }
 0x129   : > { %v1075_v35 = vpop.f32.mrf.mxu2  ;;  %v900_v37 = vpop.f32.mrf.mxu0 }
 0x12a   : > { %v1076_v36 = vadd.f32 %v1075_v35, %v987_v31  ;;  %v989_v38 = vpop.f32.mrf.mxu1  ;;  %v1022_v35 = vadd.f32 %v2071_v16, %v2039_v13 }
 0x12b   : > { %v990_v41 = vadd.f32 %v989_v38, %v900_v37 }
 0x12c   : > { %v1133_v39 = vadd.f32 %v1990_v8, %v1076_v36 }
 0x12e   : > { %1165 = vst [vmem:[%s1995_s27 + $0x78] sm:$0xff] %v1133_v39 }
 0x12f   : > { %v1098_v43 = vpop.f32.mrf.mxu3 }
 0x130   : > { %v1099_v45 = vadd.f32 %v1098_v43, %v1010_v42 }
 0x131   : > { %v1078_v44 = vpop.f32.mrf.mxu2  ;;  %v902_v48 = vpop.f32.mrf.mxu0 }
 0x132   : > { %v1079_v46 = vadd.f32 %v1078_v44, %v990_v41  ;;  %v1142_v50 = vadd.f32 %v1990_v8, %v1099_v45  ;;  %v991_v51 = vpop.f32.mrf.mxu1  ;;  %v1025_v45 = vadd.f32 %v2075_v25, %v2043_v23 }
 0x133   : > { %v992_v54 = vadd.f32 %v991_v51, %v902_v48 }
 0x134   : > { %v1134_v52 = vadd.f32 %v1990_v8, %v1079_v46  ;;  %1174 = vst [vmem:[%s1995_s27 + $0xc0] sm:$0xff] %v1142_v50 }
 0x136   : > { %1166 = vst [vmem:[%s1995_s27 + $0x80] sm:$0xff] %v1134_v52 }
 0x137   : > { %v1100_v56 = vpop.f32.mrf.mxu3 }
 0x138   : > { %v1101_v40 = vadd.f32 %v1100_v56, %v1012_v53 }
 0x139   : > { %v1080_v7 = vpop.f32.mrf.mxu2  ;;  %v905_v58 = vpop.f32.mrf.mxu0 }
 0x13a   : > { %v1081_v57 = vadd.f32 %v1080_v7, %v992_v54  ;;  %v1143_v59 = vadd.f32 %v1990_v8, %v1101_v40  ;;  %v994_v61 = vpop.f32.mrf.mxu1  ;;  %v1027_v54 = vadd.f32 %v2079_v33, %v2047_v32 }
 0x13b   : > { %v995_v0 = vadd.f32 %v994_v61, %v905_v58 }
 0x13c   : > { %v1135_v62 = vadd.f32 %v1990_v8, %v1081_v57  ;;  %1175 = vst [vmem:[%s1995_s27 + $0xc8] sm:$0xff] %v1143_v59 }
 0x13e   : > { %1167 = vst [vmem:[%s1995_s27 + $0x88] sm:$0xff] %v1135_v62 }
 0x13f   : > { %v1103_v24 = vpop.f32.mrf.mxu3 }
 0x140   : > { %v1104_v2 = vadd.f32 %v1103_v24, %v1015_v1 }
 0x141   : > { %v1083_v47 = vpop.f32.mrf.mxu2  ;;  %v907_v4 = vpop.f32.mrf.mxu0 }
 0x142   : > { %v1084_v3 = vadd.f32 %v1083_v47, %v995_v0  ;;  %v1144_v5 = vadd.f32 %v1990_v8, %v1104_v2  ;;  %v996_v9 = vpop.f32.mrf.mxu1 }
 0x143   : > { %v997_v12 = vadd.f32 %v996_v9, %v907_v4 }
 0x144   : > { %v1136_v10 = vadd.f32 %v1990_v8, %v1084_v3  ;;  %1176 = vst [vmem:[%s1995_s27 + $0xd0] sm:$0xff] %v1144_v5 }
 0x146   : > { %1168 = vst [vmem:[%s1995_s27 + $0x90] sm:$0xff] %v1136_v10 }
 0x147   : > { %v1105_v14 = vpop.f32.mrf.mxu3 }
 0x148   : > { %v1106_v55 = vadd.f32 %v1105_v14, %v1017_v11 }
 0x149   : > { %v1085_v34 = vpop.f32.mrf.mxu2  ;;  %v910_v17 = vpop.f32.mrf.mxu0 }
 0x14a   : > { %v1086_v15 = vadd.f32 %v1085_v34, %v997_v12  ;;  %v1145_v18 = vadd.f32 %v1990_v8, %v1106_v55  ;;  %v999_v19 = vpop.f32.mrf.mxu1 }
 0x14b   : > { %v1000_v21 = vadd.f32 %v999_v19, %v910_v17 }
 0x14c   : > { %v1137_v20 = vadd.f32 %v1990_v8, %v1086_v15  ;;  %1177 = vst [vmem:[%s1995_s27 + $0xd8] sm:$0xff] %v1145_v18 }
 0x14e   : > { %1169 = vst [vmem:[%s1995_s27 + $0x98] sm:$0xff] %v1137_v20 }
 0x14f   : > { %v1108_v49 = vpop.f32.mrf.mxu3 }
 0x150   : > { %v1109_v26 = vadd.f32 %v1108_v49, %v1020_v22 }
 0x151   : > { %v1088_v63 = vpop.f32.mrf.mxu2  ;;  %v912_v28 = vpop.f32.mrf.mxu0 }
 0x152   : > { %v1089_v27 = vadd.f32 %v1088_v63, %v1000_v21  ;;  %v1146_v29 = vadd.f32 %v1990_v8, %v1109_v26  ;;  %v1001_v30 = vpop.f32.mrf.mxu1 }
 0x153   : > { %v1002_v36 = vadd.f32 %v1001_v30, %v912_v28 }
 0x154   : > { %v1138_v31 = vadd.f32 %v1990_v8, %v1089_v27  ;;  %1178 = vst [vmem:[%s1995_s27 + $0xe0] sm:$0xff] %v1146_v29 }
 0x156   : > { %1170 = vst [vmem:[%s1995_s27 + $0xa0] sm:$0xff] %v1138_v31 }
 0x157   : > { %v1110_v37 = vpop.f32.mrf.mxu3 }
 0x158   : > { %v1111_v6 = vadd.f32 %v1110_v37, %v1022_v35 }
 0x159   : > { %v1090_v60 = vpop.f32.mrf.mxu2  ;;  %v915_v41 = vpop.f32.mrf.mxu0 }
 0x15a   : > { %v1091_v38 = vadd.f32 %v1090_v60, %v1002_v36  ;;  %v1147_v39 = vadd.f32 %v1990_v8, %v1111_v6  ;;  %v1004_v42 = vpop.f32.mrf.mxu1 }
 0x15b   : > { %v1005_v44 = vadd.f32 %v1004_v42, %v915_v41 }
 0x15c   : > { %v1139_v43 = vadd.f32 %v1990_v8, %v1091_v38  ;;  %1179 = vst [vmem:[%s1995_s27 + $0xe8] sm:$0xff] %v1147_v39 }
 0x15e   : > { %1171 = vst [vmem:[%s1995_s27 + $0xa8] sm:$0xff] %v1139_v43 }
 0x15f   : > { %v1113_v13 = vpop.f32.mrf.mxu3 }
 0x160   : > { %v1114_v46 = vadd.f32 %v1113_v13, %v1025_v45 }
 0x161   : > { %v1093_v16 = vpop.f32.mrf.mxu2  ;;  %v917_v52 = vpop.f32.mrf.mxu0 }
 0x162   : > { %v1094_v48 = vadd.f32 %v1093_v16, %v1005_v44  ;;  %v1148_v50 = vadd.f32 %v1990_v8, %v1114_v46  ;;  %v1006_v53 = vpop.f32.mrf.mxu1 }
 0x163   : > { %v1007_v56 = vadd.f32 %v1006_v53, %v917_v52 }
 0x164   : > { %v1140_v51 = vadd.f32 %v1990_v8, %v1094_v48  ;;  %1180 = vst [vmem:[%s1995_s27 + $0xf0] sm:$0xff] %v1148_v50 }
 0x166   : > { %1172 = vst [vmem:[%s1995_s27 + $0xb0] sm:$0xff] %v1140_v51 }
 0x167   : > { %v1115_v7 = vpop.f32.mrf.mxu3 }
 0x168   : > { %v1116_v25 = vadd.f32 %v1115_v7, %v1027_v54 }
 0x169   : > { %v1095_v23 = vpop.f32.mrf.mxu2 }
 0x16a   : > { %v1096_v40 = vadd.f32 %v1095_v23, %v1007_v56  ;;  %v1149_v57 = vadd.f32 %v1990_v8, %v1116_v25 }
 0x16c   : > { %v1141_v58 = vadd.f32 %v1990_v8, %v1096_v40  ;;  %1181 = vst [vmem:[%s1995_s27 + $0xf8] sm:$0xff] %v1149_v57 }
 0x16e   : > { %1173 = vst [vmem:[%s1995_s27 + $0xb8] sm:$0xff] %v1141_v58 }
 0x16f PF: > { %s13_s14 = sadd.s32 1, %s1741_s14   ;;  %s2144_s12 = smov %s1737_s13 }
 0x170   : > { %p10_p5 = scmp.ge.s32.totalorder %s13_s14, 4   ;;  %s2145_s13 = smov %s2147_s15 }
 0x172   :  { %12 = sbr.rel (!%p10_p5) target bundleno = 2 (0x2), region = 72 }

// kernel: generator_forward.16
= control target key start
LH: loop header
LB: loop body
LE: loop exit
PB: predicated region body
PF: predicated region fallthrough
CT: control target
= control target key end

     0   :  { %s893_s0 = inlined_call_operand.vmem [shape: f32[512,128], index: 0, kind: input, shape index: {}]   ;;  %s894_s1 = inlined_call_operand.vmem [shape: f32[1,128], index: 1, kind: input, shape index: {}]   ;;  %s895_s2 = inlined_call_operand.vmem [shape: f32[1,128], index: 2, kind: input, shape index: {}]   ;;  %s896_s3 = inlined_call_operand.vmem [shape: f32[512,128], index: 3, kind: output, shape index: {}]  }
   0x1   :  { %v14_v0 = vld [vmem:[%s893_s0] sm:$0xff]  ;;  %v15_v3 = vld [vmem:[%s893_s0 + $0x8] sm:$0xff]  ;;  %v16_v6 = vld [vmem:[%s893_s0 + $0x10] sm:$0xff] }
   0x2   :  { %v374_v1 = vld [vmem:[%s894_s1] ss:$0 sm:$0xff]  ;;  %v17_v7 = vld [vmem:[%s893_s0 + $0x18] sm:$0xff]  ;;  %v19_v12 = vld [vmem:[%s893_s0 + $0x28] sm:$0xff] }
   0x3   :  { %v379_v2 = vld [vmem:[%s895_s2] ss:$0 sm:$0xff]  ;;  %v82_v4 = vmul.f32 %v374_v1, %v14_v0  ;;  %v83_v5 = vmul.f32 %v374_v1, %v15_v3  ;;  %v84_v9 = vmul.f32 %v374_v1, %v16_v6  ;;  %v85_v10 = vmul.f32 %v374_v1, %v17_v7  ;;  %v20_v13 = vld [vmem:[%s893_s0 + $0x30] sm:$0xff]  ;;  %v21_v14 = vld [vmem:[%s893_s0 + $0x38] sm:$0xff] }
   0x4   :  { %v18_v8 = vld [vmem:[%s893_s0 + $0x20] sm:$0xff]  ;;  %v87_v17 = vmul.f32 %v374_v1, %v19_v12  ;;  %v88_v18 = vmul.f32 %v374_v1, %v20_v13  ;;  %v89_v22 = vmul.f32 %v374_v1, %v21_v14  ;;  %v23_v24 = vld [vmem:[%s893_s0 + $0x48] sm:$0xff]  ;;  %v24_v29 = vld [vmem:[%s893_s0 + $0x50] sm:$0xff] }
   0x5   :  { %v86_v11 = vmul.f32 %v374_v1, %v18_v8  ;;  %v150_v15 = vadd.f32 %v379_v2, %v82_v4  ;;  %v151_v16 = vadd.f32 %v379_v2, %v83_v5  ;;  %v152_v19 = vadd.f32 %v379_v2, %v84_v9  ;;  %v22_v23 = vld [vmem:[%s893_s0 + $0x40] sm:$0xff]  ;;  %v25_v30 = vld [vmem:[%s893_s0 + $0x58] sm:$0xff]  ;;  %v27_v35 = vld [vmem:[%s893_s0 + $0x68] sm:$0xff] }
   0x6   :  { %v153_v20 = vadd.f32 %v379_v2, %v85_v10  ;;  %v155_v27 = vadd.f32 %v379_v2, %v87_v17  ;;  %v156_v28 = vadd.f32 %v379_v2, %v88_v18  ;;  %v26_v31 = vld [vmem:[%s893_s0 + $0x60] sm:$0xff]  ;;  %v157_v34 = vadd.f32 %v379_v2, %v89_v22  ;;  %v28_v36 = vld [vmem:[%s893_s0 + $0x70] sm:$0xff]  ;;  %v29_v41 = vld [vmem:[%s893_s0 + $0x78] sm:$0xff] }
   0x7   :  { %v154_v21 = vadd.f32 %v379_v2, %v86_v11  ;;  %v214_v25 = vmax.f32 %v150_v15, 0.0  ;;  %v215_v26 = vmax.f32 %v151_v16, 0.0  ;;  %v216_v32 = vmax.f32 %v152_v19, 0.0  ;;  %v30_v54 = vld [vmem:[%s893_s0 + $0x80] sm:$0xff]  ;;  %v31_v55 = vld [vmem:[%s893_s0 + $0x88] sm:$0xff]  ;;  %v32_v58 = vld [vmem:[%s893_s0 + $0x90] sm:$0xff] }
   0x8   :  { %v217_v33 = vmax.f32 %v153_v20, 0.0  ;;  %v219_v38 = vmax.f32 %v155_v27, 0.0  ;;  %v90_v39 = vmul.f32 %v374_v1, %v22_v23  ;;  %v91_v40 = vmul.f32 %v374_v1, %v23_v24  ;;  %v33_v59 = vld [vmem:[%s893_s0 + $0x98] sm:$0xff]  ;;  %v34_v62 = vld [vmem:[%s893_s0 + $0xa0] sm:$0xff]  ;;  %v35_v5 = vld [vmem:[%s893_s0 + $0xa8] sm:$0xff] }
   0x9   :  { %278 = vst [vmem:[%s896_s3] sm:$0xff] %v214_v25  ;;  %v218_v37 = vmax.f32 %v154_v21, 0.0  ;;  %v220_v42 = vmax.f32 %v156_v28, 0.0  ;;  %v92_v43 = vmul.f32 %v374_v1, %v24_v29  ;;  %v93_v44 = vmul.f32 %v374_v1, %v25_v30  ;;  %v36_v10 = vld [vmem:[%s893_s0 + $0xb0] sm:$0xff]  ;;  %v37_v14 = vld [vmem:[%s893_s0 + $0xb8] sm:$0xff]  ;;  %v38_v18 = vld [vmem:[%s893_s0 + $0xc0] sm:$0xff] }
   0xa   :  { %279 = vst [vmem:[%s896_s3 + $0x8] sm:$0xff] %v215_v26  ;;  %v94_v45 = vmul.f32 %v374_v1, %v26_v31  ;;  %v158_v46 = vadd.f32 %v379_v2, %v90_v39  ;;  %v159_v47 = vadd.f32 %v379_v2, %v91_v40  ;;  %v95_v48 = vmul.f32 %v374_v1, %v27_v35  ;;  %v39_v22 = vld [vmem:[%s893_s0 + $0xc8] sm:$0xff]  ;;  %v40_v26 = vld [vmem:[%s893_s0 + $0xd0] sm:$0xff]  ;;  %v41_v30 = vld [vmem:[%s893_s0 + $0xd8] sm:$0xff] }
   0xb   :  { %280 = vst [vmem:[%s896_s3 + $0x10] sm:$0xff] %v216_v32  ;;  %v96_v49 = vmul.f32 %v374_v1, %v28_v36  ;;  %v221_v50 = vmax.f32 %v157_v34, 0.0  ;;  %v160_v51 = vadd.f32 %v379_v2, %v92_v43  ;;  %v161_v52 = vadd.f32 %v379_v2, %v93_v44  ;;  %v42_v34 = vld [vmem:[%s893_s0 + $0xe0] sm:$0xff] }
   0xc   :  { %281 = vst [vmem:[%s896_s3 + $0x18] sm:$0xff] %v217_v33  ;;  %v97_v53 = vmul.f32 %v374_v1, %v29_v41  ;;  %v222_v56 = vmax.f32 %v158_v46, 0.0  ;;  %v162_v57 = vadd.f32 %v379_v2, %v94_v45  ;;  %v223_v60 = vmax.f32 %v159_v47, 0.0  ;;  %v45_v46 = vld [vmem:[%s893_s0 + $0xf8] sm:$0xff] }
   0xd   :  { %282 = vst [vmem:[%s896_s3 + $0x20] sm:$0xff] %v218_v37  ;;  %v163_v61 = vadd.f32 %v379_v2, %v95_v48  ;;  %v224_v63 = vmax.f32 %v160_v51, 0.0  ;;  %v164_v0 = vadd.f32 %v379_v2, %v96_v49  ;;  %v98_v3 = vmul.f32 %v374_v1, %v30_v54  ;;  %v47_v54 = vld [vmem:[%s893_s0 + $0x108] sm:$0xff] }
   0xe   :  { %283 = vst [vmem:[%s896_s3 + $0x28] sm:$0xff] %v219_v38  ;;  %v99_v4 = vmul.f32 %v374_v1, %v31_v55  ;;  %v225_v6 = vmax.f32 %v161_v52, 0.0  ;;  %v165_v7 = vadd.f32 %v379_v2, %v97_v53  ;;  %v100_v8 = vmul.f32 %v374_v1, %v32_v58  ;;  %v43_v38 = vld [vmem:[%s893_s0 + $0xe8] sm:$0xff]  ;;  %v48_v58 = vld [vmem:[%s893_s0 + $0x110] sm:$0xff] }
   0xf   :  { %284 = vst [vmem:[%s896_s3 + $0x30] sm:$0xff] %v220_v42  ;;  %v101_v9 = vmul.f32 %v374_v1, %v33_v59  ;;  %v226_v11 = vmax.f32 %v162_v57, 0.0  ;;  %v166_v12 = vadd.f32 %v379_v2, %v98_v3  ;;  %v102_v13 = vmul.f32 %v374_v1, %v34_v62  ;;  %v44_v42 = vld [vmem:[%s893_s0 + $0xf0] sm:$0xff]  ;;  %v49_v62 = vld [vmem:[%s893_s0 + $0x118] sm:$0xff] }
  0x10   :  { %285 = vst [vmem:[%s896_s3 + $0x38] sm:$0xff] %v221_v50  ;;  %v227_v15 = vmax.f32 %v163_v61, 0.0  ;;  %v167_v16 = vadd.f32 %v379_v2, %v99_v4  ;;  %v103_v17 = vmul.f32 %v374_v1, %v35_v5  ;;  %v228_v19 = vmax.f32 %v164_v0, 0.0  ;;  %v46_v50 = vld [vmem:[%s893_s0 + $0x100] sm:$0xff] }
  0x11   :  { %286 = vst [vmem:[%s896_s3 + $0x40] sm:$0xff] %v222_v56  ;;  %v168_v20 = vadd.f32 %v379_v2, %v100_v8  ;;  %v104_v21 = vmul.f32 %v374_v1, %v36_v10  ;;  %v229_v23 = vmax.f32 %v165_v7, 0.0  ;;  %v169_v24 = vadd.f32 %v379_v2, %v101_v9  ;;  %v50_v4 = vld [vmem:[%s893_s0 + $0x120] sm:$0xff]  ;;  %v51_v8 = vld [vmem:[%s893_s0 + $0x128] sm:$0xff] }
  0x12   :  { %287 = vst [vmem:[%s896_s3 + $0x48] sm:$0xff] %v223_v60  ;;  %v105_v25 = vmul.f32 %v374_v1, %v37_v14  ;;  %v230_v27 = vmax.f32 %v166_v12, 0.0  ;;  %v170_v28 = vadd.f32 %v379_v2, %v102_v13  ;;  %v106_v29 = vmul.f32 %v374_v1, %v38_v18  ;;  %v52_v12 = vld [vmem:[%s893_s0 + $0x130] sm:$0xff] }
  0x13   :  { %288 = vst [vmem:[%s896_s3 + $0x50] sm:$0xff] %v224_v63  ;;  %v231_v31 = vmax.f32 %v167_v16, 0.0  ;;  %v171_v32 = vadd.f32 %v379_v2, %v103_v17  ;;  %v107_v33 = vmul.f32 %v374_v1, %v39_v22  ;;  %v232_v35 = vmax.f32 %v168_v20, 0.0  ;;  %v53_v16 = vld [vmem:[%s893_s0 + $0x138] sm:$0xff]  ;;  %v54_v20 = vld [vmem:[%s893_s0 + $0x140] sm:$0xff] }
  0x14   :  { %289 = vst [vmem:[%s896_s3 + $0x58] sm:$0xff] %v225_v6  ;;  %v172_v36 = vadd.f32 %v379_v2, %v104_v21  ;;  %v108_v37 = vmul.f32 %v374_v1, %v40_v26  ;;  %v233_v39 = vmax.f32 %v169_v24, 0.0  ;;  %v173_v40 = vadd.f32 %v379_v2, %v105_v25  ;;  %v55_v24 = vld [vmem:[%s893_s0 + $0x148] sm:$0xff] }
  0x15   :  { %290 = vst [vmem:[%s896_s3 + $0x60] sm:$0xff] %v226_v11  ;;  %v109_v41 = vmul.f32 %v374_v1, %v41_v30  ;;  %v234_v43 = vmax.f32 %v170_v28, 0.0  ;;  %v174_v44 = vadd.f32 %v379_v2, %v106_v29  ;;  %v110_v45 = vmul.f32 %v374_v1, %v42_v34  ;;  %v56_v28 = vld [vmem:[%s893_s0 + $0x150] sm:$0xff] }
  0x16   :  { %291 = vst [vmem:[%s896_s3 + $0x68] sm:$0xff] %v227_v15  ;;  %v235_v47 = vmax.f32 %v171_v32, 0.0  ;;  %v175_v48 = vadd.f32 %v379_v2, %v107_v33  ;;  %v111_v49 = vmul.f32 %v374_v1, %v43_v38  ;;  %v236_v51 = vmax.f32 %v172_v36, 0.0  ;;  %v57_v32 = vld [vmem:[%s893_s0 + $0x158] sm:$0xff]  ;;  %v58_v36 = vld [vmem:[%s893_s0 + $0x160] sm:$0xff] }
  0x17   :  { %292 = vst [vmem:[%s896_s3 + $0x70] sm:$0xff] %v228_v19  ;;  %v176_v52 = vadd.f32 %v379_v2, %v108_v37  ;;  %v112_v53 = vmul.f32 %v374_v1, %v44_v42  ;;  %v237_v55 = vmax.f32 %v173_v40, 0.0  ;;  %v177_v56 = vadd.f32 %v379_v2, %v109_v41  ;;  %v59_v40 = vld [vmem:[%s893_s0 + $0x168] sm:$0xff] }
  0x18   :  { %293 = vst [vmem:[%s896_s3 + $0x78] sm:$0xff] %v229_v23  ;;  %v113_v57 = vmul.f32 %v374_v1, %v45_v46  ;;  %v238_v59 = vmax.f32 %v174_v44, 0.0  ;;  %v178_v60 = vadd.f32 %v379_v2, %v110_v45  ;;  %v114_v61 = vmul.f32 %v374_v1, %v46_v50  ;;  %v60_v44 = vld [vmem:[%s893_s0 + $0x170] sm:$0xff] }
  0x19   :  { %294 = vst [vmem:[%s896_s3 + $0x80] sm:$0xff] %v230_v27  ;;  %v239_v63 = vmax.f32 %v175_v48, 0.0  ;;  %v179_v0 = vadd.f32 %v379_v2, %v111_v49  ;;  %v115_v3 = vmul.f32 %v374_v1, %v47_v54  ;;  %v240_v5 = vmax.f32 %v176_v52, 0.0  ;;  %v61_v48 = vld [vmem:[%s893_s0 + $0x178] sm:$0xff]  ;;  %v62_v52 = vld [vmem:[%s893_s0 + $0x180] sm:$0xff] }
  0x1a   :  { %295 = vst [vmem:[%s896_s3 + $0x88] sm:$0xff] %v231_v31  ;;  %v180_v6 = vadd.f32 %v379_v2, %v112_v53  ;;  %v116_v7 = vmul.f32 %v374_v1, %v48_v58  ;;  %v241_v9 = vmax.f32 %v177_v56, 0.0  ;;  %v181_v10 = vadd.f32 %v379_v2, %v113_v57  ;;  %v63_v56 = vld [vmem:[%s893_s0 + $0x188] sm:$0xff] }
  0x1b   :  { %296 = vst [vmem:[%s896_s3 + $0x90] sm:$0xff] %v232_v35  ;;  %v117_v11 = vmul.f32 %v374_v1, %v49_v62  ;;  %v242_v13 = vmax.f32 %v178_v60, 0.0  ;;  %v182_v14 = vadd.f32 %v379_v2, %v114_v61  ;;  %v118_v15 = vmul.f32 %v374_v1, %v50_v4  ;;  %v64_v60 = vld [vmem:[%s893_s0 + $0x190] sm:$0xff] }
  0x1c   :  { %297 = vst [vmem:[%s896_s3 + $0x98] sm:$0xff] %v233_v39  ;;  %v243_v17 = vmax.f32 %v179_v0, 0.0  ;;  %v183_v18 = vadd.f32 %v379_v2, %v115_v3  ;;  %v119_v19 = vmul.f32 %v374_v1, %v51_v8  ;;  %v244_v21 = vmax.f32 %v180_v6, 0.0  ;;  %v65_v0 = vld [vmem:[%s893_s0 + $0x198] sm:$0xff] }
  0x1d   :  { %298 = vst [vmem:[%s896_s3 + $0xa0] sm:$0xff] %v234_v43  ;;  %v184_v22 = vadd.f32 %v379_v2, %v116_v7  ;;  %v120_v23 = vmul.f32 %v374_v1, %v52_v12  ;;  %v245_v25 = vmax.f32 %v181_v10, 0.0  ;;  %v185_v26 = vadd.f32 %v379_v2, %v117_v11  ;;  %v77_v3 = vld [vmem:[%s893_s0 + $0x1f8] sm:$0xff]  ;;  %v66_v7 = vld [vmem:[%s893_s0 + $0x1a0] sm:$0xff]  ;;  %v67_v11 = vld [vmem:[%s893_s0 + $0x1a8] sm:$0xff] }
  0x1e   :  { %299 = vst [vmem:[%s896_s3 + $0xa8] sm:$0xff] %v235_v47  ;;  %v121_v27 = vmul.f32 %v374_v1, %v53_v16  ;;  %v246_v29 = vmax.f32 %v182_v14, 0.0  ;;  %v186_v30 = vadd.f32 %v379_v2, %v118_v15  ;;  %v122_v31 = vmul.f32 %v374_v1, %v54_v20  ;;  %v68_v15 = vld [vmem:[%s893_s0 + $0x1b0] sm:$0xff]  ;;  %v69_v20 = vld [vmem:[%s893_s0 + $0x1b8] sm:$0xff] }
  0x1f   :  { %300 = vst [vmem:[%s896_s3 + $0xb0] sm:$0xff] %v236_v51  ;;  %v247_v33 = vmax.f32 %v183_v18, 0.0  ;;  %v187_v34 = vadd.f32 %v379_v2, %v119_v19  ;;  %v123_v35 = vmul.f32 %v374_v1, %v55_v24  ;;  %v248_v37 = vmax.f32 %v184_v22, 0.0  ;;  %v70_v24 = vld [vmem:[%s893_s0 + $0x1c0] sm:$0xff] }
  0x20   :  { %301 = vst [vmem:[%s896_s3 + $0xb8] sm:$0xff] %v237_v55  ;;  %v188_v38 = vadd.f32 %v379_v2, %v120_v23  ;;  %v124_v39 = vmul.f32 %v374_v1, %v56_v28  ;;  %v249_v41 = vmax.f32 %v185_v26, 0.0  ;;  %v189_v42 = vadd.f32 %v379_v2, %v121_v27 }
  0x21   :  { %302 = vst [vmem:[%s896_s3 + $0xc0] sm:$0xff] %v238_v59  ;;  %v125_v43 = vmul.f32 %v374_v1, %v57_v32  ;;  %v250_v45 = vmax.f32 %v186_v30, 0.0  ;;  %v190_v46 = vadd.f32 %v379_v2, %v122_v31  ;;  %v126_v47 = vmul.f32 %v374_v1, %v58_v36 }
  0x22   :  { %303 = vst [vmem:[%s896_s3 + $0xc8] sm:$0xff] %v239_v63  ;;  %v251_v49 = vmax.f32 %v187_v34, 0.0  ;;  %v191_v50 = vadd.f32 %v379_v2, %v123_v35  ;;  %v127_v51 = vmul.f32 %v374_v1, %v59_v40  ;;  %v252_v53 = vmax.f32 %v188_v38, 0.0 }
  0x23   :  { %304 = vst [vmem:[%s896_s3 + $0xd0] sm:$0xff] %v240_v5  ;;  %v192_v54 = vadd.f32 %v379_v2, %v124_v39  ;;  %v128_v55 = vmul.f32 %v374_v1, %v60_v44  ;;  %v253_v57 = vmax.f32 %v189_v42, 0.0  ;;  %v193_v58 = vadd.f32 %v379_v2, %v125_v43 }
  0x24   :  { %305 = vst [vmem:[%s896_s3 + $0xd8] sm:$0xff] %v241_v9  ;;  %v129_v59 = vmul.f32 %v374_v1, %v61_v48  ;;  %v254_v61 = vmax.f32 %v190_v46, 0.0  ;;  %v194_v62 = vadd.f32 %v379_v2, %v126_v47  ;;  %v130_v63 = vmul.f32 %v374_v1, %v62_v52 }
  0x25   :  { %306 = vst [vmem:[%s896_s3 + $0xe0] sm:$0xff] %v242_v13  ;;  %v255_v4 = vmax.f32 %v191_v50, 0.0  ;;  %v195_v5 = vadd.f32 %v379_v2, %v127_v51  ;;  %v131_v6 = vmul.f32 %v374_v1, %v63_v56  ;;  %v256_v8 = vmax.f32 %v192_v54, 0.0 }
  0x26   :  { %307 = vst [vmem:[%s896_s3 + $0xe8] sm:$0xff] %v243_v17  ;;  %v196_v9 = vadd.f32 %v379_v2, %v128_v55  ;;  %v132_v10 = vmul.f32 %v374_v1, %v64_v60  ;;  %v257_v12 = vmax.f32 %v193_v58, 0.0  ;;  %v197_v13 = vadd.f32 %v379_v2, %v129_v59 }
  0x27   :  { %308 = vst [vmem:[%s896_s3 + $0xf0] sm:$0xff] %v244_v21  ;;  %v133_v14 = vmul.f32 %v374_v1, %v65_v0  ;;  %v145_v16 = vmul.f32 %v374_v1, %v77_v3  ;;  %v258_v17 = vmax.f32 %v194_v62, 0.0  ;;  %v198_v18 = vadd.f32 %v379_v2, %v130_v63 }
  0x28   :  { %309 = vst [vmem:[%s896_s3 + $0xf8] sm:$0xff] %v245_v25  ;;  %v134_v19 = vmul.f32 %v374_v1, %v66_v7  ;;  %v259_v21 = vmax.f32 %v195_v5, 0.0  ;;  %v199_v22 = vadd.f32 %v379_v2, %v131_v6  ;;  %v135_v23 = vmul.f32 %v374_v1, %v67_v11 }
  0x29   :  { %310 = vst [vmem:[%s896_s3 + $0x100] sm:$0xff] %v246_v29  ;;  %v784_v25 = vadd.f32 %v379_v2, %v145_v16  ;;  %v260_v26 = vmax.f32 %v196_v9, 0.0  ;;  %v200_v27 = vadd.f32 %v379_v2, %v132_v10  ;;  %v136_v28 = vmul.f32 %v374_v1, %v68_v15  ;;  %v71_v29 = vld [vmem:[%s893_s0 + $0x1c8] sm:$0xff] }
  0x2a   :  { %311 = vst [vmem:[%s896_s3 + $0x108] sm:$0xff] %v247_v33  ;;  %v261_v30 = vmax.f32 %v197_v13, 0.0  ;;  %v201_v31 = vadd.f32 %v379_v2, %v133_v14  ;;  %v137_v32 = vmul.f32 %v374_v1, %v69_v20  ;;  %v72_v33 = vld [vmem:[%s893_s0 + $0x1d0] sm:$0xff]  ;;  %v262_v34 = vmax.f32 %v198_v18, 0.0 }
  0x2b   :  { %312 = vst [vmem:[%s896_s3 + $0x110] sm:$0xff] %v248_v37  ;;  %v202_v35 = vadd.f32 %v379_v2, %v134_v19  ;;  %v138_v36 = vmul.f32 %v374_v1, %v70_v24  ;;  %v73_v37 = vld [vmem:[%s893_s0 + $0x1d8] sm:$0xff]  ;;  %v263_v38 = vmax.f32 %v199_v22, 0.0  ;;  %v203_v39 = vadd.f32 %v379_v2, %v135_v23 }
  0x2c   :  { %313 = vst [vmem:[%s896_s3 + $0x118] sm:$0xff] %v249_v41  ;;  %v139_v40 = vmul.f32 %v374_v1, %v71_v29  ;;  %v74_v41 = vld [vmem:[%s893_s0 + $0x1e0] sm:$0xff]  ;;  %v264_v42 = vmax.f32 %v200_v27, 0.0  ;;  %v204_v43 = vadd.f32 %v379_v2, %v136_v28  ;;  %v140_v44 = vmul.f32 %v374_v1, %v72_v33 }
  0x2d   :  { %314 = vst [vmem:[%s896_s3 + $0x120] sm:$0xff] %v250_v45  ;;  %v75_v45 = vld [vmem:[%s893_s0 + $0x1e8] sm:$0xff]  ;;  %v265_v46 = vmax.f32 %v201_v31, 0.0  ;;  %v205_v47 = vadd.f32 %v379_v2, %v137_v32  ;;  %v141_v48 = vmul.f32 %v374_v1, %v73_v37  ;;  %v266_v50 = vmax.f32 %v202_v35, 0.0 }
  0x2e   :  { %315 = vst [vmem:[%s896_s3 + $0x128] sm:$0xff] %v251_v49  ;;  %v76_v49 = vld [vmem:[%s893_s0 + $0x1f0] sm:$0xff]  ;;  %v206_v51 = vadd.f32 %v379_v2, %v138_v36  ;;  %v142_v52 = vmul.f32 %v374_v1, %v74_v41  ;;  %v207_v54 = vadd.f32 %v379_v2, %v139_v40  ;;  %v143_v55 = vmul.f32 %v374_v1, %v75_v45 }
  0x2f   :  { %316 = vst [vmem:[%s896_s3 + $0x130] sm:$0xff] %v252_v53  ;;  %v267_v53 = vmax.f32 %v203_v39, 0.0  ;;  %v268_v56 = vmax.f32 %v204_v43, 0.0  ;;  %v144_v58 = vmul.f32 %v374_v1, %v76_v49  ;;  %v269_v59 = vmax.f32 %v205_v47, 0.0 }
  0x30   :  { %317 = vst [vmem:[%s896_s3 + $0x138] sm:$0xff] %v253_v57  ;;  %v208_v57 = vadd.f32 %v379_v2, %v140_v44  ;;  %v209_v60 = vadd.f32 %v379_v2, %v141_v48  ;;  %v210_v62 = vadd.f32 %v379_v2, %v142_v52  ;;  %v271_v63 = vmax.f32 %v207_v54, 0.0 }
  0x31   :  { %318 = vst [vmem:[%s896_s3 + $0x140] sm:$0xff] %v254_v61  ;;  %v270_v61 = vmax.f32 %v206_v51, 0.0  ;;  %v211_v1 = vadd.f32 %v379_v2, %v143_v55  ;;  %v212_v3 = vadd.f32 %v379_v2, %v144_v58  ;;  %v277_v7 = vmax.f32 %v784_v25, 0.0 }
  0x32   :  { %319 = vst [vmem:[%s896_s3 + $0x148] sm:$0xff] %v255_v4  ;;  %v272_v0 = vmax.f32 %v208_v57, 0.0  ;;  %v273_v4 = vmax.f32 %v209_v60, 0.0  ;;  %v274_v5 = vmax.f32 %v210_v62, 0.0 }
  0x33   :  { %320 = vst [vmem:[%s896_s3 + $0x150] sm:$0xff] %v256_v8  ;;  %v275_v6 = vmax.f32 %v211_v1, 0.0  ;;  %v276_v2 = vmax.f32 %v212_v3, 0.0 }
  0x34   :  { %321 = vst [vmem:[%s896_s3 + $0x158] sm:$0xff] %v257_v12 }
  0x35   :  { %322 = vst [vmem:[%s896_s3 + $0x160] sm:$0xff] %v258_v17 }
  0x36   :  { %323 = vst [vmem:[%s896_s3 + $0x168] sm:$0xff] %v259_v21 }
  0x37   :  { %324 = vst [vmem:[%s896_s3 + $0x170] sm:$0xff] %v260_v26 }
  0x38   :  { %325 = vst [vmem:[%s896_s3 + $0x178] sm:$0xff] %v261_v30 }
  0x39   :  { %326 = vst [vmem:[%s896_s3 + $0x180] sm:$0xff] %v262_v34 }
  0x3a   :  { %327 = vst [vmem:[%s896_s3 + $0x188] sm:$0xff] %v263_v38 }
  0x3b   :  { %328 = vst [vmem:[%s896_s3 + $0x190] sm:$0xff] %v264_v42 }
  0x3c   :  { %329 = vst [vmem:[%s896_s3 + $0x198] sm:$0xff] %v265_v46 }
  0x3d   :  { %330 = vst [vmem:[%s896_s3 + $0x1a0] sm:$0xff] %v266_v50 }
  0x3e   :  { %331 = vst [vmem:[%s896_s3 + $0x1a8] sm:$0xff] %v267_v53 }
  0x3f   :  { %332 = vst [vmem:[%s896_s3 + $0x1b0] sm:$0xff] %v268_v56 }
  0x40   :  { %333 = vst [vmem:[%s896_s3 + $0x1b8] sm:$0xff] %v269_v59 }
  0x41   :  { %334 = vst [vmem:[%s896_s3 + $0x1c0] sm:$0xff] %v270_v61 }
  0x42   :  { %335 = vst [vmem:[%s896_s3 + $0x1c8] sm:$0xff] %v271_v63 }
  0x43   :  { %336 = vst [vmem:[%s896_s3 + $0x1d0] sm:$0xff] %v272_v0 }
  0x44   :  { %337 = vst [vmem:[%s896_s3 + $0x1d8] sm:$0xff] %v273_v4 }
  0x45   :  { %338 = vst [vmem:[%s896_s3 + $0x1e0] sm:$0xff] %v274_v5 }
  0x46   :  { %339 = vst [vmem:[%s896_s3 + $0x1e8] sm:$0xff] %v275_v6 }
  0x47   :  { %340 = vst [vmem:[%s896_s3 + $0x1f0] sm:$0xff] %v276_v2 }
  0x48   :  { %341 = vst [vmem:[%s896_s3 + $0x1f8] sm:$0xff] %v277_v7 }

// kernel: tile.68
= control target key start
LH: loop header
LB: loop body
LE: loop exit
PB: predicated region body
PF: predicated region fallthrough
CT: control target
= control target key end

     0   :  { %s22_s0 = inlined_call_operand.vmem [shape: f32[3], index: 0, kind: input, shape index: {}]   ;;  %s23_s1 = inlined_call_operand.vmem [shape: f32[4,3], index: 1, kind: output, shape index: {}]  }
   0x1   :  { %v4_v0 = vld [vmem:[%s22_s0] ss:$0 sm:$0xff] }
   0x2   :  { %5 = vst [vmem:[%s23_s1] sm:$0xf] %v4_v0 }

// kernel: tile.69
= control target key start
LH: loop header
LB: loop body
LE: loop exit
PB: predicated region body
PF: predicated region fallthrough
CT: control target
= control target key end

     0   :  { %s37_s8 = smov 3   ;;  %s38_s9 = smov 6   ;;  %vm7_vm0 = vcmask 23552   ;;  %vm13_vm1 = vcmask 97352   ;;  %vm19_vm2 = vcmask 72752   ;;  %vm25_vm3 = vcmask 48152   ;;  %s55_s0 = inlined_call_operand.vmem [shape: f32[4,3], index: 0, kind: input, shape index: {}]   ;;  %s56_s1 = inlined_call_operand.vmem [shape: f32[12], index: 1, kind: output, shape index: {}]  }
   0x1   :  { %v4_v0 = vld [vmem:[%s55_s0] sm:$0xf]  ;;  %s36_s0 = smov 9  }
   0x2   :  { %5 = vst [vmem:[#allocation1] sm:$0xf] %v4_v0 }
   0x9   :  { %v10_v1 = vld [vmem:[#allocation1 + $0x3] sm:$0x1]   ;;  %v22_v2 = vld [vmem:[#allocation1 + $0x1] sm:$0x1]   ;;  %v16_v3 = vld [vmem:[#allocation1 + $0x2] sm:$0x1]  }
   0xa   :  { %11 = vrot.lane.b32.xlu0 %v10_v1, %s36_s0  ;;  %23 = vrot.lane.b32.xlu1 %v22_v2, %s37_s8  ;;  %v6_v4 = vld [vmem:[#allocation1] sm:$0x1]  }
   0xb   :  { %8 = vst.msk [vmem:[#allocation0] sm:$0x1] %vm7_vm0, %v6_v4  }
  0x12   :  { %17 = vrot.lane.b32.xlu0 %v16_v3, %s38_s9 }
  0x7c   :  { %v12_v5 = vpop.permute.xlu0 %11   ;;  %v24_v6 = vpop.permute.xlu1 %23  }
  0x7d   :  { %14 = vst.msk [vmem:[#allocation0] sm:$0x1] %vm13_vm1, %v12_v5  }
  0x84   :  { %v18_v7 = vpop.permute.xlu0 %17  }
  0x85   :  { %20 = vst.msk [vmem:[#allocation0] sm:$0x1] %vm19_vm2, %v18_v7  }
  0x86   :  { %26 = vst.msk [vmem:[#allocation0] sm:$0x1] %vm25_vm3, %v24_v6  }
  0x8d   :  { %v29_v8 = vld [vmem:[#allocation0] sm:$0x1] }
  0x8e   :  { %32 = vst [vmem:[%s56_s1] sm:$0x1] %v29_v8 }

// kernel: generator_forward.17
= control target key start
LH: loop header
LB: loop body
LE: loop exit
PB: predicated region body
PF: predicated region fallthrough
CT: control target
= control target key end

     0   :  { %s2318_s12 = smov 0   ;;  %s2320_s13 = smov 0   ;;  %s2720_s0 = inlined_call_operand.vmem [shape: bf16[2048,256], index: 0, kind: input, shape index: {}]   ;;  %s2721_s1 = inlined_call_operand.vmem [shape: bf16[256,128], index: 1, kind: input, shape index: {}]   ;;  %s2722_s2 = inlined_call_operand.vmem [shape: f32[1,128], index: 2, kind: input, shape index: {}]   ;;  %s2723_s3 = inlined_call_operand.vmem [shape: f32[2048,128], index: 3, kind: output, shape index: {}]  }
   0x1   :  { %s2322_s14 = smov 0  }
   0x2 LB: > { %s32_s15 = sadd.s32 1, %s2292_s13  ;;  %p1696_p0 = scmp.ge.s32.totalorder %s2296_s14, 1  ;;  %s2296_s14 = sphi %s2322_s14, %s13_s14   ;;  %s2292_s13 = sphi %s2320_s13, %s2725_s13   ;;  %s2288_s12 = sphi %s2318_s12, %s2724_s12  }
   0x3   : > { %p34_p1 = scmp.ge.s32.totalorder %s32_s15, 4  ;;  %p191_p2 = scmp.lt.s32.totalorder %s2296_s14, 5 }
   0x5   : > { %s2727_s15 = smov (%p34_p1, %s32_s15), 0  ;;  %p192_p3 = pnand %p1696_p0, %p191_p2 }
   0x6   : > { %s1697_s28 = sshll.u32 (!%p192_p3), %s2288_s12, 6 }
   0x7   : > { %195 = sbr.rel (%p192_p3) target bundleno = 437 (0x1b5), region = 32  ;;  %p236_p4 = scmp.lt.s32.totalorder (!%p192_p3), %s1697_s28, 255 }
   0xc   : > { %v2096_v0 = vld [vmem:[%s2721_s1 + $0x38] sm:$0xff]  ;;  %v2095_v2 = vld [vmem:[%s2721_s1 + $0x30] sm:$0xff]  ;;  %v2094_v4 = vld [vmem:[%s2721_s1 + $0x28] sm:$0xff]  ;;  %s2729_s28 = smov (!%p236_p4, %s1697_s28), 255 }
   0xd   : > { %v2104_v1 = vld [vmem:[%s2721_s1 + $0x78] sm:$0xff]  ;;  %915 = vmatpush.bf16.msra.mxu0 %v2096_v0  ;;  %2105 = vmatpush.bf16.msra.mxu2 %v2096_v0  ;;  %v2103_v3 = vld [vmem:[%s2721_s1 + $0x70] sm:$0xff]  ;;  %v2102_v5 = vld [vmem:[%s2721_s1 + $0x68] sm:$0xff]  ;;  %s2024_s17 = sshll.u32 %s2729_s28, 3 }
   0xe   : > { %1084 = vmatpush.bf16.msra.mxu1 %v2104_v1  ;;  %2113 = vmatpush.bf16.msra.mxu3 %v2104_v1  ;;  %v2093_v6 = vld [vmem:[%s2721_s1 + $0x20] sm:$0xff]  ;;  %v2092_v8 = vld [vmem:[%s2721_s1 + $0x18] sm:$0xff]  ;;  %v2091_v10 = vld [vmem:[%s2721_s1 + $0x10] sm:$0xff]  ;;  %s2386_s22 = scalar_lea.vmem %s2720_s0, %s2024_s17  ;;  %s2463_s7 = scalar_lea.vmem %s2723_s3, %s2024_s17 }
   0xf   : > { %v2101_v7 = vld [vmem:[%s2721_s1 + $0x60] sm:$0xff]  ;;  %v2100_v9 = vld [vmem:[%s2721_s1 + $0x58] sm:$0xff]  ;;  %v2099_v11 = vld [vmem:[%s2721_s1 + $0x50] sm:$0xff] }
  0x10   : > { %v2090_v12 = vld [vmem:[%s2721_s1 + $0x8] sm:$0xff]  ;;  %v2089_v14 = vld [vmem:[%s2721_s1] sm:$0xff]  ;;  %v1712_v28 = vld [vmem:[%s2386_s22 + $0x10] sm:$0xf] }
  0x11   : > { %916 = vmatpush.bf16.msra.mxu0 %v2095_v2  ;;  %2106 = vmatpush.bf16.msra.mxu2 %v2095_v2  ;;  %v2098_v13 = vld [vmem:[%s2721_s1 + $0x48] sm:$0xff]  ;;  %v2097_v15 = vld [vmem:[%s2721_s1 + $0x40] sm:$0xff]  ;;  %v2028_v29 = vld [vmem:[%s2386_s22 + $0x14] sm:$0xf0] }
  0x12   : > { %1085 = vmatpush.bf16.msra.mxu1 %v2103_v3  ;;  %2114 = vmatpush.bf16.msra.mxu3 %v2103_v3  ;;  %v1704_v16 = vld [vmem:[%s2386_s22] sm:$0xf]  ;;  %v2026_v17 = vld [vmem:[%s2386_s22 + $0x4] sm:$0xf0]  ;;  %v2025_v20 = vld [vmem:[%s2386_s22 + $0x4] sm:$0xf]  ;;  %v1713_v36 = vor.u32 %v2028_v29, %v1712_v28 }
  0x13   : > { %v1832_v18 = vld [vmem:[%s2386_s22 + $0x100] sm:$0xf]  ;;  %v2058_v19 = vld [vmem:[%s2386_s22 + $0x104] sm:$0xf0]  ;;  %v1706_v21 = vld [vmem:[%s2386_s22 + $0x8] sm:$0xf0]  ;;  %v1705_v24 = vor.u32 %v2026_v17, %v1704_v16 }
  0x14   : > { %v2057_v22 = vld [vmem:[%s2386_s22 + $0x104] sm:$0xf]  ;;  %v1834_v23 = vld [vmem:[%s2386_s22 + $0x108] sm:$0xf0]  ;;  %v1833_v25 = vor.u32 %v2058_v19, %v1832_v18  ;;  %v1709_v26 = vor.u32 %v2025_v20, %v1706_v21  ;;  %v1840_v30 = vld [vmem:[%s2386_s22 + $0x110] sm:$0xf] }
  0x15   : > { %917 = vmatpush.bf16.msra.mxu0 %v2094_v4  ;;  %2107 = vmatpush.bf16.msra.mxu2 %v2094_v4  ;;  %v1837_v27 = vor.u32 %v2057_v22, %v1834_v23  ;;  %v2060_v31 = vld [vmem:[%s2386_s22 + $0x114] sm:$0xf0]  ;;  %v2027_v32 = vld [vmem:[%s2386_s22 + $0x14] sm:$0xf]  ;;  %v1714_v33 = vld [vmem:[%s2386_s22 + $0x18] sm:$0xf0] }
  0x16   : > { %1086 = vmatpush.bf16.msra.mxu1 %v2102_v5  ;;  %2115 = vmatpush.bf16.msra.mxu3 %v2102_v5  ;;  %v2059_v34 = vld [vmem:[%s2386_s22 + $0x114] sm:$0xf]  ;;  %v1842_v35 = vld [vmem:[%s2386_s22 + $0x118] sm:$0xf0]  ;;  %v1841_v37 = vor.u32 %v2060_v31, %v1840_v30  ;;  %v1717_v38 = vor.u32 %v2027_v32, %v1714_v33  ;;  %v1720_v40 = vld [vmem:[%s2386_s22 + $0x20] sm:$0xf] }
  0x17   : > { %v1845_v39 = vor.u32 %v2059_v34, %v1842_v35  ;;  %v2030_v41 = vld [vmem:[%s2386_s22 + $0x24] sm:$0xf0]  ;;  %v1848_v42 = vld [vmem:[%s2386_s22 + $0x120] sm:$0xf]  ;;  %v2029_v44 = vld [vmem:[%s2386_s22 + $0x24] sm:$0xf] }
  0x18   : > { %v2062_v43 = vld [vmem:[%s2386_s22 + $0x124] sm:$0xf0]  ;;  %v1722_v45 = vld [vmem:[%s2386_s22 + $0x28] sm:$0xf0]  ;;  %v2061_v46 = vld [vmem:[%s2386_s22 + $0x124] sm:$0xf]  ;;  %v1721_v48 = vor.u32 %v2030_v41, %v1720_v40 }
  0x19   : > { %918 = vmatpush.bf16.msra.mxu0 %v2093_v6  ;;  %2108 = vmatpush.bf16.msra.mxu2 %v2093_v6  ;;  %v1850_v47 = vld [vmem:[%s2386_s22 + $0x128] sm:$0xf0]  ;;  %v1849_v49 = vor.u32 %v2062_v43, %v1848_v42  ;;  %v1725_v50 = vor.u32 %v2029_v44, %v1722_v45  ;;  %v1728_v52 = vld [vmem:[%s2386_s22 + $0x30] sm:$0xf]  ;;  %v2032_v53 = vld [vmem:[%s2386_s22 + $0x34] sm:$0xf0] }
  0x1a   : > { %1087 = vmatpush.bf16.msra.mxu1 %v2101_v7  ;;  %2116 = vmatpush.bf16.msra.mxu3 %v2101_v7  ;;  %v1853_v51 = vor.u32 %v2061_v46, %v1850_v47  ;;  %v1856_v54 = vld [vmem:[%s2386_s22 + $0x130] sm:$0xf]  ;;  %v2064_v55 = vld [vmem:[%s2386_s22 + $0x134] sm:$0xf0]  ;;  %v2031_v56 = vld [vmem:[%s2386_s22 + $0x34] sm:$0xf]  ;;  %v1729_v60 = vor.u32 %v2032_v53, %v1728_v52 }
  0x1b   : > { %v1730_v57 = vld [vmem:[%s2386_s22 + $0x38] sm:$0xf0]  ;;  %v2063_v58 = vld [vmem:[%s2386_s22 + $0x134] sm:$0xf]  ;;  %v1857_v61 = vor.u32 %v2064_v55, %v1856_v54  ;;  %v1736_v0 = vld [vmem:[%s2386_s22 + $0x40] sm:$0xf] }
  0x1c   : > { %v1858_v59 = vld [vmem:[%s2386_s22 + $0x138] sm:$0xf0]  ;;  %v1733_v62 = vor.u32 %v2031_v56, %v1730_v57  ;;  %v2034_v1 = vld [vmem:[%s2386_s22 + $0x44] sm:$0xf0]  ;;  %v1864_v2 = vld [vmem:[%s2386_s22 + $0x140] sm:$0xf] }
  0x1d   : > { %919 = vmatpush.bf16.msra.mxu0 %v2092_v8  ;;  %2109 = vmatpush.bf16.msra.mxu2 %v2092_v8  ;;  %v1861_v63 = vor.u32 %v2063_v58, %v1858_v59  ;;  %v2066_v3 = vld [vmem:[%s2386_s22 + $0x144] sm:$0xf0]  ;;  %v2033_v4 = vld [vmem:[%s2386_s22 + $0x44] sm:$0xf]  ;;  %v1738_v5 = vld [vmem:[%s2386_s22 + $0x48] sm:$0xf0]  ;;  %v1737_v8 = vor.u32 %v2034_v1, %v1736_v0 }
  0x1e   : > { %1088 = vmatpush.bf16.msra.mxu1 %v2100_v9  ;;  %2117 = vmatpush.bf16.msra.mxu3 %v2100_v9  ;;  %v2065_v6 = vld [vmem:[%s2386_s22 + $0x144] sm:$0xf]  ;;  %v1866_v7 = vld [vmem:[%s2386_s22 + $0x148] sm:$0xf0]  ;;  %v1865_v9 = vor.u32 %v2066_v3, %v1864_v2  ;;  %v2035_v16 = vld [vmem:[%s2386_s22 + $0x54] sm:$0xf] }
  0x1f   : > { %v1746_v17 = vld [vmem:[%s2386_s22 + $0x58] sm:$0xf0]  ;;  %v2067_v18 = vld [vmem:[%s2386_s22 + $0x154] sm:$0xf]  ;;  %v2037_v28 = vld [vmem:[%s2386_s22 + $0x64] sm:$0xf] }
  0x20   : > { %v1874_v19 = vld [vmem:[%s2386_s22 + $0x158] sm:$0xf0]  ;;  %v1749_v22 = vor.u32 %v2035_v16, %v1746_v17  ;;  %v1754_v29 = vld [vmem:[%s2386_s22 + $0x68] sm:$0xf0]  ;;  %v2069_v30 = vld [vmem:[%s2386_s22 + $0x164] sm:$0xf] }
  0x21   : > { %920 = vmatpush.bf16.msra.mxu0 %v2091_v10  ;;  %2110 = vmatpush.bf16.msra.mxu2 %v2091_v10  ;;  %v1741_v10 = vor.u32 %v2033_v4, %v1738_v5  ;;  %v1877_v23 = vor.u32 %v2067_v18, %v1874_v19  ;;  %v1882_v31 = vld [vmem:[%s2386_s22 + $0x168] sm:$0xf0]  ;;  %v1757_v34 = vor.u32 %v2037_v28, %v1754_v29  ;;  %v2072_v40 = vld [vmem:[%s2386_s22 + $0x174] sm:$0xf0]  ;;  %v2039_v41 = vld [vmem:[%s2386_s22 + $0x74] sm:$0xf] }
  0x22   : > { %1089 = vmatpush.bf16.msra.mxu1 %v2099_v11  ;;  %2118 = vmatpush.bf16.msra.mxu3 %v2099_v11  ;;  %v1869_v11 = vor.u32 %v2065_v6, %v1866_v7  ;;  %v1885_v35 = vor.u32 %v2069_v30, %v1882_v31  ;;  %v1762_v42 = vld [vmem:[%s2386_s22 + $0x78] sm:$0xf0]  ;;  %v2071_v43 = vld [vmem:[%s2386_s22 + $0x174] sm:$0xf]  ;;  %v2074_v52 = vld [vmem:[%s2386_s22 + $0x184] sm:$0xf0] }
  0x23   : > { %v1890_v44 = vld [vmem:[%s2386_s22 + $0x178] sm:$0xf0]  ;;  %v1765_v47 = vor.u32 %v2039_v41, %v1762_v42  ;;  %v2041_v53 = vld [vmem:[%s2386_s22 + $0x84] sm:$0xf]  ;;  %v1770_v54 = vld [vmem:[%s2386_s22 + $0x88] sm:$0xf0] }
  0x24   : > { %v2073_v55 = vld [vmem:[%s2386_s22 + $0x184] sm:$0xf]  ;;  %v1898_v56 = vld [vmem:[%s2386_s22 + $0x188] sm:$0xf0]  ;;  %v2075_v16 = vld [vmem:[%s2386_s22 + $0x194] sm:$0xf] }
  0x25   : > { %921 = vmatpush.bf16.msra.mxu0 %v2090_v12  ;;  %2111 = vmatpush.bf16.msra.mxu2 %v2090_v12  ;;  %v1744_v12 = vld [vmem:[%s2386_s22 + $0x50] sm:$0xf]  ;;  %v1906_v17 = vld [vmem:[%s2386_s22 + $0x198] sm:$0xf0]  ;;  %v1784_v41 = vld [vmem:[%s2386_s22 + $0xa0] sm:$0xf] }
  0x26   : > { %1090 = vmatpush.bf16.msra.mxu1 %v2098_v13  ;;  %2119 = vmatpush.bf16.msra.mxu3 %v2098_v13  ;;  %v2036_v13 = vld [vmem:[%s2386_s22 + $0x54] sm:$0xf0]  ;;  %v2046_v42 = vld [vmem:[%s2386_s22 + $0xa4] sm:$0xf0] }
  0x27   : > { %v1745_v20 = vor.u32 %v2036_v13, %v1744_v12  ;;  %v1904_v12 = vld [vmem:[%s2386_s22 + $0x190] sm:$0xf]  ;;  %v2076_v13 = vld [vmem:[%s2386_s22 + $0x194] sm:$0xf0] }
  0x29   : > { %922 = vmatpush.bf16.msra.mxu0 %v2089_v14  ;;  %2112 = vmatpush.bf16.msra.mxu2 %v2089_v14  ;;  %v1872_v14 = vld [vmem:[%s2386_s22 + $0x150] sm:$0xf] }
  0x2a   : > { %1091 = vmatpush.bf16.msra.mxu1 %v2097_v15  ;;  %2120 = vmatpush.bf16.msra.mxu3 %v2097_v15  ;;  %v2068_v15 = vld [vmem:[%s2386_s22 + $0x154] sm:$0xf0] }
  0x2b   : > { %v1873_v21 = vor.u32 %v2068_v15, %v1872_v14  ;;  %v2043_v14 = vld [vmem:[%s2386_s22 + $0x94] sm:$0xf]  ;;  %v1778_v15 = vld [vmem:[%s2386_s22 + $0x98] sm:$0xf0] }
  0x2c   : > { %923 = vmatmul.bf16.vlgmr.msra.gmra.mxu0 %v1705_v24  ;;  %1003 = vmatmul.bf16.vlgmr.msra.gmra.mxu2 %v1833_v25  ;;  %v1752_v24 = vld [vmem:[%s2386_s22 + $0x60] sm:$0xf]  ;;  %v2038_v25 = vld [vmem:[%s2386_s22 + $0x64] sm:$0xf0] }
  0x2d   : > { %1092 = vmatmul.bf16.vlgmr.msra.gmra.mxu1 %v1709_v26  ;;  %1172 = vmatmul.bf16.vlgmr.msra.gmra.mxu3 %v1837_v27  ;;  %v1880_v26 = vld [vmem:[%s2386_s22 + $0x160] sm:$0xf]  ;;  %v2070_v27 = vld [vmem:[%s2386_s22 + $0x164] sm:$0xf0]  ;;  %v1753_v32 = vor.u32 %v2038_v25, %v1752_v24  ;;  %v1781_v24 = vor.u32 %v2043_v14, %v1778_v15  ;;  %v1909_v25 = vor.u32 %v2075_v16, %v1906_v17  ;;  %v2080_v14 = vld [vmem:[%s2386_s22 + $0x1b4] sm:$0xf0] }
  0x2e   : > { %v1881_v33 = vor.u32 %v2070_v27, %v1880_v26  ;;  %v2047_v15 = vld [vmem:[%s2386_s22 + $0xb4] sm:$0xf]  ;;  %v1794_v16 = vld [vmem:[%s2386_s22 + $0xb8] sm:$0xf0] }
  0x2f   : > { %v2079_v17 = vld [vmem:[%s2386_s22 + $0x1b4] sm:$0xf] }
  0x3c   : > { %928 = vmatmul.bf16.gmra.mxu0 %v1713_v36  ;;  %1008 = vmatmul.bf16.gmra.mxu2 %v1841_v37  ;;  %v2456_v36 = vld [vmem:[%s2722_s2] ss:$0 sm:$0xff]  ;;  %v1760_v37 = vld [vmem:[%s2386_s22 + $0x70] sm:$0xf] }
  0x3d   : > { %1097 = vmatmul.bf16.gmra.mxu1 %v1717_v38  ;;  %1177 = vmatmul.bf16.gmra.mxu3 %v1845_v39  ;;  %295 = vst [vmem:[%s2463_s7 + $0xa0] sm:$0xff] %v2456_v36  ;;  %v2040_v38 = vld [vmem:[%s2386_s22 + $0x74] sm:$0xf0]  ;;  %v1888_v39 = vld [vmem:[%s2386_s22 + $0x170] sm:$0xf] }
  0x3e   : > { %296 = vst [vmem:[%s2463_s7 + $0xa8] sm:$0xff] %v2456_v36  ;;  %v1761_v45 = vor.u32 %v2040_v38, %v1760_v37  ;;  %v1889_v46 = vor.u32 %v2072_v40, %v1888_v39 }
  0x3f   : > { %297 = vst [vmem:[%s2463_s7 + $0xb0] sm:$0xff] %v2456_v36 }
  0x40   : > { %298 = vst [vmem:[%s2463_s7 + $0xb8] sm:$0xff] %v2456_v36 }
  0x41   : > { %299 = vst [vmem:[%s2463_s7 + $0xc0] sm:$0xff] %v2456_v36 }
  0x42   : > { %300 = vst [vmem:[%s2463_s7 + $0xc8] sm:$0xff] %v2456_v36 }
  0x43   : > { %301 = vst [vmem:[%s2463_s7 + $0xd0] sm:$0xff] %v2456_v36 }
  0x44   : > { %302 = vst [vmem:[%s2463_s7 + $0xd8] sm:$0xff] %v2456_v36 }
  0x45   : > { %303 = vst [vmem:[%s2463_s7 + $0xe0] sm:$0xff] %v2456_v36 }
  0x46   : > { %304 = vst [vmem:[%s2463_s7 + $0xe8] sm:$0xff] %v2456_v36 }
  0x47   : > { %305 = vst [vmem:[%s2463_s7 + $0xf0] sm:$0xff] %v2456_v36 }
  0x48   : > { %306 = vst [vmem:[%s2463_s7 + $0xf8] sm:$0xff] %v2456_v36 }
  0x49   : > { %328 = vst [vmem:[%s2463_s7 + $0x1a8] sm:$0xff] %v2456_v36 }
  0x4a   : > { %329 = vst [vmem:[%s2463_s7 + $0x1b0] sm:$0xff] %v2456_v36 }
  0x4b   : > { %330 = vst [vmem:[%s2463_s7 + $0x1b8] sm:$0xff] %v2456_v36 }
  0x4c   : > { %933 = vmatmul.bf16.gmra.mxu0 %v1721_v48  ;;  %1013 = vmatmul.bf16.gmra.mxu2 %v1849_v49  ;;  %v1893_v48 = vor.u32 %v2071_v43, %v1890_v44  ;;  %331 = vst [vmem:[%s2463_s7 + $0x1c0] sm:$0xff] %v2456_v36  ;;  %v1768_v49 = vld [vmem:[%s2386_s22 + $0x80] sm:$0xf] }
  0x4d   : > { %1102 = vmatmul.bf16.gmra.mxu1 %v1725_v50  ;;  %1182 = vmatmul.bf16.gmra.mxu3 %v1853_v51  ;;  %332 = vst [vmem:[%s2463_s7 + $0x1c8] sm:$0xff] %v2456_v36  ;;  %v2042_v50 = vld [vmem:[%s2386_s22 + $0x84] sm:$0xf0]  ;;  %v1896_v51 = vld [vmem:[%s2386_s22 + $0x180] sm:$0xf] }
  0x4e   : > { %333 = vst [vmem:[%s2463_s7 + $0x1d0] sm:$0xff] %v2456_v36  ;;  %v1769_v57 = vor.u32 %v2042_v50, %v1768_v49  ;;  %v1897_v58 = vor.u32 %v2074_v52, %v1896_v51  ;;  %v1912_v43 = vld [vmem:[%s2386_s22 + $0x1a0] sm:$0xf]  ;;  %v2077_v49 = vld [vmem:[%s2386_s22 + $0x1a4] sm:$0xf] }
  0x4f   : > { %334 = vst [vmem:[%s2463_s7 + $0x1d8] sm:$0xff] %v2456_v36  ;;  %v1914_v50 = vld [vmem:[%s2386_s22 + $0x1a8] sm:$0xf0] }
  0x50   : > { %335 = vst [vmem:[%s2463_s7 + $0x1e0] sm:$0xff] %v2456_v36 }
  0x51   : > { %336 = vst [vmem:[%s2463_s7 + $0x1e8] sm:$0xff] %v2456_v36 }
  0x52   : > { %337 = vst [vmem:[%s2463_s7 + $0x1f0] sm:$0xff] %v2456_v36 }
  0x53   : > { %338 = vst [vmem:[%s2463_s7 + $0x1f8] sm:$0xff] %v2456_v36 }
  0x5c   : > { %938 = vmatmul.bf16.gmra.mxu0 %v1729_v60  ;;  %1018 = vmatmul.bf16.gmra.mxu2 %v1857_v61  ;;  %v1773_v60 = vor.u32 %v2041_v53, %v1770_v54  ;;  %v1901_v61 = vor.u32 %v2073_v55, %v1898_v56  ;;  %v1785_v53 = vor.u32 %v2046_v42, %v1784_v41  ;;  %v1800_v42 = vld [vmem:[%s2386_s22 + $0xc0] sm:$0xf] }
  0x5d   : > { %1107 = vmatmul.bf16.gmra.mxu1 %v1733_v62  ;;  %1187 = vmatmul.bf16.gmra.mxu3 %v1861_v63 }
  0x6c   : > { %943 = vmatmul.bf16.gmra.mxu0 %v1737_v8  ;;  %1023 = vmatmul.bf16.gmra.mxu2 %v1865_v9  ;;  %v1776_v8 = vld [vmem:[%s2386_s22 + $0x90] sm:$0xf]  ;;  %v2044_v9 = vld [vmem:[%s2386_s22 + $0x94] sm:$0xf0] }
  0x6d   : > { %1112 = vmatmul.bf16.gmra.mxu1 %v1741_v10  ;;  %1192 = vmatmul.bf16.gmra.mxu3 %v1869_v11 }
  0x7c   : > { %948 = vmatmul.bf16.gmra.mxu0 %v1745_v20  ;;  %1028 = vmatmul.bf16.gmra.mxu2 %v1873_v21  ;;  %v1777_v20 = vor.u32 %v2044_v9, %v1776_v8  ;;  %v1905_v21 = vor.u32 %v2076_v13, %v1904_v12  ;;  %v1792_v9 = vld [vmem:[%s2386_s22 + $0xb0] sm:$0xf] }
  0x7d   : > { %1117 = vmatmul.bf16.gmra.mxu1 %v1749_v22  ;;  %1197 = vmatmul.bf16.gmra.mxu3 %v1877_v23 }
  0x8c   : > { %953 = vmatmul.bf16.gmra.mxu0 %v1753_v32  ;;  %1033 = vmatmul.bf16.gmra.mxu2 %v1881_v33 }
  0x8d   : > { %1122 = vmatmul.bf16.gmra.mxu1 %v1757_v34  ;;  %1202 = vmatmul.bf16.gmra.mxu3 %v1885_v35 }
  0x9c   : > { %958 = vmatmul.bf16.gmra.mxu0 %v1761_v45  ;;  %1038 = vmatmul.bf16.gmra.mxu2 %v1889_v46  ;;  %v2078_v46 = vld [vmem:[%s2386_s22 + $0x1a4] sm:$0xf0] }
  0x9d   : > { %1127 = vmatmul.bf16.gmra.mxu1 %v1765_v47  ;;  %1207 = vmatmul.bf16.gmra.mxu3 %v1893_v48  ;;  %v2045_v47 = vld [vmem:[%s2386_s22 + $0xa4] sm:$0xf]  ;;  %v1786_v48 = vld [vmem:[%s2386_s22 + $0xa8] sm:$0xf0]  ;;  %v1913_v54 = vor.u32 %v2078_v46, %v1912_v43  ;;  %v2050_v43 = vld [vmem:[%s2386_s22 + $0xc4] sm:$0xf0] }
  0xa9   : > { %v924_v59 = vpop.f32.mrf.mxu0 }
  0xaa   : > { %v1093_v62 = vpop.f32.mrf.mxu1 }
  0xab   : > { %v1094_v63 = vadd.f32 %v1093_v62, %v924_v59 }
  0xac   : > { %963 = vmatmul.bf16.gmra.mxu0 %v1769_v57  ;;  %1043 = vmatmul.bf16.gmra.mxu2 %v1897_v58  ;;  %v1789_v57 = vor.u32 %v2045_v47, %v1786_v48  ;;  %v1917_v58 = vor.u32 %v2077_v49, %v1914_v50  ;;  %v2082_v47 = vld [vmem:[%s2386_s22 + $0x1c4] sm:$0xf0]  ;;  %v2049_v48 = vld [vmem:[%s2386_s22 + $0xc4] sm:$0xf]  ;;  %v1802_v49 = vld [vmem:[%s2386_s22 + $0xc8] sm:$0xf0] }
  0xad   : > { %v1253_v0 = vadd.f32 %v2456_v36, %v1094_v63  ;;  %1132 = vmatmul.bf16.gmra.mxu1 %v1773_v60  ;;  %1212 = vmatmul.bf16.gmra.mxu3 %v1901_v61  ;;  %v2081_v50 = vld [vmem:[%s2386_s22 + $0x1c4] sm:$0xf] }
  0xaf   : > { %2146 = vtanh.f32 %v1253_v0  ;;  %v1004_v1 = vpop.f32.mrf.mxu2 }
  0xb0   : > { %v1173_v2 = vpop.f32.mrf.mxu3 }
  0xb1   : > { %v1174_v3 = vadd.f32 %v1173_v2, %v1004_v1  ;;  %v926_v4 = vpop.f32.mrf.mxu0 }
  0xb2   : > { %v1095_v5 = vpop.f32.mrf.mxu1 }
  0xb3   : > { %v1285_v6 = vadd.f32 %v2456_v36, %v1174_v3  ;;  %v1096_v7 = vadd.f32 %v1095_v5, %v926_v4 }
  0xb5   : > { %v2147_v10 = vpop.eup %2146  ;;  %2148 = vtanh.f32 %v1285_v6  ;;  %v1254_v11 = vadd.f32 %v2456_v36, %v1096_v7 }
  0xb6   : > { %1512 = vst [vmem:[%s2463_s7] sm:$0xff] %v2147_v10  ;;  %v2048_v10 = vld [vmem:[%s2386_s22 + $0xb4] sm:$0xf0] }
  0xb7   : > { %2150 = vtanh.f32 %v1254_v11  ;;  %v1006_v18 = vpop.f32.mrf.mxu2  ;;  %v1920_v11 = vld [vmem:[%s2386_s22 + $0x1b0] sm:$0xf] }
  0xb8   : > { %v1175_v19 = vpop.f32.mrf.mxu3 }
  0xb9   : > { %v1176_v22 = vadd.f32 %v1175_v19, %v1006_v18  ;;  %v929_v23 = vpop.f32.mrf.mxu0  ;;  %v1922_v18 = vld [vmem:[%s2386_s22 + $0x1b8] sm:$0xf0] }
  0xba   : > { %v1098_v26 = vpop.f32.mrf.mxu1 }
  0xbb   : > { %v2149_v27 = vpop.eup %2148  ;;  %v1286_v28 = vadd.f32 %v2456_v36, %v1176_v22  ;;  %v1099_v29 = vadd.f32 %v1098_v26, %v929_v23  ;;  %v1921_v22 = vor.u32 %v2080_v14, %v1920_v11  ;;  %v1925_v26 = vor.u32 %v2079_v17, %v1922_v18  ;;  %v2052_v11 = vld [vmem:[%s2386_s22 + $0xd4] sm:$0xf0]  ;;  %v1810_v17 = vld [vmem:[%s2386_s22 + $0xd8] sm:$0xf0]  ;;  %v2083_v18 = vld [vmem:[%s2386_s22 + $0x1d4] sm:$0xf] }
  0xbc   : > { %1544 = vst [vmem:[%s2463_s7 + $0x100] sm:$0xff] %v2149_v27  ;;  %968 = vmatmul.bf16.gmra.mxu0 %v1777_v20  ;;  %1048 = vmatmul.bf16.gmra.mxu2 %v1905_v21  ;;  %v1793_v21 = vor.u32 %v2048_v10, %v1792_v9  ;;  %v1808_v10 = vld [vmem:[%s2386_s22 + $0xd0] sm:$0xf] }
  0xbd   : > { %v2151_v30 = vpop.eup %2150  ;;  %2152 = vtanh.f32 %v1286_v28  ;;  %v1255_v31 = vadd.f32 %v2456_v36, %v1099_v29  ;;  %1137 = vmatmul.bf16.gmra.mxu1 %v1781_v24  ;;  %1217 = vmatmul.bf16.gmra.mxu3 %v1909_v25  ;;  %v1797_v25 = vor.u32 %v2047_v15, %v1794_v16  ;;  %v2084_v15 = vld [vmem:[%s2386_s22 + $0x1d4] sm:$0xf0]  ;;  %v2051_v16 = vld [vmem:[%s2386_s22 + $0xd4] sm:$0xf] }
  0xbe   : > { %1513 = vst [vmem:[%s2463_s7 + $0x8] sm:$0xff] %v2151_v30 }
  0xbf   : > { %2154 = vtanh.f32 %v1255_v31  ;;  %v1009_v32 = vpop.f32.mrf.mxu2 }
  0xc0   : > { %v1178_v33 = vpop.f32.mrf.mxu3 }
  0xc1   : > { %v1179_v34 = vadd.f32 %v1178_v33, %v1009_v32  ;;  %v931_v35 = vpop.f32.mrf.mxu0 }
  0xc2   : > { %v1100_v37 = vpop.f32.mrf.mxu1 }
  0xc3   : > { %v2153_v38 = vpop.eup %2152  ;;  %v1287_v39 = vadd.f32 %v2456_v36, %v1179_v34  ;;  %v1101_v40 = vadd.f32 %v1100_v37, %v931_v35 }
  0xc4   : > { %1545 = vst [vmem:[%s2463_s7 + $0x108] sm:$0xff] %v2153_v38 }
  0xc5   : > { %v2155_v44 = vpop.eup %2154  ;;  %2156 = vtanh.f32 %v1287_v39  ;;  %v1256_v45 = vadd.f32 %v2456_v36, %v1101_v40 }
  0xc6   : > { %1514 = vst [vmem:[%s2463_s7 + $0x10] sm:$0xff] %v2155_v44  ;;  %v1928_v44 = vld [vmem:[%s2386_s22 + $0x1c0] sm:$0xf] }
  0xc7   : > { %2158 = vtanh.f32 %v1256_v45  ;;  %v1011_v51 = vpop.f32.mrf.mxu2 }
  0xc8   : > { %v1180_v52 = vpop.f32.mrf.mxu3 }
  0xc9   : > { %v1181_v55 = vadd.f32 %v1180_v52, %v1011_v51  ;;  %v934_v56 = vpop.f32.mrf.mxu0  ;;  %v1930_v51 = vld [vmem:[%s2386_s22 + $0x1c8] sm:$0xf0] }
  0xca   : > { %v1103_v59 = vpop.f32.mrf.mxu1 }
  0xcb   : > { %v2157_v60 = vpop.eup %2156  ;;  %v1288_v61 = vadd.f32 %v2456_v36, %v1181_v55  ;;  %v1104_v62 = vadd.f32 %v1103_v59, %v934_v56  ;;  %v1929_v55 = vor.u32 %v2082_v47, %v1928_v44  ;;  %v1933_v59 = vor.u32 %v2081_v50, %v1930_v51  ;;  %v2054_v44 = vld [vmem:[%s2386_s22 + $0xe4] sm:$0xf0]  ;;  %v1818_v50 = vld [vmem:[%s2386_s22 + $0xe8] sm:$0xf0]  ;;  %v2085_v51 = vld [vmem:[%s2386_s22 + $0x1e4] sm:$0xf] }
  0xcc   : > { %1546 = vst [vmem:[%s2463_s7 + $0x110] sm:$0xff] %v2157_v60  ;;  %973 = vmatmul.bf16.gmra.mxu0 %v1785_v53  ;;  %1053 = vmatmul.bf16.gmra.mxu2 %v1913_v54  ;;  %v1801_v54 = vor.u32 %v2050_v43, %v1800_v42  ;;  %v1816_v43 = vld [vmem:[%s2386_s22 + $0xe0] sm:$0xf] }
  0xcd   : > { %v2159_v63 = vpop.eup %2158  ;;  %2160 = vtanh.f32 %v1288_v61  ;;  %v1257_v0 = vadd.f32 %v2456_v36, %v1104_v62  ;;  %1142 = vmatmul.bf16.gmra.mxu1 %v1789_v57  ;;  %1222 = vmatmul.bf16.gmra.mxu3 %v1917_v58  ;;  %v1805_v58 = vor.u32 %v2049_v48, %v1802_v49  ;;  %v2086_v48 = vld [vmem:[%s2386_s22 + $0x1e4] sm:$0xf0]  ;;  %v2053_v49 = vld [vmem:[%s2386_s22 + $0xe4] sm:$0xf] }
  0xce   : > { %1515 = vst [vmem:[%s2463_s7 + $0x18] sm:$0xff] %v2159_v63 }
  0xcf   : > { %2162 = vtanh.f32 %v1257_v0  ;;  %v1014_v1 = vpop.f32.mrf.mxu2 }
  0xd0   : > { %v1183_v2 = vpop.f32.mrf.mxu3 }
  0xd1   : > { %v1184_v3 = vadd.f32 %v1183_v2, %v1014_v1  ;;  %v936_v4 = vpop.f32.mrf.mxu0 }
  0xd2   : > { %v1105_v5 = vpop.f32.mrf.mxu1 }
  0xd3   : > { %v2161_v6 = vpop.eup %2160  ;;  %v1289_v7 = vadd.f32 %v2456_v36, %v1184_v3  ;;  %v1106_v8 = vadd.f32 %v1105_v5, %v936_v4 }
  0xd4   : > { %1547 = vst [vmem:[%s2463_s7 + $0x118] sm:$0xff] %v2161_v6 }
  0xd5   : > { %v2163_v12 = vpop.eup %2162  ;;  %2164 = vtanh.f32 %v1289_v7  ;;  %v1258_v13 = vadd.f32 %v2456_v36, %v1106_v8 }
  0xd6   : > { %1516 = vst [vmem:[%s2463_s7 + $0x20] sm:$0xff] %v2163_v12  ;;  %v1936_v12 = vld [vmem:[%s2386_s22 + $0x1d0] sm:$0xf] }
  0xd7   : > { %2166 = vtanh.f32 %v1258_v13  ;;  %v1016_v19 = vpop.f32.mrf.mxu2 }
  0xd8   : > { %v1185_v20 = vpop.f32.mrf.mxu3 }
  0xd9   : > { %v1186_v23 = vadd.f32 %v1185_v20, %v1016_v19  ;;  %v939_v24 = vpop.f32.mrf.mxu0  ;;  %v1938_v19 = vld [vmem:[%s2386_s22 + $0x1d8] sm:$0xf0] }
  0xda   : > { %v1108_v27 = vpop.f32.mrf.mxu1 }
  0xdb   : > { %v2165_v28 = vpop.eup %2164  ;;  %v1290_v29 = vadd.f32 %v2456_v36, %v1186_v23  ;;  %v1109_v30 = vadd.f32 %v1108_v27, %v939_v24  ;;  %v1937_v23 = vor.u32 %v2084_v15, %v1936_v12  ;;  %v1941_v27 = vor.u32 %v2083_v18, %v1938_v19  ;;  %v2056_v12 = vld [vmem:[%s2386_s22 + $0xf4] sm:$0xf0]  ;;  %v1826_v18 = vld [vmem:[%s2386_s22 + $0xf8] sm:$0xf0]  ;;  %v2087_v19 = vld [vmem:[%s2386_s22 + $0x1f4] sm:$0xf] }
  0xdc   : > { %1548 = vst [vmem:[%s2463_s7 + $0x120] sm:$0xff] %v2165_v28  ;;  %978 = vmatmul.bf16.gmra.mxu0 %v1793_v21  ;;  %1058 = vmatmul.bf16.gmra.mxu2 %v1921_v22  ;;  %v1809_v22 = vor.u32 %v2052_v11, %v1808_v10  ;;  %v1824_v11 = vld [vmem:[%s2386_s22 + $0xf0] sm:$0xf] }
  0xdd   : > { %v2167_v31 = vpop.eup %2166  ;;  %2168 = vtanh.f32 %v1290_v29  ;;  %v1259_v32 = vadd.f32 %v2456_v36, %v1109_v30  ;;  %1147 = vmatmul.bf16.gmra.mxu1 %v1797_v25  ;;  %1227 = vmatmul.bf16.gmra.mxu3 %v1925_v26  ;;  %v1813_v26 = vor.u32 %v2051_v16, %v1810_v17  ;;  %v2088_v16 = vld [vmem:[%s2386_s22 + $0x1f4] sm:$0xf0]  ;;  %v2055_v17 = vld [vmem:[%s2386_s22 + $0xf4] sm:$0xf] }
  0xde   : > { %1517 = vst [vmem:[%s2463_s7 + $0x28] sm:$0xff] %v2167_v31 }
  0xdf   : > { %2170 = vtanh.f32 %v1259_v32  ;;  %v1019_v33 = vpop.f32.mrf.mxu2 }
  0xe0   : > { %v1188_v34 = vpop.f32.mrf.mxu3 }
  0xe1   : > { %v1189_v35 = vadd.f32 %v1188_v34, %v1019_v33  ;;  %v941_v37 = vpop.f32.mrf.mxu0 }
  0xe2   : > { %v1110_v38 = vpop.f32.mrf.mxu1 }
  0xe3   : > { %v2169_v39 = vpop.eup %2168  ;;  %v1291_v40 = vadd.f32 %v2456_v36, %v1189_v35  ;;  %v1111_v41 = vadd.f32 %v1110_v38, %v941_v37 }
  0xe4   : > { %1549 = vst [vmem:[%s2463_s7 + $0x128] sm:$0xff] %v2169_v39 }
  0xe5   : > { %v2171_v45 = vpop.eup %2170  ;;  %2172 = vtanh.f32 %v1291_v40  ;;  %v1260_v46 = vadd.f32 %v2456_v36, %v1111_v41 }
  0xe6   : > { %1518 = vst [vmem:[%s2463_s7 + $0x30] sm:$0xff] %v2171_v45  ;;  %v1944_v45 = vld [vmem:[%s2386_s22 + $0x1e0] sm:$0xf] }
  0xe7   : > { %2174 = vtanh.f32 %v1260_v46  ;;  %v1021_v52 = vpop.f32.mrf.mxu2 }
  0xe8   : > { %v1190_v53 = vpop.f32.mrf.mxu3 }
  0xe9   : > { %v1191_v56 = vadd.f32 %v1190_v53, %v1021_v52  ;;  %v944_v57 = vpop.f32.mrf.mxu0  ;;  %v1946_v52 = vld [vmem:[%s2386_s22 + $0x1e8] sm:$0xf0] }
  0xea   : > { %v1113_v60 = vpop.f32.mrf.mxu1 }
  0xeb   : > { %v2173_v61 = vpop.eup %2172  ;;  %v1292_v62 = vadd.f32 %v2456_v36, %v1191_v56  ;;  %v1114_v63 = vadd.f32 %v1113_v60, %v944_v57  ;;  %v1945_v56 = vor.u32 %v2086_v48, %v1944_v45  ;;  %v1949_v60 = vor.u32 %v2085_v51, %v1946_v52 }
  0xec   : > { %1550 = vst [vmem:[%s2463_s7 + $0x130] sm:$0xff] %v2173_v61  ;;  %983 = vmatmul.bf16.gmra.mxu0 %v1801_v54  ;;  %1063 = vmatmul.bf16.gmra.mxu2 %v1929_v55  ;;  %v1817_v55 = vor.u32 %v2054_v44, %v1816_v43 }
  0xed   : > { %v2175_v0 = vpop.eup %2174  ;;  %2176 = vtanh.f32 %v1292_v62  ;;  %v1261_v1 = vadd.f32 %v2456_v36, %v1114_v63  ;;  %1152 = vmatmul.bf16.gmra.mxu1 %v1805_v58  ;;  %1232 = vmatmul.bf16.gmra.mxu3 %v1933_v59  ;;  %v1821_v59 = vor.u32 %v2053_v49, %v1818_v50 }
  0xee   : > { %1519 = vst [vmem:[%s2463_s7 + $0x38] sm:$0xff] %v2175_v0 }
  0xef   : > { %2178 = vtanh.f32 %v1261_v1  ;;  %v1024_v2 = vpop.f32.mrf.mxu2 }
  0xf0   : > { %v1193_v3 = vpop.f32.mrf.mxu3 }
  0xf1   : > { %v1194_v4 = vadd.f32 %v1193_v3, %v1024_v2  ;;  %v946_v5 = vpop.f32.mrf.mxu0 }
  0xf2   : > { %v1115_v6 = vpop.f32.mrf.mxu1 }
  0xf3   : > { %v2177_v7 = vpop.eup %2176  ;;  %v1293_v8 = vadd.f32 %v2456_v36, %v1194_v4  ;;  %v1116_v9 = vadd.f32 %v1115_v6, %v946_v5 }
  0xf4   : > { %1551 = vst [vmem:[%s2463_s7 + $0x138] sm:$0xff] %v2177_v7 }
  0xf5   : > { %v2179_v13 = vpop.eup %2178  ;;  %2180 = vtanh.f32 %v1293_v8  ;;  %v1262_v14 = vadd.f32 %v2456_v36, %v1116_v9 }
  0xf6   : > { %1520 = vst [vmem:[%s2463_s7 + $0x40] sm:$0xff] %v2179_v13  ;;  %v1952_v13 = vld [vmem:[%s2386_s22 + $0x1f0] sm:$0xf] }
  0xf7   : > { %2182 = vtanh.f32 %v1262_v14  ;;  %v1026_v20 = vpop.f32.mrf.mxu2 }
  0xf8   : > { %v1195_v21 = vpop.f32.mrf.mxu3 }
  0xf9   : > { %v1196_v24 = vadd.f32 %v1195_v21, %v1026_v20  ;;  %v949_v25 = vpop.f32.mrf.mxu0  ;;  %v1954_v20 = vld [vmem:[%s2386_s22 + $0x1f8] sm:$0xf0] }
  0xfa   : > { %v1118_v28 = vpop.f32.mrf.mxu1 }
  0xfb   : > { %v2181_v29 = vpop.eup %2180  ;;  %v1294_v30 = vadd.f32 %v2456_v36, %v1196_v24  ;;  %v1119_v31 = vadd.f32 %v1118_v28, %v949_v25  ;;  %v1953_v24 = vor.u32 %v2088_v16, %v1952_v13  ;;  %v1957_v28 = vor.u32 %v2087_v19, %v1954_v20 }
  0xfc   : > { %1552 = vst [vmem:[%s2463_s7 + $0x140] sm:$0xff] %v2181_v29  ;;  %988 = vmatmul.bf16.gmra.mxu0 %v1809_v22  ;;  %1068 = vmatmul.bf16.gmra.mxu2 %v1937_v23  ;;  %v1825_v23 = vor.u32 %v2056_v12, %v1824_v11 }
  0xfd   : > { %v2183_v32 = vpop.eup %2182  ;;  %2184 = vtanh.f32 %v1294_v30  ;;  %v1263_v33 = vadd.f32 %v2456_v36, %v1119_v31  ;;  %1157 = vmatmul.bf16.gmra.mxu1 %v1813_v26  ;;  %1237 = vmatmul.bf16.gmra.mxu3 %v1941_v27  ;;  %v1829_v27 = vor.u32 %v2055_v17, %v1826_v18 }
  0xfe   : > { %1521 = vst [vmem:[%s2463_s7 + $0x48] sm:$0xff] %v2183_v32 }
  0xff   : > { %2186 = vtanh.f32 %v1263_v33  ;;  %v1029_v34 = vpop.f32.mrf.mxu2 }
 0x100   : > { %v1198_v35 = vpop.f32.mrf.mxu3 }
 0x101   : > { %v1199_v37 = vadd.f32 %v1198_v35, %v1029_v34  ;;  %v951_v38 = vpop.f32.mrf.mxu0 }
 0x102   : > { %v1120_v39 = vpop.f32.mrf.mxu1 }
 0x103   : > { %v2185_v40 = vpop.eup %2184  ;;  %v1295_v41 = vadd.f32 %v2456_v36, %v1199_v37  ;;  %v1121_v42 = vadd.f32 %v1120_v39, %v951_v38 }
 0x104   : > { %1553 = vst [vmem:[%s2463_s7 + $0x148] sm:$0xff] %v2185_v40 }
 0x105   : > { %v2187_v46 = vpop.eup %2186  ;;  %2188 = vtanh.f32 %v1295_v41  ;;  %v1264_v47 = vadd.f32 %v2456_v36, %v1121_v42 }
 0x106   : > { %1522 = vst [vmem:[%s2463_s7 + $0x50] sm:$0xff] %v2187_v46 }
 0x107   : > { %2190 = vtanh.f32 %v1264_v47  ;;  %v1031_v53 = vpop.f32.mrf.mxu2 }
 0x108   : > { %v1200_v54 = vpop.f32.mrf.mxu3 }
 0x109   : > { %v1201_v57 = vadd.f32 %v1200_v54, %v1031_v53  ;;  %v954_v58 = vpop.f32.mrf.mxu0 }
 0x10a   : > { %v1123_v61 = vpop.f32.mrf.mxu1 }
 0x10b   : > { %v2189_v62 = vpop.eup %2188  ;;  %v1296_v63 = vadd.f32 %v2456_v36, %v1201_v57  ;;  %v1124_v0 = vadd.f32 %v1123_v61, %v954_v58 }
 0x10c   : > { %1554 = vst [vmem:[%s2463_s7 + $0x150] sm:$0xff] %v2189_v62  ;;  %993 = vmatmul.bf16.gmra.mxu0 %v1817_v55  ;;  %1073 = vmatmul.bf16.gmra.mxu2 %v1945_v56 }
 0x10d   : > { %v2191_v1 = vpop.eup %2190  ;;  %2192 = vtanh.f32 %v1296_v63  ;;  %v1265_v2 = vadd.f32 %v2456_v36, %v1124_v0  ;;  %1162 = vmatmul.bf16.gmra.mxu1 %v1821_v59  ;;  %1242 = vmatmul.bf16.gmra.mxu3 %v1949_v60 }
 0x10e   : > { %1523 = vst [vmem:[%s2463_s7 + $0x58] sm:$0xff] %v2191_v1 }
 0x10f   : > { %2194 = vtanh.f32 %v1265_v2  ;;  %v1034_v3 = vpop.f32.mrf.mxu2 }
 0x110   : > { %v1203_v4 = vpop.f32.mrf.mxu3 }
 0x111   : > { %v1204_v5 = vadd.f32 %v1203_v4, %v1034_v3  ;;  %v956_v6 = vpop.f32.mrf.mxu0 }
 0x112   : > { %v1125_v7 = vpop.f32.mrf.mxu1 }
 0x113   : > { %v2193_v8 = vpop.eup %2192  ;;  %v1297_v9 = vadd.f32 %v2456_v36, %v1204_v5  ;;  %v1126_v10 = vadd.f32 %v1125_v7, %v956_v6 }
 0x114   : > { %1555 = vst [vmem:[%s2463_s7 + $0x158] sm:$0xff] %v2193_v8 }
 0x115   : > { %v2195_v14 = vpop.eup %2194  ;;  %2196 = vtanh.f32 %v1297_v9  ;;  %v1266_v15 = vadd.f32 %v2456_v36, %v1126_v10 }
 0x116   : > { %1524 = vst [vmem:[%s2463_s7 + $0x60] sm:$0xff] %v2195_v14 }
 0x117   : > { %2198 = vtanh.f32 %v1266_v15  ;;  %v1036_v21 = vpop.f32.mrf.mxu2 }
 0x118   : > { %v1205_v22 = vpop.f32.mrf.mxu3 }
 0x119   : > { %v1206_v25 = vadd.f32 %v1205_v22, %v1036_v21  ;;  %v959_v26 = vpop.f32.mrf.mxu0 }
 0x11a   : > { %v1128_v29 = vpop.f32.mrf.mxu1 }
 0x11b   : > { %v2197_v30 = vpop.eup %2196  ;;  %v1298_v31 = vadd.f32 %v2456_v36, %v1206_v25  ;;  %v1129_v32 = vadd.f32 %v1128_v29, %v959_v26  ;;  %v359_v26 = vld [vmem:[%s2463_s7 + $0xa0] sm:$0xff] }
 0x11c   : > { %1556 = vst [vmem:[%s2463_s7 + $0x160] sm:$0xff] %v2197_v30  ;;  %998 = vmatmul.bf16.gmra.mxu0 %v1825_v23  ;;  %1078 = vmatmul.bf16.gmra.mxu2 %v1953_v24 }
 0x11d   : > { %v2199_v33 = vpop.eup %2198  ;;  %2200 = vtanh.f32 %v1298_v31  ;;  %v1267_v34 = vadd.f32 %v2456_v36, %v1129_v32  ;;  %1167 = vmatmul.bf16.gmra.mxu1 %v1829_v27  ;;  %1247 = vmatmul.bf16.gmra.mxu3 %v1957_v28 }
 0x11e   : > { %1525 = vst [vmem:[%s2463_s7 + $0x68] sm:$0xff] %v2199_v33 }
 0x11f   : > { %2202 = vtanh.f32 %v1267_v34  ;;  %v1039_v35 = vpop.f32.mrf.mxu2 }
 0x120   : > { %v1208_v37 = vpop.f32.mrf.mxu3 }
 0x121   : > { %v1209_v38 = vadd.f32 %v1208_v37, %v1039_v35  ;;  %v961_v39 = vpop.f32.mrf.mxu0 }
 0x122   : > { %v1130_v40 = vpop.f32.mrf.mxu1 }
 0x123   : > { %v2201_v41 = vpop.eup %2200  ;;  %v1299_v42 = vadd.f32 %v2456_v36, %v1209_v38  ;;  %v1131_v43 = vadd.f32 %v1130_v40, %v961_v39  ;;  %v360_v38 = vld [vmem:[%s2463_s7 + $0xa8] sm:$0xff] }
 0x124   : > { %1557 = vst [vmem:[%s2463_s7 + $0x168] sm:$0xff] %v2201_v41 }
 0x125   : > { %v2203_v44 = vpop.eup %2202  ;;  %2204 = vtanh.f32 %v1299_v42  ;;  %v1268_v45 = vadd.f32 %v2456_v36, %v1131_v43 }
 0x126   : > { %1526 = vst [vmem:[%s2463_s7 + $0x70] sm:$0xff] %v2203_v44 }
 0x127   : > { %2206 = vtanh.f32 %v1268_v45  ;;  %v1041_v46 = vpop.f32.mrf.mxu2 }
 0x128   : > { %v1210_v47 = vpop.f32.mrf.mxu3 }
 0x129   : > { %v1211_v48 = vadd.f32 %v1210_v47, %v1041_v46  ;;  %v964_v49 = vpop.f32.mrf.mxu0  ;;  %v392_v46 = vld [vmem:[%s2463_s7 + $0x1a8] sm:$0xff] }
 0x12a   : > { %v1133_v50 = vpop.f32.mrf.mxu1 }
 0x12b   : > { %v2205_v51 = vpop.eup %2204  ;;  %v1300_v52 = vadd.f32 %v2456_v36, %v1211_v48  ;;  %v1134_v53 = vadd.f32 %v1133_v50, %v964_v49  ;;  %v361_v50 = vld [vmem:[%s2463_s7 + $0xb0] sm:$0xff] }
 0x12c   : > { %1558 = vst [vmem:[%s2463_s7 + $0x170] sm:$0xff] %v2205_v51 }
 0x12d   : > { %v2207_v54 = vpop.eup %2206  ;;  %2208 = vtanh.f32 %v1300_v52  ;;  %v1269_v55 = vadd.f32 %v2456_v36, %v1134_v53 }
 0x12e   : > { %1527 = vst [vmem:[%s2463_s7 + $0x78] sm:$0xff] %v2207_v54 }
 0x12f   : > { %2210 = vtanh.f32 %v1269_v55  ;;  %v1044_v56 = vpop.f32.mrf.mxu2 }
 0x130   : > { %v1213_v57 = vpop.f32.mrf.mxu3 }
 0x131   : > { %v1214_v58 = vadd.f32 %v1213_v57, %v1044_v56  ;;  %v966_v59 = vpop.f32.mrf.mxu0  ;;  %v393_v57 = vld [vmem:[%s2463_s7 + $0x1b0] sm:$0xff] }
 0x132   : > { %v1135_v60 = vpop.f32.mrf.mxu1 }
 0x133   : > { %v2209_v61 = vpop.eup %2208  ;;  %v1301_v62 = vadd.f32 %v2456_v36, %v1214_v58  ;;  %v1136_v63 = vadd.f32 %v1135_v60, %v966_v59 }
 0x134   : > { %1559 = vst [vmem:[%s2463_s7 + $0x178] sm:$0xff] %v2209_v61  ;;  %v362_v61 = vld [vmem:[%s2463_s7 + $0xb8] sm:$0xff] }
 0x135   : > { %v2211_v0 = vpop.eup %2210  ;;  %2212 = vtanh.f32 %v1301_v62  ;;  %v1270_v1 = vadd.f32 %v2456_v36, %v1136_v63 }
 0x136   : > { %1528 = vst [vmem:[%s2463_s7 + $0x80] sm:$0xff] %v2211_v0 }
 0x137   : > { %2214 = vtanh.f32 %v1270_v1  ;;  %v1046_v2 = vpop.f32.mrf.mxu2 }
 0x138   : > { %v1215_v3 = vpop.f32.mrf.mxu3 }
 0x139   : > { %v1216_v4 = vadd.f32 %v1215_v3, %v1046_v2  ;;  %v969_v5 = vpop.f32.mrf.mxu0 }
 0x13a   : > { %v1138_v6 = vpop.f32.mrf.mxu1 }
 0x13b   : > { %v2213_v7 = vpop.eup %2212  ;;  %v1302_v8 = vadd.f32 %v2456_v36, %v1216_v4  ;;  %v1139_v9 = vadd.f32 %v1138_v6, %v969_v5  ;;  %v394_v5 = vld [vmem:[%s2463_s7 + $0x1b8] sm:$0xff] }
 0x13c   : > { %1560 = vst [vmem:[%s2463_s7 + $0x180] sm:$0xff] %v2213_v7 }
 0x13d   : > { %v2215_v10 = vpop.eup %2214  ;;  %2216 = vtanh.f32 %v1302_v8  ;;  %v1271_v11 = vadd.f32 %v2456_v36, %v1139_v9  ;;  %v363_v9 = vld [vmem:[%s2463_s7 + $0xc0] sm:$0xff] }
 0x13e   : > { %1529 = vst [vmem:[%s2463_s7 + $0x88] sm:$0xff] %v2215_v10 }
 0x13f   : > { %2218 = vtanh.f32 %v1271_v11  ;;  %v1049_v12 = vpop.f32.mrf.mxu2 }
 0x140   : > { %v1218_v13 = vpop.f32.mrf.mxu3 }
 0x141   : > { %v1219_v14 = vadd.f32 %v1218_v13, %v1049_v12  ;;  %v971_v15 = vpop.f32.mrf.mxu0 }
 0x142   : > { %v1140_v16 = vpop.f32.mrf.mxu1 }
 0x143   : > { %v2217_v17 = vpop.eup %2216  ;;  %v1303_v18 = vadd.f32 %v2456_v36, %v1219_v14  ;;  %v1141_v19 = vadd.f32 %v1140_v16, %v971_v15 }
 0x144   : > { %1561 = vst [vmem:[%s2463_s7 + $0x188] sm:$0xff] %v2217_v17  ;;  %v395_v17 = vld [vmem:[%s2463_s7 + $0x1c0] sm:$0xff] }
 0x145   : > { %v2219_v20 = vpop.eup %2218  ;;  %2220 = vtanh.f32 %v1303_v18  ;;  %v1272_v21 = vadd.f32 %v2456_v36, %v1141_v19 }
 0x146   : > { %1530 = vst [vmem:[%s2463_s7 + $0x90] sm:$0xff] %v2219_v20 }
 0x147   : > { %2222 = vtanh.f32 %v1272_v21  ;;  %v1051_v22 = vpop.f32.mrf.mxu2  ;;  %v364_v21 = vld [vmem:[%s2463_s7 + $0xc8] sm:$0xff] }
 0x148   : > { %v1220_v23 = vpop.f32.mrf.mxu3 }
 0x149   : > { %v1221_v24 = vadd.f32 %v1220_v23, %v1051_v22  ;;  %v974_v25 = vpop.f32.mrf.mxu0 }
 0x14a   : > { %v1143_v27 = vpop.f32.mrf.mxu1 }
 0x14b   : > { %v2221_v28 = vpop.eup %2220  ;;  %v1304_v29 = vadd.f32 %v2456_v36, %v1221_v24  ;;  %v1144_v30 = vadd.f32 %v1143_v27, %v974_v25 }
 0x14c   : > { %1562 = vst [vmem:[%s2463_s7 + $0x190] sm:$0xff] %v2221_v28 }
 0x14d   : > { %v2223_v31 = vpop.eup %2222  ;;  %2224 = vtanh.f32 %v1304_v29  ;;  %v1273_v32 = vadd.f32 %v1144_v30, %v359_v26  ;;  %v396_v29 = vld [vmem:[%s2463_s7 + $0x1c8] sm:$0xff] }
 0x14e   : > { %1531 = vst [vmem:[%s2463_s7 + $0x98] sm:$0xff] %v2223_v31 }
 0x14f   : > { %2226 = vtanh.f32 %v1273_v32  ;;  %v1054_v33 = vpop.f32.mrf.mxu2 }
 0x150   : > { %v1223_v34 = vpop.f32.mrf.mxu3 }
 0x151   : > { %v1224_v35 = vadd.f32 %v1223_v34, %v1054_v33  ;;  %v976_v37 = vpop.f32.mrf.mxu0  ;;  %v365_v33 = vld [vmem:[%s2463_s7 + $0xd0] sm:$0xff] }
 0x152   : > { %v1145_v39 = vpop.f32.mrf.mxu1 }
 0x153   : > { %v2225_v40 = vpop.eup %2224  ;;  %v1305_v41 = vadd.f32 %v2456_v36, %v1224_v35  ;;  %v1146_v42 = vadd.f32 %v1145_v39, %v976_v37 }
 0x154   : > { %1563 = vst [vmem:[%s2463_s7 + $0x198] sm:$0xff] %v2225_v40 }
 0x155   : > { %v2227_v43 = vpop.eup %2226  ;;  %2228 = vtanh.f32 %v1305_v41  ;;  %v1274_v44 = vadd.f32 %v1146_v42, %v360_v38  ;;  %v397_v42 = vld [vmem:[%s2463_s7 + $0x1d0] sm:$0xff] }
 0x156   : > { %1532 = vst [vmem:[%s2463_s7 + $0xa0] sm:$0xff] %v2227_v43 }
 0x157   : > { %2230 = vtanh.f32 %v1274_v44  ;;  %v1056_v45 = vpop.f32.mrf.mxu2 }
 0x158   : > { %v1225_v47 = vpop.f32.mrf.mxu3 }
 0x159   : > { %v1226_v48 = vadd.f32 %v1225_v47, %v1056_v45  ;;  %v979_v49 = vpop.f32.mrf.mxu0 }
 0x15a   : > { %v1148_v51 = vpop.f32.mrf.mxu1 }
 0x15b   : > { %v2229_v52 = vpop.eup %2228  ;;  %v1306_v36 = vadd.f32 %v1226_v48, %v392_v46  ;;  %v1149_v53 = vadd.f32 %v1148_v51, %v979_v49  ;;  %v366_v46 = vld [vmem:[%s2463_s7 + $0xd8] sm:$0xff] }
 0x15c   : > { %1564 = vst [vmem:[%s2463_s7 + $0x1a0] sm:$0xff] %v2229_v52 }
 0x15d   : > { %v2231_v54 = vpop.eup %2230  ;;  %2232 = vtanh.f32 %v1306_v36  ;;  %v1275_v55 = vadd.f32 %v1149_v53, %v361_v50  ;;  %v398_v53 = vld [vmem:[%s2463_s7 + $0x1d8] sm:$0xff] }
 0x15e   : > { %1533 = vst [vmem:[%s2463_s7 + $0xa8] sm:$0xff] %v2231_v54 }
 0x15f   : > { %2234 = vtanh.f32 %v1275_v55  ;;  %v1059_v56 = vpop.f32.mrf.mxu2 }
 0x160   : > { %v1228_v58 = vpop.f32.mrf.mxu3 }
 0x161   : > { %v1229_v59 = vadd.f32 %v1228_v58, %v1059_v56  ;;  %v981_v60 = vpop.f32.mrf.mxu0 }
 0x162   : > { %v1150_v62 = vpop.f32.mrf.mxu1 }
 0x163   : > { %v2233_v63 = vpop.eup %2232  ;;  %v1307_v0 = vadd.f32 %v1229_v59, %v393_v57  ;;  %v1151_v1 = vadd.f32 %v1150_v62, %v981_v60  ;;  %v367_v57 = vld [vmem:[%s2463_s7 + $0xe0] sm:$0xff] }
 0x164   : > { %1565 = vst [vmem:[%s2463_s7 + $0x1a8] sm:$0xff] %v2233_v63 }
 0x165   : > { %v2235_v2 = vpop.eup %2234  ;;  %2236 = vtanh.f32 %v1307_v0  ;;  %v1276_v3 = vadd.f32 %v1151_v1, %v362_v61  ;;  %v399_v1 = vld [vmem:[%s2463_s7 + $0x1e0] sm:$0xff] }
 0x166   : > { %1534 = vst [vmem:[%s2463_s7 + $0xb0] sm:$0xff] %v2235_v2 }
 0x167   : > { %2238 = vtanh.f32 %v1276_v3  ;;  %v1061_v4 = vpop.f32.mrf.mxu2 }
 0x168   : > { %v1230_v6 = vpop.f32.mrf.mxu3 }
 0x169   : > { %v1231_v7 = vadd.f32 %v1230_v6, %v1061_v4  ;;  %v984_v8 = vpop.f32.mrf.mxu0 }
 0x16a   : > { %v1153_v10 = vpop.f32.mrf.mxu1 }
 0x16b   : > { %v2237_v11 = vpop.eup %2236  ;;  %v1308_v12 = vadd.f32 %v1231_v7, %v394_v5  ;;  %v1154_v13 = vadd.f32 %v1153_v10, %v984_v8  ;;  %v368_v5 = vld [vmem:[%s2463_s7 + $0xe8] sm:$0xff] }
 0x16c   : > { %1566 = vst [vmem:[%s2463_s7 + $0x1b0] sm:$0xff] %v2237_v11 }
 0x16d   : > { %v2239_v14 = vpop.eup %2238  ;;  %2240 = vtanh.f32 %v1308_v12  ;;  %v1277_v15 = vadd.f32 %v1154_v13, %v363_v9  ;;  %v400_v13 = vld [vmem:[%s2463_s7 + $0x1e8] sm:$0xff] }
 0x16e   : > { %1535 = vst [vmem:[%s2463_s7 + $0xb8] sm:$0xff] %v2239_v14 }
 0x16f   : > { %2242 = vtanh.f32 %v1277_v15  ;;  %v1064_v16 = vpop.f32.mrf.mxu2 }
 0x170   : > { %v1233_v18 = vpop.f32.mrf.mxu3 }
 0x171   : > { %v1234_v19 = vadd.f32 %v1233_v18, %v1064_v16  ;;  %v986_v20 = vpop.f32.mrf.mxu0 }
 0x172   : > { %v1155_v22 = vpop.f32.mrf.mxu1 }
 0x173   : > { %v2241_v23 = vpop.eup %2240  ;;  %v1309_v24 = vadd.f32 %v1234_v19, %v395_v17  ;;  %v1156_v25 = vadd.f32 %v1155_v22, %v986_v20  ;;  %v369_v17 = vld [vmem:[%s2463_s7 + $0xf0] sm:$0xff] }
 0x174   : > { %1567 = vst [vmem:[%s2463_s7 + $0x1b8] sm:$0xff] %v2241_v23 }
 0x175   : > { %v2243_v26 = vpop.eup %2242  ;;  %2244 = vtanh.f32 %v1309_v24  ;;  %v1278_v27 = vadd.f32 %v1156_v25, %v364_v21  ;;  %v401_v25 = vld [vmem:[%s2463_s7 + $0x1f0] sm:$0xff] }
 0x176   : > { %1536 = vst [vmem:[%s2463_s7 + $0xc0] sm:$0xff] %v2243_v26 }
 0x177   : > { %2246 = vtanh.f32 %v1278_v27  ;;  %v1066_v28 = vpop.f32.mrf.mxu2 }
 0x178   : > { %v1235_v30 = vpop.f32.mrf.mxu3 }
 0x179   : > { %v1236_v31 = vadd.f32 %v1235_v30, %v1066_v28  ;;  %v989_v32 = vpop.f32.mrf.mxu0 }
 0x17a   : > { %v1158_v34 = vpop.f32.mrf.mxu1 }
 0x17b   : > { %v2245_v35 = vpop.eup %2244  ;;  %v1310_v37 = vadd.f32 %v1236_v31, %v396_v29  ;;  %v1159_v38 = vadd.f32 %v1158_v34, %v989_v32  ;;  %v370_v29 = vld [vmem:[%s2463_s7 + $0xf8] sm:$0xff] }
 0x17c   : > { %1568 = vst [vmem:[%s2463_s7 + $0x1c0] sm:$0xff] %v2245_v35 }
 0x17d   : > { %v2247_v39 = vpop.eup %2246  ;;  %2248 = vtanh.f32 %v1310_v37  ;;  %v1279_v40 = vadd.f32 %v1159_v38, %v365_v33  ;;  %v402_v38 = vld [vmem:[%s2463_s7 + $0x1f8] sm:$0xff] }
 0x17e   : > { %1537 = vst [vmem:[%s2463_s7 + $0xc8] sm:$0xff] %v2247_v39 }
 0x17f   : > { %2250 = vtanh.f32 %v1279_v40  ;;  %v1069_v41 = vpop.f32.mrf.mxu2 }
 0x180   : > { %v1238_v43 = vpop.f32.mrf.mxu3 }
 0x181   : > { %v1239_v44 = vadd.f32 %v1238_v43, %v1069_v41  ;;  %v991_v45 = vpop.f32.mrf.mxu0 }
 0x182   : > { %v1160_v47 = vpop.f32.mrf.mxu1 }
 0x183   : > { %v2249_v48 = vpop.eup %2248  ;;  %v1311_v49 = vadd.f32 %v1239_v44, %v397_v42  ;;  %v1161_v50 = vadd.f32 %v1160_v47, %v991_v45 }
 0x184   : > { %1569 = vst [vmem:[%s2463_s7 + $0x1c8] sm:$0xff] %v2249_v48 }
 0x185   : > { %v2251_v51 = vpop.eup %2250  ;;  %2252 = vtanh.f32 %v1311_v49  ;;  %v1280_v52 = vadd.f32 %v1161_v50, %v366_v46 }
 0x186   : > { %1538 = vst [vmem:[%s2463_s7 + $0xd0] sm:$0xff] %v2251_v51 }
 0x187   : > { %2254 = vtanh.f32 %v1280_v52  ;;  %v1071_v36 = vpop.f32.mrf.mxu2 }
 0x188   : > { %v1240_v54 = vpop.f32.mrf.mxu3 }
 0x189   : > { %v1241_v55 = vadd.f32 %v1240_v54, %v1071_v36  ;;  %v994_v56 = vpop.f32.mrf.mxu0 }
 0x18a   : > { %v1163_v58 = vpop.f32.mrf.mxu1 }
 0x18b   : > { %v2253_v59 = vpop.eup %2252  ;;  %v1312_v60 = vadd.f32 %v1241_v55, %v398_v53  ;;  %v1164_v61 = vadd.f32 %v1163_v58, %v994_v56 }
 0x18c   : > { %1570 = vst [vmem:[%s2463_s7 + $0x1d0] sm:$0xff] %v2253_v59 }
 0x18d   : > { %v2255_v62 = vpop.eup %2254  ;;  %2256 = vtanh.f32 %v1312_v60  ;;  %v1281_v63 = vadd.f32 %v1164_v61, %v367_v57 }
 0x18e   : > { %1539 = vst [vmem:[%s2463_s7 + $0xd8] sm:$0xff] %v2255_v62 }
 0x18f   : > { %2258 = vtanh.f32 %v1281_v63  ;;  %v1074_v0 = vpop.f32.mrf.mxu2 }
 0x190   : > { %v1243_v2 = vpop.f32.mrf.mxu3 }
 0x191   : > { %v1244_v3 = vadd.f32 %v1243_v2, %v1074_v0  ;;  %v996_v4 = vpop.f32.mrf.mxu0 }
 0x192   : > { %v1165_v6 = vpop.f32.mrf.mxu1 }
 0x193   : > { %v2257_v7 = vpop.eup %2256  ;;  %v1313_v8 = vadd.f32 %v1244_v3, %v399_v1  ;;  %v1166_v9 = vadd.f32 %v1165_v6, %v996_v4 }
 0x194   : > { %1571 = vst [vmem:[%s2463_s7 + $0x1d8] sm:$0xff] %v2257_v7 }
 0x195   : > { %v2259_v10 = vpop.eup %2258  ;;  %2260 = vtanh.f32 %v1313_v8  ;;  %v1282_v11 = vadd.f32 %v1166_v9, %v368_v5 }
 0x196   : > { %1540 = vst [vmem:[%s2463_s7 + $0xe0] sm:$0xff] %v2259_v10 }
 0x197   : > { %2262 = vtanh.f32 %v1282_v11  ;;  %v1076_v12 = vpop.f32.mrf.mxu2 }
 0x198   : > { %v1245_v14 = vpop.f32.mrf.mxu3 }
 0x199   : > { %v1246_v15 = vadd.f32 %v1245_v14, %v1076_v12  ;;  %v999_v16 = vpop.f32.mrf.mxu0 }
 0x19a   : > { %v1168_v18 = vpop.f32.mrf.mxu1 }
 0x19b   : > { %v2261_v19 = vpop.eup %2260  ;;  %v1314_v20 = vadd.f32 %v1246_v15, %v400_v13  ;;  %v1169_v21 = vadd.f32 %v1168_v18, %v999_v16 }
 0x19c   : > { %1572 = vst [vmem:[%s2463_s7 + $0x1e0] sm:$0xff] %v2261_v19 }
 0x19d   : > { %v2263_v22 = vpop.eup %2262  ;;  %2264 = vtanh.f32 %v1314_v20  ;;  %v1283_v23 = vadd.f32 %v1169_v21, %v369_v17 }
 0x19e   : > { %1541 = vst [vmem:[%s2463_s7 + $0xe8] sm:$0xff] %v2263_v22 }
 0x19f   : > { %2266 = vtanh.f32 %v1283_v23  ;;  %v1079_v24 = vpop.f32.mrf.mxu2 }
 0x1a0   : > { %v1248_v26 = vpop.f32.mrf.mxu3 }
 0x1a1   : > { %v1249_v27 = vadd.f32 %v1248_v26, %v1079_v24  ;;  %v1001_v28 = vpop.f32.mrf.mxu0 }
 0x1a2   : > { %v1170_v30 = vpop.f32.mrf.mxu1 }
 0x1a3   : > { %v2265_v31 = vpop.eup %2264  ;;  %v1315_v32 = vadd.f32 %v1249_v27, %v401_v25  ;;  %v1171_v33 = vadd.f32 %v1170_v30, %v1001_v28 }
 0x1a4   : > { %1573 = vst [vmem:[%s2463_s7 + $0x1e8] sm:$0xff] %v2265_v31 }
 0x1a5   : > { %v2267_v34 = vpop.eup %2266  ;;  %2268 = vtanh.f32 %v1315_v32  ;;  %v1284_v35 = vadd.f32 %v1171_v33, %v370_v29 }
 0x1a6   : > { %1542 = vst [vmem:[%s2463_s7 + $0xf0] sm:$0xff] %v2267_v34 }
 0x1a7   : > { %2270 = vtanh.f32 %v1284_v35  ;;  %v1081_v37 = vpop.f32.mrf.mxu2 }
 0x1a8   : > { %v1250_v39 = vpop.f32.mrf.mxu3 }
 0x1a9   : > { %v1251_v40 = vadd.f32 %v1250_v39, %v1081_v37 }
 0x1ab   : > { %v2269_v41 = vpop.eup %2268  ;;  %v1316_v42 = vadd.f32 %v1251_v40, %v402_v38 }
 0x1ac   : > { %1574 = vst [vmem:[%s2463_s7 + $0x1f0] sm:$0xff] %v2269_v41 }
 0x1ad   : > { %v2271_v43 = vpop.eup %2270  ;;  %2272 = vtanh.f32 %v1316_v42 }
 0x1ae   : > { %1543 = vst [vmem:[%s2463_s7 + $0xf8] sm:$0xff] %v2271_v43 }
 0x1b3   : > { %v2273_v44 = vpop.eup %2272 }
 0x1b4   : > { %1575 = vst [vmem:[%s2463_s7 + $0x1f8] sm:$0xff] %v2273_v44 }
 0x1b5 PF: > { %s13_s14 = sadd.s32 1, %s2296_s14   ;;  %s2724_s12 = smov %s2292_s13 }
 0x1b6   : > { %p10_p5 = scmp.ge.s32.totalorder %s13_s14, 6   ;;  %s2725_s13 = smov %s2727_s15 }
 0x1b8   :  { %12 = sbr.rel (!%p10_p5) target bundleno = 2 (0x2), region = 76 }

</bundles_post_ra>
